<compile_context>
chip_gen: v6e
topology: v6e:2x2x1
jax: 0.10.0
libtpu: 0.0.40
codegen_flags: <defaults>
</compile_context>

<pallas_src>
import functools

import jax
import jax.numpy as jnp
from jax.experimental import pallas as pl
from jax.experimental.pallas import tpu as pltpu

NUM_CHANNELS = 256
STRIDES = [4, 8, 16]


# ----------------------------------------------------------------------------
# Generation-aware VMEM budget (feedback: don't impose the v7x cap on v5e/v6e).
# ----------------------------------------------------------------------------
@functools.lru_cache(maxsize=1)
def _vmem_limit_bytes():
    limit = 32 * 1024 * 1024                      # safe everywhere (v7x: 64 MiB phys)
    try:
        cap = int(getattr(pltpu.get_tpu_info(), "vmem_capacity_bytes", 0))
        if cap >= 128 * 1024 * 1024:              # v5e / v6e
            limit = 64 * 1024 * 1024
    except Exception:
        pass
    return limit


# ----------------------------------------------------------------------------
# Tiling policy.
# ----------------------------------------------------------------------------
def _pick_tm(hw, tm_max=1024):
    """Tile of the flat per-batch spatial dim: full extent when small, else the
    largest 128-multiple divisor <= tm_max (lane-dense stores, no padding)."""
    if hw <= tm_max:
        return hw
    t = (tm_max // 128) * 128
    while t >= 128:
        if hw % t == 0:
            return t
        t -= 128
    return hw  # no aligned divisor: single full-extent block (always legal)


def _pick_th(h, w, tm_max=1024):
    """Output rows per tile for the k=2,s=2 stages: each grid step covers th*w
    flat positions; prefer th*w as a 128-multiple <= tm_max, th | h."""
    cap = max(1, tm_max // max(w, 1))
    for th in range(min(h, cap), 0, -1):
        if h % th == 0 and (th * w) % 128 == 0:
            return th
    return h  # full-extent block (always legal)


# ----------------------------------------------------------------------------
# Kernels.
# ----------------------------------------------------------------------------
def _stage1_kernel(x_ref, w_ref, b_ref, wl_ref, bl_ref, s_ref, f_ref):
    """One (batch, M-tile) step of:
         s = relu(cols @ w + b)        (stage conv as matmul, bf16 in / f32 acc)
         f = (s @ wl + bl).T           (fused FPN lateral 1x1, channel-major out)
    """
    acc = jnp.dot(x_ref[...], w_ref[...], preferred_element_type=jnp.float32)
    acc = jnp.maximum(acc + b_ref[...], 0.0)
    s_ref[...] = acc.astype(s_ref.dtype)                        # bf16, row-major
    lat = jnp.dot(acc.astype(jnp.bfloat16), wl_ref[...],
                  preferred_element_type=jnp.float32) + bl_ref[...]
    f_ref[...] = lat.T                                           # (C, tm) f32 — NCHW-ready


def _stage2_kernel(x0_ref, x1_ref, w_ref, b_ref, wl_ref, bl_ref, s_ref, f_ref):
    """k=2, s=2 conv (+ fused lateral) with NO im2col:
       x0/x1 are the even/odd input-row planes, last axis packed as (dj, c);
       acc = x0 @ w[di=0] + x1 @ w[di=1]."""
    th, w2, k2 = x0_ref.shape
    x0 = x0_ref[...].reshape(th * w2, k2)
    x1 = x1_ref[...].reshape(th * w2, k2)
    acc = jnp.dot(x0, w_ref[0], preferred_element_type=jnp.float32)
    acc = acc + jnp.dot(x1, w_ref[1], preferred_element_type=jnp.float32)
    acc = jnp.maximum(acc + b_ref[...], 0.0)
    s_ref[...] = acc.astype(s_ref.dtype)                         # bf16, row-major
    lat = jnp.dot(acc.astype(jnp.bfloat16), wl_ref[...],
                  preferred_element_type=jnp.float32) + bl_ref[...]
    f_ref[...] = lat.T                                           # (C, tm) f32


# ----------------------------------------------------------------------------
# pallas_call wrappers.
# ----------------------------------------------------------------------------
# TODO(synk): weight/bias specs (constant index_map) could use
# pipeline_mode=pl.Buffered(1) to avoid double-buffering ~1.3 MiB of constants;
# kept at the default for conservative lowering.

def _fused_stage1(cols, w, b, wl, bl, tm_max=1024):
    """cols: [B, HW, K] bf16.  Returns s [B, HW, C] bf16, f [B, C, HW] f32."""
    B, HW, K = cols.shape
    C = w.shape[1]
    tm = _pick_tm(HW, tm_max)
    grid = (B, HW // tm)
    return pl.pallas_call(
        _stage1_kernel,
        out_shape=(jax.ShapeDtypeStruct((B, HW, C), jnp.bfloat16),
                   jax.ShapeDtypeStruct((B, C, HW), jnp.float32)),
        grid=grid,
        in_specs=[
            pl.BlockSpec((None, tm, K), lambda bb, i: (bb, i, 0)),   # activation tile
            pl.BlockSpec((K, C), lambda bb, i: (0, 0)),              # stage weight
            pl.BlockSpec((1, C), lambda bb, i: (0, 0)),              # stage bias
            pl.BlockSpec((C, C), lambda bb, i: (0, 0)),              # lateral weight
            pl.BlockSpec((1, C), lambda bb, i: (0, 0)),              # lateral bias
        ],
        out_specs=(pl.BlockSpec((None, tm, C), lambda bb, i: (bb, i, 0)),
                   pl.BlockSpec((None, C, tm), lambda bb, i: (bb, 0, i))),
        compiler_params=pltpu.CompilerParams(
            dimension_semantics=("parallel", "parallel"),
            vmem_limit_bytes=_vmem_limit_bytes()),
    )(cols, w, b.reshape(1, C), wl, bl.reshape(1, C))


def _fused_stage2(s_prev, h, w, w_conv, b, wl, bl, tm_max=1024):
    """s_prev: [B, h*w, C] bf16, row-major (h, w, C).  k=2,s=2 conv + lateral.
       Returns s [B, (h//2)*(w//2), C] bf16, f [B, C, (h//2)*(w//2)] f32."""
    B, HW, C = s_prev.shape
    h2, w2 = h // 2, w // 2
    K2 = 2 * C
    # Free reshapes only (row-major regrouping, zero data movement):
    #   [B, h*w, C] == [B, h2, di(2), w2, (dj, c)(2C)]
    x_r = s_prev.reshape(B, h2, 2, w2, K2)
    w_r = w_conv.reshape(2, K2, C)          # K ordered (di, dj, c) -> split on di
    th = _pick_th(h2, w2, tm_max)
    tm = th * w2
    grid = (B, h2 // th)
    return pl.pallas_call(
        _stage2_kernel,
        out_shape=(jax.ShapeDtypeStruct((B, h2 * w2, C), jnp.bfloat16),
                   jax.ShapeDtypeStruct((B, C, h2 * w2), jnp.float32)),
        grid=grid,
        in_specs=[
            pl.BlockSpec((None, th, None, w2, K2),
                         lambda bb, i: (bb, i, 0, 0, 0)),            # even rows (di=0)
            pl.BlockSpec((None, th, None, w2, K2),
                         lambda bb, i: (bb, i, 1, 0, 0)),            # odd rows (di=1)
            pl.BlockSpec((2, K2, C), lambda bb, i: (0, 0, 0)),       # conv weight
            pl.BlockSpec((1, C), lambda bb, i: (0, 0)),              # conv bias
            pl.BlockSpec((C, C), lambda bb, i: (0, 0)),              # lateral weight
            pl.BlockSpec((1, C), lambda bb, i: (0, 0)),              # lateral bias
        ],
        out_specs=(pl.BlockSpec((None, tm, C), lambda bb, i: (bb, i, 0)),
                   pl.BlockSpec((None, C, tm), lambda bb, i: (bb, 0, i))),
        compiler_params=pltpu.CompilerParams(
            dimension_semantics=("parallel", "parallel"),
            vmem_limit_bytes=_vmem_limit_bytes()),
    )(x_r, x_r, w_r, b.reshape(1, C), wl, bl.reshape(1, C))


# ----------------------------------------------------------------------------
# Mask nearest-downsample: exact integer strides -> pure strided slice
# (equivalent of F.interpolate(mask[None].float(), size=(h, w)).to(bool)[0]).
# ----------------------------------------------------------------------------
def mask_downsample(mask_bool, h, w):
    B, H, W = mask_bool.shape
    if H % h == 0 and W % w == 0:
        return mask_bool[:, :: H // h, :: W // w]
    rows = (jnp.arange(h) * H) // h         # integer 'nearest' fallback
    cols = (jnp.arange(w) * W) // w
    return mask_bool[:, rows][:, :, cols]


# ----------------------------------------------------------------------------
# Synthetic SAM2 image-encoder backbone (deterministic bf16 params).
# ----------------------------------------------------------------------------
def init_params(key):
    ks = jax.random.split(key, 12)

    def nrm(k, shape):
        return (jax.random.normal(k, shape, jnp.float32) * 0.02).astype(jnp.bfloat16)

    def bias(k):
        return jax.random.normal(k, (NUM_CHANNELS,), jnp.float32) * 0.02

    p = {
        "w1": nrm(ks[0], (4 * 4 * 3, NUM_CHANNELS)),             # k=4, s=4, 3->256
        "b1": bias(ks[1]),
        "w2": nrm(ks[2], (2 * 2 * NUM_CHANNELS, NUM_CHANNELS)),  # k=2, s=2
        "b2": bias(ks[3]),
        "w3": nrm(ks[4], (2 * 2 * NUM_CHANNELS, NUM_CHANNELS)),  # k=2, s=2
        "b3": bias(ks[5]),
    }
    for i in range(3):
        p[f"wl{i}"] = nrm(ks[6 + 2 * i], (NUM_CHANNELS, NUM_CHANNELS))
        p[f"bl{i}"] = bias(ks[7 + 2 * i])
    return p


def sam2_backbone_forward(images_nchw, mask_bool, params):
    """Returns a list of 3 (feature_NCHW_f32, mask_bool) pairs (NestedTensor list)."""
    B, Cin, H, W = images_nchw.shape
    assert H % 16 == 0 and W % 16 == 0, "input spatial dims must be multiples of 16"
    x = images_nchw.astype(jnp.bfloat16)

    # Stage 1: conv k=4,s=4 (3->256) + fused lateral-0.  The im2col here touches
    # only the 3-channel raw image (one small XLA transpose pass).
    # TODO(synk): fold this cast+patchify into the stage-1 kernel via strip reads.
    h1, w1 = H // 4, W // 4
    cols1 = (x.reshape(B, Cin, h1, 4, w1, 4)
               .transpose(0, 2, 4, 3, 5, 1)
               .reshape(B, h1 * w1, 4 * 4 * Cin))        # K order (di, dj, c)
    s1, f1 = _fused_stage1(cols1, params["w1"], params["b1"],
                           params["wl0"], params["bl0"])

    # Stages 2/3: k=2,s=2 conv done as two MXU dots over row-parity planes —
    # the inter-stage "im2col" is pure (free) reshapes, no HBM reorg pass.
    h2, w2 = h1 // 2, w1 // 2
    s2, f2 = _fused_stage2(s1, h1, w1, params["w2"], params["b2"],
                           params["wl1"], params["bl1"])
    h3, w3 = h2 // 2, w2 // 2
    _, f3 = _fused_stage2(s2, h2, w2, params["w3"], params["b3"],
                          params["wl2"], params["bl2"])

    out = []
    for f, (hh, ww) in zip([f1, f2, f3], [(h1, w1), (h2, w2), (h3, w3)]):
        f_nchw = f.reshape(B, NUM_CHANNELS, hh, ww)       # free: already channel-major
        out.append((f_nchw, mask_downsample(mask_bool, hh, ww)))
    return out


# ----------------------------------------------------------------------------
# Pure-jnp reference (classic im2col formulation) for numerical validation.
# ----------------------------------------------------------------------------
def _ref_forward(images, params):
    f32 = jnp.float32
    x = images.astype(jnp.bfloat16).astype(f32)
    B, Cin, H, W = x.shape

    def level(cols, w, b, wl, bl):
        s = jax.nn.relu(cols.astype(jnp.bfloat16).astype(f32) @ w.astype(f32) + b)
        f = s.astype(jnp.bfloat16).astype(f32) @ wl.astype(f32) + bl
        return s, f

    h, w_ = H // 4, W // 4
    cols = (x.reshape(B, Cin, h, 4, w_, 4)
              .transpose(0, 2, 4, 3, 5, 1)
              .reshape(B, h * w_, 4 * 4 * Cin))
    s, f = level(cols, params["w1"], params["b1"], params["wl0"], params["bl0"])
    feats = [f.reshape(B, h, w_, NUM_CHANNELS).transpose(0, 3, 1, 2)]

    for i in (2, 3):
        s_nhwc = s.astype(jnp.bfloat16).astype(f32).reshape(B, h, w_, NUM_CHANNELS)
        h, w_ = h // 2, w_ // 2
        cols = (s_nhwc.reshape(B, h, 2, w_, 2, NUM_CHANNELS)
                  .transpose(0, 1, 3, 2, 4, 5)
                  .reshape(B, h * w_, 4 * NUM_CHANNELS))
        s, f = level(cols, params[f"w{i}"], params[f"b{i}"],
                     params[f"wl{i-1}"], params[f"bl{i-1}"])
        feats.append(f.reshape(B, h, w_, NUM_CHANNELS).transpose(0, 3, 1, 2))
    return feats


# ----------------------------------------------------------------------------
if __name__ == "__main__":
    key = jax.random.PRNGKey(0)
    pkey, ikey = jax.random.split(key)
    params = init_params(pkey)

    B, C_in, H, W = 2, 3, 128, 128
    images = jax.random.normal(ikey, (B, C_in, H, W), jnp.float32)

    # Deterministic padding mask (True = padded), different per batch element.
    ii = jnp.arange(H)[None, :, None]
    jj = jnp.arange(W)[None, None, :]
    valid_h = jnp.array([128, 96])[:, None, None]
    valid_w = jnp.array([96, 128])[:, None, None]
    mask = ~((ii < valid_h) & (jj < valid_w))            # [B, H, W] bool

    fwd = jax.jit(sam2_backbone_forward)
    outs = fwd(images, mask, params)
    for f, m in outs:
        jax.block_until_ready(f)
        jax.block_until_ready(m)

    # Output contract: shapes / dtypes.
    expected_f = [(B, NUM_CHANNELS, H // s, W // s) for s in STRIDES]
    expected_m = [(B, H // s, W // s) for s in STRIDES]
    assert [tuple(f.shape) for f, _ in outs] == expected_f, "feature shape mismatch"
    assert [tuple(m.shape) for _, m in outs] == expected_m, "mask shape mismatch"
    assert all(f.dtype == jnp.float32 for f, _ in outs)
    assert all(m.dtype == jnp.bool_ for _, m in outs)

    # Mask downsample must exactly match nearest-neighbour (integer strides).
    for (_, m), s in zip(outs, STRIDES):
        assert bool(jnp.all(m == mask[:, ::s, ::s])), "mask mismatch"

    # Fused, im2col-free kernels must match the plain-jnp im2col reference.
    refs = _ref_forward(images, params)
    for lvl, ((f, _), fr) in enumerate(zip(outs, refs)):
        err = float(jnp.max(jnp.abs(f - fr)))
        assert jnp.allclose(f, fr, rtol=1e-2, atol=1e-3), (lvl, err)

    print("KERNEL_OK")
</pallas_src>

<mosaic_0001>
module attributes {stable_mosaic.version = 11 : i64} {
  func.func @_stage1_kernel(%arg0: i32, %arg1: i32, %arg2: memref<1x1024x48xbf16, #tpu.memory_space<vmem>>, %arg3: memref<48x256xbf16, #tpu.memory_space<vmem>>, %arg4: memref<1x256xf32, #tpu.memory_space<vmem>>, %arg5: memref<256x256xbf16, #tpu.memory_space<vmem>>, %arg6: memref<1x256xf32, #tpu.memory_space<vmem>>, %arg7: memref<1x1024x256xbf16, #tpu.memory_space<vmem>>, %arg8: memref<1x256x1024xf32, #tpu.memory_space<vmem>>) attributes {dimension_semantics = [#tpu.dimension_semantics<parallel>, #tpu.dimension_semantics<parallel>], iteration_bounds = array<i64: 2, 1>, scalar_prefetch = 0 : i64, scratch_operands = 0 : i64, tpu.core_type = #tpu.core_type<tc>, window_params = [{transform_indices = @transform_0, window_bounds = array<i64: 1, 1024, 48>}, {pipeline_mode = #tpu.pipeline_mode<synchronous>, transform_indices = @transform_1, window_bounds = array<i64: 48, 256>}, {pipeline_mode = #tpu.pipeline_mode<synchronous>, transform_indices = @transform_2, window_bounds = array<i64: 1, 256>}, {pipeline_mode = #tpu.pipeline_mode<synchronous>, transform_indices = @transform_3, window_bounds = array<i64: 256, 256>}, {pipeline_mode = #tpu.pipeline_mode<synchronous>, transform_indices = @transform_4, window_bounds = array<i64: 1, 256>}, {transform_indices = @transform_5, window_bounds = array<i64: 1, 1024, 256>}, {transform_indices = @transform_6, window_bounds = array<i64: 1, 256, 1024>}]} {
    %c0 = arith.constant 0 : index
    %c0_0 = arith.constant 0 : index
    %c0_1 = arith.constant 0 : index
    %0 = vector.load %arg2[%c0, %c0_0, %c0_1] : memref<1x1024x48xbf16, #tpu.memory_space<vmem>>, vector<1x1024x48xbf16>
    %1 = vector.shape_cast %0 : vector<1x1024x48xbf16> to vector<1024x48xbf16>
    %c0_2 = arith.constant 0 : index
    %c0_3 = arith.constant 0 : index
    %2 = vector.load %arg3[%c0_2, %c0_3] : memref<48x256xbf16, #tpu.memory_space<vmem>>, vector<48x256xbf16>
    %cst = arith.constant dense<0.000000e+00> : vector<1024x256xf32>
    %3 = tpu.matmul %1, %2, %cst {dimension_numbers = #tpu.dot_dimension_numbers<[1], [0], [0], [1], [0, 0, 1, 1], [], []>} : vector<1024x48xbf16>, vector<48x256xbf16>, vector<1024x256xf32> -> vector<1024x256xf32>
    %c0_4 = arith.constant 0 : index
    %c0_5 = arith.constant 0 : index
    %4 = vector.load %arg4[%c0_4, %c0_5] : memref<1x256xf32, #tpu.memory_space<vmem>>, vector<1x256xf32>
    %5 = vector.broadcast %4 : vector<1x256xf32> to vector<1024x256xf32>
    %6 = arith.addf %3, %5 : vector<1024x256xf32>
    %cst_6 = arith.constant 0.000000e+00 : f32
    %7 = vector.broadcast %cst_6 : f32 to vector<1024x256xf32>
    %8 = arith.maximumf %6, %7 : vector<1024x256xf32>
    %9 = arith.truncf %8 : vector<1024x256xf32> to vector<1024x256xbf16>
    %c0_7 = arith.constant 0 : index
    %c0_8 = arith.constant 0 : index
    %c0_9 = arith.constant 0 : index
    %10 = vector.load %arg7[%c0_7, %c0_8, %c0_9] : memref<1x1024x256xbf16, #tpu.memory_space<vmem>>, vector<1x1024x256xbf16>
    %11 = vector.shape_cast %10 : vector<1x1024x256xbf16> to vector<1024x256xbf16>
    %12 = vector.shape_cast %9 : vector<1024x256xbf16> to vector<1x1024x256xbf16>
    tpu.vector_store %arg7[%c0_7, %c0_8, %c0_9], %12 {strides = array<i32>} : memref<1x1024x256xbf16, #tpu.memory_space<vmem>>, vector<1x1024x256xbf16>,
    %13 = arith.truncf %8 : vector<1024x256xf32> to vector<1024x256xbf16>
    %c0_10 = arith.constant 0 : index
    %c0_11 = arith.constant 0 : index
    %14 = vector.load %arg5[%c0_10, %c0_11] : memref<256x256xbf16, #tpu.memory_space<vmem>>, vector<256x256xbf16>
    %cst_12 = arith.constant dense<0.000000e+00> : vector<1024x256xf32>
    %15 = tpu.matmul %13, %14, %cst_12 {dimension_numbers = #tpu.dot_dimension_numbers<[1], [0], [0], [1], [0, 0, 1, 1], [], []>} : vector<1024x256xbf16>, vector<256x256xbf16>, vector<1024x256xf32> -> vector<1024x256xf32>
    %c0_13 = arith.constant 0 : index
    %c0_14 = arith.constant 0 : index
    %16 = vector.load %arg6[%c0_13, %c0_14] : memref<1x256xf32, #tpu.memory_space<vmem>>, vector<1x256xf32>
    %17 = vector.broadcast %16 : vector<1x256xf32> to vector<1024x256xf32>
    %18 = arith.addf %15, %17 : vector<1024x256xf32>
    %19 = tpu.transpose %18, [1, 0] : vector<1024x256xf32> -> vector<256x1024xf32>
    %c0_15 = arith.constant 0 : index
    %c0_16 = arith.constant 0 : index
    %c0_17 = arith.constant 0 : index
    %20 = vector.load %arg8[%c0_15, %c0_16, %c0_17] : memref<1x256x1024xf32, #tpu.memory_space<vmem>>, vector<1x256x1024xf32>
    %21 = vector.shape_cast %20 : vector<1x256x1024xf32> to vector<256x1024xf32>
    %22 = vector.shape_cast %19 : vector<256x1024xf32> to vector<1x256x1024xf32>
    tpu.vector_store %arg8[%c0_15, %c0_16, %c0_17], %22 {strides = array<i32>} : memref<1x256x1024xf32, #tpu.memory_space<vmem>>, vector<1x256x1024xf32>,
    return
  }
  func.func @transform_0(%arg0: i32, %arg1: i32) -> (i32, i32, i32) {
    %c0_i32 = arith.constant 0 : i32
    %c0_i32_0 = arith.constant 0 : i32
    return %arg0, %arg1, %c0_i32 : i32, i32, i32
  }
  func.func @transform_1(%arg0: i32, %arg1: i32) -> (i32, i32) {
    %c0_i32 = arith.constant 0 : i32
    %c0_i32_0 = arith.constant 0 : i32
    %c0_i32_1 = arith.constant 0 : i32
    return %c0_i32, %c0_i32_0 : i32, i32
  }
  func.func @transform_2(%arg0: i32, %arg1: i32) -> (i32, i32) {
    %c0_i32 = arith.constant 0 : i32
    %c0_i32_0 = arith.constant 0 : i32
    %c0_i32_1 = arith.constant 0 : i32
    return %c0_i32, %c0_i32_0 : i32, i32
  }
  func.func @transform_3(%arg0: i32, %arg1: i32) -> (i32, i32) {
    %c0_i32 = arith.constant 0 : i32
    %c0_i32_0 = arith.constant 0 : i32
    %c0_i32_1 = arith.constant 0 : i32
    return %c0_i32, %c0_i32_0 : i32, i32
  }
  func.func @transform_4(%arg0: i32, %arg1: i32) -> (i32, i32) {
    %c0_i32 = arith.constant 0 : i32
    %c0_i32_0 = arith.constant 0 : i32
    %c0_i32_1 = arith.constant 0 : i32
    return %c0_i32, %c0_i32_0 : i32, i32
  }
  func.func @transform_5(%arg0: i32, %arg1: i32) -> (i32, i32, i32) {
    %c0_i32 = arith.constant 0 : i32
    %c0_i32_0 = arith.constant 0 : i32
    return %arg0, %arg1, %c0_i32 : i32, i32, i32
  }
  func.func @transform_6(%arg0: i32, %arg1: i32) -> (i32, i32, i32) {
    %c0_i32 = arith.constant 0 : i32
    %c0_i32_0 = arith.constant 0 : i32
    return %arg0, %c0_i32, %arg1 : i32, i32, i32
  }
}

module attributes {stable_mosaic.version = 11 : i64} {
  func.func @_stage2_kernel(%arg0: i32, %arg1: i32, %arg2: memref<1x16x1x16x512xbf16, #tpu.memory_space<vmem>>, %arg3: memref<1x16x1x16x512xbf16, #tpu.memory_space<vmem>>, %arg4: memref<2x512x256xbf16, #tpu.memory_space<vmem>>, %arg5: memref<1x256xf32, #tpu.memory_space<vmem>>, %arg6: memref<256x256xbf16, #tpu.memory_space<vmem>>, %arg7: memref<1x256xf32, #tpu.memory_space<vmem>>, %arg8: memref<1x256x256xbf16, #tpu.memory_space<vmem>>, %arg9: memref<1x256x256xf32, #tpu.memory_space<vmem>>) attributes {dimension_semantics = [#tpu.dimension_semantics<parallel>, #tpu.dimension_semantics<parallel>], iteration_bounds = array<i64: 2, 1>, scalar_prefetch = 0 : i64, scratch_operands = 0 : i64, tpu.core_type = #tpu.core_type<tc>, window_params = [{transform_indices = @transform_0, window_bounds = array<i64: 1, 16, 1, 16, 512>}, {transform_indices = @transform_1, window_bounds = array<i64: 1, 16, 1, 16, 512>}, {pipeline_mode = #tpu.pipeline_mode<synchronous>, transform_indices = @transform_2, window_bounds = array<i64: 2, 512, 256>}, {pipeline_mode = #tpu.pipeline_mode<synchronous>, transform_indices = @transform_3, window_bounds = array<i64: 1, 256>}, {pipeline_mode = #tpu.pipeline_mode<synchronous>, transform_indices = @transform_4, window_bounds = array<i64: 256, 256>}, {pipeline_mode = #tpu.pipeline_mode<synchronous>, transform_indices = @transform_5, window_bounds = array<i64: 1, 256>}, {transform_indices = @transform_6, window_bounds = array<i64: 1, 256, 256>}, {transform_indices = @transform_7, window_bounds = array<i64: 1, 256, 256>}]} {
    %c0 = arith.constant 0 : index
    %c0_0 = arith.constant 0 : index
    %c0_1 = arith.constant 0 : index
    %c0_2 = arith.constant 0 : index
    %c0_3 = arith.constant 0 : index
    %0 = vector.load %arg2[%c0, %c0_0, %c0_1, %c0_2, %c0_3] : memref<1x16x1x16x512xbf16, #tpu.memory_space<vmem>>, vector<1x16x1x16x512xbf16>
    %1 = vector.shape_cast %0 : vector<1x16x1x16x512xbf16> to vector<16x16x512xbf16>
    %2 = vector.shape_cast %1 : vector<16x16x512xbf16> to vector<256x512xbf16>
    %c0_4 = arith.constant 0 : index
    %c0_5 = arith.constant 0 : index
    %c0_6 = arith.constant 0 : index
    %c0_7 = arith.constant 0 : index
    %c0_8 = arith.constant 0 : index
    %3 = vector.load %arg3[%c0_4, %c0_5, %c0_6, %c0_7, %c0_8] : memref<1x16x1x16x512xbf16, #tpu.memory_space<vmem>>, vector<1x16x1x16x512xbf16>
    %4 = vector.shape_cast %3 : vector<1x16x1x16x512xbf16> to vector<16x16x512xbf16>
    %5 = vector.shape_cast %4 : vector<16x16x512xbf16> to vector<256x512xbf16>
    %c0_9 = arith.constant 0 : index
    %c0_10 = arith.constant 0 : index
    %c0_11 = arith.constant 0 : index
    %6 = vector.load %arg4[%c0_9, %c0_10, %c0_11] : memref<2x512x256xbf16, #tpu.memory_space<vmem>>, vector<1x512x256xbf16>
    %7 = vector.shape_cast %6 : vector<1x512x256xbf16> to vector<512x256xbf16>
    %cst = arith.constant dense<0.000000e+00> : vector<256x256xf32>
    %8 = tpu.matmul %2, %7, %cst {dimension_numbers = #tpu.dot_dimension_numbers<[1], [0], [0], [1], [0, 0, 1, 1], [], []>} : vector<256x512xbf16>, vector<512x256xbf16>, vector<256x256xf32> -> vector<256x256xf32>
    %c1 = arith.constant 1 : index
    %c0_12 = arith.constant 0 : index
    %c0_13 = arith.constant 0 : index
    %9 = vector.load %arg4[%c1, %c0_12, %c0_13] : memref<2x512x256xbf16, #tpu.memory_space<vmem>>, vector<1x512x256xbf16>
    %10 = vector.shape_cast %9 : vector<1x512x256xbf16> to vector<512x256xbf16>
    %cst_14 = arith.constant dense<0.000000e+00> : vector<256x256xf32>
    %11 = tpu.matmul %5, %10, %cst_14 {dimension_numbers = #tpu.dot_dimension_numbers<[1], [0], [0], [1], [0, 0, 1, 1], [], []>} : vector<256x512xbf16>, vector<512x256xbf16>, vector<256x256xf32> -> vector<256x256xf32>
    %12 = arith.addf %8, %11 : vector<256x256xf32>
    %c0_15 = arith.constant 0 : index
    %c0_16 = arith.constant 0 : index
    %13 = vector.load %arg5[%c0_15, %c0_16] : memref<1x256xf32, #tpu.memory_space<vmem>>, vector<1x256xf32>
    %14 = vector.broadcast %13 : vector<1x256xf32> to vector<256x256xf32>
    %15 = arith.addf %12, %14 : vector<256x256xf32>
    %cst_17 = arith.constant 0.000000e+00 : f32
    %16 = vector.broadcast %cst_17 : f32 to vector<256x256xf32>
    %17 = arith.maximumf %15, %16 : vector<256x256xf32>
    %18 = arith.truncf %17 : vector<256x256xf32> to vector<256x256xbf16>
    %c0_18 = arith.constant 0 : index
    %c0_19 = arith.constant 0 : index
    %c0_20 = arith.constant 0 : index
    %19 = vector.load %arg8[%c0_18, %c0_19, %c0_20] : memref<1x256x256xbf16, #tpu.memory_space<vmem>>, vector<1x256x256xbf16>
    %20 = vector.shape_cast %19 : vector<1x256x256xbf16> to vector<256x256xbf16>
    %21 = vector.shape_cast %18 : vector<256x256xbf16> to vector<1x256x256xbf16>
    tpu.vector_store %arg8[%c0_18, %c0_19, %c0_20], %21 {strides = array<i32>} : memref<1x256x256xbf16, #tpu.memory_space<vmem>>, vector<1x256x256xbf16>,
    %22 = arith.truncf %17 : vector<256x256xf32> to vector<256x256xbf16>
    %c0_21 = arith.constant 0 : index
    %c0_22 = arith.constant 0 : index
    %23 = vector.load %arg6[%c0_21, %c0_22] : memref<256x256xbf16, #tpu.memory_space<vmem>>, vector<256x256xbf16>
    %cst_23 = arith.constant dense<0.000000e+00> : vector<256x256xf32>
    %24 = tpu.matmul %22, %23, %cst_23 {dimension_numbers = #tpu.dot_dimension_numbers<[1], [0], [0], [1], [0, 0, 1, 1], [], []>} : vector<256x256xbf16>, vector<256x256xbf16>, vector<256x256xf32> -> vector<256x256xf32>
    %c0_24 = arith.constant 0 : index
    %c0_25 = arith.constant 0 : index
    %25 = vector.load %arg7[%c0_24, %c0_25] : memref<1x256xf32, #tpu.memory_space<vmem>>, vector<1x256xf32>
    %26 = vector.broadcast %25 : vector<1x256xf32> to vector<256x256xf32>
    %27 = arith.addf %24, %26 : vector<256x256xf32>
    %28 = tpu.transpose %27, [1, 0] : vector<256x256xf32> -> vector<256x256xf32>
    %c0_26 = arith.constant 0 : index
    %c0_27 = arith.constant 0 : index
    %c0_28 = arith.constant 0 : index
    %29 = vector.load %arg9[%c0_26, %c0_27, %c0_28] : memref<1x256x256xf32, #tpu.memory_space<vmem>>, vector<1x256x256xf32>
    %30 = vector.shape_cast %29 : vector<1x256x256xf32> to vector<256x256xf32>
    %31 = vector.shape_cast %28 : vector<256x256xf32> to vector<1x256x256xf32>
    tpu.vector_store %arg9[%c0_26, %c0_27, %c0_28], %31 {strides = array<i32>} : memref<1x256x256xf32, #tpu.memory_space<vmem>>, vector<1x256x256xf32>,
    return
  }
  func.func @transform_0(%arg0: i32, %arg1: i32) -> (i32, i32, i32, i32, i32) {
    %c0_i32 = arith.constant 0 : i32
    %c0_i32_0 = arith.constant 0 : i32
    %c0_i32_1 = arith.constant 0 : i32
    %c0_i32_2 = arith.constant 0 : i32
    return %arg0, %arg1, %c0_i32, %c0_i32_0, %c0_i32_1 : i32, i32, i32, i32, i32
  }
  func.func @transform_1(%arg0: i32, %arg1: i32) -> (i32, i32, i32, i32, i32) {
    %c1_i32 = arith.constant 1 : i32
    %c0_i32 = arith.constant 0 : i32
    %c0_i32_0 = arith.constant 0 : i32
    %c0_i32_1 = arith.constant 0 : i32
    return %arg0, %arg1, %c1_i32, %c0_i32, %c0_i32_0 : i32, i32, i32, i32, i32
  }
  func.func @transform_2(%arg0: i32, %arg1: i32) -> (i32, i32, i32) {
    %c0_i32 = arith.constant 0 : i32
    %c0_i32_0 = arith.constant 0 : i32
    %c0_i32_1 = arith.constant 0 : i32
    %c0_i32_2 = arith.constant 0 : i32
    return %c0_i32, %c0_i32_0, %c0_i32_1 : i32, i32, i32
  }
  func.func @transform_3(%arg0: i32, %arg1: i32) -> (i32, i32) {
    %c0_i32 = arith.constant 0 : i32
    %c0_i32_0 = arith.constant 0 : i32
    %c0_i32_1 = arith.constant 0 : i32
    return %c0_i32, %c0_i32_0 : i32, i32
  }
  func.func @transform_4(%arg0: i32, %arg1: i32) -> (i32, i32) {
    %c0_i32 = arith.constant 0 : i32
    %c0_i32_0 = arith.constant 0 : i32
    %c0_i32_1 = arith.constant 0 : i32
    return %c0_i32, %c0_i32_0 : i32, i32
  }
  func.func @transform_5(%arg0: i32, %arg1: i32) -> (i32, i32) {
    %c0_i32 = arith.constant 0 : i32
    %c0_i32_0 = arith.constant 0 : i32
    %c0_i32_1 = arith.constant 0 : i32
    return %c0_i32, %c0_i32_0 : i32, i32
  }
  func.func @transform_6(%arg0: i32, %arg1: i32) -> (i32, i32, i32) {
    %c0_i32 = arith.constant 0 : i32
    %c0_i32_0 = arith.constant 0 : i32
    return %arg0, %arg1, %c0_i32 : i32, i32, i32
  }
  func.func @transform_7(%arg0: i32, %arg1: i32) -> (i32, i32, i32) {
    %c0_i32 = arith.constant 0 : i32
    %c0_i32_0 = arith.constant 0 : i32
    return %arg0, %c0_i32, %arg1 : i32, i32, i32
  }
}

module attributes {stable_mosaic.version = 11 : i64} {
  func.func @_stage2_kernel(%arg0: i32, %arg1: i32, %arg2: memref<1x8x1x8x512xbf16, #tpu.memory_space<vmem>>, %arg3: memref<1x8x1x8x512xbf16, #tpu.memory_space<vmem>>, %arg4: memref<2x512x256xbf16, #tpu.memory_space<vmem>>, %arg5: memref<1x256xf32, #tpu.memory_space<vmem>>, %arg6: memref<256x256xbf16, #tpu.memory_space<vmem>>, %arg7: memref<1x256xf32, #tpu.memory_space<vmem>>, %arg8: memref<1x64x256xbf16, #tpu.memory_space<vmem>>, %arg9: memref<1x256x64xf32, #tpu.memory_space<vmem>>) attributes {dimension_semantics = [#tpu.dimension_semantics<parallel>, #tpu.dimension_semantics<parallel>], iteration_bounds = array<i64: 2, 1>, scalar_prefetch = 0 : i64, scratch_operands = 0 : i64, tpu.core_type = #tpu.core_type<tc>, window_params = [{transform_indices = @transform_0, window_bounds = array<i64: 1, 8, 1, 8, 512>}, {transform_indices = @transform_1, window_bounds = array<i64: 1, 8, 1, 8, 512>}, {pipeline_mode = #tpu.pipeline_mode<synchronous>, transform_indices = @transform_2, window_bounds = array<i64: 2, 512, 256>}, {pipeline_mode = #tpu.pipeline_mode<synchronous>, transform_indices = @transform_3, window_bounds = array<i64: 1, 256>}, {pipeline_mode = #tpu.pipeline_mode<synchronous>, transform_indices = @transform_4, window_bounds = array<i64: 256, 256>}, {pipeline_mode = #tpu.pipeline_mode<synchronous>, transform_indices = @transform_5, window_bounds = array<i64: 1, 256>}, {transform_indices = @transform_6, window_bounds = array<i64: 1, 64, 256>}, {transform_indices = @transform_7, window_bounds = array<i64: 1, 256, 64>}]} {
    %c0 = arith.constant 0 : index
    %c0_0 = arith.constant 0 : index
    %c0_1 = arith.constant 0 : index
    %c0_2 = arith.constant 0 : index
    %c0_3 = arith.constant 0 : index
    %0 = vector.load %arg2[%c0, %c0_0, %c0_1, %c0_2, %c0_3] : memref<1x8x1x8x512xbf16, #tpu.memory_space<vmem>>, vector<1x8x1x8x512xbf16>
    %1 = vector.shape_cast %0 : vector<1x8x1x8x512xbf16> to vector<8x8x512xbf16>
    %2 = vector.shape_cast %1 : vector<8x8x512xbf16> to vector<64x512xbf16>
    %c0_4 = arith.constant 0 : index
    %c0_5 = arith.constant 0 : index
    %c0_6 = arith.constant 0 : index
    %c0_7 = arith.constant 0 : index
    %c0_8 = arith.constant 0 : index
    %3 = vector.load %arg3[%c0_4, %c0_5, %c0_6, %c0_7, %c0_8] : memref<1x8x1x8x512xbf16, #tpu.memory_space<vmem>>, vector<1x8x1x8x512xbf16>
    %4 = vector.shape_cast %3 : vector<1x8x1x8x512xbf16> to vector<8x8x512xbf16>
    %5 = vector.shape_cast %4 : vector<8x8x512xbf16> to vector<64x512xbf16>
    %c0_9 = arith.constant 0 : index
    %c0_10 = arith.constant 0 : index
    %c0_11 = arith.constant 0 : index
    %6 = vector.load %arg4[%c0_9, %c0_10, %c0_11] : memref<2x512x256xbf16, #tpu.memory_space<vmem>>, vector<1x512x256xbf16>
    %7 = vector.shape_cast %6 : vector<1x512x256xbf16> to vector<512x256xbf16>
    %cst = arith.constant dense<0.000000e+00> : vector<64x256xf32>
    %8 = tpu.matmul %2, %7, %cst {dimension_numbers = #tpu.dot_dimension_numbers<[1], [0], [0], [1], [0, 0, 1, 1], [], []>} : vector<64x512xbf16>, vector<512x256xbf16>, vector<64x256xf32> -> vector<64x256xf32>
    %c1 = arith.constant 1 : index
    %c0_12 = arith.constant 0 : index
    %c0_13 = arith.constant 0 : index
    %9 = vector.load %arg4[%c1, %c0_12, %c0_13] : memref<2x512x256xbf16, #tpu.memory_space<vmem>>, vector<1x512x256xbf16>
    %10 = vector.shape_cast %9 : vector<1x512x256xbf16> to vector<512x256xbf16>
    %cst_14 = arith.constant dense<0.000000e+00> : vector<64x256xf32>
    %11 = tpu.matmul %5, %10, %cst_14 {dimension_numbers = #tpu.dot_dimension_numbers<[1], [0], [0], [1], [0, 0, 1, 1], [], []>} : vector<64x512xbf16>, vector<512x256xbf16>, vector<64x256xf32> -> vector<64x256xf32>
    %12 = arith.addf %8, %11 : vector<64x256xf32>
    %c0_15 = arith.constant 0 : index
    %c0_16 = arith.constant 0 : index
    %13 = vector.load %arg5[%c0_15, %c0_16] : memref<1x256xf32, #tpu.memory_space<vmem>>, vector<1x256xf32>
    %14 = vector.broadcast %13 : vector<1x256xf32> to vector<64x256xf32>
    %15 = arith.addf %12, %14 : vector<64x256xf32>
    %cst_17 = arith.constant 0.000000e+00 : f32
    %16 = vector.broadcast %cst_17 : f32 to vector<64x256xf32>
    %17 = arith.maximumf %15, %16 : vector<64x256xf32>
    %18 = arith.truncf %17 : vector<64x256xf32> to vector<64x256xbf16>
    %c0_18 = arith.constant 0 : index
    %c0_19 = arith.constant 0 : index
    %c0_20 = arith.constant 0 : index
    %19 = vector.load %arg8[%c0_18, %c0_19, %c0_20] : memref<1x64x256xbf16, #tpu.memory_space<vmem>>, vector<1x64x256xbf16>
    %20 = vector.shape_cast %19 : vector<1x64x256xbf16> to vector<64x256xbf16>
    %21 = vector.shape_cast %18 : vector<64x256xbf16> to vector<1x64x256xbf16>
    tpu.vector_store %arg8[%c0_18, %c0_19, %c0_20], %21 {strides = array<i32>} : memref<1x64x256xbf16, #tpu.memory_space<vmem>>, vector<1x64x256xbf16>,
    %22 = arith.truncf %17 : vector<64x256xf32> to vector<64x256xbf16>
    %c0_21 = arith.constant 0 : index
    %c0_22 = arith.constant 0 : index
    %23 = vector.load %arg6[%c0_21, %c0_22] : memref<256x256xbf16, #tpu.memory_space<vmem>>, vector<256x256xbf16>
    %cst_23 = arith.constant dense<0.000000e+00> : vector<64x256xf32>
    %24 = tpu.matmul %22, %23, %cst_23 {dimension_numbers = #tpu.dot_dimension_numbers<[1], [0], [0], [1], [0, 0, 1, 1], [], []>} : vector<64x256xbf16>, vector<256x256xbf16>, vector<64x256xf32> -> vector<64x256xf32>
    %c0_24 = arith.constant 0 : index
    %c0_25 = arith.constant 0 : index
    %25 = vector.load %arg7[%c0_24, %c0_25] : memref<1x256xf32, #tpu.memory_space<vmem>>, vector<1x256xf32>
    %26 = vector.broadcast %25 : vector<1x256xf32> to vector<64x256xf32>
    %27 = arith.addf %24, %26 : vector<64x256xf32>
    %28 = tpu.transpose %27, [1, 0] : vector<64x256xf32> -> vector<256x64xf32>
    %c0_26 = arith.constant 0 : index
    %c0_27 = arith.constant 0 : index
    %c0_28 = arith.constant 0 : index
    %29 = vector.load %arg9[%c0_26, %c0_27, %c0_28] : memref<1x256x64xf32, #tpu.memory_space<vmem>>, vector<1x256x64xf32>
    %30 = vector.shape_cast %29 : vector<1x256x64xf32> to vector<256x64xf32>
    %31 = vector.shape_cast %28 : vector<256x64xf32> to vector<1x256x64xf32>
    tpu.vector_store %arg9[%c0_26, %c0_27, %c0_28], %31 {strides = array<i32>} : memref<1x256x64xf32, #tpu.memory_space<vmem>>, vector<1x256x64xf32>,
    return
  }
  func.func @transform_0(%arg0: i32, %arg1: i32) -> (i32, i32, i32, i32, i32) {
    %c0_i32 = arith.constant 0 : i32
    %c0_i32_0 = arith.constant 0 : i32
    %c0_i32_1 = arith.constant 0 : i32
    %c0_i32_2 = arith.constant 0 : i32
    return %arg0, %arg1, %c0_i32, %c0_i32_0, %c0_i32_1 : i32, i32, i32, i32, i32
  }
  func.func @transform_1(%arg0: i32, %arg1: i32) -> (i32, i32, i32, i32, i32) {
    %c1_i32 = arith.constant 1 : i32
    %c0_i32 = arith.constant 0 : i32
    %c0_i32_0 = arith.constant 0 : i32
    %c0_i32_1 = arith.constant 0 : i32
    return %arg0, %arg1, %c1_i32, %c0_i32, %c0_i32_0 : i32, i32, i32, i32, i32
  }
  func.func @transform_2(%arg0: i32, %arg1: i32) -> (i32, i32, i32) {
    %c0_i32 = arith.constant 0 : i32
    %c0_i32_0 = arith.constant 0 : i32
    %c0_i32_1 = arith.constant 0 : i32
    %c0_i32_2 = arith.constant 0 : i32
    return %c0_i32, %c0_i32_0, %c0_i32_1 : i32, i32, i32
  }
  func.func @transform_3(%arg0: i32, %arg1: i32) -> (i32, i32) {
    %c0_i32 = arith.constant 0 : i32
    %c0_i32_0 = arith.constant 0 : i32
    %c0_i32_1 = arith.constant 0 : i32
    return %c0_i32, %c0_i32_0 : i32, i32
  }
  func.func @transform_4(%arg0: i32, %arg1: i32) -> (i32, i32) {
    %c0_i32 = arith.constant 0 : i32
    %c0_i32_0 = arith.constant 0 : i32
    %c0_i32_1 = arith.constant 0 : i32
    return %c0_i32, %c0_i32_0 : i32, i32
  }
  func.func @transform_5(%arg0: i32, %arg1: i32) -> (i32, i32) {
    %c0_i32 = arith.constant 0 : i32
    %c0_i32_0 = arith.constant 0 : i32
    %c0_i32_1 = arith.constant 0 : i32
    return %c0_i32, %c0_i32_0 : i32, i32
  }
  func.func @transform_6(%arg0: i32, %arg1: i32) -> (i32, i32, i32) {
    %c0_i32 = arith.constant 0 : i32
    %c0_i32_0 = arith.constant 0 : i32
    return %arg0, %arg1, %c0_i32 : i32, i32, i32
  }
  func.func @transform_7(%arg0: i32, %arg1: i32) -> (i32, i32, i32) {
    %c0_i32 = arith.constant 0 : i32
    %c0_i32_0 = arith.constant 0 : i32
    return %arg0, %c0_i32, %arg1 : i32, i32, i32
  }
}

</mosaic_0001>

<bundles_post_ra>
// kernel: sam2_backbone_forward.3
= control target key start
LH: loop header
LB: loop body
LE: loop exit
PB: predicated region body
PF: predicated region fallthrough
CT: control target
= control target key end

     0   :  { %s5296_s21 = smov 0   ;;  %s5298_s22 = smov 0   ;;  %s6898_s0 = inlined_call_operand.vmem [shape: bf16[2,1024,48], index: 0, kind: input, shape index: {}]   ;;  %s6899_s1 = inlined_call_operand.vmem [shape: bf16[48,256], index: 1, kind: input, shape index: {}]   ;;  %s6900_s2 = inlined_call_operand.vmem [shape: f32[1,256], index: 2, kind: input, shape index: {}]   ;;  %s6901_s3 = inlined_call_operand.vmem [shape: bf16[256,256], index: 3, kind: input, shape index: {}]   ;;  %s6902_s4 = inlined_call_operand.vmem [shape: f32[1,256], index: 4, kind: input, shape index: {}]   ;;  %s6903_s5 = inlined_call_operand.vmem [shape: bf16[2,1024,256], index: 5, kind: output, shape index: {0}]   ;;  %s6904_s6 = inlined_call_operand.vmem [shape: f32[2,256,1024], index: 6, kind: output, shape index: {1}]  }
   0x1   :  { %s5300_s23 = smov 0  }
   0x2 LB: > { %s29_s24 = sadd.s32 1, %s5254_s22  ;;  %p4624_p0 = scmp.ge.s32.totalorder %s5258_s23, 1  ;;  %s5258_s23 = sphi %s5300_s23, %s17_s23   ;;  %s5254_s22 = sphi %s5298_s22, %s6906_s22   ;;  %s5250_s21 = sphi %s5296_s21, %s6905_s21  }
   0x3   : > { %p31_p1 = scmp.ge.s32.totalorder %s29_s24, 2  ;;  %p238_p2 = scmp.lt.s32.totalorder %s5258_s23, 3 }
   0x5   : > { %s6908_s24 = smov (%p31_p1, %s29_s24), 0  ;;  %p239_p3 = pnand %p4624_p0, %p238_p2 }
   0x6   : > { %p287_p4 = scmp.lt.s32.totalorder (!%p239_p3), %s5250_s21, 1 }
   0x7   : > { %242 = sbr.rel (%p239_p3) target bundleno = 1126 (0x466), region = 40 }
   0xc   : > { %v5115_v0 = vld [vmem:[%s6899_s1 + $0x24] ss:$8 sps:$4 sm:$0xff]   ;;  %v5117_v1 = vld [vmem:[%s6899_s1 + $0x20] ss:$8 sps:$4 sm:$0xff]   ;;  %v5260_v2 = vmov 0   ;;  %s6910_s21 = smov (!%p287_p4, %s5250_s21), 1  ;;  %v454_v62 = vlaneseq }
   0xd   : > { %1039 = vmatprep.mubr.bf16.mxu0 %v5260_v2  ;;  %1017 = vmatprep.subr.bf16.mxu0 %v5115_v0  ;;  %v5118_v3 = vld [vmem:[%s6899_s1 + $0x14] ss:$8 sps:$4 sm:$0xff]   ;;  %v5120_v4 = vld [vmem:[%s6899_s1 + $0x10] ss:$8 sps:$4 sm:$0xff]   ;;  %v5121_v5 = vld [vmem:[%s6899_s1 + $0x4] ss:$8 sps:$4 sm:$0xff]  }
   0xe   : > { %1018 = vmatpush1.bf16.msra.mxu0 %v5117_v1  ;;  %s4927_s11 = sshll.u32 %s6910_s21, 9  ;;  %v5126_v6 = vld [vmem:[%s6901_s3 + $0x70] ss:$8 sps:$4 sm:$0xff]   ;;  %v5128_v7 = vld [vmem:[%s6901_s3 + $0x74] ss:$8 sps:$4 sm:$0xff]   ;;  %vm814_vm0 = vcmask 392192  }
   0xf   : > { %1019 = vmatprep.subr.bf16.mxu0 %v5118_v3  ;;  %s5339_s16 = scalar_lea.vmem %s6898_s0, %s4927_s11  ;;  %v5123_v8 = vld [vmem:[%s6899_s1] ss:$8 sps:$4 sm:$0xff]   ;;  %5058 = vmatprep.subr.bf16.mxu1 %v5128_v7  ;;  %v5135_v11 = vld [vmem:[%s6901_s3 + $0x64] ss:$8 sps:$4 sm:$0xff]   ;;  %v5140_v12 = vld [vmem:[%s6901_s3 + $0x50] ss:$8 sps:$4 sm:$0xff]  }
  0x10   : > { %5074 = vmatpush1.bf16.msra.mxu1 %v5126_v6  ;;  %v5124_v9 = vld [vmem:[%s5339_s16] sm:$0xff]   ;;  %v5142_v13 = vld [vmem:[%s6901_s3 + $0x54] ss:$8 sps:$4 sm:$0xff]   ;;  %v5125_v14 = vld [vmem:[%s5339_s16 + $0x8] sm:$0xff]   ;;  %v5507_v0 = vshrl.u32 %v454_v62, 7  ;;  %s4928_s30 = sshll.u32 %s6910_s21, 10 }
  0x11   : > { %v5133_v10 = vld [vmem:[%s6901_s3 + $0x60] ss:$8 sps:$4 sm:$0xff]   ;;  %5059 = vmatprep.subr.bf16.mxu1 %v5135_v11  ;;  %v5149_v16 = vld [vmem:[%s6901_s3 + $0x44] ss:$8 sps:$4 sm:$0xff]   ;;  %v5129_v17 = vld [vmem:[%s5339_s16 + $0x10] sm:$0xff]   ;;  %s5535_s9 = scalar_lea.vmem %s6903_s5, %s4928_s30 }
  0x12   : > { %1020 = vmatpush1.bf16.msra.mxu0 %v5120_v4  ;;  %v5147_v15 = vld [vmem:[%s6901_s3 + $0x40] ss:$8 sps:$4 sm:$0xff]   ;;  %v5156_v18 = vld [vmem:[%s6901_s3 + $0x34] ss:$8 sps:$4 sm:$0xff]   ;;  %v5154_v19 = vld [vmem:[%s6901_s3 + $0x30] ss:$8 sps:$4 sm:$0xff]  }
  0x13   : > { %1021 = vmatprep.subr.bf16.mxu0 %v5121_v5  ;;  %v5130_v20 = vld [vmem:[%s5339_s16 + $0x18] sm:$0xff]   ;;  %v5131_v21 = vld [vmem:[%s5339_s16 + $0x20] sm:$0xff]   ;;  %v5132_v22 = vld [vmem:[%s5339_s16 + $0x28] sm:$0xff]   ;;  %v456_v1 = vsub.s32 0, %v5507_v0  ;;  %v460_v4 = vsub.s32 1, %v5507_v0 }
  0x14   : > { %5075 = vmatpush1.bf16.msra.mxu1 %v5133_v10  ;;  %v5161_v23 = vld [vmem:[%s6901_s3 + $0x20] ss:$8 sps:$4 sm:$0xff]   ;;  %v5163_v24 = vld [vmem:[%s6901_s3 + $0x24] ss:$8 sps:$4 sm:$0xff]   ;;  %v5136_v25 = vld [vmem:[%s5339_s16 + $0x30] sm:$0xff]  }
  0x15   : > { %5060 = vmatprep.subr.bf16.mxu1 %v5142_v13  ;;  %v5137_v26 = vld [vmem:[%s5339_s16 + $0x38] sm:$0xff]   ;;  %v5138_v29 = vld [vmem:[%s5339_s16 + $0x40] sm:$0xff]   ;;  %v5139_v32 = vld [vmem:[%s5339_s16 + $0x48] sm:$0xff]  }
  0x16   : > { %1022 = vmatpush1.bf16.msra.mxu0 %v5123_v8  ;;  %v5166_v27 = vld [vmem:[%s6901_s3 + $0x14] ss:$8 sps:$4 sm:$0xff]   ;;  %v5168_v28 = vld [vmem:[%s6901_s3 + $0x10] ss:$8 sps:$4 sm:$0xff]   ;;  %v5170_v30 = vld [vmem:[%s6901_s3 + $0x4] ss:$8 sps:$4 sm:$0xff]  }
  0x17   : > { %3036 = vmatprep.subr.bf16.mxu0 %v5128_v7  ;;  %v5172_v31 = vld [vmem:[%s6901_s3] ss:$8 sps:$4 sm:$0xff]   ;;  %v5173_v33 = vld [vmem:[%s6901_s3 + $0xf4] ss:$8 sps:$4 sm:$0xff]   ;;  %v5175_v34 = vld [vmem:[%s6901_s3 + $0xf0] ss:$8 sps:$4 sm:$0xff]  }
  0x18   : > { %5076 = vmatpush1.bf16.msra.mxu1 %v5140_v12  ;;  %v5177_v35 = vld [vmem:[%s6901_s3 + $0xe4] ss:$8 sps:$4 sm:$0xff]   ;;  %v5179_v36 = vld [vmem:[%s6901_s3 + $0xe0] ss:$8 sps:$4 sm:$0xff]   ;;  %v5143_v37 = vld [vmem:[%s5339_s16 + $0x50] sm:$0xff]  }
  0x19   : > { %4701 = vmatmul.mubr.msk.bf16.vlgmr.msra.gmra.mxu0 %vm814_vm0, %v5124_v9  ;;  %5061 = vmatprep.subr.bf16.mxu1 %v5149_v16  ;;  %v5180_v38 = vld [vmem:[%s6901_s3 + $0xd4] ss:$8 sps:$4 sm:$0xff]   ;;  %v5182_v39 = vld [vmem:[%s6901_s3 + $0xd0] ss:$8 sps:$4 sm:$0xff]   ;;  %v5184_v40 = vld [vmem:[%s6901_s3 + $0xc4] ss:$8 sps:$4 sm:$0xff]  }
  0x1a   : > { %1049 = vmatprep.mubr.bf16.mxu0 %v5260_v2  ;;  %3037 = vmatpush1.bf16.msra.mxu0 %v5126_v6  ;;  %v5186_v41 = vld [vmem:[%s6901_s3 + $0xc0] ss:$8 sps:$4 sm:$0xff]   ;;  %v5144_v42 = vld [vmem:[%s5339_s16 + $0x58] sm:$0xff]   ;;  %v5191_v45 = vld [vmem:[%s6901_s3 + $0xa4] ss:$8 sps:$4 sm:$0xff]  }
  0x1b   : > { %3038 = vmatprep.subr.bf16.mxu0 %v5135_v11  ;;  %v5187_v43 = vld [vmem:[%s6901_s3 + $0xb4] ss:$8 sps:$4 sm:$0xff]   ;;  %v5189_v44 = vld [vmem:[%s6901_s3 + $0xb0] ss:$8 sps:$4 sm:$0xff]   ;;  %v5193_v46 = vld [vmem:[%s6901_s3 + $0xa0] ss:$8 sps:$4 sm:$0xff]  }
  0x1c   : > { %5077 = vmatpush1.bf16.msra.mxu1 %v5147_v15  ;;  %v5145_v47 = vld [vmem:[%s5339_s16 + $0x60] sm:$0xff]   ;;  %v5194_v48 = vld [vmem:[%s6901_s3 + $0x94] ss:$8 sps:$4 sm:$0xff]   ;;  %v5196_v49 = vld [vmem:[%s6901_s3 + $0x90] ss:$8 sps:$4 sm:$0xff]  }
  0x1d   : > { %5062 = vmatprep.subr.bf16.mxu1 %v5156_v18  ;;  %v5198_v50 = vld [vmem:[%s6901_s3 + $0x84] ss:$8 sps:$4 sm:$0xff]   ;;  %v5200_v51 = vld [vmem:[%s6901_s3 + $0x80] ss:$8 sps:$4 sm:$0xff]   ;;  %v5150_v53 = vld [vmem:[%s5339_s16 + $0x70] sm:$0xff]  }
  0x1e   : > { %3039 = vmatpush1.bf16.msra.mxu0 %v5133_v10  ;;  %v5146_v52 = vld [vmem:[%s5339_s16 + $0x68] sm:$0xff]   ;;  %v5151_v54 = vld [vmem:[%s5339_s16 + $0x78] sm:$0xff]   ;;  %v5152_v55 = vld [vmem:[%s5339_s16 + $0x80] sm:$0xff]  }
  0x1f   : > { %3040 = vmatprep.subr.bf16.mxu0 %v5142_v13  ;;  %v5153_v56 = vld [vmem:[%s5339_s16 + $0x88] sm:$0xff]   ;;  %v5157_v57 = vld [vmem:[%s5339_s16 + $0x90] sm:$0xff]   ;;  %v5158_v58 = vld [vmem:[%s5339_s16 + $0x98] sm:$0xff]  }
  0x20   : > { %5078 = vmatpush1.bf16.msra.mxu1 %v5154_v19  ;;  %v5159_v59 = vld [vmem:[%s5339_s16 + $0xa0] sm:$0xff]   ;;  %v5160_v60 = vld [vmem:[%s5339_s16 + $0xa8] sm:$0xff]   ;;  %v5164_v61 = vld [vmem:[%s5339_s16 + $0xb0] sm:$0xff]  }
  0x21   : > { %4702 = vmatmul.mubr.msk.bf16.gmra.mxu0 %vm814_vm0, %v5125_v14  ;;  %5063 = vmatprep.subr.bf16.mxu1 %v5163_v24  ;;  %v5165_v63 = vld [vmem:[%s5339_s16 + $0xb8] sm:$0xff]   ;;  %v452_v3 = vld [vmem:[%s6900_s2] sm:$0x3]  ;;  %v5176_v13 = vld [vmem:[%s5339_s16 + $0xc8] sm:$0xff]  }
  0x22   : > { %1059 = vmatprep.mubr.bf16.mxu0 %v5260_v2  ;;  %3041 = vmatpush1.bf16.msra.mxu0 %v5140_v12  ;;  %v5169_v5 = vld [vmem:[%s5339_s16 + $0xc0] sm:$0xff]   ;;  %v5519_v6 = vrot.slane %v452_v3, %v456_v1  ;;  %v5523_v7 = vrot.slane %v452_v3, %v460_v4 }
  0x23   : > { %3042 = vmatprep.subr.bf16.mxu0 %v5149_v16  ;;  %v5197_v3 = vld [vmem:[%s5339_s16 + $0xe0] sm:$0xff]  }
  0x24   : > { %5079 = vmatpush1.bf16.msra.mxu1 %v5161_v23 }
  0x25   : > { %5064 = vmatprep.subr.bf16.mxu1 %v5166_v27 }
  0x26   : > { %3043 = vmatpush1.bf16.msra.mxu0 %v5147_v15 }
  0x27   : > { %3044 = vmatprep.subr.bf16.mxu0 %v5156_v18 }
  0x28   : > { %5080 = vmatpush1.bf16.msra.mxu1 %v5168_v28 }
  0x29   : > { %4703 = vmatmul.mubr.msk.bf16.gmra.mxu0 %vm814_vm0, %v5129_v17  ;;  %5065 = vmatprep.subr.bf16.mxu1 %v5170_v30 }
  0x2a   : > { %1069 = vmatprep.mubr.bf16.mxu0 %v5260_v2  ;;  %3045 = vmatpush1.bf16.msra.mxu0 %v5154_v19 }
  0x2b   : > { %3046 = vmatprep.subr.bf16.mxu0 %v5163_v24 }
  0x2c   : > { %5081 = vmatpush1.bf16.msra.mxu1 %v5172_v31 }
  0x2d   : > { %5066 = vmatprep.subr.bf16.mxu1 %v5173_v33 }
  0x2e   : > { %3047 = vmatpush1.bf16.msra.mxu0 %v5161_v23 }
  0x2f   : > { %3048 = vmatprep.subr.bf16.mxu0 %v5166_v27 }
  0x30   : > { %5082 = vmatpush2.bf16.msra.mxu1 %v5175_v34 }
  0x31   : > { %4704 = vmatmul.mubr.msk.bf16.gmra.mxu0 %vm814_vm0, %v5130_v20  ;;  %5067 = vmatprep.subr.bf16.mxu1 %v5177_v35 }
  0x32   : > { %1079 = vmatprep.mubr.bf16.mxu0 %v5260_v2  ;;  %3049 = vmatpush1.bf16.msra.mxu0 %v5168_v28 }
  0x33   : > { %3050 = vmatprep.subr.bf16.mxu0 %v5170_v30  ;;  %v5183_v30 = vld [vmem:[%s5339_s16 + $0xd0] sm:$0xff]  }
  0x34   : > { %5083 = vmatpush2.bf16.msra.mxu1 %v5179_v36 }
  0x35   : > { %5068 = vmatprep.subr.bf16.mxu1 %v5180_v38 }
  0x36   : > { %3051 = vmatpush1.bf16.msra.mxu0 %v5172_v31 }
  0x37   : > { %3052 = vmatprep.subr.bf16.mxu0 %v5173_v33 }
  0x38   : > { %5084 = vmatpush2.bf16.msra.mxu1 %v5182_v39 }
  0x39   : > { %4705 = vmatmul.mubr.msk.bf16.gmra.mxu0 %vm814_vm0, %v5131_v21  ;;  %5069 = vmatprep.subr.bf16.mxu1 %v5184_v40 }
  0x3a   : > { %1089 = vmatprep.mubr.bf16.mxu0 %v5260_v2  ;;  %3053 = vmatpush2.bf16.msra.mxu0 %v5175_v34 }
  0x3b   : > { %3054 = vmatprep.subr.bf16.mxu0 %v5177_v35 }
  0x3c   : > { %5085 = vmatpush2.bf16.msra.mxu1 %v5186_v41 }
  0x3d   : > { %5070 = vmatprep.subr.bf16.mxu1 %v5187_v43 }
  0x3e   : > { %3055 = vmatpush2.bf16.msra.mxu0 %v5179_v36 }
  0x3f   : > { %3056 = vmatprep.subr.bf16.mxu0 %v5180_v38 }
  0x40   : > { %5086 = vmatpush2.bf16.msra.mxu1 %v5189_v44 }
  0x41   : > { %4706 = vmatmul.mubr.msk.bf16.gmra.mxu0 %vm814_vm0, %v5132_v22  ;;  %5071 = vmatprep.subr.bf16.mxu1 %v5191_v45 }
  0x42   : > { %1099 = vmatprep.mubr.bf16.mxu0 %v5260_v2  ;;  %3057 = vmatpush2.bf16.msra.mxu0 %v5182_v39 }
  0x43   : > { %3058 = vmatprep.subr.bf16.mxu0 %v5184_v40 }
  0x44   : > { %5087 = vmatpush2.bf16.msra.mxu1 %v5193_v46 }
  0x45   : > { %5072 = vmatprep.subr.bf16.mxu1 %v5194_v48 }
  0x46   : > { %3059 = vmatpush2.bf16.msra.mxu0 %v5186_v41 }
  0x47   : > { %3060 = vmatprep.subr.bf16.mxu0 %v5187_v43 }
  0x48   : > { %5088 = vmatpush2.bf16.msra.mxu1 %v5196_v49 }
  0x49   : > { %4707 = vmatmul.mubr.msk.bf16.gmra.mxu0 %vm814_vm0, %v5136_v25  ;;  %5073 = vmatprep.subr.bf16.mxu1 %v5198_v50 }
  0x4a   : > { %1109 = vmatprep.mubr.bf16.mxu0 %v5260_v2  ;;  %3061 = vmatpush2.bf16.msra.mxu0 %v5189_v44 }
  0x4b   : > { %3062 = vmatprep.subr.bf16.mxu0 %v5191_v45 }
  0x4c   : > { %5089 = vmatpush2.bf16.msra.mxu1 %v5200_v51 }
  0x4e   : > { %3063 = vmatpush2.bf16.msra.mxu0 %v5193_v46 }
  0x4f   : > { %3064 = vmatprep.subr.bf16.mxu0 %v5194_v48 }
  0x51   : > { %4708 = vmatmul.mubr.msk.bf16.gmra.mxu0 %vm814_vm0, %v5137_v26 }
  0x52   : > { %1119 = vmatprep.mubr.bf16.mxu0 %v5260_v2  ;;  %3065 = vmatpush2.bf16.msra.mxu0 %v5196_v49 }
  0x53   : > { %3066 = vmatprep.subr.bf16.mxu0 %v5198_v50 }
  0x56   : > { %3067 = vmatpush2.bf16.msra.mxu0 %v5200_v51 }
  0x59   : > { %4709 = vmatmul.mubr.msk.bf16.gmra.mxu0 %vm814_vm0, %v5138_v29 }
  0x5a   : > { %1129 = vmatprep.mubr.bf16.mxu0 %v5260_v2 }
  0x61   : > { %4710 = vmatmul.mubr.msk.bf16.gmra.mxu0 %vm814_vm0, %v5139_v32 }
  0x62   : > { %1139 = vmatprep.mubr.bf16.mxu0 %v5260_v2 }
  0x69   : > { %4711 = vmatmul.mubr.msk.bf16.gmra.mxu0 %vm814_vm0, %v5143_v37 }
  0x6a   : > { %1149 = vmatprep.mubr.bf16.mxu0 %v5260_v2 }
  0x71   : > { %4712 = vmatmul.mubr.msk.bf16.gmra.mxu0 %vm814_vm0, %v5144_v42 }
  0x72   : > { %1159 = vmatprep.mubr.bf16.mxu0 %v5260_v2 }
  0x79   : > { %4713 = vmatmul.mubr.msk.bf16.gmra.mxu0 %vm814_vm0, %v5145_v47  ;;  %v5190_v47 = vld [vmem:[%s5339_s16 + $0xd8] sm:$0xff]  }
  0x7a   : > { %1169 = vmatprep.mubr.bf16.mxu0 %v5260_v2 }
  0x81   : > { %4714 = vmatmul.mubr.msk.bf16.gmra.mxu0 %vm814_vm0, %v5146_v52 }
  0x82   : > { %1179 = vmatprep.mubr.bf16.mxu0 %v5260_v2 }
  0x89   : > { %4715 = vmatmul.mubr.msk.bf16.gmra.mxu0 %vm814_vm0, %v5150_v53 }
  0x8a   : > { %1189 = vmatprep.mubr.bf16.mxu0 %v5260_v2 }
  0x91   : > { %4716 = vmatmul.mubr.msk.bf16.gmra.mxu0 %vm814_vm0, %v5151_v54 }
  0x92   : > { %1199 = vmatprep.mubr.bf16.mxu0 %v5260_v2 }
  0x99   : > { %4717 = vmatmul.mubr.msk.bf16.gmra.mxu0 %vm814_vm0, %v5152_v55 }
  0x9a   : > { %1209 = vmatprep.mubr.bf16.mxu0 %v5260_v2 }
  0xa1   : > { %4718 = vmatmul.mubr.msk.bf16.gmra.mxu0 %vm814_vm0, %v5153_v56 }
  0xa2   : > { %1219 = vmatprep.mubr.bf16.mxu0 %v5260_v2 }
  0xa9   : > { %4719 = vmatmul.mubr.msk.bf16.gmra.mxu0 %vm814_vm0, %v5157_v57 }
  0xaa   : > { %1229 = vmatprep.mubr.bf16.mxu0 %v5260_v2 }
  0xb1   : > { %4720 = vmatmul.mubr.msk.bf16.gmra.mxu0 %vm814_vm0, %v5158_v58 }
  0xb2   : > { %1239 = vmatprep.mubr.bf16.mxu0 %v5260_v2 }
  0xb9   : > { %4721 = vmatmul.mubr.msk.bf16.gmra.mxu0 %vm814_vm0, %v5159_v59 }
  0xba   : > { %1249 = vmatprep.mubr.bf16.mxu0 %v5260_v2 }
  0xc1   : > { %4722 = vmatmul.mubr.msk.bf16.gmra.mxu0 %vm814_vm0, %v5160_v60 }
  0xc2   : > { %1259 = vmatprep.mubr.bf16.mxu0 %v5260_v2 }
  0xc9   : > { %4723 = vmatmul.mubr.msk.bf16.gmra.mxu0 %vm814_vm0, %v5164_v61 }
  0xca   : > { %1269 = vmatprep.mubr.bf16.mxu0 %v5260_v2 }
  0xd1   : > { %4724 = vmatmul.mubr.msk.bf16.gmra.mxu0 %vm814_vm0, %v5165_v63 }
  0xd2   : > { %1279 = vmatprep.mubr.bf16.mxu0 %v5260_v2 }
  0xd9   : > { %v1041_v8 = vpop.f32.mrf.mxu0  ;;  %4725 = vmatmul.mubr.msk.bf16.gmra.mxu0 %vm814_vm0, %v5169_v5 }
  0xda   : > { %v1042_v9 = vadd.f32 %v1041_v8, %v5519_v6  ;;  %1289 = vmatprep.mubr.bf16.mxu0 %v5260_v2 }
  0xdb   : > { %v1043_v10 = vpop.f32.mrf.mxu0 }
  0xdc   : > { %v1044_v11 = vadd.f32 %v1043_v10, %v5523_v7  ;;  %v1680_v14 = vmax.f32 %v1042_v9, 0.0 }
  0xdd   : > { %v1045_v12 = vpop.f32.mrf.mxu0 }
  0xde   : > { %v1681_v15 = vmax.f32 %v1044_v11, 0.0  ;;  %v1046_v16 = vadd.f32 %v1045_v12, %v5519_v6 }
  0xdf   : > { %v1047_v17 = vpop.f32.mrf.mxu0 }
  0xe0   : > { %v4930_v18 = vpack.c.bf16 %v1681_v15, %v1680_v14  ;;  %v1682_v19 = vmax.f32 %v1046_v16, 0.0  ;;  %v1048_v20 = vadd.f32 %v1047_v17, %v5523_v7 }
  0xe1   : > { %v1051_v21 = vpop.f32.mrf.mxu0  ;;  %4726 = vmatmul.mubr.msk.bf16.gmra.mxu0 %vm814_vm0, %v5176_v13 }
  0xe2   : > { %2704 = vst [vmem:[%s5535_s9] sm:$0xff] %v4930_v18  ;;  %v5540_v22 = vpack.c.bf16 %v1682_v19, %v1680_v14  ;;  %v1683_v23 = vmax.f32 %v1048_v20, 0.0  ;;  %v1052_v24 = vadd.f32 %v1051_v21, %v5519_v6  ;;  %1299 = vmatprep.mubr.bf16.mxu0 %v5260_v2 }
  0xe3   : > { %v1053_v25 = vpop.f32.mrf.mxu0 }
  0xe4   : > { %v4931_v26 = vpack.c.bf16 %v1683_v23, %v1682_v19  ;;  %v1054_v27 = vadd.f32 %v1053_v25, %v5523_v7  ;;  %v5545_v28 = vpack.c.bf16 %v1683_v23, %v1681_v15  ;;  %v1684_v31 = vmax.f32 %v1052_v24, 0.0  ;;  %v5201_v24 = vld [vmem:[%s5339_s16 + $0xe8] sm:$0xff]  }
  0xe5   : > { %v1055_v29 = vpop.f32.mrf.mxu0 }
  0xe6   : > { %2705 = vst [vmem:[%s5535_s9 + $0x8] sm:$0xff] %v4931_v26  ;;  %v1685_v32 = vmax.f32 %v1054_v27, 0.0  ;;  %v1056_v33 = vadd.f32 %v1055_v29, %v5519_v6 }
  0xe7   : > { %v1057_v34 = vpop.f32.mrf.mxu0 }
  0xe8   : > { %v4932_v35 = vpack.c.bf16 %v1685_v32, %v1684_v31  ;;  %v1686_v36 = vmax.f32 %v1056_v33, 0.0  ;;  %v1058_v37 = vadd.f32 %v1057_v34, %v5523_v7 }
  0xe9   : > { %v1061_v38 = vpop.f32.mrf.mxu0  ;;  %4727 = vmatmul.mubr.msk.bf16.gmra.mxu0 %vm814_vm0, %v5183_v30 }
  0xea   : > { %2706 = vst [vmem:[%s5535_s9 + $0x10] sm:$0xff] %v4932_v35  ;;  %v5553_v39 = vpack.c.bf16 %v1686_v36, %v1684_v31  ;;  %v1687_v40 = vmax.f32 %v1058_v37, 0.0  ;;  %v1062_v41 = vadd.f32 %v1061_v38, %v5519_v6  ;;  %1309 = vmatprep.mubr.bf16.mxu0 %v5260_v2 }
  0xeb   : > { %v1063_v42 = vpop.f32.mrf.mxu0 }
  0xec   : > { %v4933_v43 = vpack.c.bf16 %v1687_v40, %v1686_v36  ;;  %v1064_v44 = vadd.f32 %v1063_v42, %v5523_v7  ;;  %v5558_v45 = vpack.c.bf16 %v1687_v40, %v1685_v32  ;;  %v1688_v48 = vmax.f32 %v1062_v41, 0.0 }
  0xed   : > { %v1065_v46 = vpop.f32.mrf.mxu0 }
  0xee   : > { %2707 = vst [vmem:[%s5535_s9 + $0x18] sm:$0xff] %v4933_v43  ;;  %v1689_v49 = vmax.f32 %v1064_v44, 0.0  ;;  %v1066_v50 = vadd.f32 %v1065_v46, %v5519_v6  ;;  %v5202_v43 = vld [vmem:[%s5339_s16 + $0xf0] sm:$0xff]  }
  0xef   : > { %v1067_v51 = vpop.f32.mrf.mxu0 }
  0xf0   : > { %v4934_v52 = vpack.c.bf16 %v1689_v49, %v1688_v48  ;;  %v1690_v53 = vmax.f32 %v1066_v50, 0.0  ;;  %v1068_v54 = vadd.f32 %v1067_v51, %v5523_v7 }
  0xf1   : > { %v1071_v55 = vpop.f32.mrf.mxu0  ;;  %4728 = vmatmul.mubr.msk.bf16.gmra.mxu0 %vm814_vm0, %v5190_v47 }
  0xf2   : > { %2708 = vst [vmem:[%s5535_s9 + $0x20] sm:$0xff] %v4934_v52  ;;  %v5566_v56 = vpack.c.bf16 %v1690_v53, %v1688_v48  ;;  %v1691_v57 = vmax.f32 %v1068_v54, 0.0  ;;  %v1072_v58 = vadd.f32 %v1071_v55, %v5519_v6  ;;  %1319 = vmatprep.mubr.bf16.mxu0 %v5260_v2 }
  0xf3   : > { %v1073_v59 = vpop.f32.mrf.mxu0 }
  0xf4   : > { %v4935_v60 = vpack.c.bf16 %v1691_v57, %v1690_v53  ;;  %v1074_v61 = vadd.f32 %v1073_v59, %v5523_v7  ;;  %v5571_v62 = vpack.c.bf16 %v1691_v57, %v1689_v49  ;;  %v1692_v5 = vmax.f32 %v1072_v58, 0.0 }
  0xf5   : > { %v1075_v63 = vpop.f32.mrf.mxu0 }
  0xf6   : > { %2709 = vst [vmem:[%s5535_s9 + $0x28] sm:$0xff] %v4935_v60  ;;  %v1693_v8 = vmax.f32 %v1074_v61, 0.0  ;;  %v1076_v9 = vadd.f32 %v1075_v63, %v5519_v6  ;;  %v5203_v63 = vld [vmem:[%s5339_s16 + $0xf8] sm:$0xff]  }
  0xf7   : > { %v1077_v10 = vpop.f32.mrf.mxu0 }
  0xf8   : > { %v4936_v11 = vpack.c.bf16 %v1693_v8, %v1692_v5  ;;  %v1078_v12 = vadd.f32 %v1077_v10, %v5523_v7  ;;  %v1694_v13 = vmax.f32 %v1076_v9, 0.0 }
  0xf9   : > { %v1081_v14 = vpop.f32.mrf.mxu0  ;;  %4729 = vmatmul.mubr.msk.bf16.gmra.mxu0 %vm814_vm0, %v5197_v3 }
  0xfa   : > { %2710 = vst [vmem:[%s5535_s9 + $0x30] sm:$0xff] %v4936_v11  ;;  %v1082_v15 = vadd.f32 %v1081_v14, %v5519_v6  ;;  %v1695_v16 = vmax.f32 %v1078_v12, 0.0  ;;  %1329 = vmatprep.mubr.bf16.mxu0 %v5260_v2  ;;  %v1942_v21 = vpack.c.bf16 %v1694_v13, %v1692_v5 }
  0xfb   : > { %v1083_v17 = vpop.f32.mrf.mxu0 }
  0xfc   : > { %v1084_v18 = vadd.f32 %v1083_v17, %v5523_v7  ;;  %v1943_v19 = vpack.c.bf16 %v1695_v16, %v1693_v8  ;;  %v4937_v20 = vpack.c.bf16 %v1695_v16, %v1694_v13  ;;  %v1696_v25 = vmax.f32 %v1082_v15, 0.0 }
  0xfd   : > { %v1085_v23 = vpop.f32.mrf.mxu0 }
  0xfe   : > { %v1697_v26 = vmax.f32 %v1084_v18, 0.0  ;;  %v1086_v27 = vadd.f32 %v1085_v23, %v5519_v6  ;;  %2711 = vst [vmem:[%s5535_s9 + $0x38] sm:$0xff] %v4937_v20  ;;  %3098 = vmatprep.mubr.bf16.mxu1 %v1943_v19  ;;  %v5204_v23 = vld [vmem:[%s5339_s16 + $0x100] sm:$0xff]  }
  0xff   : > { %v1087_v29 = vpop.f32.mrf.mxu0  ;;  %3099 = vmatmul.mubr.bf16.vlgmr.msra.gmra.mxu1 %v1942_v21 }
 0x100   : > { %v4938_v30 = vpack.c.bf16 %v1697_v26, %v1696_v25  ;;  %v1088_v31 = vadd.f32 %v1087_v29, %v5523_v7  ;;  %v1698_v32 = vmax.f32 %v1086_v27, 0.0 }
 0x101   : > { %v1091_v33 = vpop.f32.mrf.mxu0  ;;  %4730 = vmatmul.mubr.msk.bf16.gmra.mxu0 %vm814_vm0, %v5201_v24 }
 0x102   : > { %2712 = vst [vmem:[%s5535_s9 + $0x40] sm:$0xff] %v4938_v30  ;;  %v1699_v34 = vmax.f32 %v1088_v31, 0.0  ;;  %v1092_v35 = vadd.f32 %v1091_v33, %v5519_v6  ;;  %1339 = vmatprep.mubr.bf16.mxu0 %v5260_v2  ;;  %v1944_v41 = vpack.c.bf16 %v1698_v32, %v1696_v25 }
 0x103   : > { %v1093_v36 = vpop.f32.mrf.mxu0 }
 0x104   : > { %v4939_v37 = vpack.c.bf16 %v1699_v34, %v1698_v32  ;;  %v1094_v38 = vadd.f32 %v1093_v36, %v5523_v7  ;;  %v1945_v40 = vpack.c.bf16 %v1699_v34, %v1697_v26  ;;  %v1700_v44 = vmax.f32 %v1092_v35, 0.0 }
 0x105   : > { %v1095_v42 = vpop.f32.mrf.mxu0 }
 0x106   : > { %2713 = vst [vmem:[%s5535_s9 + $0x48] sm:$0xff] %v4939_v37  ;;  %v1701_v46 = vmax.f32 %v1094_v38, 0.0  ;;  %v1096_v47 = vadd.f32 %v1095_v42, %v5519_v6  ;;  %3108 = vmatprep.mubr.bf16.mxu1 %v1945_v40  ;;  %v5205_v42 = vld [vmem:[%s5339_s16 + $0x108] sm:$0xff]  }
 0x107   : > { %v1097_v48 = vpop.f32.mrf.mxu0  ;;  %3109 = vmatmul.mubr.bf16.gmra.mxu1 %v1944_v41 }
 0x108   : > { %v4940_v49 = vpack.c.bf16 %v1701_v46, %v1700_v44  ;;  %v1098_v50 = vadd.f32 %v1097_v48, %v5523_v7  ;;  %v1702_v51 = vmax.f32 %v1096_v47, 0.0 }
 0x109   : > { %v1101_v52 = vpop.f32.mrf.mxu0  ;;  %4731 = vmatmul.mubr.msk.bf16.gmra.mxu0 %vm814_vm0, %v5202_v43 }
 0x10a   : > { %2714 = vst [vmem:[%s5535_s9 + $0x50] sm:$0xff] %v4940_v49  ;;  %v1703_v53 = vmax.f32 %v1098_v50, 0.0  ;;  %v1102_v54 = vadd.f32 %v1101_v52, %v5519_v6  ;;  %1349 = vmatprep.mubr.bf16.mxu0 %v5260_v2  ;;  %v1946_v60 = vpack.c.bf16 %v1702_v51, %v1700_v44 }
 0x10b   : > { %v1103_v55 = vpop.f32.mrf.mxu0 }
 0x10c   : > { %v4941_v57 = vpack.c.bf16 %v1703_v53, %v1702_v51  ;;  %v1104_v58 = vadd.f32 %v1103_v55, %v5523_v7  ;;  %v1947_v59 = vpack.c.bf16 %v1703_v53, %v1701_v46  ;;  %v1704_v3 = vmax.f32 %v1102_v54, 0.0 }
 0x10d   : > { %v1105_v61 = vpop.f32.mrf.mxu0 }
 0x10e   : > { %2715 = vst [vmem:[%s5535_s9 + $0x58] sm:$0xff] %v4941_v57  ;;  %v1705_v5 = vmax.f32 %v1104_v58, 0.0  ;;  %v1106_v8 = vadd.f32 %v1105_v61, %v5519_v6  ;;  %3118 = vmatprep.mubr.bf16.mxu1 %v1947_v59  ;;  %v5206_v61 = vld [vmem:[%s5339_s16 + $0x110] sm:$0xff]  }
 0x10f   : > { %v1107_v9 = vpop.f32.mrf.mxu0  ;;  %3119 = vmatmul.mubr.bf16.gmra.mxu1 %v1946_v60 }
 0x110   : > { %v4942_v10 = vpack.c.bf16 %v1705_v5, %v1704_v3  ;;  %v1108_v11 = vadd.f32 %v1107_v9, %v5523_v7  ;;  %v1706_v12 = vmax.f32 %v1106_v8, 0.0 }
 0x111   : > { %v1111_v13 = vpop.f32.mrf.mxu0  ;;  %4732 = vmatmul.mubr.msk.bf16.gmra.mxu0 %vm814_vm0, %v5203_v63 }
 0x112   : > { %2716 = vst [vmem:[%s5535_s9 + $0x60] sm:$0xff] %v4942_v10  ;;  %v1707_v14 = vmax.f32 %v1108_v11, 0.0  ;;  %v1112_v15 = vadd.f32 %v1111_v13, %v5519_v6  ;;  %1359 = vmatprep.mubr.bf16.mxu0 %v5260_v2  ;;  %v1948_v20 = vpack.c.bf16 %v1706_v12, %v1704_v3 }
 0x113   : > { %v1113_v16 = vpop.f32.mrf.mxu0 }
 0x114   : > { %v4943_v17 = vpack.c.bf16 %v1707_v14, %v1706_v12  ;;  %v1114_v18 = vadd.f32 %v1113_v16, %v5523_v7  ;;  %v1949_v19 = vpack.c.bf16 %v1707_v14, %v1705_v5  ;;  %v1708_v24 = vmax.f32 %v1112_v15, 0.0 }
 0x115   : > { %v1115_v21 = vpop.f32.mrf.mxu0 }
 0x116   : > { %2717 = vst [vmem:[%s5535_s9 + $0x68] sm:$0xff] %v4943_v17  ;;  %v1709_v25 = vmax.f32 %v1114_v18, 0.0  ;;  %v1116_v26 = vadd.f32 %v1115_v21, %v5519_v6  ;;  %3128 = vmatprep.mubr.bf16.mxu1 %v1949_v19  ;;  %v5207_v21 = vld [vmem:[%s5339_s16 + $0x118] sm:$0xff]  }
 0x117   : > { %v1117_v27 = vpop.f32.mrf.mxu0  ;;  %3129 = vmatmul.mubr.bf16.gmra.mxu1 %v1948_v20 }
 0x118   : > { %v4944_v29 = vpack.c.bf16 %v1709_v25, %v1708_v24  ;;  %v1118_v30 = vadd.f32 %v1117_v27, %v5523_v7  ;;  %v1710_v31 = vmax.f32 %v1116_v26, 0.0 }
 0x119   : > { %v1121_v32 = vpop.f32.mrf.mxu0  ;;  %4733 = vmatmul.mubr.msk.bf16.gmra.mxu0 %vm814_vm0, %v5204_v23 }
 0x11a   : > { %2718 = vst [vmem:[%s5535_s9 + $0x70] sm:$0xff] %v4944_v29  ;;  %v1711_v33 = vmax.f32 %v1118_v30, 0.0  ;;  %v1122_v34 = vadd.f32 %v1121_v32, %v5519_v6  ;;  %1369 = vmatprep.mubr.bf16.mxu0 %v5260_v2  ;;  %v1950_v40 = vpack.c.bf16 %v1710_v31, %v1708_v24 }
 0x11b   : > { %v1123_v35 = vpop.f32.mrf.mxu0 }
 0x11c   : > { %v4945_v36 = vpack.c.bf16 %v1711_v33, %v1710_v31  ;;  %v1124_v37 = vadd.f32 %v1123_v35, %v5523_v7  ;;  %v1951_v38 = vpack.c.bf16 %v1711_v33, %v1709_v25  ;;  %v1712_v43 = vmax.f32 %v1122_v34, 0.0 }
 0x11d   : > { %v1125_v41 = vpop.f32.mrf.mxu0 }
 0x11e   : > { %2719 = vst [vmem:[%s5535_s9 + $0x78] sm:$0xff] %v4945_v36  ;;  %v1713_v44 = vmax.f32 %v1124_v37, 0.0  ;;  %v1126_v46 = vadd.f32 %v1125_v41, %v5519_v6  ;;  %3138 = vmatprep.mubr.bf16.mxu1 %v1951_v38  ;;  %v5208_v41 = vld [vmem:[%s5339_s16 + $0x120] sm:$0xff]  }
 0x11f   : > { %v1127_v47 = vpop.f32.mrf.mxu0  ;;  %3139 = vmatmul.mubr.bf16.gmra.mxu1 %v1950_v40 }
 0x120   : > { %v4946_v48 = vpack.c.bf16 %v1713_v44, %v1712_v43  ;;  %v1128_v49 = vadd.f32 %v1127_v47, %v5523_v7  ;;  %v1714_v50 = vmax.f32 %v1126_v46, 0.0 }
 0x121   : > { %v1131_v51 = vpop.f32.mrf.mxu0  ;;  %4734 = vmatmul.mubr.msk.bf16.gmra.mxu0 %vm814_vm0, %v5205_v42 }
 0x122   : > { %2720 = vst [vmem:[%s5535_s9 + $0x80] sm:$0xff] %v4946_v48  ;;  %v1715_v52 = vmax.f32 %v1128_v49, 0.0  ;;  %v1132_v53 = vadd.f32 %v1131_v51, %v5519_v6  ;;  %1379 = vmatprep.mubr.bf16.mxu0 %v5260_v2  ;;  %v1952_v59 = vpack.c.bf16 %v1714_v50, %v1712_v43 }
 0x123   : > { %v1133_v54 = vpop.f32.mrf.mxu0 }
 0x124   : > { %v4947_v55 = vpack.c.bf16 %v1715_v52, %v1714_v50  ;;  %v1134_v57 = vadd.f32 %v1133_v54, %v5523_v7  ;;  %v1953_v58 = vpack.c.bf16 %v1715_v52, %v1713_v44  ;;  %v1716_v63 = vmax.f32 %v1132_v53, 0.0 }
 0x125   : > { %v1135_v60 = vpop.f32.mrf.mxu0 }
 0x126   : > { %2721 = vst [vmem:[%s5535_s9 + $0x88] sm:$0xff] %v4947_v55  ;;  %v1717_v3 = vmax.f32 %v1134_v57, 0.0  ;;  %v1136_v5 = vadd.f32 %v1135_v60, %v5519_v6  ;;  %3148 = vmatprep.mubr.bf16.mxu1 %v1953_v58  ;;  %v5209_v60 = vld [vmem:[%s5339_s16 + $0x128] sm:$0xff]  }
 0x127   : > { %v1137_v8 = vpop.f32.mrf.mxu0  ;;  %3149 = vmatmul.mubr.bf16.gmra.mxu1 %v1952_v59 }
 0x128   : > { %v4948_v9 = vpack.c.bf16 %v1717_v3, %v1716_v63  ;;  %v1138_v10 = vadd.f32 %v1137_v8, %v5523_v7  ;;  %v1718_v11 = vmax.f32 %v1136_v5, 0.0 }
 0x129   : > { %v1141_v12 = vpop.f32.mrf.mxu0  ;;  %4735 = vmatmul.mubr.msk.bf16.gmra.mxu0 %vm814_vm0, %v5206_v61 }
 0x12a   : > { %2722 = vst [vmem:[%s5535_s9 + $0x90] sm:$0xff] %v4948_v9  ;;  %v1719_v13 = vmax.f32 %v1138_v10, 0.0  ;;  %v1142_v14 = vadd.f32 %v1141_v12, %v5519_v6  ;;  %1389 = vmatprep.mubr.bf16.mxu0 %v5260_v2  ;;  %v1954_v19 = vpack.c.bf16 %v1718_v11, %v1716_v63 }
 0x12b   : > { %v1143_v15 = vpop.f32.mrf.mxu0 }
 0x12c   : > { %v4949_v16 = vpack.c.bf16 %v1719_v13, %v1718_v11  ;;  %v1144_v17 = vadd.f32 %v1143_v15, %v5523_v7  ;;  %v1955_v18 = vpack.c.bf16 %v1719_v13, %v1717_v3  ;;  %v1720_v23 = vmax.f32 %v1142_v14, 0.0 }
 0x12d   : > { %v1145_v20 = vpop.f32.mrf.mxu0 }
 0x12e   : > { %2723 = vst [vmem:[%s5535_s9 + $0x98] sm:$0xff] %v4949_v16  ;;  %v1721_v24 = vmax.f32 %v1144_v17, 0.0  ;;  %v1146_v25 = vadd.f32 %v1145_v20, %v5519_v6  ;;  %3158 = vmatprep.mubr.bf16.mxu1 %v1955_v18  ;;  %v5210_v20 = vld [vmem:[%s5339_s16 + $0x130] sm:$0xff]  }
 0x12f   : > { %v1147_v26 = vpop.f32.mrf.mxu0  ;;  %3159 = vmatmul.mubr.bf16.gmra.mxu1 %v1954_v19 }
 0x130   : > { %v4950_v27 = vpack.c.bf16 %v1721_v24, %v1720_v23  ;;  %v1148_v29 = vadd.f32 %v1147_v26, %v5523_v7  ;;  %v1722_v30 = vmax.f32 %v1146_v25, 0.0 }
 0x131   : > { %v1151_v31 = vpop.f32.mrf.mxu0  ;;  %4736 = vmatmul.mubr.msk.bf16.gmra.mxu0 %vm814_vm0, %v5207_v21 }
 0x132   : > { %2724 = vst [vmem:[%s5535_s9 + $0xa0] sm:$0xff] %v4950_v27  ;;  %v1723_v32 = vmax.f32 %v1148_v29, 0.0  ;;  %v1152_v33 = vadd.f32 %v1151_v31, %v5519_v6  ;;  %1399 = vmatprep.mubr.bf16.mxu0 %v5260_v2  ;;  %v1956_v38 = vpack.c.bf16 %v1722_v30, %v1720_v23 }
 0x133   : > { %v1153_v34 = vpop.f32.mrf.mxu0 }
 0x134   : > { %v4951_v35 = vpack.c.bf16 %v1723_v32, %v1722_v30  ;;  %v1154_v36 = vadd.f32 %v1153_v34, %v5523_v7  ;;  %v1957_v37 = vpack.c.bf16 %v1723_v32, %v1721_v24  ;;  %v1724_v42 = vmax.f32 %v1152_v33, 0.0 }
 0x135   : > { %v1155_v40 = vpop.f32.mrf.mxu0 }
 0x136   : > { %2725 = vst [vmem:[%s5535_s9 + $0xa8] sm:$0xff] %v4951_v35  ;;  %v1725_v43 = vmax.f32 %v1154_v36, 0.0  ;;  %v1156_v44 = vadd.f32 %v1155_v40, %v5519_v6  ;;  %3168 = vmatprep.mubr.bf16.mxu1 %v1957_v37  ;;  %v5211_v40 = vld [vmem:[%s5339_s16 + $0x138] sm:$0xff]  }
 0x137   : > { %v1157_v46 = vpop.f32.mrf.mxu0  ;;  %3169 = vmatmul.mubr.bf16.gmra.mxu1 %v1956_v38 }
 0x138   : > { %v4952_v47 = vpack.c.bf16 %v1725_v43, %v1724_v42  ;;  %v1158_v48 = vadd.f32 %v1157_v46, %v5523_v7  ;;  %v1726_v49 = vmax.f32 %v1156_v44, 0.0 }
 0x139   : > { %v1161_v50 = vpop.f32.mrf.mxu0  ;;  %4737 = vmatmul.mubr.msk.bf16.gmra.mxu0 %vm814_vm0, %v5208_v41 }
 0x13a   : > { %2726 = vst [vmem:[%s5535_s9 + $0xb0] sm:$0xff] %v4952_v47  ;;  %v1727_v51 = vmax.f32 %v1158_v48, 0.0  ;;  %v1162_v52 = vadd.f32 %v1161_v50, %v5519_v6  ;;  %1409 = vmatprep.mubr.bf16.mxu0 %v5260_v2  ;;  %v1958_v58 = vpack.c.bf16 %v1726_v49, %v1724_v42 }
 0x13b   : > { %v1163_v53 = vpop.f32.mrf.mxu0 }
 0x13c   : > { %v4953_v54 = vpack.c.bf16 %v1727_v51, %v1726_v49  ;;  %v1164_v55 = vadd.f32 %v1163_v53, %v5523_v7  ;;  %v1959_v57 = vpack.c.bf16 %v1727_v51, %v1725_v43  ;;  %v1728_v61 = vmax.f32 %v1162_v52, 0.0 }
 0x13d   : > { %v1165_v59 = vpop.f32.mrf.mxu0 }
 0x13e   : > { %2727 = vst [vmem:[%s5535_s9 + $0xb8] sm:$0xff] %v4953_v54  ;;  %v1729_v63 = vmax.f32 %v1164_v55, 0.0  ;;  %v1166_v3 = vadd.f32 %v1165_v59, %v5519_v6  ;;  %3178 = vmatprep.mubr.bf16.mxu1 %v1959_v57  ;;  %v5212_v59 = vld [vmem:[%s5339_s16 + $0x140] sm:$0xff]  }
 0x13f   : > { %v1167_v5 = vpop.f32.mrf.mxu0  ;;  %3179 = vmatmul.mubr.bf16.gmra.mxu1 %v1958_v58 }
 0x140   : > { %v4954_v8 = vpack.c.bf16 %v1729_v63, %v1728_v61  ;;  %v1168_v9 = vadd.f32 %v1167_v5, %v5523_v7  ;;  %v1730_v10 = vmax.f32 %v1166_v3, 0.0 }
 0x141   : > { %v1171_v11 = vpop.f32.mrf.mxu0  ;;  %4738 = vmatmul.mubr.msk.bf16.gmra.mxu0 %vm814_vm0, %v5209_v60 }
 0x142   : > { %2728 = vst [vmem:[%s5535_s9 + $0xc0] sm:$0xff] %v4954_v8  ;;  %v1731_v12 = vmax.f32 %v1168_v9, 0.0  ;;  %v1172_v13 = vadd.f32 %v1171_v11, %v5519_v6  ;;  %1419 = vmatprep.mubr.bf16.mxu0 %v5260_v2  ;;  %v1960_v18 = vpack.c.bf16 %v1730_v10, %v1728_v61 }
 0x143   : > { %v1173_v14 = vpop.f32.mrf.mxu0 }
 0x144   : > { %v4955_v15 = vpack.c.bf16 %v1731_v12, %v1730_v10  ;;  %v1174_v16 = vadd.f32 %v1173_v14, %v5523_v7  ;;  %v1961_v17 = vpack.c.bf16 %v1731_v12, %v1729_v63  ;;  %v1732_v21 = vmax.f32 %v1172_v13, 0.0 }
 0x145   : > { %v1175_v19 = vpop.f32.mrf.mxu0 }
 0x146   : > { %2729 = vst [vmem:[%s5535_s9 + $0xc8] sm:$0xff] %v4955_v15  ;;  %v1733_v23 = vmax.f32 %v1174_v16, 0.0  ;;  %v1176_v24 = vadd.f32 %v1175_v19, %v5519_v6  ;;  %3188 = vmatprep.mubr.bf16.mxu1 %v1961_v17  ;;  %v5213_v19 = vld [vmem:[%s5339_s16 + $0x148] sm:$0xff]  }
 0x147   : > { %v1177_v25 = vpop.f32.mrf.mxu0  ;;  %3189 = vmatmul.mubr.bf16.gmra.mxu1 %v1960_v18 }
 0x148   : > { %v4956_v26 = vpack.c.bf16 %v1733_v23, %v1732_v21  ;;  %v1178_v27 = vadd.f32 %v1177_v25, %v5523_v7  ;;  %v1734_v29 = vmax.f32 %v1176_v24, 0.0 }
 0x149   : > { %v1181_v30 = vpop.f32.mrf.mxu0  ;;  %4739 = vmatmul.mubr.msk.bf16.gmra.mxu0 %vm814_vm0, %v5210_v20 }
 0x14a   : > { %2730 = vst [vmem:[%s5535_s9 + $0xd0] sm:$0xff] %v4956_v26  ;;  %v1735_v31 = vmax.f32 %v1178_v27, 0.0  ;;  %v1182_v32 = vadd.f32 %v1181_v30, %v5519_v6  ;;  %1429 = vmatprep.mubr.bf16.mxu0 %v5260_v2  ;;  %v1962_v37 = vpack.c.bf16 %v1734_v29, %v1732_v21 }
 0x14b   : > { %v1183_v33 = vpop.f32.mrf.mxu0 }
 0x14c   : > { %v4957_v34 = vpack.c.bf16 %v1735_v31, %v1734_v29  ;;  %v1184_v35 = vadd.f32 %v1183_v33, %v5523_v7  ;;  %v1963_v36 = vpack.c.bf16 %v1735_v31, %v1733_v23  ;;  %v1736_v41 = vmax.f32 %v1182_v32, 0.0 }
 0x14d   : > { %v1185_v38 = vpop.f32.mrf.mxu0 }
 0x14e   : > { %2731 = vst [vmem:[%s5535_s9 + $0xd8] sm:$0xff] %v4957_v34  ;;  %v1737_v42 = vmax.f32 %v1184_v35, 0.0  ;;  %v1186_v43 = vadd.f32 %v1185_v38, %v5519_v6  ;;  %3198 = vmatprep.mubr.bf16.mxu1 %v1963_v36  ;;  %v5214_v38 = vld [vmem:[%s5339_s16 + $0x150] sm:$0xff]  }
 0x14f   : > { %v1187_v44 = vpop.f32.mrf.mxu0  ;;  %3199 = vmatmul.mubr.bf16.gmra.mxu1 %v1962_v37 }
 0x150   : > { %v4958_v46 = vpack.c.bf16 %v1737_v42, %v1736_v41  ;;  %v1188_v47 = vadd.f32 %v1187_v44, %v5523_v7  ;;  %v1738_v48 = vmax.f32 %v1186_v43, 0.0 }
 0x151   : > { %v1191_v49 = vpop.f32.mrf.mxu0  ;;  %4740 = vmatmul.mubr.msk.bf16.gmra.mxu0 %vm814_vm0, %v5211_v40 }
 0x152   : > { %2732 = vst [vmem:[%s5535_s9 + $0xe0] sm:$0xff] %v4958_v46  ;;  %v1739_v50 = vmax.f32 %v1188_v47, 0.0  ;;  %v1192_v51 = vadd.f32 %v1191_v49, %v5519_v6  ;;  %1439 = vmatprep.mubr.bf16.mxu0 %v5260_v2  ;;  %v1964_v57 = vpack.c.bf16 %v1738_v48, %v1736_v41 }
 0x153   : > { %v1193_v52 = vpop.f32.mrf.mxu0 }
 0x154   : > { %v4959_v53 = vpack.c.bf16 %v1739_v50, %v1738_v48  ;;  %v1194_v54 = vadd.f32 %v1193_v52, %v5523_v7  ;;  %v1965_v55 = vpack.c.bf16 %v1739_v50, %v1737_v42  ;;  %v1740_v60 = vmax.f32 %v1192_v51, 0.0 }
 0x155   : > { %v1195_v58 = vpop.f32.mrf.mxu0 }
 0x156   : > { %2733 = vst [vmem:[%s5535_s9 + $0xe8] sm:$0xff] %v4959_v53  ;;  %v1741_v61 = vmax.f32 %v1194_v54, 0.0  ;;  %v1196_v63 = vadd.f32 %v1195_v58, %v5519_v6  ;;  %3208 = vmatprep.mubr.bf16.mxu1 %v1965_v55  ;;  %v5215_v58 = vld [vmem:[%s5339_s16 + $0x158] sm:$0xff]  }
 0x157   : > { %v1197_v3 = vpop.f32.mrf.mxu0  ;;  %3209 = vmatmul.mubr.bf16.gmra.mxu1 %v1964_v57 }
 0x158   : > { %v4960_v5 = vpack.c.bf16 %v1741_v61, %v1740_v60  ;;  %v1198_v8 = vadd.f32 %v1197_v3, %v5523_v7  ;;  %v1742_v9 = vmax.f32 %v1196_v63, 0.0 }
 0x159   : > { %v1201_v10 = vpop.f32.mrf.mxu0  ;;  %4741 = vmatmul.mubr.msk.bf16.gmra.mxu0 %vm814_vm0, %v5212_v59 }
 0x15a   : > { %2734 = vst [vmem:[%s5535_s9 + $0xf0] sm:$0xff] %v4960_v5  ;;  %v1743_v11 = vmax.f32 %v1198_v8, 0.0  ;;  %v1202_v12 = vadd.f32 %v1201_v10, %v5519_v6  ;;  %1449 = vmatprep.mubr.bf16.mxu0 %v5260_v2  ;;  %v1966_v17 = vpack.c.bf16 %v1742_v9, %v1740_v60 }
 0x15b   : > { %v1203_v13 = vpop.f32.mrf.mxu0 }
 0x15c   : > { %v4961_v14 = vpack.c.bf16 %v1743_v11, %v1742_v9  ;;  %v1204_v15 = vadd.f32 %v1203_v13, %v5523_v7  ;;  %v1967_v16 = vpack.c.bf16 %v1743_v11, %v1741_v61  ;;  %v1744_v20 = vmax.f32 %v1202_v12, 0.0 }
 0x15d   : > { %v1205_v18 = vpop.f32.mrf.mxu0 }
 0x15e   : > { %2735 = vst [vmem:[%s5535_s9 + $0xf8] sm:$0xff] %v4961_v14  ;;  %v1745_v21 = vmax.f32 %v1204_v15, 0.0  ;;  %v1206_v23 = vadd.f32 %v1205_v18, %v5519_v6  ;;  %3218 = vmatprep.mubr.bf16.mxu1 %v1967_v16  ;;  %v5216_v18 = vld [vmem:[%s5339_s16 + $0x160] sm:$0xff]  }
 0x15f   : > { %v1207_v24 = vpop.f32.mrf.mxu0  ;;  %3219 = vmatmul.mubr.bf16.gmra.mxu1 %v1966_v17 }
 0x160   : > { %v4962_v25 = vpack.c.bf16 %v1745_v21, %v1744_v20  ;;  %v1208_v26 = vadd.f32 %v1207_v24, %v5523_v7  ;;  %v1746_v27 = vmax.f32 %v1206_v23, 0.0 }
 0x161   : > { %v1211_v29 = vpop.f32.mrf.mxu0  ;;  %4742 = vmatmul.mubr.msk.bf16.gmra.mxu0 %vm814_vm0, %v5213_v19 }
 0x162   : > { %2736 = vst [vmem:[%s5535_s9 + $0x100] sm:$0xff] %v4962_v25  ;;  %v1747_v30 = vmax.f32 %v1208_v26, 0.0  ;;  %v1212_v31 = vadd.f32 %v1211_v29, %v5519_v6  ;;  %1459 = vmatprep.mubr.bf16.mxu0 %v5260_v2  ;;  %v1968_v36 = vpack.c.bf16 %v1746_v27, %v1744_v20 }
 0x163   : > { %v1213_v32 = vpop.f32.mrf.mxu0 }
 0x164   : > { %v4963_v33 = vpack.c.bf16 %v1747_v30, %v1746_v27  ;;  %v1214_v34 = vadd.f32 %v1213_v32, %v5523_v7  ;;  %v1969_v35 = vpack.c.bf16 %v1747_v30, %v1745_v21  ;;  %v1748_v40 = vmax.f32 %v1212_v31, 0.0 }
 0x165   : > { %v1215_v37 = vpop.f32.mrf.mxu0 }
 0x166   : > { %2737 = vst [vmem:[%s5535_s9 + $0x108] sm:$0xff] %v4963_v33  ;;  %v1749_v41 = vmax.f32 %v1214_v34, 0.0  ;;  %v1216_v42 = vadd.f32 %v1215_v37, %v5519_v6  ;;  %3228 = vmatprep.mubr.bf16.mxu1 %v1969_v35  ;;  %v5217_v37 = vld [vmem:[%s5339_s16 + $0x168] sm:$0xff]  }
 0x167   : > { %v1217_v43 = vpop.f32.mrf.mxu0  ;;  %3229 = vmatmul.mubr.bf16.gmra.mxu1 %v1968_v36 }
 0x168   : > { %v4964_v44 = vpack.c.bf16 %v1749_v41, %v1748_v40  ;;  %v1218_v46 = vadd.f32 %v1217_v43, %v5523_v7  ;;  %v1750_v47 = vmax.f32 %v1216_v42, 0.0 }
 0x169   : > { %v1221_v48 = vpop.f32.mrf.mxu0  ;;  %4743 = vmatmul.mubr.msk.bf16.gmra.mxu0 %vm814_vm0, %v5214_v38 }
 0x16a   : > { %2738 = vst [vmem:[%s5535_s9 + $0x110] sm:$0xff] %v4964_v44  ;;  %v1751_v49 = vmax.f32 %v1218_v46, 0.0  ;;  %v1222_v50 = vadd.f32 %v1221_v48, %v5519_v6  ;;  %1469 = vmatprep.mubr.bf16.mxu0 %v5260_v2  ;;  %v1970_v55 = vpack.c.bf16 %v1750_v47, %v1748_v40 }
 0x16b   : > { %v1223_v51 = vpop.f32.mrf.mxu0 }
 0x16c   : > { %v4965_v52 = vpack.c.bf16 %v1751_v49, %v1750_v47  ;;  %v1224_v53 = vadd.f32 %v1223_v51, %v5523_v7  ;;  %v1971_v54 = vpack.c.bf16 %v1751_v49, %v1749_v41  ;;  %v1752_v59 = vmax.f32 %v1222_v50, 0.0 }
 0x16d   : > { %v1225_v57 = vpop.f32.mrf.mxu0 }
 0x16e   : > { %2739 = vst [vmem:[%s5535_s9 + $0x118] sm:$0xff] %v4965_v52  ;;  %v1753_v60 = vmax.f32 %v1224_v53, 0.0  ;;  %v1226_v61 = vadd.f32 %v1225_v57, %v5519_v6  ;;  %3238 = vmatprep.mubr.bf16.mxu1 %v1971_v54  ;;  %v5218_v57 = vld [vmem:[%s5339_s16 + $0x170] sm:$0xff]  }
 0x16f   : > { %v1227_v63 = vpop.f32.mrf.mxu0  ;;  %3239 = vmatmul.mubr.bf16.gmra.mxu1 %v1970_v55 }
 0x170   : > { %v4966_v3 = vpack.c.bf16 %v1753_v60, %v1752_v59  ;;  %v1228_v5 = vadd.f32 %v1227_v63, %v5523_v7  ;;  %v1754_v8 = vmax.f32 %v1226_v61, 0.0 }
 0x171   : > { %v1231_v9 = vpop.f32.mrf.mxu0  ;;  %4744 = vmatmul.mubr.msk.bf16.gmra.mxu0 %vm814_vm0, %v5215_v58 }
 0x172   : > { %2740 = vst [vmem:[%s5535_s9 + $0x120] sm:$0xff] %v4966_v3  ;;  %v1755_v10 = vmax.f32 %v1228_v5, 0.0  ;;  %v1232_v11 = vadd.f32 %v1231_v9, %v5519_v6  ;;  %1479 = vmatprep.mubr.bf16.mxu0 %v5260_v2  ;;  %v1972_v16 = vpack.c.bf16 %v1754_v8, %v1752_v59 }
 0x173   : > { %v1233_v12 = vpop.f32.mrf.mxu0 }
 0x174   : > { %v4967_v13 = vpack.c.bf16 %v1755_v10, %v1754_v8  ;;  %v1234_v14 = vadd.f32 %v1233_v12, %v5523_v7  ;;  %v1973_v15 = vpack.c.bf16 %v1755_v10, %v1753_v60  ;;  %v1756_v19 = vmax.f32 %v1232_v11, 0.0 }
 0x175   : > { %v1235_v17 = vpop.f32.mrf.mxu0 }
 0x176   : > { %2741 = vst [vmem:[%s5535_s9 + $0x128] sm:$0xff] %v4967_v13  ;;  %v1757_v20 = vmax.f32 %v1234_v14, 0.0  ;;  %v1236_v21 = vadd.f32 %v1235_v17, %v5519_v6  ;;  %3248 = vmatprep.mubr.bf16.mxu1 %v1973_v15  ;;  %v5219_v17 = vld [vmem:[%s5339_s16 + $0x178] sm:$0xff]  }
 0x177   : > { %v1237_v23 = vpop.f32.mrf.mxu0  ;;  %3249 = vmatmul.mubr.bf16.gmra.mxu1 %v1972_v16 }
 0x178   : > { %v4968_v24 = vpack.c.bf16 %v1757_v20, %v1756_v19  ;;  %v1238_v25 = vadd.f32 %v1237_v23, %v5523_v7  ;;  %v1758_v26 = vmax.f32 %v1236_v21, 0.0 }
 0x179   : > { %v1241_v27 = vpop.f32.mrf.mxu0  ;;  %4745 = vmatmul.mubr.msk.bf16.gmra.mxu0 %vm814_vm0, %v5216_v18 }
 0x17a   : > { %2742 = vst [vmem:[%s5535_s9 + $0x130] sm:$0xff] %v4968_v24  ;;  %v1759_v29 = vmax.f32 %v1238_v25, 0.0  ;;  %v1242_v30 = vadd.f32 %v1241_v27, %v5519_v6  ;;  %1489 = vmatprep.mubr.bf16.mxu0 %v5260_v2  ;;  %v1974_v35 = vpack.c.bf16 %v1758_v26, %v1756_v19 }
 0x17b   : > { %v1243_v31 = vpop.f32.mrf.mxu0 }
 0x17c   : > { %v4969_v32 = vpack.c.bf16 %v1759_v29, %v1758_v26  ;;  %v1244_v33 = vadd.f32 %v1243_v31, %v5523_v7  ;;  %v1975_v34 = vpack.c.bf16 %v1759_v29, %v1757_v20  ;;  %v1760_v38 = vmax.f32 %v1242_v30, 0.0 }
 0x17d   : > { %v1245_v36 = vpop.f32.mrf.mxu0 }
 0x17e   : > { %2743 = vst [vmem:[%s5535_s9 + $0x138] sm:$0xff] %v4969_v32  ;;  %v1761_v40 = vmax.f32 %v1244_v33, 0.0  ;;  %v1246_v41 = vadd.f32 %v1245_v36, %v5519_v6  ;;  %3258 = vmatprep.mubr.bf16.mxu1 %v1975_v34  ;;  %v5220_v36 = vld [vmem:[%s5339_s16 + $0x180] sm:$0xff]  }
 0x17f   : > { %v1247_v42 = vpop.f32.mrf.mxu0  ;;  %3259 = vmatmul.mubr.bf16.gmra.mxu1 %v1974_v35 }
 0x180   : > { %v4970_v43 = vpack.c.bf16 %v1761_v40, %v1760_v38  ;;  %v1248_v44 = vadd.f32 %v1247_v42, %v5523_v7  ;;  %v1762_v46 = vmax.f32 %v1246_v41, 0.0 }
 0x181   : > { %v1251_v47 = vpop.f32.mrf.mxu0  ;;  %4746 = vmatmul.mubr.msk.bf16.gmra.mxu0 %vm814_vm0, %v5217_v37 }
 0x182   : > { %2744 = vst [vmem:[%s5535_s9 + $0x140] sm:$0xff] %v4970_v43  ;;  %v1763_v48 = vmax.f32 %v1248_v44, 0.0  ;;  %v1252_v49 = vadd.f32 %v1251_v47, %v5519_v6  ;;  %1499 = vmatprep.mubr.bf16.mxu0 %v5260_v2  ;;  %v1976_v54 = vpack.c.bf16 %v1762_v46, %v1760_v38 }
 0x183   : > { %v1253_v50 = vpop.f32.mrf.mxu0 }
 0x184   : > { %v4971_v51 = vpack.c.bf16 %v1763_v48, %v1762_v46  ;;  %v1254_v52 = vadd.f32 %v1253_v50, %v5523_v7  ;;  %v1977_v53 = vpack.c.bf16 %v1763_v48, %v1761_v40  ;;  %v1764_v58 = vmax.f32 %v1252_v49, 0.0 }
 0x185   : > { %v1255_v55 = vpop.f32.mrf.mxu0 }
 0x186   : > { %2745 = vst [vmem:[%s5535_s9 + $0x148] sm:$0xff] %v4971_v51  ;;  %v1765_v59 = vmax.f32 %v1254_v52, 0.0  ;;  %v1256_v60 = vadd.f32 %v1255_v55, %v5519_v6  ;;  %3268 = vmatprep.mubr.bf16.mxu1 %v1977_v53  ;;  %v5221_v55 = vld [vmem:[%s5339_s16 + $0x188] sm:$0xff]  }
 0x187   : > { %v1257_v61 = vpop.f32.mrf.mxu0  ;;  %3269 = vmatmul.mubr.bf16.gmra.mxu1 %v1976_v54 }
 0x188   : > { %v4972_v63 = vpack.c.bf16 %v1765_v59, %v1764_v58  ;;  %v1258_v3 = vadd.f32 %v1257_v61, %v5523_v7  ;;  %v1766_v5 = vmax.f32 %v1256_v60, 0.0 }
 0x189   : > { %v1261_v8 = vpop.f32.mrf.mxu0  ;;  %4747 = vmatmul.mubr.msk.bf16.gmra.mxu0 %vm814_vm0, %v5218_v57 }
 0x18a   : > { %2746 = vst [vmem:[%s5535_s9 + $0x150] sm:$0xff] %v4972_v63  ;;  %v1767_v9 = vmax.f32 %v1258_v3, 0.0  ;;  %v1262_v10 = vadd.f32 %v1261_v8, %v5519_v6  ;;  %1509 = vmatprep.mubr.bf16.mxu0 %v5260_v2  ;;  %v1978_v15 = vpack.c.bf16 %v1766_v5, %v1764_v58 }
 0x18b   : > { %v1263_v11 = vpop.f32.mrf.mxu0 }
 0x18c   : > { %v4973_v12 = vpack.c.bf16 %v1767_v9, %v1766_v5  ;;  %v1264_v13 = vadd.f32 %v1263_v11, %v5523_v7  ;;  %v1979_v14 = vpack.c.bf16 %v1767_v9, %v1765_v59  ;;  %v1768_v18 = vmax.f32 %v1262_v10, 0.0 }
 0x18d   : > { %v1265_v16 = vpop.f32.mrf.mxu0 }
 0x18e   : > { %2747 = vst [vmem:[%s5535_s9 + $0x158] sm:$0xff] %v4973_v12  ;;  %v1769_v19 = vmax.f32 %v1264_v13, 0.0  ;;  %v1266_v20 = vadd.f32 %v1265_v16, %v5519_v6  ;;  %3278 = vmatprep.mubr.bf16.mxu1 %v1979_v14  ;;  %v5222_v16 = vld [vmem:[%s5339_s16 + $0x190] sm:$0xff]  }
 0x18f   : > { %v1267_v21 = vpop.f32.mrf.mxu0  ;;  %3279 = vmatmul.mubr.bf16.gmra.mxu1 %v1978_v15 }
 0x190   : > { %v4974_v23 = vpack.c.bf16 %v1769_v19, %v1768_v18  ;;  %v1268_v24 = vadd.f32 %v1267_v21, %v5523_v7  ;;  %v1770_v25 = vmax.f32 %v1266_v20, 0.0 }
 0x191   : > { %v1271_v26 = vpop.f32.mrf.mxu0  ;;  %4748 = vmatmul.mubr.msk.bf16.gmra.mxu0 %vm814_vm0, %v5219_v17 }
 0x192   : > { %2748 = vst [vmem:[%s5535_s9 + $0x160] sm:$0xff] %v4974_v23  ;;  %v1771_v27 = vmax.f32 %v1268_v24, 0.0  ;;  %v1272_v29 = vadd.f32 %v1271_v26, %v5519_v6  ;;  %1519 = vmatprep.mubr.bf16.mxu0 %v5260_v2  ;;  %v1980_v34 = vpack.c.bf16 %v1770_v25, %v1768_v18 }
 0x193   : > { %v1273_v30 = vpop.f32.mrf.mxu0 }
 0x194   : > { %v4975_v31 = vpack.c.bf16 %v1771_v27, %v1770_v25  ;;  %v1274_v32 = vadd.f32 %v1273_v30, %v5523_v7  ;;  %v1981_v33 = vpack.c.bf16 %v1771_v27, %v1769_v19  ;;  %v1772_v37 = vmax.f32 %v1272_v29, 0.0 }
 0x195   : > { %v1275_v35 = vpop.f32.mrf.mxu0 }
 0x196   : > { %2749 = vst [vmem:[%s5535_s9 + $0x168] sm:$0xff] %v4975_v31  ;;  %v1773_v38 = vmax.f32 %v1274_v32, 0.0  ;;  %v1276_v40 = vadd.f32 %v1275_v35, %v5519_v6  ;;  %3288 = vmatprep.mubr.bf16.mxu1 %v1981_v33  ;;  %v5223_v35 = vld [vmem:[%s5339_s16 + $0x198] sm:$0xff]  }
 0x197   : > { %v1277_v41 = vpop.f32.mrf.mxu0  ;;  %3289 = vmatmul.mubr.bf16.gmra.mxu1 %v1980_v34 }
 0x198   : > { %v4976_v42 = vpack.c.bf16 %v1773_v38, %v1772_v37  ;;  %v1278_v43 = vadd.f32 %v1277_v41, %v5523_v7  ;;  %v1774_v44 = vmax.f32 %v1276_v40, 0.0 }
 0x199   : > { %v1281_v46 = vpop.f32.mrf.mxu0  ;;  %4749 = vmatmul.mubr.msk.bf16.gmra.mxu0 %vm814_vm0, %v5220_v36 }
 0x19a   : > { %2750 = vst [vmem:[%s5535_s9 + $0x170] sm:$0xff] %v4976_v42  ;;  %v1775_v47 = vmax.f32 %v1278_v43, 0.0  ;;  %v1282_v48 = vadd.f32 %v1281_v46, %v5519_v6  ;;  %1529 = vmatprep.mubr.bf16.mxu0 %v5260_v2  ;;  %v1982_v53 = vpack.c.bf16 %v1774_v44, %v1772_v37 }
 0x19b   : > { %v1283_v49 = vpop.f32.mrf.mxu0 }
 0x19c   : > { %v4977_v50 = vpack.c.bf16 %v1775_v47, %v1774_v44  ;;  %v1284_v51 = vadd.f32 %v1283_v49, %v5523_v7  ;;  %v1983_v52 = vpack.c.bf16 %v1775_v47, %v1773_v38  ;;  %v1776_v57 = vmax.f32 %v1282_v48, 0.0 }
 0x19d   : > { %v1285_v54 = vpop.f32.mrf.mxu0 }
 0x19e   : > { %2751 = vst [vmem:[%s5535_s9 + $0x178] sm:$0xff] %v4977_v50  ;;  %v1777_v58 = vmax.f32 %v1284_v51, 0.0  ;;  %v1286_v59 = vadd.f32 %v1285_v54, %v5519_v6  ;;  %3298 = vmatprep.mubr.bf16.mxu1 %v1983_v52  ;;  %v5224_v54 = vld [vmem:[%s5339_s16 + $0x1a0] sm:$0xff]  }
 0x19f   : > { %v1287_v60 = vpop.f32.mrf.mxu0  ;;  %3299 = vmatmul.mubr.bf16.gmra.mxu1 %v1982_v53 }
 0x1a0   : > { %v4978_v61 = vpack.c.bf16 %v1777_v58, %v1776_v57  ;;  %v1288_v63 = vadd.f32 %v1287_v60, %v5523_v7  ;;  %v1778_v3 = vmax.f32 %v1286_v59, 0.0 }
 0x1a1   : > { %v1291_v5 = vpop.f32.mrf.mxu0  ;;  %4750 = vmatmul.mubr.msk.bf16.gmra.mxu0 %vm814_vm0, %v5221_v55 }
 0x1a2   : > { %2752 = vst [vmem:[%s5535_s9 + $0x180] sm:$0xff] %v4978_v61  ;;  %v1779_v8 = vmax.f32 %v1288_v63, 0.0  ;;  %v1292_v9 = vadd.f32 %v1291_v5, %v5519_v6  ;;  %1539 = vmatprep.mubr.bf16.mxu0 %v5260_v2  ;;  %v1984_v14 = vpack.c.bf16 %v1778_v3, %v1776_v57 }
 0x1a3   : > { %v1293_v10 = vpop.f32.mrf.mxu0 }
 0x1a4   : > { %v4979_v11 = vpack.c.bf16 %v1779_v8, %v1778_v3  ;;  %v1294_v12 = vadd.f32 %v1293_v10, %v5523_v7  ;;  %v1985_v13 = vpack.c.bf16 %v1779_v8, %v1777_v58  ;;  %v1780_v17 = vmax.f32 %v1292_v9, 0.0 }
 0x1a5   : > { %v1295_v15 = vpop.f32.mrf.mxu0 }
 0x1a6   : > { %2753 = vst [vmem:[%s5535_s9 + $0x188] sm:$0xff] %v4979_v11  ;;  %v1781_v18 = vmax.f32 %v1294_v12, 0.0  ;;  %v1296_v19 = vadd.f32 %v1295_v15, %v5519_v6  ;;  %3308 = vmatprep.mubr.bf16.mxu1 %v1985_v13  ;;  %v5225_v15 = vld [vmem:[%s5339_s16 + $0x1a8] sm:$0xff]  }
 0x1a7   : > { %v1297_v20 = vpop.f32.mrf.mxu0  ;;  %3309 = vmatmul.mubr.bf16.gmra.mxu1 %v1984_v14 }
 0x1a8   : > { %v4980_v21 = vpack.c.bf16 %v1781_v18, %v1780_v17  ;;  %v1298_v23 = vadd.f32 %v1297_v20, %v5523_v7  ;;  %v1782_v24 = vmax.f32 %v1296_v19, 0.0 }
 0x1a9   : > { %v1301_v25 = vpop.f32.mrf.mxu0  ;;  %4751 = vmatmul.mubr.msk.bf16.gmra.mxu0 %vm814_vm0, %v5222_v16 }
 0x1aa   : > { %2754 = vst [vmem:[%s5535_s9 + $0x190] sm:$0xff] %v4980_v21  ;;  %v1783_v26 = vmax.f32 %v1298_v23, 0.0  ;;  %v1302_v27 = vadd.f32 %v1301_v25, %v5519_v6  ;;  %1549 = vmatprep.mubr.bf16.mxu0 %v5260_v2  ;;  %v1986_v33 = vpack.c.bf16 %v1782_v24, %v1780_v17 }
 0x1ab   : > { %v1303_v29 = vpop.f32.mrf.mxu0 }
 0x1ac   : > { %v4981_v30 = vpack.c.bf16 %v1783_v26, %v1782_v24  ;;  %v1304_v31 = vadd.f32 %v1303_v29, %v5523_v7  ;;  %v1987_v32 = vpack.c.bf16 %v1783_v26, %v1781_v18  ;;  %v1784_v36 = vmax.f32 %v1302_v27, 0.0 }
 0x1ad   : > { %v1305_v34 = vpop.f32.mrf.mxu0 }
 0x1ae   : > { %2755 = vst [vmem:[%s5535_s9 + $0x198] sm:$0xff] %v4981_v30  ;;  %v1785_v37 = vmax.f32 %v1304_v31, 0.0  ;;  %v1306_v38 = vadd.f32 %v1305_v34, %v5519_v6  ;;  %3318 = vmatprep.mubr.bf16.mxu1 %v1987_v32 }
 0x1af   : > { %v1307_v40 = vpop.f32.mrf.mxu0  ;;  %3319 = vmatmul.mubr.bf16.gmra.mxu1 %v1986_v33 }
 0x1b0   : > { %v4982_v41 = vpack.c.bf16 %v1785_v37, %v1784_v36  ;;  %v1308_v42 = vadd.f32 %v1307_v40, %v5523_v7  ;;  %v1786_v43 = vmax.f32 %v1306_v38, 0.0 }
 0x1b1   : > { %v1311_v44 = vpop.f32.mrf.mxu0  ;;  %4752 = vmatmul.mubr.msk.bf16.gmra.mxu0 %vm814_vm0, %v5223_v35 }
 0x1b2   : > { %2756 = vst [vmem:[%s5535_s9 + $0x1a0] sm:$0xff] %v4982_v41  ;;  %v1787_v46 = vmax.f32 %v1308_v42, 0.0  ;;  %v1312_v47 = vadd.f32 %v1311_v44, %v5519_v6  ;;  %1559 = vmatprep.mubr.bf16.mxu0 %v5260_v2  ;;  %v1988_v52 = vpack.c.bf16 %v1786_v43, %v1784_v36 }
 0x1b3   : > { %v1313_v48 = vpop.f32.mrf.mxu0 }
 0x1b4   : > { %v4983_v49 = vpack.c.bf16 %v1787_v46, %v1786_v43  ;;  %v1314_v50 = vadd.f32 %v1313_v48, %v5523_v7  ;;  %v1989_v51 = vpack.c.bf16 %v1787_v46, %v1785_v37  ;;  %v1788_v55 = vmax.f32 %v1312_v47, 0.0  ;;  %v5226_v37 = vld [vmem:[%s5339_s16 + $0x1b0] sm:$0xff]  }
 0x1b5   : > { %v1315_v53 = vpop.f32.mrf.mxu0 }
 0x1b6   : > { %2757 = vst [vmem:[%s5535_s9 + $0x1a8] sm:$0xff] %v4983_v49  ;;  %v1789_v57 = vmax.f32 %v1314_v50, 0.0  ;;  %v1316_v58 = vadd.f32 %v1315_v53, %v5519_v6  ;;  %3328 = vmatprep.mubr.bf16.mxu1 %v1989_v51 }
 0x1b7   : > { %v1317_v59 = vpop.f32.mrf.mxu0  ;;  %3329 = vmatmul.mubr.bf16.gmra.mxu1 %v1988_v52 }
 0x1b8   : > { %v4984_v60 = vpack.c.bf16 %v1789_v57, %v1788_v55  ;;  %v1318_v61 = vadd.f32 %v1317_v59, %v5523_v7  ;;  %v1790_v63 = vmax.f32 %v1316_v58, 0.0 }
 0x1b9   : > { %v1321_v3 = vpop.f32.mrf.mxu0  ;;  %4753 = vmatmul.mubr.msk.bf16.gmra.mxu0 %vm814_vm0, %v5224_v54 }
 0x1ba   : > { %2758 = vst [vmem:[%s5535_s9 + $0x1b0] sm:$0xff] %v4984_v60  ;;  %v1791_v5 = vmax.f32 %v1318_v61, 0.0  ;;  %v1322_v8 = vadd.f32 %v1321_v3, %v5519_v6  ;;  %1569 = vmatprep.mubr.bf16.mxu0 %v5260_v2  ;;  %v1990_v13 = vpack.c.bf16 %v1790_v63, %v1788_v55  ;;  %v5227_v61 = vld [vmem:[%s5339_s16 + $0x1b8] sm:$0xff]  }
 0x1bb   : > { %v1323_v9 = vpop.f32.mrf.mxu0 }
 0x1bc   : > { %v4985_v10 = vpack.c.bf16 %v1791_v5, %v1790_v63  ;;  %v1324_v11 = vadd.f32 %v1323_v9, %v5523_v7  ;;  %v1991_v12 = vpack.c.bf16 %v1791_v5, %v1789_v57  ;;  %v1792_v16 = vmax.f32 %v1322_v8, 0.0 }
 0x1bd   : > { %v1325_v14 = vpop.f32.mrf.mxu0 }
 0x1be   : > { %2759 = vst [vmem:[%s5535_s9 + $0x1b8] sm:$0xff] %v4985_v10  ;;  %v1793_v17 = vmax.f32 %v1324_v11, 0.0  ;;  %v1326_v18 = vadd.f32 %v1325_v14, %v5519_v6  ;;  %3338 = vmatprep.mubr.bf16.mxu1 %v1991_v12 }
 0x1bf   : > { %v1327_v19 = vpop.f32.mrf.mxu0  ;;  %v5801_v20 = vpop.f32.mrf.mxu1  ;;  %3339 = vmatmul.mubr.bf16.gmra.mxu1 %v1990_v13 }
 0x1c0   : > { %v4986_v21 = vpack.c.bf16 %v1793_v17, %v1792_v16  ;;  %v1328_v23 = vadd.f32 %v1327_v19, %v5523_v7  ;;  %v1794_v26 = vmax.f32 %v1326_v18, 0.0 }
 0x1c1   : > { %v1331_v24 = vpop.f32.mrf.mxu0  ;;  %4754 = vmatmul.mubr.msk.bf16.gmra.mxu0 %vm814_vm0, %v5225_v15  ;;  %v5805_v25 = vpop.f32.mrf.mxu1 }
 0x1c2   : > { %2760 = vst [vmem:[%s5535_s9 + $0x1c0] sm:$0xff] %v4986_v21  ;;  %v1795_v27 = vmax.f32 %v1328_v23, 0.0  ;;  %v1332_v29 = vadd.f32 %v1331_v24, %v5519_v6  ;;  %1579 = vmatprep.mubr.bf16.mxu0 %v5260_v2  ;;  %v1992_v38 = vpack.c.bf16 %v1794_v26, %v1792_v16 }
 0x1c3   : > { %v1333_v30 = vpop.f32.mrf.mxu0  ;;  %v5810_v31 = vpop.f32.mrf.mxu1 }
 0x1c4   : > { %v4987_v32 = vpack.c.bf16 %v1795_v27, %v1794_v26  ;;  %v1334_v33 = vadd.f32 %v1333_v30, %v5523_v7  ;;  %v1993_v36 = vpack.c.bf16 %v1795_v27, %v1793_v17  ;;  %v1796_v40 = vmax.f32 %v1332_v29, 0.0  ;;  %v5228_v29 = vld [vmem:[%s5339_s16 + $0x1c0] sm:$0xff]  }
 0x1c5   : > { %v1335_v34 = vpop.f32.mrf.mxu0  ;;  %v5813_v35 = vpop.f32.mrf.mxu1 }
 0x1c6   : > { %2761 = vst [vmem:[%s5535_s9 + $0x1c8] sm:$0xff] %v4987_v32  ;;  %v1797_v41 = vmax.f32 %v1334_v33, 0.0  ;;  %v1336_v42 = vadd.f32 %v1335_v34, %v5519_v6  ;;  %3348 = vmatprep.mubr.bf16.mxu1 %v1993_v36 }
 0x1c7   : > { %v1337_v43 = vpop.f32.mrf.mxu0  ;;  %v5818_v44 = vpop.f32.mrf.mxu1  ;;  %3349 = vmatmul.mubr.bf16.gmra.mxu1 %v1992_v38 }
 0x1c8   : > { %v4988_v46 = vpack.c.bf16 %v1797_v41, %v1796_v40  ;;  %v1338_v47 = vadd.f32 %v1337_v43, %v5523_v7  ;;  %v1798_v50 = vmax.f32 %v1336_v42, 0.0 }
 0x1c9   : > { %v1341_v48 = vpop.f32.mrf.mxu0  ;;  %4755 = vmatmul.mubr.msk.bf16.gmra.mxu0 %vm814_vm0, %v5226_v37  ;;  %v5822_v49 = vpop.f32.mrf.mxu1 }
 0x1ca   : > { %2762 = vst [vmem:[%s5535_s9 + $0x1d0] sm:$0xff] %v4988_v46  ;;  %v1799_v51 = vmax.f32 %v1338_v47, 0.0  ;;  %v1342_v52 = vadd.f32 %v1341_v48, %v5519_v6  ;;  %1589 = vmatprep.mubr.bf16.mxu0 %v5260_v2  ;;  %v1994_v63 = vpack.c.bf16 %v1798_v50, %v1796_v40 }
 0x1cb   : > { %v1343_v53 = vpop.f32.mrf.mxu0  ;;  %v5827_v54 = vpop.f32.mrf.mxu1 }
 0x1cc   : > { %v4989_v55 = vpack.c.bf16 %v1799_v51, %v1798_v50  ;;  %v1344_v57 = vadd.f32 %v1343_v53, %v5523_v7  ;;  %v1995_v60 = vpack.c.bf16 %v1799_v51, %v1797_v41  ;;  %v1800_v3 = vmax.f32 %v1342_v52, 0.0 }
 0x1cd   : > { %v1345_v58 = vpop.f32.mrf.mxu0  ;;  %v5830_v59 = vpop.f32.mrf.mxu1 }
 0x1ce   : > { %2763 = vst [vmem:[%s5535_s9 + $0x1d8] sm:$0xff] %v4989_v55  ;;  %v1801_v5 = vmax.f32 %v1344_v57, 0.0  ;;  %v1346_v8 = vadd.f32 %v1345_v58, %v5519_v6  ;;  %3358 = vmatprep.mubr.bf16.mxu1 %v1995_v60  ;;  %v5229_v58 = vld [vmem:[%s5339_s16 + $0x1c8] sm:$0xff]  }
 0x1cf   : > { %v1347_v9 = vpop.f32.mrf.mxu0  ;;  %v5835_v10 = vpop.f32.mrf.mxu1  ;;  %3359 = vmatmul.mubr.bf16.gmra.mxu1 %v1994_v63 }
 0x1d0   : > { %v4990_v11 = vpack.c.bf16 %v1801_v5, %v1800_v3  ;;  %v1348_v12 = vadd.f32 %v1347_v9, %v5523_v7  ;;  %v1802_v15 = vmax.f32 %v1346_v8, 0.0 }
 0x1d1   : > { %v1351_v13 = vpop.f32.mrf.mxu0  ;;  %4756 = vmatmul.mubr.msk.bf16.gmra.mxu0 %vm814_vm0, %v5227_v61  ;;  %v5839_v14 = vpop.f32.mrf.mxu1 }
 0x1d2   : > { %2764 = vst [vmem:[%s5535_s9 + $0x1e0] sm:$0xff] %v4990_v11  ;;  %v1803_v16 = vmax.f32 %v1348_v12, 0.0  ;;  %v1352_v17 = vadd.f32 %v1351_v13, %v5519_v6  ;;  %1599 = vmatprep.mubr.bf16.mxu0 %v5260_v2  ;;  %v1996_v30 = vpack.c.bf16 %v1802_v15, %v1800_v3 }
 0x1d3   : > { %v1353_v18 = vpop.f32.mrf.mxu0  ;;  %v5844_v19 = vpop.f32.mrf.mxu1 }
 0x1d4   : > { %v4991_v21 = vpack.c.bf16 %v1803_v16, %v1802_v15  ;;  %v1354_v23 = vadd.f32 %v1353_v18, %v5523_v7  ;;  %v1997_v27 = vpack.c.bf16 %v1803_v16, %v1801_v5  ;;  %v1804_v32 = vmax.f32 %v1352_v17, 0.0  ;;  %v2864_v15 = vld [vmem:[%s6902_s4] sm:$0x3] }
 0x1d5   : > { %v1355_v24 = vpop.f32.mrf.mxu0  ;;  %v5847_v26 = vpop.f32.mrf.mxu1 }
 0x1d6   : > { %2765 = vst [vmem:[%s5535_s9 + $0x1e8] sm:$0xff] %v4991_v21  ;;  %v1805_v33 = vmax.f32 %v1354_v23, 0.0  ;;  %v1356_v34 = vadd.f32 %v1355_v24, %v5519_v6  ;;  %3368 = vmatprep.mubr.bf16.mxu1 %v1997_v27 }
 0x1d7   : > { %v1357_v36 = vpop.f32.mrf.mxu0  ;;  %v5852_v37 = vpop.f32.mrf.mxu1  ;;  %3369 = vmatmul.mubr.bf16.gmra.mxu1 %v1996_v30 }
 0x1d8   : > { %v4992_v38 = vpack.c.bf16 %v1805_v33, %v1804_v32  ;;  %v1358_v40 = vadd.f32 %v1357_v36, %v5523_v7  ;;  %v1806_v43 = vmax.f32 %v1356_v34, 0.0  ;;  %v5230_v34 = vld [vmem:[%s5339_s16 + $0x1d0] sm:$0xff]  }
 0x1d9   : > { %v1361_v41 = vpop.f32.mrf.mxu0  ;;  %4757 = vmatmul.mubr.msk.bf16.gmra.mxu0 %vm814_vm0, %v5228_v29  ;;  %v5856_v42 = vpop.f32.mrf.mxu1  ;;  %v5886_v29 = vrot.slane %v2864_v15, %v456_v1 }
 0x1da   : > { %2766 = vst [vmem:[%s5535_s9 + $0x1f0] sm:$0xff] %v4992_v38  ;;  %v1807_v46 = vmax.f32 %v1358_v40, 0.0  ;;  %v1362_v47 = vadd.f32 %v1361_v41, %v5519_v6  ;;  %1609 = vmatprep.mubr.bf16.mxu0 %v5260_v2  ;;  %v1998_v60 = vpack.c.bf16 %v1806_v43, %v1804_v32 }
 0x1db   : > { %v1363_v48 = vpop.f32.mrf.mxu0  ;;  %v5861_v50 = vpop.f32.mrf.mxu1 }
 0x1dc   : > { %v4993_v51 = vpack.c.bf16 %v1807_v46, %v1806_v43  ;;  %v1364_v52 = vadd.f32 %v1363_v48, %v5523_v7  ;;  %v1999_v57 = vpack.c.bf16 %v1807_v46, %v1805_v33  ;;  %v1808_v61 = vmax.f32 %v1362_v47, 0.0 }
 0x1dd   : > { %v1365_v53 = vpop.f32.mrf.mxu0  ;;  %v5864_v55 = vpop.f32.mrf.mxu1  ;;  %v5895_v47 = vrot.slane %v2864_v15, %v460_v4 }
 0x1de   : > { %2767 = vst [vmem:[%s5535_s9 + $0x1f8] sm:$0xff] %v4993_v51  ;;  %v1809_v63 = vmax.f32 %v1364_v52, 0.0  ;;  %v1366_v3 = vadd.f32 %v1365_v53, %v5519_v6  ;;  %3378 = vmatprep.mubr.bf16.mxu1 %v1999_v57 }
 0x1df   : > { %v1367_v5 = vpop.f32.mrf.mxu0  ;;  %v5869_v8 = vpop.f32.mrf.mxu1  ;;  %3379 = vmatmul.mubr.bf16.gmra.mxu1 %v1998_v60 }
 0x1e0   : > { %v4994_v9 = vpack.c.bf16 %v1809_v63, %v1808_v61  ;;  %v1368_v11 = vadd.f32 %v1367_v5, %v5523_v7  ;;  %v1810_v16 = vmax.f32 %v1366_v3, 0.0 }
 0x1e1   : > { %v1371_v12 = vpop.f32.mrf.mxu0  ;;  %4758 = vmatmul.mubr.msk.bf16.gmra.mxu0 %vm814_vm0, %v5229_v58  ;;  %v5873_v13 = vpop.f32.mrf.mxu1 }
 0x1e2   : > { %2768 = vst [vmem:[%s5535_s9 + $0x200] sm:$0xff] %v4994_v9  ;;  %v1811_v17 = vmax.f32 %v1368_v11, 0.0  ;;  %v1372_v18 = vadd.f32 %v1371_v12, %v5519_v6  ;;  %1619 = vmatprep.mubr.bf16.mxu0 %v5260_v2  ;;  %v2000_v36 = vpack.c.bf16 %v1810_v16, %v1808_v61 }
 0x1e3   : > { %v1373_v21 = vpop.f32.mrf.mxu0  ;;  %v5881_v23 = vpop.f32.mrf.mxu1 }
 0x1e4   : > { %v4995_v24 = vpack.c.bf16 %v1811_v17, %v1810_v16  ;;  %v1374_v27 = vadd.f32 %v1373_v21, %v5523_v7  ;;  %v2001_v33 = vpack.c.bf16 %v1811_v17, %v1809_v63  ;;  %v1812_v38 = vmax.f32 %v1372_v18, 0.0  ;;  %v5231_v16 = vld [vmem:[%s5339_s16 + $0x1d8] sm:$0xff]  }
 0x1e5   : > { %v1375_v30 = vpop.f32.mrf.mxu0  ;;  %v5888_v32 = vpop.f32.mrf.mxu1 }
 0x1e6   : > { %2769 = vst [vmem:[%s5535_s9 + $0x208] sm:$0xff] %v4995_v24  ;;  %v1813_v40 = vmax.f32 %v1374_v27, 0.0  ;;  %v1376_v41 = vadd.f32 %v1375_v30, %v5519_v6  ;;  %3388 = vmatprep.mubr.bf16.mxu1 %v2001_v33 }
 0x1e7   : > { %v1377_v43 = vpop.f32.mrf.mxu0  ;;  %v3150_v46 = vpop.f32.mrf.mxu1  ;;  %3389 = vmatmul.mubr.bf16.gmra.mxu1 %v2000_v36 }
 0x1e8   : > { %v4996_v1 = vpack.c.bf16 %v1813_v40, %v1812_v38  ;;  %v1378_v48 = vadd.f32 %v1377_v43, %v5523_v7  ;;  %v3151_v51 = vadd.f32 %v3150_v46, %v5886_v29  ;;  %v1814_v52 = vmax.f32 %v1376_v41, 0.0 }
 0x1e9   : > { %v1381_v53 = vpop.f32.mrf.mxu0  ;;  %4759 = vmatmul.mubr.msk.bf16.gmra.mxu0 %vm814_vm0, %v5230_v34  ;;  %v3152_v57 = vpop.f32.mrf.mxu1 }
 0x1ea   : > { %2770 = vst [vmem:[%s5535_s9 + $0x210] sm:$0xff] %v4996_v1  ;;  %v1815_v58 = vmax.f32 %v1378_v48, 0.0  ;;  %v1382_v60 = vadd.f32 %v1381_v53, %v5519_v6  ;;  %3773 = vxpose.xlu0.b32.start [1/16] %v3151_v51, 128  ;;  %v3153_v0 = vadd.f32 %v3152_v57, %v5895_v47  ;;  %1629 = vmatprep.mubr.bf16.mxu0 %v5260_v2 }
 0x1eb   : > { %v1383_v4 = vpop.f32.mrf.mxu0  ;;  %v3154_v61 = vpop.f32.mrf.mxu1  ;;  %v2002_v9 = vpack.c.bf16 %v1814_v52, %v1812_v38 }
 0x1ec   : > { %v4997_v63 = vpack.c.bf16 %v1815_v58, %v1814_v52  ;;  %v1384_v3 = vadd.f32 %v1383_v4, %v5523_v7  ;;  %v3155_v5 = vadd.f32 %v3154_v61, %v5886_v29  ;;  %3805 = vxpose.xlu1.b32.start [1/16] %v3153_v0, 128  ;;  %v2003_v15 = vpack.c.bf16 %v1815_v58, %v1813_v40  ;;  %v5232_v61 = vld [vmem:[%s5339_s16 + $0x1e0] sm:$0xff]  }
 0x1ed   : > { %v1385_v11 = vpop.f32.mrf.mxu0  ;;  %v3156_v12 = vpop.f32.mrf.mxu1  ;;  %v1816_v17 = vmax.f32 %v1382_v60, 0.0 }
 0x1ee   : > { %2771 = vst [vmem:[%s5535_s9 + $0x218] sm:$0xff] %v4997_v63  ;;  %v1817_v18 = vmax.f32 %v1384_v3, 0.0  ;;  %v1386_v21 = vadd.f32 %v1385_v11, %v5519_v6  ;;  %3774 = vxpose.xlu0.b32.cont [2/16] %v3155_v5, 128  ;;  %v3157_v24 = vadd.f32 %v3156_v12, %v5895_v47  ;;  %3398 = vmatprep.mubr.bf16.mxu1 %v2003_v15 }
 0x1ef   : > { %v1387_v27 = vpop.f32.mrf.mxu0  ;;  %v3160_v30 = vpop.f32.mrf.mxu1  ;;  %3399 = vmatmul.mubr.bf16.gmra.mxu1 %v2002_v9 }
 0x1f0   : > { %v4998_v33 = vpack.c.bf16 %v1817_v18, %v1816_v17  ;;  %v1388_v34 = vadd.f32 %v1387_v27, %v5523_v7  ;;  %v3161_v36 = vadd.f32 %v3160_v30, %v5886_v29  ;;  %3806 = vxpose.xlu1.b32.cont [2/16] %v3157_v24, 128  ;;  %v1818_v38 = vmax.f32 %v1386_v21, 0.0 }
 0x1f1   : > { %v1391_v40 = vpop.f32.mrf.mxu0  ;;  %4760 = vmatmul.mubr.msk.bf16.gmra.mxu0 %vm814_vm0, %v5231_v16  ;;  %v3162_v41 = vpop.f32.mrf.mxu1 }
 0x1f2   : > { %2772 = vst [vmem:[%s5535_s9 + $0x220] sm:$0xff] %v4998_v33  ;;  %v1819_v43 = vmax.f32 %v1388_v34, 0.0  ;;  %v1392_v46 = vadd.f32 %v1391_v40, %v5519_v6  ;;  %v3163_v1 = vadd.f32 %v3162_v41, %v5895_v47  ;;  %3775 = vxpose.xlu0.b32.cont [3/16] %v3161_v36, 128  ;;  %1639 = vmatprep.mubr.bf16.mxu0 %v5260_v2 }
 0x1f3   : > { %v1393_v48 = vpop.f32.mrf.mxu0  ;;  %v3164_v51 = vpop.f32.mrf.mxu1  ;;  %v2004_v58 = vpack.c.bf16 %v1818_v38, %v1816_v17 }
 0x1f4   : > { %v4999_v52 = vpack.c.bf16 %v1819_v43, %v1818_v38  ;;  %v1394_v53 = vadd.f32 %v1393_v48, %v5523_v7  ;;  %v3165_v57 = vadd.f32 %v3164_v51, %v5886_v29  ;;  %3807 = vxpose.xlu1.b32.cont [3/16] %v3163_v1, 128  ;;  %v2005_v4 = vpack.c.bf16 %v1819_v43, %v1817_v18  ;;  %v5233_v51 = vld [vmem:[%s5339_s16 + $0x1e8] sm:$0xff]  }
 0x1f5   : > { %v1395_v60 = vpop.f32.mrf.mxu0  ;;  %v3166_v0 = vpop.f32.mrf.mxu1  ;;  %v1820_v63 = vmax.f32 %v1392_v46, 0.0 }
 0x1f6   : > { %2773 = vst [vmem:[%s5535_s9 + $0x228] sm:$0xff] %v4999_v52  ;;  %v1821_v3 = vmax.f32 %v1394_v53, 0.0  ;;  %v1396_v5 = vadd.f32 %v1395_v60, %v5519_v6  ;;  %3776 = vxpose.xlu0.b32.cont [4/16] %v3165_v57, 128  ;;  %v3167_v9 = vadd.f32 %v3166_v0, %v5895_v47  ;;  %3408 = vmatprep.mubr.bf16.mxu1 %v2005_v4 }
 0x1f7   : > { %v1397_v11 = vpop.f32.mrf.mxu0  ;;  %v3170_v12 = vpop.f32.mrf.mxu1  ;;  %3409 = vmatmul.mubr.bf16.gmra.mxu1 %v2004_v58 }
 0x1f8   : > { %v5000_v15 = vpack.c.bf16 %v1821_v3, %v1820_v63  ;;  %v1398_v16 = vadd.f32 %v1397_v11, %v5523_v7  ;;  %v3171_v17 = vadd.f32 %v3170_v12, %v5886_v29  ;;  %3808 = vxpose.xlu1.b32.cont [4/16] %v3167_v9, 128  ;;  %v1822_v18 = vmax.f32 %v1396_v5, 0.0 }
 0x1f9   : > { %v1401_v21 = vpop.f32.mrf.mxu0  ;;  %4761 = vmatmul.mubr.msk.bf16.gmra.mxu0 %vm814_vm0, %v5232_v61  ;;  %v3172_v24 = vpop.f32.mrf.mxu1 }
 0x1fa   : > { %2774 = vst [vmem:[%s5535_s9 + $0x230] sm:$0xff] %v5000_v15  ;;  %v1823_v27 = vmax.f32 %v1398_v16, 0.0  ;;  %v1402_v30 = vadd.f32 %v1401_v21, %v5519_v6  ;;  %v3173_v33 = vadd.f32 %v3172_v24, %v5895_v47  ;;  %3777 = vxpose.xlu0.b32.cont [5/16] %v3171_v17, 128  ;;  %1649 = vmatprep.mubr.bf16.mxu0 %v5260_v2 }
 0x1fb   : > { %v1403_v34 = vpop.f32.mrf.mxu0  ;;  %v3174_v36 = vpop.f32.mrf.mxu1  ;;  %v2006_v43 = vpack.c.bf16 %v1822_v18, %v1820_v63 }
 0x1fc   : > { %v5001_v38 = vpack.c.bf16 %v1823_v27, %v1822_v18  ;;  %v1404_v40 = vadd.f32 %v1403_v34, %v5523_v7  ;;  %v3175_v41 = vadd.f32 %v3174_v36, %v5886_v29  ;;  %3809 = vxpose.xlu1.b32.cont [5/16] %v3173_v33, 128  ;;  %v2007_v48 = vpack.c.bf16 %v1823_v27, %v1821_v3  ;;  %v5234_v36 = vld [vmem:[%s5339_s16 + $0x1f0] sm:$0xff]  }
 0x1fd   : > { %v1405_v46 = vpop.f32.mrf.mxu0  ;;  %v3176_v1 = vpop.f32.mrf.mxu1  ;;  %v1824_v52 = vmax.f32 %v1402_v30, 0.0 }
 0x1fe   : > { %2775 = vst [vmem:[%s5535_s9 + $0x238] sm:$0xff] %v5001_v38  ;;  %v1825_v53 = vmax.f32 %v1404_v40, 0.0  ;;  %v1406_v57 = vadd.f32 %v1405_v46, %v5519_v6  ;;  %3778 = vxpose.xlu0.b32.cont [6/16] %v3175_v41, 128  ;;  %v3177_v58 = vadd.f32 %v3176_v1, %v5895_v47  ;;  %3418 = vmatprep.mubr.bf16.mxu1 %v2007_v48 }
 0x1ff   : > { %v1407_v60 = vpop.f32.mrf.mxu0  ;;  %v3180_v0 = vpop.f32.mrf.mxu1  ;;  %3419 = vmatmul.mubr.bf16.gmra.mxu1 %v2006_v43 }
 0x200   : > { %v5002_v4 = vpack.c.bf16 %v1825_v53, %v1824_v52  ;;  %v1408_v61 = vadd.f32 %v1407_v60, %v5523_v7  ;;  %v3181_v63 = vadd.f32 %v3180_v0, %v5886_v29  ;;  %3810 = vxpose.xlu1.b32.cont [6/16] %v3177_v58, 128  ;;  %v1826_v3 = vmax.f32 %v1406_v57, 0.0 }
 0x201   : > { %v1411_v5 = vpop.f32.mrf.mxu0  ;;  %4762 = vmatmul.mubr.msk.bf16.gmra.mxu0 %vm814_vm0, %v5233_v51  ;;  %v3182_v9 = vpop.f32.mrf.mxu1 }
 0x202   : > { %2776 = vst [vmem:[%s5535_s9 + $0x240] sm:$0xff] %v5002_v4  ;;  %v1827_v11 = vmax.f32 %v1408_v61, 0.0  ;;  %v1412_v12 = vadd.f32 %v1411_v5, %v5519_v6  ;;  %v3183_v15 = vadd.f32 %v3182_v9, %v5895_v47  ;;  %3779 = vxpose.xlu0.b32.cont [7/16] %v3181_v63, 128  ;;  %1659 = vmatprep.mubr.bf16.mxu0 %v5260_v2 }
 0x203   : > { %v1413_v16 = vpop.f32.mrf.mxu0  ;;  %v3184_v17 = vpop.f32.mrf.mxu1  ;;  %v2008_v27 = vpack.c.bf16 %v1826_v3, %v1824_v52 }
 0x204   : > { %v5003_v18 = vpack.c.bf16 %v1827_v11, %v1826_v3  ;;  %v1414_v21 = vadd.f32 %v1413_v16, %v5523_v7  ;;  %v3185_v24 = vadd.f32 %v3184_v17, %v5886_v29  ;;  %3811 = vxpose.xlu1.b32.cont [7/16] %v3183_v15, 128  ;;  %v2009_v34 = vpack.c.bf16 %v1827_v11, %v1825_v53  ;;  %v5235_v17 = vld [vmem:[%s5339_s16 + $0x1f8] sm:$0xff]   ;;  %s4929_s16 = sshll.u32 %s6910_s21, 11 }
 0x205   : > { %v1415_v30 = vpop.f32.mrf.mxu0  ;;  %v3186_v33 = vpop.f32.mrf.mxu1  ;;  %v1828_v38 = vmax.f32 %v1412_v12, 0.0  ;;  %s6083_s13 = scalar_lea.vmem %s6904_s6, %s4929_s16 }
 0x206   : > { %2777 = vst [vmem:[%s5535_s9 + $0x248] sm:$0xff] %v5003_v18  ;;  %v1829_v40 = vmax.f32 %v1414_v21, 0.0  ;;  %v1416_v41 = vadd.f32 %v1415_v30, %v5519_v6  ;;  %3780 = vxpose.xlu0.b32.cont [8/16] %v3185_v24, 128  ;;  %v3187_v43 = vadd.f32 %v3186_v33, %v5895_v47  ;;  %3428 = vmatprep.mubr.bf16.mxu1 %v2009_v34 }
 0x207   : > { %v1417_v46 = vpop.f32.mrf.mxu0  ;;  %v3190_v1 = vpop.f32.mrf.mxu1  ;;  %3429 = vmatmul.mubr.bf16.gmra.mxu1 %v2008_v27 }
 0x208   : > { %v5004_v48 = vpack.c.bf16 %v1829_v40, %v1828_v38  ;;  %v1418_v51 = vadd.f32 %v1417_v46, %v5523_v7  ;;  %v3191_v52 = vadd.f32 %v3190_v1, %v5886_v29  ;;  %3812 = vxpose.xlu1.b32.cont [8/16] %v3187_v43, 128  ;;  %v1830_v53 = vmax.f32 %v1416_v41, 0.0 }
 0x209   : > { %v1421_v57 = vpop.f32.mrf.mxu0  ;;  %4763 = vmatmul.mubr.msk.bf16.gmra.mxu0 %vm814_vm0, %v5234_v36  ;;  %v3192_v58 = vpop.f32.mrf.mxu1 }
 0x20a   : > { %2778 = vst [vmem:[%s5535_s9 + $0x250] sm:$0xff] %v5004_v48  ;;  %v1831_v60 = vmax.f32 %v1418_v51, 0.0  ;;  %v1422_v0 = vadd.f32 %v1421_v57, %v5519_v6  ;;  %v3193_v4 = vadd.f32 %v3192_v58, %v5895_v47  ;;  %3781 = vxpose.xlu0.b32.cont [9/16] %v3191_v52, 128  ;;  %1669 = vmatprep.mubr.bf16.mxu0 %v5260_v2 }
 0x20b   : > { %v1423_v61 = vpop.f32.mrf.mxu0  ;;  %v3194_v63 = vpop.f32.mrf.mxu1  ;;  %v2010_v11 = vpack.c.bf16 %v1830_v53, %v1828_v38 }
 0x20c   : > { %v5005_v3 = vpack.c.bf16 %v1831_v60, %v1830_v53  ;;  %v1424_v5 = vadd.f32 %v1423_v61, %v5523_v7  ;;  %v3195_v9 = vadd.f32 %v3194_v63, %v5886_v29  ;;  %3813 = vxpose.xlu1.b32.cont [9/16] %v3193_v4, 128  ;;  %v2011_v16 = vpack.c.bf16 %v1831_v60, %v1829_v40 }
 0x20d   : > { %v1425_v12 = vpop.f32.mrf.mxu0  ;;  %v3196_v15 = vpop.f32.mrf.mxu1  ;;  %v1832_v18 = vmax.f32 %v1422_v0, 0.0 }
 0x20e   : > { %2779 = vst [vmem:[%s5535_s9 + $0x258] sm:$0xff] %v5005_v3  ;;  %v1833_v21 = vmax.f32 %v1424_v5, 0.0  ;;  %v1426_v24 = vadd.f32 %v1425_v12, %v5519_v6  ;;  %3782 = vxpose.xlu0.b32.cont [10/16] %v3195_v9, 128  ;;  %v3197_v2 = vadd.f32 %v3196_v15, %v5895_v47  ;;  %3438 = vmatprep.mubr.bf16.mxu1 %v2011_v16 }
 0x20f   : > { %v1427_v27 = vpop.f32.mrf.mxu0  ;;  %v3200_v30 = vpop.f32.mrf.mxu1  ;;  %3439 = vmatmul.mubr.bf16.gmra.mxu1 %v2010_v11 }
 0x210   : > { %v5006_v33 = vpack.c.bf16 %v1833_v21, %v1832_v18  ;;  %v1428_v34 = vadd.f32 %v1427_v27, %v5523_v7  ;;  %v3201_v36 = vadd.f32 %v3200_v30, %v5886_v29  ;;  %3814 = vxpose.xlu1.b32.cont [10/16] %v3197_v2, 128  ;;  %v1834_v38 = vmax.f32 %v1426_v24, 0.0 }
 0x211   : > { %v1431_v40 = vpop.f32.mrf.mxu0  ;;  %4764 = vmatmul.mubr.msk.bf16.gmra.mxu0 %vm814_vm0, %v5235_v17  ;;  %v3202_v41 = vpop.f32.mrf.mxu1 }
 0x212   : > { %2780 = vst [vmem:[%s5535_s9 + $0x260] sm:$0xff] %v5006_v33  ;;  %v1835_v43 = vmax.f32 %v1428_v34, 0.0  ;;  %v1432_v46 = vadd.f32 %v1431_v40, %v5519_v6  ;;  %v3203_v1 = vadd.f32 %v3202_v41, %v5895_v47  ;;  %3783 = vxpose.xlu0.b32.cont [11/16] %v3201_v36, 128  ;;  %3068 = vmatprep.mubr.bf16.mxu0 %v5545_v28 }
 0x213   : > { %v1433_v48 = vpop.f32.mrf.mxu0  ;;  %v3204_v51 = vpop.f32.mrf.mxu1  ;;  %v2012_v58 = vpack.c.bf16 %v1834_v38, %v1832_v18 }
 0x214   : > { %v5007_v52 = vpack.c.bf16 %v1835_v43, %v1834_v38  ;;  %v1434_v53 = vadd.f32 %v1433_v48, %v5523_v7  ;;  %v3205_v57 = vadd.f32 %v3204_v51, %v5886_v29  ;;  %3815 = vxpose.xlu1.b32.cont [11/16] %v3203_v1, 128  ;;  %v2013_v4 = vpack.c.bf16 %v1835_v43, %v1833_v21 }
 0x215   : > { %v1435_v60 = vpop.f32.mrf.mxu0  ;;  %v3206_v0 = vpop.f32.mrf.mxu1  ;;  %v1836_v61 = vmax.f32 %v1432_v46, 0.0 }
 0x216   : > { %2781 = vst [vmem:[%s5535_s9 + $0x268] sm:$0xff] %v5007_v52  ;;  %v1837_v63 = vmax.f32 %v1434_v53, 0.0  ;;  %v1436_v3 = vadd.f32 %v1435_v60, %v5519_v6  ;;  %3784 = vxpose.xlu0.b32.cont [12/16] %v3205_v57, 128  ;;  %v3207_v28 = vadd.f32 %v3206_v0, %v5895_v47  ;;  %3448 = vmatprep.mubr.bf16.mxu1 %v2013_v4 }
 0x217   : > { %v1437_v5 = vpop.f32.mrf.mxu0  ;;  %v3210_v9 = vpop.f32.mrf.mxu1  ;;  %3449 = vmatmul.mubr.bf16.gmra.mxu1 %v2012_v58 }
 0x218   : > { %v5008_v11 = vpack.c.bf16 %v1837_v63, %v1836_v61  ;;  %v1438_v12 = vadd.f32 %v1437_v5, %v5523_v7  ;;  %v3211_v15 = vadd.f32 %v3210_v9, %v5886_v29  ;;  %3816 = vxpose.xlu1.b32.cont [12/16] %v3207_v28, 128  ;;  %v1838_v16 = vmax.f32 %v1436_v3, 0.0 }
 0x219   : > { %v1441_v17 = vpop.f32.mrf.mxu0  ;;  %3069 = vmatmul.mubr.bf16.vlgmr.msra.gmra.mxu0 %v5540_v22  ;;  %v3212_v18 = vpop.f32.mrf.mxu1 }
 0x21a   : > { %2782 = vst [vmem:[%s5535_s9 + $0x270] sm:$0xff] %v5008_v11  ;;  %v1839_v21 = vmax.f32 %v1438_v12, 0.0  ;;  %v1442_v24 = vadd.f32 %v1441_v17, %v5519_v6  ;;  %v3213_v2 = vadd.f32 %v3212_v18, %v5895_v47  ;;  %3785 = vxpose.xlu0.b32.cont [13/16] %v3211_v15, 128  ;;  %3078 = vmatprep.mubr.bf16.mxu0 %v5558_v45 }
 0x21b   : > { %v1443_v27 = vpop.f32.mrf.mxu0  ;;  %v3214_v30 = vpop.f32.mrf.mxu1  ;;  %v2014_v38 = vpack.c.bf16 %v1838_v16, %v1836_v61 }
 0x21c   : > { %v2015_v33 = vpack.c.bf16 %v1839_v21, %v1837_v63  ;;  %v5009_v34 = vpack.c.bf16 %v1839_v21, %v1838_v16  ;;  %v1444_v36 = vadd.f32 %v1443_v27, %v5523_v7  ;;  %3817 = vxpose.xlu1.b32.cont [13/16] %v3213_v2, 128  ;;  %v3215_v22 = vadd.f32 %v3214_v30, %v5886_v29 }
 0x21d   : > { %v1445_v40 = vpop.f32.mrf.mxu0  ;;  %v3216_v41 = vpop.f32.mrf.mxu1  ;;  %v1840_v43 = vmax.f32 %v1442_v24, 0.0 }
 0x21e   : > { %2783 = vst [vmem:[%s5535_s9 + $0x278] sm:$0xff] %v5009_v34  ;;  %v1841_v46 = vmax.f32 %v1444_v36, 0.0  ;;  %v1446_v1 = vadd.f32 %v1445_v40, %v5519_v6  ;;  %3458 = vmatprep.mubr.bf16.mxu1 %v2015_v33  ;;  %v3217_v45 = vadd.f32 %v3216_v41, %v5895_v47  ;;  %3786 = vxpose.xlu0.b32.cont [14/16] %v3215_v22, 128 }
 0x21f   : > { %v1447_v48 = vpop.f32.mrf.mxu0  ;;  %v3220_v51 = vpop.f32.mrf.mxu1  ;;  %3459 = vmatmul.mubr.bf16.gmra.mxu1 %v2014_v38 }
 0x220   : > { %v5010_v52 = vpack.c.bf16 %v1841_v46, %v1840_v43  ;;  %v1842_v53 = vmax.f32 %v1446_v1, 0.0  ;;  %v1448_v57 = vadd.f32 %v1447_v48, %v5523_v7  ;;  %v3221_v58 = vadd.f32 %v3220_v51, %v5886_v29  ;;  %3818 = vxpose.xlu1.b32.cont [14/16] %v3217_v45, 128 }
 0x221   : > { %v1451_v60 = vpop.f32.mrf.mxu0  ;;  %3079 = vmatmul.mubr.bf16.gmra.mxu0 %v5553_v39  ;;  %v3222_v0 = vpop.f32.mrf.mxu1 }
 0x222   : > { %2784 = vst [vmem:[%s5535_s9 + $0x280] sm:$0xff] %v5010_v52  ;;  %v1843_v4 = vmax.f32 %v1448_v57, 0.0  ;;  %v1452_v61 = vadd.f32 %v1451_v60, %v5519_v6  ;;  %v3223_v63 = vadd.f32 %v3222_v0, %v5895_v47  ;;  %3088 = vmatprep.mubr.bf16.mxu0 %v5571_v62  ;;  %3787 = vxpose.xlu0.b32.cont [15/16] %v3221_v58, 128 }
 0x223   : > { %v1453_v3 = vpop.f32.mrf.mxu0  ;;  %v3224_v28 = vpop.f32.mrf.mxu1  ;;  %v2016_v5 = vpack.c.bf16 %v1842_v53, %v1840_v43 }
 0x224   : > { %v2017_v9 = vpack.c.bf16 %v1843_v4, %v1841_v46  ;;  %v5011_v11 = vpack.c.bf16 %v1843_v4, %v1842_v53  ;;  %v1454_v12 = vadd.f32 %v1453_v3, %v5523_v7  ;;  %3819 = vxpose.xlu1.b32.cont [15/16] %v3223_v63, 128  ;;  %v3225_v39 = vadd.f32 %v3224_v28, %v5886_v29 }
 0x225   : > { %v1455_v15 = vpop.f32.mrf.mxu0  ;;  %v3226_v16 = vpop.f32.mrf.mxu1  ;;  %v1844_v17 = vmax.f32 %v1452_v61, 0.0 }
 0x226   : > { %2785 = vst [vmem:[%s5535_s9 + $0x288] sm:$0xff] %v5011_v11  ;;  %v1845_v18 = vmax.f32 %v1454_v12, 0.0  ;;  %v1456_v21 = vadd.f32 %v1455_v15, %v5519_v6  ;;  %3468 = vmatprep.mubr.bf16.mxu1 %v2017_v9  ;;  %v3227_v62 = vadd.f32 %v3226_v16, %v5895_v47  ;;  %3788 = vxpose.xlu0.b32.end [16/16] %v3225_v39, 128 }
 0x227   : > { %v1457_v24 = vpop.f32.mrf.mxu0  ;;  %v3230_v2 = vpop.f32.mrf.mxu1  ;;  %3469 = vmatmul.mubr.bf16.gmra.mxu1 %v2016_v5 }
 0x228   : > { %v5012_v27 = vpack.c.bf16 %v1845_v18, %v1844_v17  ;;  %v1846_v30 = vmax.f32 %v1456_v21, 0.0  ;;  %v1458_v33 = vadd.f32 %v1457_v24, %v5523_v7  ;;  %v3231_v34 = vadd.f32 %v3230_v2, %v5886_v29  ;;  %3820 = vxpose.xlu1.b32.end [16/16] %v3227_v62, 128 }
 0x229   : > { %v1461_v36 = vpop.f32.mrf.mxu0  ;;  %3089 = vmatmul.mubr.bf16.gmra.mxu0 %v5566_v56  ;;  %v3232_v38 = vpop.f32.mrf.mxu1 }
 0x22a   : > { %2786 = vst [vmem:[%s5535_s9 + $0x290] sm:$0xff] %v5012_v27  ;;  %v1847_v22 = vmax.f32 %v1458_v33, 0.0  ;;  %v1462_v40 = vadd.f32 %v1461_v36, %v5519_v6  ;;  %v3233_v41 = vadd.f32 %v3232_v38, %v5895_v47  ;;  %3837 = vxpose.xlu0.b32.start [1/16] %v3231_v34, 128  ;;  %v2018_v1 = vpack.c.bf16 %v1846_v30, %v1844_v17 }
 0x22b   : > { %v1463_v43 = vpop.f32.mrf.mxu0  ;;  %v3234_v46 = vpop.f32.mrf.mxu1 }
 0x22c   : > { %v2019_v45 = vpack.c.bf16 %v1847_v22, %v1845_v18  ;;  %v5013_v48 = vpack.c.bf16 %v1847_v22, %v1846_v30  ;;  %v1464_v51 = vadd.f32 %v1463_v43, %v5523_v7  ;;  %3869 = vxpose.xlu1.b32.start [1/16] %v3233_v41, 128  ;;  %v3235_v52 = vadd.f32 %v3234_v46, %v5886_v29 }
 0x22d   : > { %v1465_v56 = vpop.f32.mrf.mxu0  ;;  %v3236_v53 = vpop.f32.mrf.mxu1  ;;  %v1848_v57 = vmax.f32 %v1462_v40, 0.0 }
 0x22e   : > { %2787 = vst [vmem:[%s5535_s9 + $0x298] sm:$0xff] %v5013_v48  ;;  %v1849_v58 = vmax.f32 %v1464_v51, 0.0  ;;  %v1466_v60 = vadd.f32 %v1465_v56, %v5519_v6  ;;  %v3237_v0 = vadd.f32 %v3236_v53, %v5895_v47  ;;  %3478 = vmatprep.mubr.bf16.mxu1 %v2019_v45  ;;  %3838 = vxpose.xlu0.b32.cont [2/16] %v3235_v52, 128 }
 0x22f   : > { %v1467_v4 = vpop.f32.mrf.mxu0  ;;  %v3240_v61 = vpop.f32.mrf.mxu1  ;;  %3479 = vmatmul.mubr.bf16.gmra.mxu1 %v2018_v1 }
 0x230   : > { %v5014_v63 = vpack.c.bf16 %v1849_v58, %v1848_v57  ;;  %v1850_v3 = vmax.f32 %v1466_v60, 0.0  ;;  %v1468_v28 = vadd.f32 %v1467_v4, %v5523_v7  ;;  %v3241_v5 = vadd.f32 %v3240_v61, %v5886_v29  ;;  %3870 = vxpose.xlu1.b32.cont [2/16] %v3237_v0, 128 }
 0x231   : > { %v1471_v9 = vpop.f32.mrf.mxu0  ;;  %v3242_v11 = vpop.f32.mrf.mxu1 }
 0x232   : > { %2788 = vst [vmem:[%s5535_s9 + $0x2a0] sm:$0xff] %v5014_v63  ;;  %v1851_v12 = vmax.f32 %v1468_v28, 0.0  ;;  %v1472_v39 = vadd.f32 %v1471_v9, %v5519_v6  ;;  %v3243_v15 = vadd.f32 %v3242_v11, %v5895_v47  ;;  %3839 = vxpose.xlu0.b32.cont [3/16] %v3241_v5, 128  ;;  %v2020_v18 = vpack.c.bf16 %v1850_v3, %v1848_v57 }
 0x233   : > { %v1473_v16 = vpop.f32.mrf.mxu0  ;;  %v3244_v17 = vpop.f32.mrf.mxu1 }
 0x234   : > { %v2021_v21 = vpack.c.bf16 %v1851_v12, %v1849_v58  ;;  %v5015_v62 = vpack.c.bf16 %v1851_v12, %v1850_v3  ;;  %v1474_v24 = vadd.f32 %v1473_v16, %v5523_v7  ;;  %3871 = vxpose.xlu1.b32.cont [3/16] %v3243_v15, 128  ;;  %v3245_v2 = vadd.f32 %v3244_v17, %v5886_v29 }
 0x235   : > { %v1475_v27 = vpop.f32.mrf.mxu0  ;;  %v3246_v30 = vpop.f32.mrf.mxu1  ;;  %v1852_v33 = vmax.f32 %v1472_v39, 0.0 }
 0x236   : > { %2789 = vst [vmem:[%s5535_s9 + $0x2a8] sm:$0xff] %v5015_v62  ;;  %v1853_v34 = vmax.f32 %v1474_v24, 0.0  ;;  %v1476_v36 = vadd.f32 %v1475_v27, %v5519_v6  ;;  %v3247_v38 = vadd.f32 %v3246_v30, %v5895_v47  ;;  %3488 = vmatprep.mubr.bf16.mxu1 %v2021_v21  ;;  %3840 = vxpose.xlu0.b32.cont [4/16] %v3245_v2, 128 }
 0x237   : > { %v1477_v22 = vpop.f32.mrf.mxu0  ;;  %v3250_v40 = vpop.f32.mrf.mxu1  ;;  %3489 = vmatmul.mubr.bf16.gmra.mxu1 %v2020_v18 }
 0x238   : > { %v5016_v41 = vpack.c.bf16 %v1853_v34, %v1852_v33  ;;  %v1854_v43 = vmax.f32 %v1476_v36, 0.0  ;;  %v1478_v46 = vadd.f32 %v1477_v22, %v5523_v7  ;;  %v3251_v1 = vadd.f32 %v3250_v40, %v5886_v29  ;;  %3872 = vxpose.xlu1.b32.cont [4/16] %v3247_v38, 128 }
 0x239   : > { %v1481_v45 = vpop.f32.mrf.mxu0  ;;  %v3252_v48 = vpop.f32.mrf.mxu1 }
 0x23a   : > { %2790 = vst [vmem:[%s5535_s9 + $0x2b0] sm:$0xff] %v5016_v41  ;;  %v1855_v51 = vmax.f32 %v1478_v46, 0.0  ;;  %v1482_v52 = vadd.f32 %v1481_v45, %v5519_v6  ;;  %v3253_v56 = vadd.f32 %v3252_v48, %v5895_v47  ;;  %3841 = vxpose.xlu0.b32.cont [5/16] %v3251_v1, 128  ;;  %v2022_v58 = vpack.c.bf16 %v1854_v43, %v1852_v33 }
 0x23b   : > { %v1483_v53 = vpop.f32.mrf.mxu0  ;;  %v3254_v57 = vpop.f32.mrf.mxu1 }
 0x23c   : > { %v2023_v60 = vpack.c.bf16 %v1855_v51, %v1853_v34  ;;  %v5017_v0 = vpack.c.bf16 %v1855_v51, %v1854_v43  ;;  %v1484_v4 = vadd.f32 %v1483_v53, %v5523_v7  ;;  %3873 = vxpose.xlu1.b32.cont [5/16] %v3253_v56, 128  ;;  %v3255_v61 = vadd.f32 %v3254_v57, %v5886_v29 }
 0x23d   : > { %v1485_v63 = vpop.f32.mrf.mxu0  ;;  %v3256_v3 = vpop.f32.mrf.mxu1  ;;  %v1856_v28 = vmax.f32 %v1482_v52, 0.0 }
 0x23e   : > { %2791 = vst [vmem:[%s5535_s9 + $0x2b8] sm:$0xff] %v5017_v0  ;;  %v1857_v5 = vmax.f32 %v1484_v4, 0.0  ;;  %v1486_v9 = vadd.f32 %v1485_v63, %v5519_v6  ;;  %v3257_v11 = vadd.f32 %v3256_v3, %v5895_v47  ;;  %3498 = vmatprep.mubr.bf16.mxu1 %v2023_v60  ;;  %3842 = vxpose.xlu0.b32.cont [6/16] %v3255_v61, 128 }
 0x23f   : > { %v1487_v12 = vpop.f32.mrf.mxu0  ;;  %v3260_v39 = vpop.f32.mrf.mxu1  ;;  %3499 = vmatmul.mubr.bf16.gmra.mxu1 %v2022_v58 }
 0x240   : > { %v5018_v15 = vpack.c.bf16 %v1857_v5, %v1856_v28  ;;  %v1858_v16 = vmax.f32 %v1486_v9, 0.0  ;;  %v1488_v17 = vadd.f32 %v1487_v12, %v5523_v7  ;;  %v3261_v18 = vadd.f32 %v3260_v39, %v5886_v29  ;;  %3874 = vxpose.xlu1.b32.cont [6/16] %v3257_v11, 128 }
 0x241   : > { %v1491_v21 = vpop.f32.mrf.mxu0  ;;  %v3262_v62 = vpop.f32.mrf.mxu1 }
 0x242   : > { %2792 = vst [vmem:[%s5535_s9 + $0x2c0] sm:$0xff] %v5018_v15  ;;  %v1859_v24 = vmax.f32 %v1488_v17, 0.0  ;;  %v1492_v2 = vadd.f32 %v1491_v21, %v5519_v6  ;;  %v3263_v27 = vadd.f32 %v3262_v62, %v5895_v47  ;;  %3843 = vxpose.xlu0.b32.cont [7/16] %v3261_v18, 128  ;;  %v2024_v34 = vpack.c.bf16 %v1858_v16, %v1856_v28 }
 0x243   : > { %v1493_v30 = vpop.f32.mrf.mxu0  ;;  %v3264_v33 = vpop.f32.mrf.mxu1 }
 0x244   : > { %v2025_v36 = vpack.c.bf16 %v1859_v24, %v1857_v5  ;;  %v5019_v38 = vpack.c.bf16 %v1859_v24, %v1858_v16  ;;  %v1494_v22 = vadd.f32 %v1493_v30, %v5523_v7  ;;  %3875 = vxpose.xlu1.b32.cont [7/16] %v3263_v27, 128  ;;  %v3265_v40 = vadd.f32 %v3264_v33, %v5886_v29 }
 0x245   : > { %v1495_v41 = vpop.f32.mrf.mxu0  ;;  %v3266_v43 = vpop.f32.mrf.mxu1  ;;  %v1860_v46 = vmax.f32 %v1492_v2, 0.0 }
 0x246   : > { %2793 = vst [vmem:[%s5535_s9 + $0x2c8] sm:$0xff] %v5019_v38  ;;  %v1861_v1 = vmax.f32 %v1494_v22, 0.0  ;;  %v1496_v45 = vadd.f32 %v1495_v41, %v5519_v6  ;;  %v3267_v48 = vadd.f32 %v3266_v43, %v5895_v47  ;;  %3508 = vmatprep.mubr.bf16.mxu1 %v2025_v36  ;;  %3844 = vxpose.xlu0.b32.cont [8/16] %v3265_v40, 128 }
 0x247   : > { %v1497_v51 = vpop.f32.mrf.mxu0  ;;  %v3270_v52 = vpop.f32.mrf.mxu1  ;;  %3509 = vmatmul.mubr.bf16.gmra.mxu1 %v2024_v34 }
 0x248   : > { %v5020_v56 = vpack.c.bf16 %v1861_v1, %v1860_v46  ;;  %v1862_v53 = vmax.f32 %v1496_v45, 0.0  ;;  %v1498_v57 = vadd.f32 %v1497_v51, %v5523_v7  ;;  %v3271_v58 = vadd.f32 %v3270_v52, %v5886_v29  ;;  %3876 = vxpose.xlu1.b32.cont [8/16] %v3267_v48, 128 }
 0x249   : > { %v1501_v60 = vpop.f32.mrf.mxu0  ;;  %v3272_v0 = vpop.f32.mrf.mxu1 }
 0x24a   : > { %2794 = vst [vmem:[%s5535_s9 + $0x2d0] sm:$0xff] %v5020_v56  ;;  %v1863_v4 = vmax.f32 %v1498_v57, 0.0  ;;  %v1502_v61 = vadd.f32 %v1501_v60, %v5519_v6  ;;  %v3273_v63 = vadd.f32 %v3272_v0, %v5895_v47  ;;  %3845 = vxpose.xlu0.b32.cont [9/16] %v3271_v58, 128  ;;  %v2026_v5 = vpack.c.bf16 %v1862_v53, %v1860_v46 }
 0x24b   : > { %v1503_v3 = vpop.f32.mrf.mxu0  ;;  %v3274_v28 = vpop.f32.mrf.mxu1 }
 0x24c   : > { %v2027_v9 = vpack.c.bf16 %v1863_v4, %v1861_v1  ;;  %v5021_v11 = vpack.c.bf16 %v1863_v4, %v1862_v53  ;;  %v1504_v12 = vadd.f32 %v1503_v3, %v5523_v7  ;;  %3877 = vxpose.xlu1.b32.cont [9/16] %v3273_v63, 128  ;;  %v3275_v39 = vadd.f32 %v3274_v28, %v5886_v29 }
 0x24d   : > { %v1505_v15 = vpop.f32.mrf.mxu0  ;;  %v3276_v16 = vpop.f32.mrf.mxu1  ;;  %v1864_v17 = vmax.f32 %v1502_v61, 0.0 }
 0x24e   : > { %2795 = vst [vmem:[%s5535_s9 + $0x2d8] sm:$0xff] %v5021_v11  ;;  %v1865_v18 = vmax.f32 %v1504_v12, 0.0  ;;  %v1506_v21 = vadd.f32 %v1505_v15, %v5519_v6  ;;  %v3277_v62 = vadd.f32 %v3276_v16, %v5895_v47  ;;  %3518 = vmatprep.mubr.bf16.mxu1 %v2027_v9  ;;  %3846 = vxpose.xlu0.b32.cont [10/16] %v3275_v39, 128 }
 0x24f   : > { %v1507_v24 = vpop.f32.mrf.mxu0  ;;  %v3280_v2 = vpop.f32.mrf.mxu1  ;;  %3519 = vmatmul.mubr.bf16.gmra.mxu1 %v2026_v5 }
 0x250   : > { %v5022_v27 = vpack.c.bf16 %v1865_v18, %v1864_v17  ;;  %v1866_v30 = vmax.f32 %v1506_v21, 0.0  ;;  %v1508_v33 = vadd.f32 %v1507_v24, %v5523_v7  ;;  %v3281_v34 = vadd.f32 %v3280_v2, %v5886_v29  ;;  %3878 = vxpose.xlu1.b32.cont [10/16] %v3277_v62, 128 }
 0x251   : > { %v1511_v36 = vpop.f32.mrf.mxu0  ;;  %v3282_v38 = vpop.f32.mrf.mxu1 }
 0x252   : > { %2796 = vst [vmem:[%s5535_s9 + $0x2e0] sm:$0xff] %v5022_v27  ;;  %v1867_v22 = vmax.f32 %v1508_v33, 0.0  ;;  %v1512_v40 = vadd.f32 %v1511_v36, %v5519_v6  ;;  %v3283_v41 = vadd.f32 %v3282_v38, %v5895_v47  ;;  %3847 = vxpose.xlu0.b32.cont [11/16] %v3281_v34, 128  ;;  %v2028_v1 = vpack.c.bf16 %v1866_v30, %v1864_v17 }
 0x253   : > { %v1513_v43 = vpop.f32.mrf.mxu0  ;;  %v3284_v46 = vpop.f32.mrf.mxu1 }
 0x254   : > { %v2029_v45 = vpack.c.bf16 %v1867_v22, %v1865_v18  ;;  %v5023_v48 = vpack.c.bf16 %v1867_v22, %v1866_v30  ;;  %v1514_v51 = vadd.f32 %v1513_v43, %v5523_v7  ;;  %3879 = vxpose.xlu1.b32.cont [11/16] %v3283_v41, 128  ;;  %v3285_v52 = vadd.f32 %v3284_v46, %v5886_v29 }
 0x255   : > { %v1515_v56 = vpop.f32.mrf.mxu0  ;;  %v3286_v53 = vpop.f32.mrf.mxu1  ;;  %v1868_v57 = vmax.f32 %v1512_v40, 0.0 }
 0x256   : > { %2797 = vst [vmem:[%s5535_s9 + $0x2e8] sm:$0xff] %v5023_v48  ;;  %v1869_v58 = vmax.f32 %v1514_v51, 0.0  ;;  %v1516_v60 = vadd.f32 %v1515_v56, %v5519_v6  ;;  %v3287_v0 = vadd.f32 %v3286_v53, %v5895_v47  ;;  %3528 = vmatprep.mubr.bf16.mxu1 %v2029_v45  ;;  %3848 = vxpose.xlu0.b32.cont [12/16] %v3285_v52, 128 }
 0x257   : > { %v1517_v4 = vpop.f32.mrf.mxu0  ;;  %v3290_v61 = vpop.f32.mrf.mxu1  ;;  %3529 = vmatmul.mubr.bf16.gmra.mxu1 %v2028_v1 }
 0x258   : > { %v5024_v63 = vpack.c.bf16 %v1869_v58, %v1868_v57  ;;  %v1870_v3 = vmax.f32 %v1516_v60, 0.0  ;;  %v1518_v28 = vadd.f32 %v1517_v4, %v5523_v7  ;;  %v3291_v5 = vadd.f32 %v3290_v61, %v5886_v29  ;;  %3880 = vxpose.xlu1.b32.cont [12/16] %v3287_v0, 128 }
 0x259   : > { %v1521_v9 = vpop.f32.mrf.mxu0  ;;  %v3292_v11 = vpop.f32.mrf.mxu1 }
 0x25a   : > { %2798 = vst [vmem:[%s5535_s9 + $0x2f0] sm:$0xff] %v5024_v63  ;;  %v1871_v12 = vmax.f32 %v1518_v28, 0.0  ;;  %v1522_v39 = vadd.f32 %v1521_v9, %v5519_v6  ;;  %v3293_v15 = vadd.f32 %v3292_v11, %v5895_v47  ;;  %3849 = vxpose.xlu0.b32.cont [13/16] %v3291_v5, 128  ;;  %v2030_v18 = vpack.c.bf16 %v1870_v3, %v1868_v57 }
 0x25b   : > { %v1523_v16 = vpop.f32.mrf.mxu0  ;;  %v3294_v17 = vpop.f32.mrf.mxu1 }
 0x25c   : > { %v2031_v21 = vpack.c.bf16 %v1871_v12, %v1869_v58  ;;  %v5025_v62 = vpack.c.bf16 %v1871_v12, %v1870_v3  ;;  %v1524_v24 = vadd.f32 %v1523_v16, %v5523_v7  ;;  %3881 = vxpose.xlu1.b32.cont [13/16] %v3293_v15, 128  ;;  %v3295_v2 = vadd.f32 %v3294_v17, %v5886_v29 }
 0x25d   : > { %v1525_v27 = vpop.f32.mrf.mxu0  ;;  %v3296_v30 = vpop.f32.mrf.mxu1  ;;  %v1872_v33 = vmax.f32 %v1522_v39, 0.0 }
 0x25e   : > { %2799 = vst [vmem:[%s5535_s9 + $0x2f8] sm:$0xff] %v5025_v62  ;;  %v1873_v34 = vmax.f32 %v1524_v24, 0.0  ;;  %v1526_v36 = vadd.f32 %v1525_v27, %v5519_v6  ;;  %v3297_v38 = vadd.f32 %v3296_v30, %v5895_v47  ;;  %3538 = vmatprep.mubr.bf16.mxu1 %v2031_v21  ;;  %3850 = vxpose.xlu0.b32.cont [14/16] %v3295_v2, 128 }
 0x25f   : > { %v1527_v22 = vpop.f32.mrf.mxu0  ;;  %v3300_v40 = vpop.f32.mrf.mxu1  ;;  %3539 = vmatmul.mubr.bf16.gmra.mxu1 %v2030_v18 }
 0x260   : > { %v5026_v41 = vpack.c.bf16 %v1873_v34, %v1872_v33  ;;  %v1874_v43 = vmax.f32 %v1526_v36, 0.0  ;;  %v1528_v46 = vadd.f32 %v1527_v22, %v5523_v7  ;;  %v3301_v1 = vadd.f32 %v3300_v40, %v5886_v29  ;;  %3882 = vxpose.xlu1.b32.cont [14/16] %v3297_v38, 128 }
 0x261   : > { %v1531_v45 = vpop.f32.mrf.mxu0  ;;  %v3302_v48 = vpop.f32.mrf.mxu1 }
 0x262   : > { %2800 = vst [vmem:[%s5535_s9 + $0x300] sm:$0xff] %v5026_v41  ;;  %v1875_v51 = vmax.f32 %v1528_v46, 0.0  ;;  %v1532_v52 = vadd.f32 %v1531_v45, %v5519_v6  ;;  %v3303_v56 = vadd.f32 %v3302_v48, %v5895_v47  ;;  %3851 = vxpose.xlu0.b32.cont [15/16] %v3301_v1, 128  ;;  %v2032_v58 = vpack.c.bf16 %v1874_v43, %v1872_v33 }
 0x263   : > { %v1533_v53 = vpop.f32.mrf.mxu0  ;;  %v3304_v57 = vpop.f32.mrf.mxu1 }
 0x264   : > { %v2033_v60 = vpack.c.bf16 %v1875_v51, %v1873_v34  ;;  %v5027_v0 = vpack.c.bf16 %v1875_v51, %v1874_v43  ;;  %v1534_v4 = vadd.f32 %v1533_v53, %v5523_v7  ;;  %3883 = vxpose.xlu1.b32.cont [15/16] %v3303_v56, 128  ;;  %v3305_v61 = vadd.f32 %v3304_v57, %v5886_v29 }
 0x265   : > { %v1535_v63 = vpop.f32.mrf.mxu0  ;;  %v3306_v3 = vpop.f32.mrf.mxu1  ;;  %v1876_v28 = vmax.f32 %v1532_v52, 0.0 }
 0x266   : > { %2801 = vst [vmem:[%s5535_s9 + $0x308] sm:$0xff] %v5027_v0  ;;  %v1877_v5 = vmax.f32 %v1534_v4, 0.0  ;;  %v1536_v9 = vadd.f32 %v1535_v63, %v5519_v6  ;;  %v3307_v11 = vadd.f32 %v3306_v3, %v5895_v47  ;;  %3548 = vmatprep.mubr.bf16.mxu1 %v2033_v60  ;;  %3852 = vxpose.xlu0.b32.end [16/16] %v3305_v61, 128  ;;  %v3789_v62 = vpop.trf.xlu0 }
 0x267   : > { %v1537_v12 = vpop.f32.mrf.mxu0  ;;  %v3310_v39 = vpop.f32.mrf.mxu1  ;;  %3549 = vmatmul.mubr.bf16.gmra.mxu1 %v2032_v58  ;;  %4222 = vst [vmem:[%s6083_s13 + $0x8] sm:$0xff] %v3789_v62 }
 0x268   : > { %v5028_v15 = vpack.c.bf16 %v1877_v5, %v1876_v28  ;;  %v1878_v16 = vmax.f32 %v1536_v9, 0.0  ;;  %v1538_v17 = vadd.f32 %v1537_v12, %v5523_v7  ;;  %v3311_v18 = vadd.f32 %v3310_v39, %v5886_v29  ;;  %3884 = vxpose.xlu1.b32.end [16/16] %v3307_v11, 128  ;;  %v3821_v21 = vpop.trf.xlu1 }
 0x269   : > { %4350 = vst [vmem:[%s6083_s13 + $0x408] sm:$0xff] %v3821_v21  ;;  %v1541_v24 = vpop.f32.mrf.mxu0  ;;  %v3312_v2 = vpop.f32.mrf.mxu1 }
 0x26a   : > { %2802 = vst [vmem:[%s5535_s9 + $0x310] sm:$0xff] %v5028_v15  ;;  %v1879_v27 = vmax.f32 %v1538_v17, 0.0  ;;  %v1542_v30 = vadd.f32 %v1541_v24, %v5519_v6  ;;  %v3313_v33 = vadd.f32 %v3312_v2, %v5895_v47  ;;  %3901 = vxpose.xlu0.b32.start [1/16] %v3311_v18, 128  ;;  %v2034_v38 = vpack.c.bf16 %v1878_v16, %v1876_v28  ;;  %v3790_v46 = vpop.trf.xlu0 }
 0x26b   : > { %v1543_v34 = vpop.f32.mrf.mxu0  ;;  %v3314_v36 = vpop.f32.mrf.mxu1  ;;  %4230 = vst [vmem:[%s6083_s13 + $0x48] sm:$0xff] %v3790_v46 }
 0x26c   : > { %v2035_v22 = vpack.c.bf16 %v1879_v27, %v1877_v5  ;;  %v5029_v40 = vpack.c.bf16 %v1879_v27, %v1878_v16  ;;  %v1544_v41 = vadd.f32 %v1543_v34, %v5523_v7  ;;  %3933 = vxpose.xlu1.b32.start [1/16] %v3313_v33, 128  ;;  %v3822_v43 = vpop.trf.xlu1  ;;  %v3315_v1 = vadd.f32 %v3314_v36, %v5886_v29 }
 0x26d   : > { %4358 = vst [vmem:[%s6083_s13 + $0x448] sm:$0xff] %v3822_v43  ;;  %v1545_v45 = vpop.f32.mrf.mxu0  ;;  %v3316_v48 = vpop.f32.mrf.mxu1  ;;  %v1880_v51 = vmax.f32 %v1542_v30, 0.0 }
 0x26e   : > { %2803 = vst [vmem:[%s5535_s9 + $0x318] sm:$0xff] %v5029_v40  ;;  %v1881_v52 = vmax.f32 %v1544_v41, 0.0  ;;  %v1546_v56 = vadd.f32 %v1545_v45, %v5519_v6  ;;  %v3317_v53 = vadd.f32 %v3316_v48, %v5895_v47  ;;  %3558 = vmatprep.mubr.bf16.mxu1 %v2035_v22  ;;  %3902 = vxpose.xlu0.b32.cont [2/16] %v3315_v1, 128  ;;  %v3791_v3 = vpop.trf.xlu0 }
 0x26f   : > { %v1547_v57 = vpop.f32.mrf.mxu0  ;;  %v3320_v58 = vpop.f32.mrf.mxu1  ;;  %3559 = vmatmul.mubr.bf16.gmra.mxu1 %v2034_v38  ;;  %4238 = vst [vmem:[%s6083_s13 + $0x88] sm:$0xff] %v3791_v3 }
 0x270   : > { %v5030_v60 = vpack.c.bf16 %v1881_v52, %v1880_v51  ;;  %v1882_v0 = vmax.f32 %v1546_v56, 0.0  ;;  %v1548_v4 = vadd.f32 %v1547_v57, %v5523_v7  ;;  %v3321_v61 = vadd.f32 %v3320_v58, %v5886_v29  ;;  %3934 = vxpose.xlu1.b32.cont [2/16] %v3317_v53, 128  ;;  %v3823_v63 = vpop.trf.xlu1 }
 0x271   : > { %4366 = vst [vmem:[%s6083_s13 + $0x488] sm:$0xff] %v3823_v63  ;;  %v1551_v28 = vpop.f32.mrf.mxu0  ;;  %v3322_v5 = vpop.f32.mrf.mxu1 }
 0x272   : > { %2804 = vst [vmem:[%s5535_s9 + $0x320] sm:$0xff] %v5030_v60  ;;  %v1883_v9 = vmax.f32 %v1548_v4, 0.0  ;;  %v1552_v11 = vadd.f32 %v1551_v28, %v5519_v6  ;;  %v3323_v12 = vadd.f32 %v3322_v5, %v5895_v47  ;;  %3903 = vxpose.xlu0.b32.cont [3/16] %v3321_v61, 128  ;;  %v2036_v16 = vpack.c.bf16 %v1882_v0, %v1880_v51  ;;  %v3792_v24 = vpop.trf.xlu0 }
 0x273   : > { %v1553_v39 = vpop.f32.mrf.mxu0  ;;  %v3324_v15 = vpop.f32.mrf.mxu1  ;;  %4246 = vst [vmem:[%s6083_s13 + $0xc8] sm:$0xff] %v3792_v24 }
 0x274   : > { %v2037_v17 = vpack.c.bf16 %v1883_v9, %v1881_v52  ;;  %v5031_v18 = vpack.c.bf16 %v1883_v9, %v1882_v0  ;;  %v1554_v21 = vadd.f32 %v1553_v39, %v5523_v7  ;;  %3935 = vxpose.xlu1.b32.cont [3/16] %v3323_v12, 128  ;;  %v3824_v62 = vpop.trf.xlu1  ;;  %v3325_v2 = vadd.f32 %v3324_v15, %v5886_v29 }
 0x275   : > { %4374 = vst [vmem:[%s6083_s13 + $0x4c8] sm:$0xff] %v3824_v62  ;;  %v1555_v27 = vpop.f32.mrf.mxu0  ;;  %v3326_v30 = vpop.f32.mrf.mxu1  ;;  %v1884_v33 = vmax.f32 %v1552_v11, 0.0 }
 0x276   : > { %2805 = vst [vmem:[%s5535_s9 + $0x328] sm:$0xff] %v5031_v18  ;;  %v1885_v34 = vmax.f32 %v1554_v21, 0.0  ;;  %v1556_v36 = vadd.f32 %v1555_v27, %v5519_v6  ;;  %v3327_v38 = vadd.f32 %v3326_v30, %v5895_v47  ;;  %3568 = vmatprep.mubr.bf16.mxu1 %v2037_v17  ;;  %3904 = vxpose.xlu0.b32.cont [4/16] %v3325_v2, 128  ;;  %v3793_v48 = vpop.trf.xlu0 }
 0x277   : > { %v1557_v22 = vpop.f32.mrf.mxu0  ;;  %v3330_v40 = vpop.f32.mrf.mxu1  ;;  %3569 = vmatmul.mubr.bf16.gmra.mxu1 %v2036_v16  ;;  %4254 = vst [vmem:[%s6083_s13 + $0x108] sm:$0xff] %v3793_v48 }
 0x278   : > { %v5032_v41 = vpack.c.bf16 %v1885_v34, %v1884_v33  ;;  %v1886_v43 = vmax.f32 %v1556_v36, 0.0  ;;  %v1558_v46 = vadd.f32 %v1557_v22, %v5523_v7  ;;  %v3331_v1 = vadd.f32 %v3330_v40, %v5886_v29  ;;  %3936 = vxpose.xlu1.b32.cont [4/16] %v3327_v38, 128  ;;  %v3825_v45 = vpop.trf.xlu1 }
 0x279   : > { %4382 = vst [vmem:[%s6083_s13 + $0x508] sm:$0xff] %v3825_v45  ;;  %v1561_v51 = vpop.f32.mrf.mxu0  ;;  %v3332_v52 = vpop.f32.mrf.mxu1 }
 0x27a   : > { %2806 = vst [vmem:[%s5535_s9 + $0x330] sm:$0xff] %v5032_v41  ;;  %v1887_v56 = vmax.f32 %v1558_v46, 0.0  ;;  %v1562_v53 = vadd.f32 %v1561_v51, %v5519_v6  ;;  %v3333_v57 = vadd.f32 %v3332_v52, %v5895_v47  ;;  %3905 = vxpose.xlu0.b32.cont [5/16] %v3331_v1, 128  ;;  %v2038_v0 = vpack.c.bf16 %v1886_v43, %v1884_v33  ;;  %v3794_v28 = vpop.trf.xlu0 }
 0x27b   : > { %v1563_v58 = vpop.f32.mrf.mxu0  ;;  %v3334_v60 = vpop.f32.mrf.mxu1  ;;  %4262 = vst [vmem:[%s6083_s13 + $0x148] sm:$0xff] %v3794_v28 }
 0x27c   : > { %v2039_v4 = vpack.c.bf16 %v1887_v56, %v1885_v34  ;;  %v5033_v61 = vpack.c.bf16 %v1887_v56, %v1886_v43  ;;  %v1564_v63 = vadd.f32 %v1563_v58, %v5523_v7  ;;  %3937 = vxpose.xlu1.b32.cont [5/16] %v3333_v57, 128  ;;  %v3826_v3 = vpop.trf.xlu1  ;;  %v3335_v5 = vadd.f32 %v3334_v60, %v5886_v29 }
 0x27d   : > { %4390 = vst [vmem:[%s6083_s13 + $0x548] sm:$0xff] %v3826_v3  ;;  %v1565_v9 = vpop.f32.mrf.mxu0  ;;  %v3336_v11 = vpop.f32.mrf.mxu1  ;;  %v1888_v12 = vmax.f32 %v1562_v53, 0.0 }
 0x27e   : > { %2807 = vst [vmem:[%s5535_s9 + $0x338] sm:$0xff] %v5033_v61  ;;  %v1889_v39 = vmax.f32 %v1564_v63, 0.0  ;;  %v1566_v15 = vadd.f32 %v1565_v9, %v5519_v6  ;;  %v3337_v16 = vadd.f32 %v3336_v11, %v5895_v47  ;;  %3578 = vmatprep.mubr.bf16.mxu1 %v2039_v4  ;;  %3906 = vxpose.xlu0.b32.cont [6/16] %v3335_v5, 128  ;;  %v3795_v30 = vpop.trf.xlu0 }
 0x27f   : > { %v1567_v17 = vpop.f32.mrf.mxu0  ;;  %v3340_v18 = vpop.f32.mrf.mxu1  ;;  %3579 = vmatmul.mubr.bf16.gmra.mxu1 %v2038_v0  ;;  %4270 = vst [vmem:[%s6083_s13 + $0x188] sm:$0xff] %v3795_v30 }
 0x280   : > { %v5034_v21 = vpack.c.bf16 %v1889_v39, %v1888_v12  ;;  %v1890_v62 = vmax.f32 %v1566_v15, 0.0  ;;  %v1568_v24 = vadd.f32 %v1567_v17, %v5523_v7  ;;  %v3341_v2 = vadd.f32 %v3340_v18, %v5886_v29  ;;  %3938 = vxpose.xlu1.b32.cont [6/16] %v3337_v16, 128  ;;  %v3827_v27 = vpop.trf.xlu1 }
 0x281   : > { %4398 = vst [vmem:[%s6083_s13 + $0x588] sm:$0xff] %v3827_v27  ;;  %v1571_v33 = vpop.f32.mrf.mxu0  ;;  %v3342_v34 = vpop.f32.mrf.mxu1 }
 0x282   : > { %2808 = vst [vmem:[%s5535_s9 + $0x340] sm:$0xff] %v5034_v21  ;;  %v1891_v36 = vmax.f32 %v1568_v24, 0.0  ;;  %v1572_v38 = vadd.f32 %v1571_v33, %v5519_v6  ;;  %v3343_v22 = vadd.f32 %v3342_v34, %v5895_v47  ;;  %3907 = vxpose.xlu0.b32.cont [7/16] %v3341_v2, 128  ;;  %v2040_v43 = vpack.c.bf16 %v1890_v62, %v1888_v12  ;;  %v3796_v51 = vpop.trf.xlu0 }
 0x283   : > { %v1573_v40 = vpop.f32.mrf.mxu0  ;;  %v3344_v41 = vpop.f32.mrf.mxu1  ;;  %4278 = vst [vmem:[%s6083_s13 + $0x1c8] sm:$0xff] %v3796_v51 }
 0x284   : > { %v2041_v46 = vpack.c.bf16 %v1891_v36, %v1889_v39  ;;  %v5035_v1 = vpack.c.bf16 %v1891_v36, %v1890_v62  ;;  %v1574_v45 = vadd.f32 %v1573_v40, %v5523_v7  ;;  %3939 = vxpose.xlu1.b32.cont [7/16] %v3343_v22, 128  ;;  %v3828_v48 = vpop.trf.xlu1  ;;  %v3345_v52 = vadd.f32 %v3344_v41, %v5886_v29 }
 0x285   : > { %4406 = vst [vmem:[%s6083_s13 + $0x5c8] sm:$0xff] %v3828_v48  ;;  %v1575_v56 = vpop.f32.mrf.mxu0  ;;  %v3346_v53 = vpop.f32.mrf.mxu1  ;;  %v1892_v57 = vmax.f32 %v1572_v38, 0.0 }
 0x286   : > { %2809 = vst [vmem:[%s5535_s9 + $0x348] sm:$0xff] %v5035_v1  ;;  %v1893_v58 = vmax.f32 %v1574_v45, 0.0  ;;  %v1576_v60 = vadd.f32 %v1575_v56, %v5519_v6  ;;  %v3347_v0 = vadd.f32 %v3346_v53, %v5895_v47  ;;  %3588 = vmatprep.mubr.bf16.mxu1 %v2041_v46  ;;  %3908 = vxpose.xlu0.b32.cont [8/16] %v3345_v52, 128  ;;  %v3797_v11 = vpop.trf.xlu0 }
 0x287   : > { %v1577_v4 = vpop.f32.mrf.mxu0  ;;  %v3350_v28 = vpop.f32.mrf.mxu1  ;;  %3589 = vmatmul.mubr.bf16.gmra.mxu1 %v2040_v43  ;;  %4286 = vst [vmem:[%s6083_s13 + $0x208] sm:$0xff] %v3797_v11 }
 0x288   : > { %v5036_v61 = vpack.c.bf16 %v1893_v58, %v1892_v57  ;;  %v1894_v63 = vmax.f32 %v1576_v60, 0.0  ;;  %v1578_v3 = vadd.f32 %v1577_v4, %v5523_v7  ;;  %3940 = vxpose.xlu1.b32.cont [8/16] %v3347_v0, 128  ;;  %v3829_v5 = vpop.trf.xlu1  ;;  %v3351_v9 = vadd.f32 %v3350_v28, %v5886_v29 }
 0x289   : > { %4414 = vst [vmem:[%s6083_s13 + $0x608] sm:$0xff] %v3829_v5  ;;  %v1581_v12 = vpop.f32.mrf.mxu0  ;;  %v3352_v16 = vpop.f32.mrf.mxu1 }
 0x28a   : > { %2810 = vst [vmem:[%s5535_s9 + $0x350] sm:$0xff] %v5036_v61  ;;  %v1895_v39 = vmax.f32 %v1578_v3, 0.0  ;;  %v1582_v15 = vadd.f32 %v1581_v12, %v5519_v6  ;;  %v3353_v17 = vadd.f32 %v3352_v16, %v5895_v47  ;;  %3909 = vxpose.xlu0.b32.cont [9/16] %v3351_v9, 128  ;;  %v2042_v21 = vpack.c.bf16 %v1894_v63, %v1892_v57  ;;  %v3798_v34 = vpop.trf.xlu0 }
 0x28b   : > { %v1583_v18 = vpop.f32.mrf.mxu0  ;;  %v3354_v27 = vpop.f32.mrf.mxu1  ;;  %4294 = vst [vmem:[%s6083_s13 + $0x248] sm:$0xff] %v3798_v34 }
 0x28c   : > { %v2043_v62 = vpack.c.bf16 %v1895_v39, %v1893_v58  ;;  %v5037_v24 = vpack.c.bf16 %v1895_v39, %v1894_v63  ;;  %v1584_v2 = vadd.f32 %v1583_v18, %v5523_v7  ;;  %v3830_v30 = vpop.trf.xlu1  ;;  %v3355_v33 = vadd.f32 %v3354_v27, %v5886_v29  ;;  %3941 = vxpose.xlu1.b32.cont [9/16] %v3353_v17, 128 }
 0x28d   : > { %4422 = vst [vmem:[%s6083_s13 + $0x648] sm:$0xff] %v3830_v30  ;;  %v1585_v36 = vpop.f32.mrf.mxu0  ;;  %v1896_v38 = vmax.f32 %v1582_v15, 0.0  ;;  %v3356_v41 = vpop.f32.mrf.mxu1 }
 0x28e   : > { %2811 = vst [vmem:[%s5535_s9 + $0x358] sm:$0xff] %v5037_v24  ;;  %v1897_v22 = vmax.f32 %v1584_v2, 0.0  ;;  %v1586_v40 = vadd.f32 %v1585_v36, %v5519_v6  ;;  %3598 = vmatprep.mubr.bf16.mxu1 %v2043_v62  ;;  %v3357_v43 = vadd.f32 %v3356_v41, %v5895_v47  ;;  %3910 = vxpose.xlu0.b32.cont [10/16] %v3355_v33, 128  ;;  %v3799_v53 = vpop.trf.xlu0 }
 0x28f   : > { %v1587_v46 = vpop.f32.mrf.mxu0  ;;  %v3360_v51 = vpop.f32.mrf.mxu1  ;;  %3599 = vmatmul.mubr.bf16.gmra.mxu1 %v2042_v21  ;;  %4302 = vst [vmem:[%s6083_s13 + $0x288] sm:$0xff] %v3799_v53 }
 0x290   : > { %v5038_v1 = vpack.c.bf16 %v1897_v22, %v1896_v38  ;;  %v1898_v45 = vmax.f32 %v1586_v40, 0.0  ;;  %v1588_v48 = vadd.f32 %v1587_v46, %v5523_v7  ;;  %v3831_v52 = vpop.trf.xlu1  ;;  %v3361_v56 = vadd.f32 %v3360_v51, %v5886_v29  ;;  %3942 = vxpose.xlu1.b32.cont [10/16] %v3357_v43, 128 }
 0x291   : > { %4430 = vst [vmem:[%s6083_s13 + $0x688] sm:$0xff] %v3831_v52  ;;  %v1591_v57 = vpop.f32.mrf.mxu0  ;;  %v3362_v0 = vpop.f32.mrf.mxu1 }
 0x292   : > { %2812 = vst [vmem:[%s5535_s9 + $0x360] sm:$0xff] %v5038_v1  ;;  %v1899_v58 = vmax.f32 %v1588_v48, 0.0  ;;  %v1592_v60 = vadd.f32 %v1591_v57, %v5519_v6  ;;  %v3363_v4 = vadd.f32 %v3362_v0, %v5895_v47  ;;  %3911 = vxpose.xlu0.b32.cont [11/16] %v3361_v56, 128  ;;  %v2044_v63 = vpack.c.bf16 %v1898_v45, %v1896_v38  ;;  %v3800_v39 = vpop.trf.xlu0 }
 0x293   : > { %v1593_v61 = vpop.f32.mrf.mxu0  ;;  %v3364_v9 = vpop.f32.mrf.mxu1  ;;  %4310 = vst [vmem:[%s6083_s13 + $0x2c8] sm:$0xff] %v3800_v39 }
 0x294   : > { %v2045_v3 = vpack.c.bf16 %v1899_v58, %v1897_v22  ;;  %v5039_v28 = vpack.c.bf16 %v1899_v58, %v1898_v45  ;;  %v1594_v5 = vadd.f32 %v1593_v61, %v5523_v7  ;;  %v3832_v11 = vpop.trf.xlu1  ;;  %v3365_v12 = vadd.f32 %v3364_v9, %v5886_v29  ;;  %3943 = vxpose.xlu1.b32.cont [11/16] %v3363_v4, 128 }
 0x295   : > { %4438 = vst [vmem:[%s6083_s13 + $0x6c8] sm:$0xff] %v3832_v11  ;;  %v1595_v15 = vpop.f32.mrf.mxu0  ;;  %v1900_v16 = vmax.f32 %v1592_v60, 0.0  ;;  %v3366_v21 = vpop.f32.mrf.mxu1 }
 0x296   : > { %2813 = vst [vmem:[%s5535_s9 + $0x368] sm:$0xff] %v5039_v28  ;;  %v1901_v17 = vmax.f32 %v1594_v5, 0.0  ;;  %v1596_v18 = vadd.f32 %v1595_v15, %v5519_v6  ;;  %3608 = vmatprep.mubr.bf16.mxu1 %v2045_v3  ;;  %v3367_v62 = vadd.f32 %v3366_v21, %v5895_v47  ;;  %3912 = vxpose.xlu0.b32.cont [12/16] %v3365_v12, 128  ;;  %v3801_v38 = vpop.trf.xlu0 }
 0x297   : > { %v1597_v24 = vpop.f32.mrf.mxu0  ;;  %v3370_v33 = vpop.f32.mrf.mxu1  ;;  %3609 = vmatmul.mubr.bf16.gmra.mxu1 %v2044_v63  ;;  %4318 = vst [vmem:[%s6083_s13 + $0x308] sm:$0xff] %v3801_v38 }
 0x298   : > { %v5040_v2 = vpack.c.bf16 %v1901_v17, %v1900_v16  ;;  %v1902_v27 = vmax.f32 %v1596_v18, 0.0  ;;  %v1598_v30 = vadd.f32 %v1597_v24, %v5523_v7  ;;  %v3833_v34 = vpop.trf.xlu1  ;;  %v3371_v36 = vadd.f32 %v3370_v33, %v5886_v29  ;;  %3944 = vxpose.xlu1.b32.cont [12/16] %v3367_v62, 128 }
 0x299   : > { %4446 = vst [vmem:[%s6083_s13 + $0x708] sm:$0xff] %v3833_v34  ;;  %v1601_v22 = vpop.f32.mrf.mxu0  ;;  %v3372_v43 = vpop.f32.mrf.mxu1 }
 0x29a   : > { %2814 = vst [vmem:[%s5535_s9 + $0x370] sm:$0xff] %v5040_v2  ;;  %v1903_v40 = vmax.f32 %v1598_v30, 0.0  ;;  %v1602_v41 = vadd.f32 %v1601_v22, %v5519_v6  ;;  %v3373_v46 = vadd.f32 %v3372_v43, %v5895_v47  ;;  %3913 = vxpose.xlu0.b32.cont [13/16] %v3371_v36, 128  ;;  %v2046_v45 = vpack.c.bf16 %v1902_v27, %v1900_v16  ;;  %v3802_v58 = vpop.trf.xlu0 }
 0x29b   : > { %v1603_v1 = vpop.f32.mrf.mxu0  ;;  %v3374_v56 = vpop.f32.mrf.mxu1  ;;  %4326 = vst [vmem:[%s6083_s13 + $0x348] sm:$0xff] %v3802_v58 }
 0x29c   : > { %v2047_v48 = vpack.c.bf16 %v1903_v40, %v1901_v17  ;;  %v5041_v51 = vpack.c.bf16 %v1903_v40, %v1902_v27  ;;  %v1604_v52 = vadd.f32 %v1603_v1, %v5523_v7  ;;  %v3834_v53 = vpop.trf.xlu1  ;;  %v3375_v57 = vadd.f32 %v3374_v56, %v5886_v29  ;;  %3945 = vxpose.xlu1.b32.cont [13/16] %v3373_v46, 128 }
 0x29d   : > { %4454 = vst [vmem:[%s6083_s13 + $0x748] sm:$0xff] %v3834_v53  ;;  %v1605_v60 = vpop.f32.mrf.mxu0  ;;  %v1904_v0 = vmax.f32 %v1602_v41, 0.0  ;;  %v3376_v63 = vpop.f32.mrf.mxu1 }
 0x29e   : > { %2815 = vst [vmem:[%s5535_s9 + $0x378] sm:$0xff] %v5041_v51  ;;  %v1905_v4 = vmax.f32 %v1604_v52, 0.0  ;;  %v1606_v61 = vadd.f32 %v1605_v60, %v5519_v6  ;;  %3618 = vmatprep.mubr.bf16.mxu1 %v2047_v48  ;;  %v3377_v3 = vadd.f32 %v3376_v63, %v5895_v47  ;;  %3914 = vxpose.xlu0.b32.cont [14/16] %v3375_v57, 128  ;;  %v3803_v16 = vpop.trf.xlu0 }
 0x29f   : > { %v1607_v28 = vpop.f32.mrf.mxu0  ;;  %v3380_v12 = vpop.f32.mrf.mxu1  ;;  %3619 = vmatmul.mubr.bf16.gmra.mxu1 %v2046_v45  ;;  %4334 = vst [vmem:[%s6083_s13 + $0x388] sm:$0xff] %v3803_v16 }
 0x2a0   : > { %v5042_v5 = vpack.c.bf16 %v1905_v4, %v1904_v0  ;;  %v1906_v9 = vmax.f32 %v1606_v61, 0.0  ;;  %v1608_v11 = vadd.f32 %v1607_v28, %v5523_v7  ;;  %v3835_v39 = vpop.trf.xlu1  ;;  %v3381_v15 = vadd.f32 %v3380_v12, %v5886_v29  ;;  %3946 = vxpose.xlu1.b32.cont [14/16] %v3377_v3, 128 }
 0x2a1   : > { %4462 = vst [vmem:[%s6083_s13 + $0x788] sm:$0xff] %v3835_v39  ;;  %v1611_v17 = vpop.f32.mrf.mxu0  ;;  %v3382_v62 = vpop.f32.mrf.mxu1 }
 0x2a2   : > { %2816 = vst [vmem:[%s5535_s9 + $0x380] sm:$0xff] %v5042_v5  ;;  %v1907_v18 = vmax.f32 %v1608_v11, 0.0  ;;  %v1612_v21 = vadd.f32 %v1611_v17, %v5519_v6  ;;  %v3383_v24 = vadd.f32 %v3382_v62, %v5895_v47  ;;  %3915 = vxpose.xlu0.b32.cont [15/16] %v3381_v15, 128  ;;  %v2048_v27 = vpack.c.bf16 %v1906_v9, %v1904_v0  ;;  %v3804_v40 = vpop.trf.xlu0 }
 0x2a3   : > { %v1613_v2 = vpop.f32.mrf.mxu0  ;;  %v3384_v36 = vpop.f32.mrf.mxu1  ;;  %4342 = vst [vmem:[%s6083_s13 + $0x3c8] sm:$0xff] %v3804_v40 }
 0x2a4   : > { %v2049_v30 = vpack.c.bf16 %v1907_v18, %v1905_v4  ;;  %v5043_v33 = vpack.c.bf16 %v1907_v18, %v1906_v9  ;;  %v1614_v34 = vadd.f32 %v1613_v2, %v5523_v7  ;;  %v3836_v38 = vpop.trf.xlu1  ;;  %v3385_v22 = vadd.f32 %v3384_v36, %v5886_v29  ;;  %3947 = vxpose.xlu1.b32.cont [15/16] %v3383_v24, 128 }
 0x2a5   : > { %4470 = vst [vmem:[%s6083_s13 + $0x7c8] sm:$0xff] %v3836_v38  ;;  %v1615_v41 = vpop.f32.mrf.mxu0  ;;  %v1908_v43 = vmax.f32 %v1612_v21, 0.0  ;;  %v3386_v45 = vpop.f32.mrf.mxu1 }
 0x2a6   : > { %2817 = vst [vmem:[%s5535_s9 + $0x388] sm:$0xff] %v5043_v33  ;;  %v1909_v46 = vmax.f32 %v1614_v34, 0.0  ;;  %v1616_v1 = vadd.f32 %v1615_v41, %v5519_v6  ;;  %3628 = vmatprep.mubr.bf16.mxu1 %v2049_v30  ;;  %v3387_v48 = vadd.f32 %v3386_v45, %v5895_v47  ;;  %3916 = vxpose.xlu0.b32.end [16/16] %v3385_v22, 128  ;;  %v3853_v0 = vpop.trf.xlu0 }
 0x2a7   : > { %v1617_v51 = vpop.f32.mrf.mxu0  ;;  %v3390_v57 = vpop.f32.mrf.mxu1  ;;  %3629 = vmatmul.mubr.bf16.gmra.mxu1 %v2048_v27  ;;  %4223 = vst [vmem:[%s6083_s13 + $0x10] sm:$0xff] %v3853_v0 }
 0x2a8   : > { %v5044_v52 = vpack.c.bf16 %v1909_v46, %v1908_v43  ;;  %v1910_v56 = vmax.f32 %v1616_v1, 0.0  ;;  %v1618_v53 = vadd.f32 %v1617_v51, %v5523_v7  ;;  %v3885_v58 = vpop.trf.xlu1  ;;  %v3391_v60 = vadd.f32 %v3390_v57, %v5886_v29  ;;  %3948 = vxpose.xlu1.b32.end [16/16] %v3387_v48, 128 }
 0x2a9   : > { %4351 = vst [vmem:[%s6083_s13 + $0x410] sm:$0xff] %v3885_v58  ;;  %v1621_v4 = vpop.f32.mrf.mxu0  ;;  %v3392_v3 = vpop.f32.mrf.mxu1 }
 0x2aa   : > { %2818 = vst [vmem:[%s5535_s9 + $0x390] sm:$0xff] %v5044_v52  ;;  %v1911_v61 = vmax.f32 %v1618_v53, 0.0  ;;  %v1622_v63 = vadd.f32 %v1621_v4, %v5519_v6  ;;  %v3393_v28 = vadd.f32 %v3392_v3, %v5895_v47  ;;  %3965 = vxpose.xlu0.b32.start [1/16] %v3391_v60, 128  ;;  %v2050_v9 = vpack.c.bf16 %v1910_v56, %v1908_v43  ;;  %v3854_v18 = vpop.trf.xlu0 }
 0x2ab   : > { %v1623_v5 = vpop.f32.mrf.mxu0  ;;  %v3394_v15 = vpop.f32.mrf.mxu1  ;;  %4231 = vst [vmem:[%s6083_s13 + $0x50] sm:$0xff] %v3854_v18 }
 0x2ac   : > { %v2051_v11 = vpack.c.bf16 %v1911_v61, %v1909_v46  ;;  %v5045_v12 = vpack.c.bf16 %v1911_v61, %v1910_v56  ;;  %v1624_v39 = vadd.f32 %v1623_v5, %v5523_v7  ;;  %v3886_v16 = vpop.trf.xlu1  ;;  %v3395_v17 = vadd.f32 %v3394_v15, %v5886_v29  ;;  %3997 = vxpose.xlu1.b32.start [1/16] %v3393_v28, 128 }
 0x2ad   : > { %4359 = vst [vmem:[%s6083_s13 + $0x450] sm:$0xff] %v3886_v16  ;;  %v1625_v21 = vpop.f32.mrf.mxu0  ;;  %v1912_v62 = vmax.f32 %v1622_v63, 0.0  ;;  %v3396_v27 = vpop.f32.mrf.mxu1 }
 0x2ae   : > { %2819 = vst [vmem:[%s5535_s9 + $0x398] sm:$0xff] %v5045_v12  ;;  %v1913_v24 = vmax.f32 %v1624_v39, 0.0  ;;  %v1626_v2 = vadd.f32 %v1625_v21, %v5519_v6  ;;  %3638 = vmatprep.mubr.bf16.mxu1 %v2051_v11  ;;  %v3397_v30 = vadd.f32 %v3396_v27, %v5895_v47  ;;  %3966 = vxpose.xlu0.b32.cont [2/16] %v3395_v17, 128  ;;  %v3855_v43 = vpop.trf.xlu0 }
 0x2af   : > { %v1627_v33 = vpop.f32.mrf.mxu0  ;;  %v3400_v22 = vpop.f32.mrf.mxu1  ;;  %3639 = vmatmul.mubr.bf16.gmra.mxu1 %v2050_v9  ;;  %4239 = vst [vmem:[%s6083_s13 + $0x90] sm:$0xff] %v3855_v43 }
 0x2b0   : > { %v5046_v34 = vpack.c.bf16 %v1913_v24, %v1912_v62  ;;  %v1914_v36 = vmax.f32 %v1626_v2, 0.0  ;;  %v1628_v38 = vadd.f32 %v1627_v33, %v5523_v7  ;;  %v3887_v40 = vpop.trf.xlu1  ;;  %v3401_v41 = vadd.f32 %v3400_v22, %v5886_v29  ;;  %3998 = vxpose.xlu1.b32.cont [2/16] %v3397_v30, 128 }
 0x2b1   : > { %4367 = vst [vmem:[%s6083_s13 + $0x490] sm:$0xff] %v3887_v40  ;;  %v1631_v46 = vpop.f32.mrf.mxu0  ;;  %v3402_v48 = vpop.f32.mrf.mxu1 }
 0x2b2   : > { %2820 = vst [vmem:[%s5535_s9 + $0x3a0] sm:$0xff] %v5046_v34  ;;  %v1915_v1 = vmax.f32 %v1628_v38, 0.0  ;;  %v1632_v45 = vadd.f32 %v1631_v46, %v5519_v6  ;;  %v3403_v51 = vadd.f32 %v3402_v48, %v5895_v47  ;;  %3967 = vxpose.xlu0.b32.cont [3/16] %v3401_v41, 128  ;;  %v2052_v56 = vpack.c.bf16 %v1914_v36, %v1912_v62  ;;  %v3856_v61 = vpop.trf.xlu0 }
 0x2b3   : > { %v1633_v52 = vpop.f32.mrf.mxu0  ;;  %v3404_v60 = vpop.f32.mrf.mxu1  ;;  %4247 = vst [vmem:[%s6083_s13 + $0xd0] sm:$0xff] %v3856_v61 }
 0x2b4   : > { %v2053_v53 = vpack.c.bf16 %v1915_v1, %v1913_v24  ;;  %v5047_v57 = vpack.c.bf16 %v1915_v1, %v1914_v36  ;;  %v1634_v58 = vadd.f32 %v1633_v52, %v5523_v7  ;;  %v3888_v0 = vpop.trf.xlu1  ;;  %v3405_v4 = vadd.f32 %v3404_v60, %v5886_v29  ;;  %3999 = vxpose.xlu1.b32.cont [3/16] %v3403_v51, 128 }
 0x2b5   : > { %4375 = vst [vmem:[%s6083_s13 + $0x4d0] sm:$0xff] %v3888_v0  ;;  %v1635_v63 = vpop.f32.mrf.mxu0  ;;  %v1916_v3 = vmax.f32 %v1632_v45, 0.0  ;;  %v3406_v9 = vpop.f32.mrf.mxu1 }
 0x2b6   : > { %2821 = vst [vmem:[%s5535_s9 + $0x3a8] sm:$0xff] %v5047_v57  ;;  %v1917_v28 = vmax.f32 %v1634_v58, 0.0  ;;  %v1636_v5 = vadd.f32 %v1635_v63, %v5519_v6  ;;  %3648 = vmatprep.mubr.bf16.mxu1 %v2053_v53  ;;  %v3407_v11 = vadd.f32 %v3406_v9, %v5895_v47  ;;  %3968 = vxpose.xlu0.b32.cont [4/16] %v3405_v4, 128  ;;  %v3857_v62 = vpop.trf.xlu0 }
 0x2b7   : > { %v1637_v12 = vpop.f32.mrf.mxu0  ;;  %v3410_v17 = vpop.f32.mrf.mxu1  ;;  %3649 = vmatmul.mubr.bf16.gmra.mxu1 %v2052_v56  ;;  %4255 = vst [vmem:[%s6083_s13 + $0x110] sm:$0xff] %v3857_v62 }
 0x2b8   : > { %v5048_v39 = vpack.c.bf16 %v1917_v28, %v1916_v3  ;;  %v1918_v15 = vmax.f32 %v1636_v5, 0.0  ;;  %v1638_v16 = vadd.f32 %v1637_v12, %v5523_v7  ;;  %v3889_v18 = vpop.trf.xlu1  ;;  %v3411_v21 = vadd.f32 %v3410_v17, %v5886_v29  ;;  %4000 = vxpose.xlu1.b32.cont [4/16] %v3407_v11, 128 }
 0x2b9   : > { %4383 = vst [vmem:[%s6083_s13 + $0x510] sm:$0xff] %v3889_v18  ;;  %v1641_v24 = vpop.f32.mrf.mxu0  ;;  %v3412_v30 = vpop.f32.mrf.mxu1 }
 0x2ba   : > { %2822 = vst [vmem:[%s5535_s9 + $0x3b0] sm:$0xff] %v5048_v39  ;;  %v1919_v2 = vmax.f32 %v1638_v16, 0.0  ;;  %v1642_v27 = vadd.f32 %v1641_v24, %v5519_v6  ;;  %v3413_v33 = vadd.f32 %v3412_v30, %v5895_v47  ;;  %3969 = vxpose.xlu0.b32.cont [5/16] %v3411_v21, 128  ;;  %v2054_v36 = vpack.c.bf16 %v1918_v15, %v1916_v3  ;;  %v3858_v1 = vpop.trf.xlu0 }
 0x2bb   : > { %v1643_v34 = vpop.f32.mrf.mxu0  ;;  %v3414_v41 = vpop.f32.mrf.mxu1  ;;  %4263 = vst [vmem:[%s6083_s13 + $0x150] sm:$0xff] %v3858_v1 }
 0x2bc   : > { %v2055_v38 = vpack.c.bf16 %v1919_v2, %v1917_v28  ;;  %v5049_v22 = vpack.c.bf16 %v1919_v2, %v1918_v15  ;;  %v1644_v40 = vadd.f32 %v1643_v34, %v5523_v7  ;;  %v3890_v43 = vpop.trf.xlu1  ;;  %v3415_v46 = vadd.f32 %v3414_v41, %v5886_v29  ;;  %4001 = vxpose.xlu1.b32.cont [5/16] %v3413_v33, 128 }
 0x2bd   : > { %4391 = vst [vmem:[%s6083_s13 + $0x550] sm:$0xff] %v3890_v43  ;;  %v1645_v45 = vpop.f32.mrf.mxu0  ;;  %v1920_v48 = vmax.f32 %v1642_v27, 0.0  ;;  %v3416_v56 = vpop.f32.mrf.mxu1 }
 0x2be   : > { %2823 = vst [vmem:[%s5535_s9 + $0x3b8] sm:$0xff] %v5049_v22  ;;  %v1921_v51 = vmax.f32 %v1644_v40, 0.0  ;;  %v1646_v52 = vadd.f32 %v1645_v45, %v5519_v6  ;;  %3658 = vmatprep.mubr.bf16.mxu1 %v2055_v38  ;;  %v3417_v53 = vadd.f32 %v3416_v56, %v5895_v47  ;;  %3970 = vxpose.xlu0.b32.cont [6/16] %v3415_v46, 128  ;;  %v3859_v3 = vpop.trf.xlu0 }
 0x2bf   : > { %v1647_v57 = vpop.f32.mrf.mxu0  ;;  %v3420_v4 = vpop.f32.mrf.mxu1  ;;  %3659 = vmatmul.mubr.bf16.gmra.mxu1 %v2054_v36  ;;  %4271 = vst [vmem:[%s6083_s13 + $0x190] sm:$0xff] %v3859_v3 }
 0x2c0   : > { %v5050_v58 = vpack.c.bf16 %v1921_v51, %v1920_v48  ;;  %v1922_v60 = vmax.f32 %v1646_v52, 0.0  ;;  %v1648_v0 = vadd.f32 %v1647_v57, %v5523_v7  ;;  %v3891_v61 = vpop.trf.xlu1  ;;  %v3421_v63 = vadd.f32 %v3420_v4, %v5886_v29  ;;  %4002 = vxpose.xlu1.b32.cont [6/16] %v3417_v53, 128 }
 0x2c1   : > { %4399 = vst [vmem:[%s6083_s13 + $0x590] sm:$0xff] %v3891_v61  ;;  %v1651_v28 = vpop.f32.mrf.mxu0  ;;  %v3422_v11 = vpop.f32.mrf.mxu1 }
 0x2c2   : > { %2824 = vst [vmem:[%s5535_s9 + $0x3c0] sm:$0xff] %v5050_v58  ;;  %v1923_v5 = vmax.f32 %v1648_v0, 0.0  ;;  %v1652_v9 = vadd.f32 %v1651_v28, %v5519_v6  ;;  %v3423_v12 = vadd.f32 %v3422_v11, %v5895_v47  ;;  %3971 = vxpose.xlu0.b32.cont [7/16] %v3421_v63, 128  ;;  %v2056_v15 = vpack.c.bf16 %v1922_v60, %v1920_v48  ;;  %v3860_v2 = vpop.trf.xlu0 }
 0x2c3   : > { %v1653_v39 = vpop.f32.mrf.mxu0  ;;  %v3424_v21 = vpop.f32.mrf.mxu1  ;;  %4279 = vst [vmem:[%s6083_s13 + $0x1d0] sm:$0xff] %v3860_v2 }
 0x2c4   : > { %v2057_v16 = vpack.c.bf16 %v1923_v5, %v1921_v51  ;;  %v5051_v17 = vpack.c.bf16 %v1923_v5, %v1922_v60  ;;  %v1654_v18 = vadd.f32 %v1653_v39, %v5523_v7  ;;  %v3892_v62 = vpop.trf.xlu1  ;;  %v3425_v24 = vadd.f32 %v3424_v21, %v5886_v29  ;;  %4003 = vxpose.xlu1.b32.cont [7/16] %v3423_v12, 128 }
 0x2c5   : > { %4407 = vst [vmem:[%s6083_s13 + $0x5d0] sm:$0xff] %v3892_v62  ;;  %v1655_v27 = vpop.f32.mrf.mxu0  ;;  %v1924_v30 = vmax.f32 %v1652_v9, 0.0  ;;  %v3426_v36 = vpop.f32.mrf.mxu1 }
 0x2c6   : > { %2825 = vst [vmem:[%s5535_s9 + $0x3c8] sm:$0xff] %v5051_v17  ;;  %v1925_v33 = vmax.f32 %v1654_v18, 0.0  ;;  %v1656_v34 = vadd.f32 %v1655_v27, %v5519_v6  ;;  %3668 = vmatprep.mubr.bf16.mxu1 %v2057_v16  ;;  %v3427_v38 = vadd.f32 %v3426_v36, %v5895_v47  ;;  %3972 = vxpose.xlu0.b32.cont [8/16] %v3425_v24, 128  ;;  %v3861_v48 = vpop.trf.xlu0 }
 0x2c7   : > { %v1657_v22 = vpop.f32.mrf.mxu0  ;;  %v3430_v46 = vpop.f32.mrf.mxu1  ;;  %3669 = vmatmul.mubr.bf16.gmra.mxu1 %v2056_v15  ;;  %4287 = vst [vmem:[%s6083_s13 + $0x210] sm:$0xff] %v3861_v48 }
 0x2c8   : > { %v5052_v40 = vpack.c.bf16 %v1925_v33, %v1924_v30  ;;  %v1926_v41 = vmax.f32 %v1656_v34, 0.0  ;;  %v1658_v43 = vadd.f32 %v1657_v22, %v5523_v7  ;;  %v3893_v1 = vpop.trf.xlu1  ;;  %v3431_v45 = vadd.f32 %v3430_v46, %v5886_v29  ;;  %4004 = vxpose.xlu1.b32.cont [8/16] %v3427_v38, 128 }
 0x2c9   : > { %4415 = vst [vmem:[%s6083_s13 + $0x610] sm:$0xff] %v3893_v1  ;;  %v1661_v51 = vpop.f32.mrf.mxu0  ;;  %v3432_v53 = vpop.f32.mrf.mxu1 }
 0x2ca   : > { %2826 = vst [vmem:[%s5535_s9 + $0x3d0] sm:$0xff] %v5052_v40  ;;  %v1927_v52 = vmax.f32 %v1658_v43, 0.0  ;;  %v1662_v56 = vadd.f32 %v1661_v51, %v5519_v6  ;;  %v3433_v57 = vadd.f32 %v3432_v53, %v5895_v47  ;;  %3973 = vxpose.xlu0.b32.cont [9/16] %v3431_v45, 128  ;;  %v2058_v60 = vpack.c.bf16 %v1926_v41, %v1924_v30  ;;  %v3862_v5 = vpop.trf.xlu0 }
 0x2cb   : > { %v1663_v58 = vpop.f32.mrf.mxu0  ;;  %v3434_v63 = vpop.f32.mrf.mxu1  ;;  %4295 = vst [vmem:[%s6083_s13 + $0x250] sm:$0xff] %v3862_v5 }
 0x2cc   : > { %v2059_v0 = vpack.c.bf16 %v1927_v52, %v1925_v33  ;;  %v5053_v4 = vpack.c.bf16 %v1927_v52, %v1926_v41  ;;  %v1664_v61 = vadd.f32 %v1663_v58, %v5523_v7  ;;  %v3894_v3 = vpop.trf.xlu1  ;;  %v3435_v28 = vadd.f32 %v3434_v63, %v5886_v29  ;;  %4005 = vxpose.xlu1.b32.cont [9/16] %v3433_v57, 128 }
 0x2cd   : > { %4423 = vst [vmem:[%s6083_s13 + $0x650] sm:$0xff] %v3894_v3  ;;  %v1665_v9 = vpop.f32.mrf.mxu0  ;;  %v1928_v11 = vmax.f32 %v1662_v56, 0.0  ;;  %v3436_v15 = vpop.f32.mrf.mxu1 }
 0x2ce   : > { %2827 = vst [vmem:[%s5535_s9 + $0x3d8] sm:$0xff] %v5053_v4  ;;  %v1929_v12 = vmax.f32 %v1664_v61, 0.0  ;;  %v1666_v39 = vadd.f32 %v1665_v9, %v5519_v6  ;;  %3678 = vmatprep.mubr.bf16.mxu1 %v2059_v0  ;;  %v3437_v16 = vadd.f32 %v3436_v15, %v5895_v47  ;;  %3974 = vxpose.xlu0.b32.cont [10/16] %v3435_v28, 128  ;;  %v3863_v30 = vpop.trf.xlu0 }
 0x2cf   : > { %v1667_v17 = vpop.f32.mrf.mxu0  ;;  %v3440_v24 = vpop.f32.mrf.mxu1  ;;  %3679 = vmatmul.mubr.bf16.gmra.mxu1 %v2058_v60  ;;  %4303 = vst [vmem:[%s6083_s13 + $0x290] sm:$0xff] %v3863_v30 }
 0x2d0   : > { %v5054_v18 = vpack.c.bf16 %v1929_v12, %v1928_v11  ;;  %v1930_v21 = vmax.f32 %v1666_v39, 0.0  ;;  %v1668_v62 = vadd.f32 %v1667_v17, %v5523_v7  ;;  %v3895_v2 = vpop.trf.xlu1  ;;  %v3441_v27 = vadd.f32 %v3440_v24, %v5886_v29  ;;  %4006 = vxpose.xlu1.b32.cont [10/16] %v3437_v16, 128 }
 0x2d1   : > { %4431 = vst [vmem:[%s6083_s13 + $0x690] sm:$0xff] %v3895_v2  ;;  %v1671_v33 = vpop.f32.mrf.mxu0  ;;  %v3442_v38 = vpop.f32.mrf.mxu1 }
 0x2d2   : > { %2828 = vst [vmem:[%s5535_s9 + $0x3e0] sm:$0xff] %v5054_v18  ;;  %v1931_v34 = vmax.f32 %v1668_v62, 0.0  ;;  %v1672_v36 = vadd.f32 %v1671_v33, %v5519_v6  ;;  %v3443_v22 = vadd.f32 %v3442_v38, %v5895_v47  ;;  %3975 = vxpose.xlu0.b32.cont [11/16] %v3441_v27, 128  ;;  %v2060_v41 = vpack.c.bf16 %v1930_v21, %v1928_v11  ;;  %v3864_v52 = vpop.trf.xlu0 }
 0x2d3   : > { %v1673_v40 = vpop.f32.mrf.mxu0  ;;  %v3444_v45 = vpop.f32.mrf.mxu1  ;;  %4311 = vst [vmem:[%s6083_s13 + $0x2d0] sm:$0xff] %v3864_v52 }
 0x2d4   : > { %v2061_v43 = vpack.c.bf16 %v1931_v34, %v1929_v12  ;;  %v5055_v46 = vpack.c.bf16 %v1931_v34, %v1930_v21  ;;  %v1674_v1 = vadd.f32 %v1673_v40, %v5523_v7  ;;  %v3896_v48 = vpop.trf.xlu1  ;;  %v3445_v51 = vadd.f32 %v3444_v45, %v5886_v29  ;;  %4007 = vxpose.xlu1.b32.cont [11/16] %v3443_v22, 128 }
 0x2d5   : > { %4439 = vst [vmem:[%s6083_s13 + $0x6d0] sm:$0xff] %v3896_v48  ;;  %v1675_v56 = vpop.f32.mrf.mxu0  ;;  %v1932_v53 = vmax.f32 %v1672_v36, 0.0  ;;  %v3446_v60 = vpop.f32.mrf.mxu1 }
 0x2d6   : > { %2829 = vst [vmem:[%s5535_s9 + $0x3e8] sm:$0xff] %v5055_v46  ;;  %v1933_v57 = vmax.f32 %v1674_v1, 0.0  ;;  %v1676_v58 = vadd.f32 %v1675_v56, %v5519_v6  ;;  %3688 = vmatprep.mubr.bf16.mxu1 %v2061_v43  ;;  %v3447_v0 = vadd.f32 %v3446_v60, %v5895_v47  ;;  %3976 = vxpose.xlu0.b32.cont [12/16] %v3445_v51, 128  ;;  %v3865_v6 = vpop.trf.xlu0 }
 0x2d7   : > { %v1677_v4 = vpop.f32.mrf.mxu0  ;;  %v3450_v28 = vpop.f32.mrf.mxu1  ;;  %3689 = vmatmul.mubr.bf16.gmra.mxu1 %v2060_v41  ;;  %4319 = vst [vmem:[%s6083_s13 + $0x310] sm:$0xff] %v3865_v6 }
 0x2d8   : > { %v5056_v61 = vpack.c.bf16 %v1933_v57, %v1932_v53  ;;  %v1934_v63 = vmax.f32 %v1676_v58, 0.0  ;;  %v1678_v3 = vadd.f32 %v1677_v4, %v5523_v7  ;;  %v3897_v5 = vpop.trf.xlu1  ;;  %v3451_v9 = vadd.f32 %v3450_v28, %v5886_v29  ;;  %4008 = vxpose.xlu1.b32.cont [12/16] %v3447_v0, 128 }
 0x2d9   : > { %4447 = vst [vmem:[%s6083_s13 + $0x710] sm:$0xff] %v3897_v5  ;;  %v3070_v11 = vpop.f32.mrf.mxu0  ;;  %v3452_v39 = vpop.f32.mrf.mxu1 }
 0x2da   : > { %2830 = vst [vmem:[%s5535_s9 + $0x3f0] sm:$0xff] %v5056_v61  ;;  %v1935_v12 = vmax.f32 %v1678_v3, 0.0  ;;  %v3453_v15 = vadd.f32 %v3452_v39, %v5895_v47  ;;  %3977 = vxpose.xlu0.b32.cont [13/16] %v3451_v9, 128  ;;  %v2062_v16 = vpack.c.bf16 %v1934_v63, %v1932_v53  ;;  %v3866_v2 = vpop.trf.xlu0  ;;  %v3071_v60 = vadd.f32 %v3070_v11, %v5886_v29 }
 0x2db   : > { %v3072_v7 = vpop.f32.mrf.mxu0  ;;  %v3454_v21 = vpop.f32.mrf.mxu1  ;;  %4327 = vst [vmem:[%s6083_s13 + $0x350] sm:$0xff] %v3866_v2 }
 0x2dc   : > { %v2063_v17 = vpack.c.bf16 %v1935_v12, %v1933_v57  ;;  %v5057_v18 = vpack.c.bf16 %v1935_v12, %v1934_v63  ;;  %v3898_v62 = vpop.trf.xlu1  ;;  %v3455_v24 = vadd.f32 %v3454_v21, %v5886_v29  ;;  %4009 = vxpose.xlu1.b32.cont [13/16] %v3453_v15, 128  ;;  %v3073_v63 = vadd.f32 %v3072_v7, %v5895_v47 }
 0x2dd   : > { %4455 = vst [vmem:[%s6083_s13 + $0x750] sm:$0xff] %v3898_v62  ;;  %v3074_v27 = vpop.f32.mrf.mxu0  ;;  %v3456_v30 = vpop.f32.mrf.mxu1 }
 0x2de   : > { %2831 = vst [vmem:[%s5535_s9 + $0x3f8] sm:$0xff] %v5057_v18  ;;  %3698 = vmatprep.mubr.bf16.mxu1 %v2063_v17  ;;  %v3457_v33 = vadd.f32 %v3456_v30, %v5895_v47  ;;  %3978 = vxpose.xlu0.b32.cont [14/16] %v3455_v24, 128  ;;  %v3867_v40 = vpop.trf.xlu0  ;;  %v3075_v5 = vadd.f32 %v3074_v27, %v5886_v29 }
 0x2df   : > { %v3076_v34 = vpop.f32.mrf.mxu0  ;;  %v3460_v36 = vpop.f32.mrf.mxu1  ;;  %3699 = vmatmul.mubr.bf16.gmra.mxu1 %v2062_v16  ;;  %4335 = vst [vmem:[%s6083_s13 + $0x390] sm:$0xff] %v3867_v40 }
 0x2e0   : > { %v3899_v38 = vpop.trf.xlu1  ;;  %v3461_v22 = vadd.f32 %v3460_v36, %v5886_v29  ;;  %4010 = vxpose.xlu1.b32.cont [14/16] %v3457_v33, 128  ;;  %v3077_v12 = vadd.f32 %v3076_v34, %v5895_v47 }
 0x2e1   : > { %4463 = vst [vmem:[%s6083_s13 + $0x790] sm:$0xff] %v3899_v38  ;;  %v3080_v41 = vpop.f32.mrf.mxu0  ;;  %v3462_v43 = vpop.f32.mrf.mxu1 }
 0x2e2   : > { %v3463_v46 = vadd.f32 %v3462_v43, %v5895_v47  ;;  %3979 = vxpose.xlu0.b32.cont [15/16] %v3461_v22, 128  ;;  %v3868_v52 = vpop.trf.xlu0  ;;  %v3081_v7 = vadd.f32 %v3080_v41, %v5886_v29 }
 0x2e3   : > { %v3082_v1 = vpop.f32.mrf.mxu0  ;;  %v3464_v45 = vpop.f32.mrf.mxu1  ;;  %4343 = vst [vmem:[%s6083_s13 + $0x3d0] sm:$0xff] %v3868_v52 }
 0x2e4   : > { %v3900_v48 = vpop.trf.xlu1  ;;  %v3465_v51 = vadd.f32 %v3464_v45, %v5886_v29  ;;  %4011 = vxpose.xlu1.b32.cont [15/16] %v3463_v46, 128  ;;  %v3083_v21 = vadd.f32 %v3082_v1, %v5895_v47 }
 0x2e5   : > { %4471 = vst [vmem:[%s6083_s13 + $0x7d0] sm:$0xff] %v3900_v48  ;;  %v3466_v56 = vpop.f32.mrf.mxu1  ;;  %v3084_v57 = vpop.f32.mrf.mxu0 }
 0x2e6   : > { %v3467_v53 = vadd.f32 %v3466_v56, %v5895_v47  ;;  %3980 = vxpose.xlu0.b32.end [16/16] %v3465_v51, 128  ;;  %v3917_v4 = vpop.trf.xlu0  ;;  %v3085_v2 = vadd.f32 %v3084_v57, %v5886_v29 }
 0x2e7   : > { %v6300_v58 = vpop.f32.mrf.mxu1  ;;  %4224 = vst [vmem:[%s6083_s13 + $0x18] sm:$0xff] %v3917_v4  ;;  %v3086_v3 = vpop.f32.mrf.mxu0 }
 0x2e8   : > { %4012 = vxpose.xlu1.b32.end [16/16] %v3467_v53, 128  ;;  %v3949_v0 = vpop.trf.xlu1  ;;  %v3087_v34 = vadd.f32 %v3086_v3, %v5895_v47  ;;  %v3103_v3 = vadd.f32 %v5805_v25, %v5895_v47 }
 0x2e9   : > { %4352 = vst [vmem:[%s6083_s13 + $0x418] sm:$0xff] %v3949_v0  ;;  %v6305_v61 = vpop.f32.mrf.mxu1  ;;  %v3090_v39 = vpop.f32.mrf.mxu0 }
 0x2ea   : > { %3709 = vxpose.xlu0.b32.start [1/16] %v3071_v60, 128  ;;  %v3918_v6 = vpop.trf.xlu0  ;;  %v3091_v22 = vadd.f32 %v3090_v39, %v5886_v29  ;;  %v3101_v60 = vadd.f32 %v5801_v20, %v5886_v29  ;;  %v3107_v39 = vadd.f32 %v5813_v35, %v5895_v47 }
 0x2eb   : > { %v6308_v28 = vpop.f32.mrf.mxu1  ;;  %4232 = vst [vmem:[%s6083_s13 + $0x58] sm:$0xff] %v3918_v6  ;;  %v3092_v62 = vpop.f32.mrf.mxu0 }
 0x2ec   : > { %v3950_v9 = vpop.trf.xlu1  ;;  %3741 = vxpose.xlu1.b32.start [1/16] %v3073_v63, 128  ;;  %v3093_v46 = vadd.f32 %v3092_v62, %v5895_v47  ;;  %v3115_v62 = vadd.f32 %v5827_v54, %v5886_v29 }
 0x2ed   : > { %4360 = vst [vmem:[%s6083_s13 + $0x458] sm:$0xff] %v3950_v9  ;;  %v6313_v11 = vpop.f32.mrf.mxu1  ;;  %v3094_v36 = vpop.f32.mrf.mxu0  ;;  %v3105_v9 = vadd.f32 %v5810_v31, %v5886_v29 }
 0x2ee   : > { %3710 = vxpose.xlu0.b32.cont [2/16] %v3075_v5, 128  ;;  %v3919_v17 = vpop.trf.xlu0  ;;  %v3095_v48 = vadd.f32 %v3094_v36, %v5886_v29 }
 0x2ef   : > { %v6316_v15 = vpop.f32.mrf.mxu1  ;;  %4240 = vst [vmem:[%s6083_s13 + $0x98] sm:$0xff] %v3919_v17  ;;  %v3096_v1 = vpop.f32.mrf.mxu0 }
 0x2f0   : > { %v3951_v16 = vpop.trf.xlu1  ;;  %3742 = vxpose.xlu1.b32.cont [2/16] %v3077_v12, 128  ;;  %v3097_v53 = vadd.f32 %v3096_v1, %v5895_v47 }
 0x2f1   : > { %4368 = vst [vmem:[%s6083_s13 + $0x498] sm:$0xff] %v3951_v16  ;;  %v6321_v18 = vpop.f32.mrf.mxu1 }
 0x2f2   : > { %3711 = vxpose.xlu0.b32.cont [3/16] %v3081_v7, 128  ;;  %v3920_v30 = vpop.trf.xlu0  ;;  %v3111_v7 = vadd.f32 %v5818_v44, %v5886_v29 }
 0x2f3   : > { %v6324_v24 = vpop.f32.mrf.mxu1  ;;  %4248 = vst [vmem:[%s6083_s13 + $0xd8] sm:$0xff] %v3920_v30  ;;  %v3117_v30 = vadd.f32 %v5830_v59, %v5895_v47 }
 0x2f4   : > { %v3952_v27 = vpop.trf.xlu1  ;;  %3743 = vxpose.xlu1.b32.cont [3/16] %v3083_v21, 128  ;;  %v3113_v21 = vadd.f32 %v5822_v49, %v5895_v47 }
 0x2f5   : > { %4376 = vst [vmem:[%s6083_s13 + $0x4d8] sm:$0xff] %v3952_v27  ;;  %v6329_v33 = vpop.f32.mrf.mxu1 }
 0x2f6   : > { %3712 = vxpose.xlu0.b32.cont [4/16] %v3085_v2, 128  ;;  %v3921_v41 = vpop.trf.xlu0 }
 0x2f7   : > { %v6332_v38 = vpop.f32.mrf.mxu1  ;;  %4256 = vst [vmem:[%s6083_s13 + $0x118] sm:$0xff] %v3921_v41  ;;  %v3125_v41 = vadd.f32 %v5844_v19, %v5886_v29 }
 0x2f8   : > { %v3953_v40 = vpop.trf.xlu1  ;;  %3744 = vxpose.xlu1.b32.cont [4/16] %v3087_v34, 128  ;;  %v3121_v34 = vadd.f32 %v5835_v10, %v5886_v29 }
 0x2f9   : > { %4384 = vst [vmem:[%s6083_s13 + $0x518] sm:$0xff] %v3953_v40  ;;  %v6337_v43 = vpop.f32.mrf.mxu1  ;;  %v3123_v40 = vadd.f32 %v5839_v14, %v5895_v47 }
 0x2fa   : > { %3713 = vxpose.xlu0.b32.cont [5/16] %v3091_v22, 128  ;;  %v3922_v52 = vpop.trf.xlu0 }
 0x2fb   : > { %v6340_v45 = vpop.f32.mrf.mxu1  ;;  %4264 = vst [vmem:[%s6083_s13 + $0x158] sm:$0xff] %v3922_v52 }
 0x2fc   : > { %v3954_v51 = vpop.trf.xlu1  ;;  %3745 = vxpose.xlu1.b32.cont [5/16] %v3093_v46, 128 }
 0x2fd   : > { %4392 = vst [vmem:[%s6083_s13 + $0x558] sm:$0xff] %v3954_v51  ;;  %v6345_v56 = vpop.f32.mrf.mxu1  ;;  %v3131_v51 = vadd.f32 %v5852_v37, %v5886_v29 }
 0x2fe   : > { %3714 = vxpose.xlu0.b32.cont [6/16] %v3095_v48, 128  ;;  %v3923_v4 = vpop.trf.xlu0  ;;  %v3127_v48 = vadd.f32 %v5847_v26, %v5895_v47 }
 0x2ff   : > { %v6348_v57 = vpop.f32.mrf.mxu1  ;;  %4272 = vst [vmem:[%s6083_s13 + $0x198] sm:$0xff] %v3923_v4 }
 0x300   : > { %v3955_v0 = vpop.trf.xlu1  ;;  %3746 = vxpose.xlu1.b32.cont [6/16] %v3097_v53, 128 }
 0x301   : > { %4400 = vst [vmem:[%s6083_s13 + $0x598] sm:$0xff] %v3955_v0  ;;  %v6354_v63 = vpop.f32.mrf.mxu1  ;;  %v3135_v0 = vadd.f32 %v5861_v50, %v5886_v29 }
 0x302   : > { %3715 = vxpose.xlu0.b32.cont [7/16] %v3101_v60, 128  ;;  %v3924_v20 = vpop.trf.xlu0  ;;  %v3133_v60 = vadd.f32 %v5856_v42, %v5895_v47 }
 0x303   : > { %v6358_v5 = vpop.f32.mrf.mxu1  ;;  %4280 = vst [vmem:[%s6083_s13 + $0x1d8] sm:$0xff] %v3924_v20 }
 0x304   : > { %v3956_v6 = vpop.trf.xlu1  ;;  %3747 = vxpose.xlu1.b32.cont [7/16] %v3103_v3, 128 }
 0x305   : > { %4408 = vst [vmem:[%s6083_s13 + $0x5d8] sm:$0xff] %v3956_v6  ;;  %v6364_v12 = vpop.f32.mrf.mxu1  ;;  %v3141_v6 = vadd.f32 %v5869_v8, %v5886_v29 }
 0x306   : > { %3716 = vxpose.xlu0.b32.cont [8/16] %v3105_v9, 128  ;;  %v3925_v31 = vpop.trf.xlu0  ;;  %v3137_v9 = vadd.f32 %v5864_v55, %v5895_v47 }
 0x307   : > { %v6368_v25 = vpop.f32.mrf.mxu1  ;;  %4288 = vst [vmem:[%s6083_s13 + $0x218] sm:$0xff] %v3925_v31 }
 0x308   : > { %v3957_v16 = vpop.trf.xlu1  ;;  %3748 = vxpose.xlu1.b32.cont [8/16] %v3107_v39, 128 }
 0x309   : > { %4416 = vst [vmem:[%s6083_s13 + $0x618] sm:$0xff] %v3957_v16  ;;  %v6374_v17 = vpop.f32.mrf.mxu1  ;;  %v3145_v16 = vadd.f32 %v5881_v23, %v5886_v29 }
 0x30a   : > { %3717 = vxpose.xlu0.b32.cont [9/16] %v3111_v7, 128  ;;  %v3926_v44 = vpop.trf.xlu0  ;;  %v3143_v7 = vadd.f32 %v5873_v13, %v5895_v47 }
 0x30b   : > { %v6378_v35 = vpop.f32.mrf.mxu1  ;;  %4296 = vst [vmem:[%s6083_s13 + $0x258] sm:$0xff] %v3926_v44 }
 0x30c   : > { %v3958_v2 = vpop.trf.xlu1  ;;  %3749 = vxpose.xlu1.b32.cont [9/16] %v3113_v21, 128 }
 0x30d   : > { %4424 = vst [vmem:[%s6083_s13 + $0x658] sm:$0xff] %v3958_v2  ;;  %v6384_v27 = vpop.f32.mrf.mxu1  ;;  %v3471_v2 = vadd.f32 %v6300_v58, %v5886_v29 }
 0x30e   : > { %3718 = vxpose.xlu0.b32.cont [10/16] %v3115_v62, 128  ;;  %v3927_v54 = vpop.trf.xlu0  ;;  %v3147_v62 = vadd.f32 %v5888_v32, %v5895_v47 }
 0x30f   : > { %v6388_v49 = vpop.f32.mrf.mxu1  ;;  %4304 = vst [vmem:[%s6083_s13 + $0x298] sm:$0xff] %v3927_v54 }
 0x310   : > { %v3959_v36 = vpop.trf.xlu1  ;;  %3750 = vxpose.xlu1.b32.cont [10/16] %v3117_v30, 128 }
 0x311   : > { %4432 = vst [vmem:[%s6083_s13 + $0x698] sm:$0xff] %v3959_v36  ;;  %v6394_v22 = vpop.f32.mrf.mxu1  ;;  %v3475_v36 = vadd.f32 %v6308_v28, %v5886_v29 }
 0x312   : > { %3719 = vxpose.xlu0.b32.cont [11/16] %v3121_v34, 128  ;;  %v3928_v10 = vpop.trf.xlu0  ;;  %v3473_v34 = vadd.f32 %v6305_v61, %v5895_v47 }
 0x313   : > { %v6398_v59 = vpop.f32.mrf.mxu1  ;;  %4312 = vst [vmem:[%s6083_s13 + $0x2d8] sm:$0xff] %v3928_v10 }
 0x314   : > { %v3960_v46 = vpop.trf.xlu1  ;;  %3751 = vxpose.xlu1.b32.cont [11/16] %v3123_v40, 128 }
 0x315   : > { %4440 = vst [vmem:[%s6083_s13 + $0x6d8] sm:$0xff] %v3960_v46  ;;  %v6404_v1 = vpop.f32.mrf.mxu1  ;;  %v3481_v46 = vadd.f32 %v6316_v15, %v5886_v29 }
 0x316   : > { %3720 = vxpose.xlu0.b32.cont [12/16] %v3125_v41, 128  ;;  %v3929_v19 = vpop.trf.xlu0  ;;  %v3477_v41 = vadd.f32 %v6313_v11, %v5895_v47 }
 0x317   : > { %v6408_v14 = vpop.f32.mrf.mxu1  ;;  %4320 = vst [vmem:[%s6083_s13 + $0x318] sm:$0xff] %v3929_v19 }
 0x318   : > { %v3961_v52 = vpop.trf.xlu1  ;;  %3752 = vxpose.xlu1.b32.cont [12/16] %v3127_v48, 128 }
 0x319   : > { %4448 = vst [vmem:[%s6083_s13 + $0x718] sm:$0xff] %v3961_v52  ;;  %v6414_v53 = vpop.f32.mrf.mxu1  ;;  %v3485_v52 = vadd.f32 %v6324_v24, %v5886_v29 }
 0x31a   : > { %3721 = vxpose.xlu0.b32.cont [13/16] %v3131_v51, 128  ;;  %v3930_v37 = vpop.trf.xlu0  ;;  %v3483_v51 = vadd.f32 %v6321_v18, %v5895_v47 }
 0x31b   : > { %v6418_v26 = vpop.f32.mrf.mxu1  ;;  %4328 = vst [vmem:[%s6083_s13 + $0x358] sm:$0xff] %v3930_v37 }
 0x31c   : > { %v3962_v4 = vpop.trf.xlu1  ;;  %3753 = vxpose.xlu1.b32.cont [13/16] %v3133_v60, 128 }
 0x31d   : > { %4456 = vst [vmem:[%s6083_s13 + $0x758] sm:$0xff] %v3962_v4  ;;  %v6424_v3 = vpop.f32.mrf.mxu1  ;;  %v3491_v4 = vadd.f32 %v6332_v38, %v5886_v29 }
 0x31e   : > { %3722 = vxpose.xlu0.b32.cont [14/16] %v3135_v0, 128  ;;  %v3931_v50 = vpop.trf.xlu0  ;;  %v3487_v0 = vadd.f32 %v6329_v33, %v5895_v47 }
 0x31f   : > { %v6428_v42 = vpop.f32.mrf.mxu1  ;;  %4336 = vst [vmem:[%s6083_s13 + $0x398] sm:$0xff] %v3931_v50 }
 0x320   : > { %v3963_v20 = vpop.trf.xlu1  ;;  %3754 = vxpose.xlu1.b32.cont [14/16] %v3137_v9, 128 }
 0x321   : > { %4464 = vst [vmem:[%s6083_s13 + $0x798] sm:$0xff] %v3963_v20  ;;  %v6434_v39 = vpop.f32.mrf.mxu1  ;;  %v3495_v20 = vadd.f32 %v6340_v45, %v5886_v29 }
 0x322   : > { %3723 = vxpose.xlu0.b32.cont [15/16] %v3141_v6, 128  ;;  %v3932_v8 = vpop.trf.xlu0  ;;  %v3493_v6 = vadd.f32 %v6337_v43, %v5895_v47 }
 0x323   : > { %v6438_v55 = vpop.f32.mrf.mxu1  ;;  %4344 = vst [vmem:[%s6083_s13 + $0x3d8] sm:$0xff] %v3932_v8 }
 0x324   : > { %v3964_v31 = vpop.trf.xlu1  ;;  %3755 = vxpose.xlu1.b32.cont [15/16] %v3143_v7, 128 }
 0x325   : > { %4472 = vst [vmem:[%s6083_s13 + $0x7d8] sm:$0xff] %v3964_v31  ;;  %v6444_v21 = vpop.f32.mrf.mxu1  ;;  %v3501_v31 = vadd.f32 %v6348_v57, %v5886_v29 }
 0x326   : > { %3724 = vxpose.xlu0.b32.end [16/16] %v3145_v16, 128  ;;  %v3981_v23 = vpop.trf.xlu0  ;;  %v3497_v16 = vadd.f32 %v6345_v56, %v5895_v47 }
 0x327   : > { %v6448_v13 = vpop.f32.mrf.mxu1  ;;  %4225 = vst [vmem:[%s6083_s13 + $0x20] sm:$0xff] %v3981_v23 }
 0x328   : > { %v4013_v44 = vpop.trf.xlu1  ;;  %3756 = vxpose.xlu1.b32.end [16/16] %v3147_v62, 128 }
 0x329   : > { %4353 = vst [vmem:[%s6083_s13 + $0x420] sm:$0xff] %v4013_v44  ;;  %v6454_v30 = vpop.f32.mrf.mxu1  ;;  %v3505_v44 = vadd.f32 %v6358_v5, %v5886_v29 }
 0x32a   : > { %4029 = vxpose.xlu0.b32.start [1/16] %v3471_v2, 128  ;;  %v3982_v58 = vpop.trf.xlu0  ;;  %v3503_v2 = vadd.f32 %v6354_v63, %v5895_v47 }
 0x32b   : > { %v6458_v32 = vpop.f32.mrf.mxu1  ;;  %4233 = vst [vmem:[%s6083_s13 + $0x60] sm:$0xff] %v3982_v58 }
 0x32c   : > { %v4014_v54 = vpop.trf.xlu1  ;;  %4061 = vxpose.xlu1.b32.start [1/16] %v3473_v34, 128 }
 0x32d   : > { %4361 = vst [vmem:[%s6083_s13 + $0x460] sm:$0xff] %v4014_v54  ;;  %v6464_v40 = vpop.f32.mrf.mxu1  ;;  %v3511_v54 = vadd.f32 %v6368_v25, %v5886_v29 }
 0x32e   : > { %4030 = vxpose.xlu0.b32.cont [2/16] %v3475_v36, 128  ;;  %v3983_v28 = vpop.trf.xlu0  ;;  %v3507_v36 = vadd.f32 %v6364_v12, %v5895_v47 }
 0x32f   : > { %v6468_v61 = vpop.f32.mrf.mxu1  ;;  %4241 = vst [vmem:[%s6083_s13 + $0xa0] sm:$0xff] %v3983_v28 }
 0x330   : > { %v4015_v10 = vpop.trf.xlu1  ;;  %4062 = vxpose.xlu1.b32.cont [2/16] %v3477_v41, 128 }
 0x331   : > { %4369 = vst [vmem:[%s6083_s13 + $0x4a0] sm:$0xff] %v4015_v10  ;;  %v6474_v48 = vpop.f32.mrf.mxu1  ;;  %v3515_v10 = vadd.f32 %v6378_v35, %v5886_v29 }
 0x332   : > { %4031 = vxpose.xlu0.b32.cont [3/16] %v3481_v46, 128  ;;  %v3984_v15 = vpop.trf.xlu0  ;;  %v3513_v46 = vadd.f32 %v6374_v17, %v5895_v47 }
 0x333   : > { %v6478_v11 = vpop.f32.mrf.mxu1  ;;  %4249 = vst [vmem:[%s6083_s13 + $0xe0] sm:$0xff] %v3984_v15 }
 0x334   : > { %v4016_v19 = vpop.trf.xlu1  ;;  %4063 = vxpose.xlu1.b32.cont [3/16] %v3483_v51, 128 }
 0x335   : > { %4377 = vst [vmem:[%s6083_s13 + $0x4e0] sm:$0xff] %v4016_v19  ;;  %v6484_v60 = vpop.f32.mrf.mxu1  ;;  %v3521_v19 = vadd.f32 %v6388_v49, %v5886_v29 }
 0x336   : > { %4032 = vxpose.xlu0.b32.cont [4/16] %v3485_v52, 128  ;;  %v3985_v24 = vpop.trf.xlu0  ;;  %v3517_v52 = vadd.f32 %v6384_v27, %v5895_v47 }
 0x337   : > { %v6488_v18 = vpop.f32.mrf.mxu1  ;;  %4257 = vst [vmem:[%s6083_s13 + $0x120] sm:$0xff] %v3985_v24 }
 0x338   : > { %v4017_v37 = vpop.trf.xlu1  ;;  %4064 = vxpose.xlu1.b32.cont [4/16] %v3487_v0, 128 }
 0x339   : > { %4385 = vst [vmem:[%s6083_s13 + $0x520] sm:$0xff] %v4017_v37  ;;  %v6494_v9 = vpop.f32.mrf.mxu1  ;;  %v3525_v37 = vadd.f32 %v6398_v59, %v5886_v29 }
 0x33a   : > { %4033 = vxpose.xlu0.b32.cont [5/16] %v3491_v4, 128  ;;  %v3986_v38 = vpop.trf.xlu0  ;;  %v3523_v4 = vadd.f32 %v6394_v22, %v5895_v47 }
 0x33b   : > { %v6498_v33 = vpop.f32.mrf.mxu1  ;;  %4265 = vst [vmem:[%s6083_s13 + $0x160] sm:$0xff] %v3986_v38 }
 0x33c   : > { %v4018_v50 = vpop.trf.xlu1  ;;  %4065 = vxpose.xlu1.b32.cont [5/16] %v3493_v6, 128 }
 0x33d   : > { %4393 = vst [vmem:[%s6083_s13 + $0x560] sm:$0xff] %v4018_v50  ;;  %v6504_v7 = vpop.f32.mrf.mxu1  ;;  %v3531_v50 = vadd.f32 %v6408_v14, %v5886_v29 }
 0x33e   : > { %4034 = vxpose.xlu0.b32.cont [6/16] %v3495_v20, 128  ;;  %v3987_v45 = vpop.trf.xlu0  ;;  %v3527_v20 = vadd.f32 %v6404_v1, %v5895_v47 }
 0x33f   : > { %v6508_v43 = vpop.f32.mrf.mxu1  ;;  %4273 = vst [vmem:[%s6083_s13 + $0x1a0] sm:$0xff] %v3987_v45 }
 0x340   : > { %v4019_v8 = vpop.trf.xlu1  ;;  %4066 = vxpose.xlu1.b32.cont [6/16] %v3497_v16, 128 }
 0x341   : > { %4401 = vst [vmem:[%s6083_s13 + $0x5a0] sm:$0xff] %v4019_v8  ;;  %v6514_v62 = vpop.f32.mrf.mxu1  ;;  %v3535_v8 = vadd.f32 %v6418_v26, %v5886_v29 }
 0x342   : > { %4035 = vxpose.xlu0.b32.cont [7/16] %v3501_v31, 128  ;;  %v3988_v57 = vpop.trf.xlu0  ;;  %v3533_v31 = vadd.f32 %v6414_v53, %v5895_v47 }
 0x343   : > { %v6518_v56 = vpop.f32.mrf.mxu1  ;;  %4281 = vst [vmem:[%s6083_s13 + $0x1e0] sm:$0xff] %v3988_v57 }
 0x344   : > { %v4020_v23 = vpop.trf.xlu1  ;;  %4067 = vxpose.xlu1.b32.cont [7/16] %v3503_v2, 128 }
 0x345   : > { %4409 = vst [vmem:[%s6083_s13 + $0x5e0] sm:$0xff] %v4020_v23  ;;  %v6524_v34 = vpop.f32.mrf.mxu1  ;;  %v3541_v23 = vadd.f32 %v6428_v42, %v5886_v29 }
 0x346   : > { %4036 = vxpose.xlu0.b32.cont [8/16] %v3505_v44, 128  ;;  %v3989_v5 = vpop.trf.xlu0  ;;  %v3537_v44 = vadd.f32 %v6424_v3, %v5895_v47 }
 0x347   : > { %v6528_v63 = vpop.f32.mrf.mxu1  ;;  %4289 = vst [vmem:[%s6083_s13 + $0x220] sm:$0xff] %v3989_v5 }
 0x348   : > { %v4021_v58 = vpop.trf.xlu1  ;;  %4068 = vxpose.xlu1.b32.cont [8/16] %v3507_v36, 128 }
 0x349   : > { %4417 = vst [vmem:[%s6083_s13 + $0x620] sm:$0xff] %v4021_v58  ;;  %v6534_v41 = vpop.f32.mrf.mxu1  ;;  %v3545_v58 = vadd.f32 %v6438_v55, %v5886_v29 }
 0x34a   : > { %4037 = vxpose.xlu0.b32.cont [9/16] %v3511_v54, 128  ;;  %v3990_v25 = vpop.trf.xlu0  ;;  %v3543_v54 = vadd.f32 %v6434_v39, %v5895_v47 }
 0x34b   : > { %v6538_v12 = vpop.f32.mrf.mxu1  ;;  %4297 = vst [vmem:[%s6083_s13 + $0x260] sm:$0xff] %v3990_v25 }
 0x34c   : > { %v4022_v28 = vpop.trf.xlu1  ;;  %4069 = vxpose.xlu1.b32.cont [9/16] %v3513_v46, 128 }
 0x34d   : > { %4425 = vst [vmem:[%s6083_s13 + $0x660] sm:$0xff] %v4022_v28  ;;  %v6544_v51 = vpop.f32.mrf.mxu1  ;;  %v3551_v28 = vadd.f32 %v6448_v13, %v5886_v29  ;;  %v3557_v13 = vadd.f32 %v6464_v40, %v5895_v47 }
 0x34e   : > { %4038 = vxpose.xlu0.b32.cont [10/16] %v3515_v10, 128  ;;  %v3991_v35 = vpop.trf.xlu0  ;;  %v3547_v10 = vadd.f32 %v6444_v21, %v5895_v47 }
 0x34f   : > { %v6548_v17 = vpop.f32.mrf.mxu1  ;;  %4305 = vst [vmem:[%s6083_s13 + $0x2a0] sm:$0xff] %v3991_v35 }
 0x350   : > { %v4023_v15 = vpop.trf.xlu1  ;;  %4070 = vxpose.xlu1.b32.cont [10/16] %v3517_v52, 128  ;;  %v3553_v52 = vadd.f32 %v6454_v30, %v5895_v47 }
 0x351   : > { %4433 = vst [vmem:[%s6083_s13 + $0x6a0] sm:$0xff] %v4023_v15  ;;  %v6554_v0 = vpop.f32.mrf.mxu1 }
 0x352   : > { %4039 = vxpose.xlu0.b32.cont [11/16] %v3521_v19, 128  ;;  %v3992_v49 = vpop.trf.xlu0  ;;  %v3555_v19 = vadd.f32 %v6458_v32, %v5886_v29  ;;  %v3563_v32 = vadd.f32 %v6474_v48, %v5895_v47 }
 0x353   : > { %v6558_v27 = vpop.f32.mrf.mxu1  ;;  %4313 = vst [vmem:[%s6083_s13 + $0x2e0] sm:$0xff] %v3992_v49  ;;  %v3565_v49 = vadd.f32 %v6478_v11, %v5886_v29  ;;  %v3573_v11 = vadd.f32 %v6494_v9, %v5895_v47 }
 0x354   : > { %v4024_v24 = vpop.trf.xlu1  ;;  %4071 = vxpose.xlu1.b32.cont [11/16] %v3523_v4, 128  ;;  %v3561_v4 = vadd.f32 %v6468_v61, %v5886_v29  ;;  %v3567_v61 = vadd.f32 %v6484_v60, %v5895_v47 }
 0x355   : > { %4441 = vst [vmem:[%s6083_s13 + $0x6e0] sm:$0xff] %v4024_v24  ;;  %v6564_v6 = vpop.f32.mrf.mxu1 }
 0x356   : > { %4040 = vxpose.xlu0.b32.cont [12/16] %v3525_v37, 128  ;;  %v3993_v59 = vpop.trf.xlu0 }
 0x357   : > { %v6568_v22 = vpop.f32.mrf.mxu1  ;;  %4321 = vst [vmem:[%s6083_s13 + $0x320] sm:$0xff] %v3993_v59 }
 0x358   : > { %v4025_v38 = vpop.trf.xlu1  ;;  %4072 = vxpose.xlu1.b32.cont [12/16] %v3527_v20, 128 }
 0x359   : > { %4449 = vst [vmem:[%s6083_s13 + $0x720] sm:$0xff] %v4025_v38  ;;  %v6574_v16 = vpop.f32.mrf.mxu1  ;;  %v3571_v38 = vadd.f32 %v6488_v18, %v5886_v29  ;;  %v3577_v18 = vadd.f32 %v6504_v7, %v5895_v47 }
 0x35a   : > { %4041 = vxpose.xlu0.b32.cont [13/16] %v3531_v50, 128  ;;  %v3994_v14 = vpop.trf.xlu0 }
 0x35b   : > { %v6578_v1 = vpop.f32.mrf.mxu1  ;;  %4329 = vst [vmem:[%s6083_s13 + $0x360] sm:$0xff] %v3994_v14 }
 0x35c   : > { %v4026_v45 = vpop.trf.xlu1  ;;  %4073 = vxpose.xlu1.b32.cont [13/16] %v3533_v31, 128 }
 0x35d   : > { %4457 = vst [vmem:[%s6083_s13 + $0x760] sm:$0xff] %v4026_v45  ;;  %v6584_v2 = vpop.f32.mrf.mxu1 }
 0x35e   : > { %4042 = vxpose.xlu0.b32.cont [14/16] %v3535_v8, 128  ;;  %v3995_v26 = vpop.trf.xlu0  ;;  %v3575_v8 = vadd.f32 %v6498_v33, %v5886_v29  ;;  %v3583_v33 = vadd.f32 %v6514_v62, %v5895_v47 }
 0x35f   : > { %v6588_v53 = vpop.f32.mrf.mxu1  ;;  %4337 = vst [vmem:[%s6083_s13 + $0x3a0] sm:$0xff] %v3995_v26  ;;  %v3585_v26 = vadd.f32 %v6518_v56, %v5886_v29  ;;  %v3593_v56 = vadd.f32 %v6534_v41, %v5895_v47 }
 0x360   : > { %v4027_v57 = vpop.trf.xlu1  ;;  %4074 = vxpose.xlu1.b32.cont [14/16] %v3537_v44, 128  ;;  %v3581_v44 = vadd.f32 %v6508_v43, %v5886_v29  ;;  %v3587_v43 = vadd.f32 %v6524_v34, %v5895_v47 }
 0x361   : > { %4465 = vst [vmem:[%s6083_s13 + $0x7a0] sm:$0xff] %v4027_v57  ;;  %v6594_v36 = vpop.f32.mrf.mxu1 }
 0x362   : > { %4043 = vxpose.xlu0.b32.cont [15/16] %v3541_v23, 128  ;;  %v3996_v42 = vpop.trf.xlu0 }
 0x363   : > { %v6598_v3 = vpop.f32.mrf.mxu1  ;;  %4345 = vst [vmem:[%s6083_s13 + $0x3e0] sm:$0xff] %v3996_v42 }
 0x364   : > { %v4028_v5 = vpop.trf.xlu1  ;;  %4075 = vxpose.xlu1.b32.cont [15/16] %v3543_v54, 128 }
 0x365   : > { %4473 = vst [vmem:[%s6083_s13 + $0x7e0] sm:$0xff] %v4028_v5  ;;  %v6604_v46 = vpop.f32.mrf.mxu1  ;;  %v3591_v5 = vadd.f32 %v6528_v63, %v5886_v29  ;;  %v3597_v63 = vadd.f32 %v6544_v51, %v5895_v47 }
 0x366   : > { %4044 = vxpose.xlu0.b32.end [16/16] %v3545_v58, 128  ;;  %v3725_v25 = vpop.trf.xlu0 }
 0x367   : > { %v6608_v39 = vpop.f32.mrf.mxu1  ;;  %4221 = vst [vmem:[%s6083_s13] sm:$0xff] %v3725_v25 }
 0x368   : > { %4076 = vxpose.xlu1.b32.end [16/16] %v3547_v10, 128  ;;  %v3757_v55 = vpop.trf.xlu1 }
 0x369   : > { %4349 = vst [vmem:[%s6083_s13 + $0x400] sm:$0xff] %v3757_v55  ;;  %v6616_v21 = vpop.f32.mrf.mxu1 }
 0x36a   : > { %4093 = vxpose.xlu0.b32.start [1/16] %v3551_v28, 128  ;;  %v3726_v35 = vpop.trf.xlu0  ;;  %v3595_v28 = vadd.f32 %v6538_v12, %v5886_v29  ;;  %v3603_v12 = vadd.f32 %v6554_v0, %v5895_v47 }
 0x36b   : > { %4229 = vst [vmem:[%s6083_s13 + $0x40] sm:$0xff] %v3726_v35  ;;  %v6624_v30 = vpop.f32.mrf.mxu1  ;;  %v3605_v35 = vadd.f32 %v6558_v27, %v5886_v29  ;;  %v3613_v27 = vadd.f32 %v6574_v16, %v5895_v47 }
 0x36c   : > { %4125 = vxpose.xlu1.b32.start [1/16] %v3553_v52, 128  ;;  %v3758_v15 = vpop.trf.xlu1  ;;  %v3601_v52 = vadd.f32 %v6548_v17, %v5886_v29  ;;  %v3607_v17 = vadd.f32 %v6564_v6, %v5895_v47 }
 0x36d   : > { %4357 = vst [vmem:[%s6083_s13 + $0x440] sm:$0xff] %v3758_v15  ;;  %v6632_v40 = vpop.f32.mrf.mxu1 }
 0x36e   : > { %4094 = vxpose.xlu0.b32.cont [2/16] %v3555_v19, 128  ;;  %v3727_v24 = vpop.trf.xlu0 }
 0x36f   : > { %4237 = vst [vmem:[%s6083_s13 + $0x80] sm:$0xff] %v3727_v24  ;;  %v6640_v48 = vpop.f32.mrf.mxu1 }
 0x370   : > { %4126 = vxpose.xlu1.b32.cont [2/16] %v3557_v13, 128  ;;  %v3759_v37 = vpop.trf.xlu1 }
 0x371   : > { %4365 = vst [vmem:[%s6083_s13 + $0x480] sm:$0xff] %v3759_v37  ;;  %v6648_v60 = vpop.f32.mrf.mxu1  ;;  %v3611_v37 = vadd.f32 %v6568_v22, %v5886_v29  ;;  %v3617_v22 = vadd.f32 %v6584_v2, %v5895_v47 }
 0x372   : > { %4095 = vxpose.xlu0.b32.cont [3/16] %v3561_v4, 128  ;;  %v3728_v50 = vpop.trf.xlu0 }
 0x373   : > { %4245 = vst [vmem:[%s6083_s13 + $0xc0] sm:$0xff] %v3728_v50  ;;  %v6656_v9 = vpop.f32.mrf.mxu1 }
 0x374   : > { %4127 = vxpose.xlu1.b32.cont [3/16] %v3563_v32, 128  ;;  %v3760_v20 = vpop.trf.xlu1 }
 0x375   : > { %4373 = vst [vmem:[%s6083_s13 + $0x4c0] sm:$0xff] %v3760_v20  ;;  %v6664_v7 = vpop.f32.mrf.mxu1 }
 0x376   : > { %4096 = vxpose.xlu0.b32.cont [4/16] %v3565_v49, 128  ;;  %v3729_v31 = vpop.trf.xlu0  ;;  %v3615_v49 = vadd.f32 %v6578_v1, %v5886_v29  ;;  %v3623_v1 = vadd.f32 %v6594_v36, %v5895_v47 }
 0x377   : > { %4253 = vst [vmem:[%s6083_s13 + $0x100] sm:$0xff] %v3729_v31  ;;  %v6672_v62 = vpop.f32.mrf.mxu1  ;;  %v3625_v31 = vadd.f32 %v6598_v3, %v5886_v29  ;;  %v3633_v3 = vadd.f32 %v6616_v21, %v5895_v47 }
 0x378   : > { %4128 = vxpose.xlu1.b32.cont [4/16] %v3567_v61, 128  ;;  %v3761_v59 = vpop.trf.xlu1  ;;  %v3621_v61 = vadd.f32 %v6588_v53, %v5886_v29  ;;  %v3627_v53 = vadd.f32 %v6604_v46, %v5895_v47 }
 0x379   : > { %4381 = vst [vmem:[%s6083_s13 + $0x500] sm:$0xff] %v3761_v59  ;;  %v6680_v34 = vpop.f32.mrf.mxu1 }
 0x37a   : > { %4097 = vxpose.xlu0.b32.cont [5/16] %v3571_v38, 128  ;;  %v3730_v14 = vpop.trf.xlu0 }
 0x37b   : > { %4261 = vst [vmem:[%s6083_s13 + $0x140] sm:$0xff] %v3730_v14  ;;  %v6688_v41 = vpop.f32.mrf.mxu1 }
 0x37c   : > { %4129 = vxpose.xlu1.b32.cont [5/16] %v3573_v11, 128  ;;  %v3762_v45 = vpop.trf.xlu1 }
 0x37d   : > { %4389 = vst [vmem:[%s6083_s13 + $0x540] sm:$0xff] %v3762_v45  ;;  %v6696_v51 = vpop.f32.mrf.mxu1  ;;  %v3631_v45 = vadd.f32 %v6608_v39, %v5886_v29  ;;  %v3637_v39 = vadd.f32 %v6632_v40, %v5895_v47 }
 0x37e   : > { %4098 = vxpose.xlu0.b32.cont [6/16] %v3575_v8, 128  ;;  %v3731_v57 = vpop.trf.xlu0 }
 0x37f   : > { %4269 = vst [vmem:[%s6083_s13 + $0x180] sm:$0xff] %v3731_v57  ;;  %v6704_v0 = vpop.f32.mrf.mxu1 }
 0x380   : > { %4130 = vxpose.xlu1.b32.cont [6/16] %v3577_v18, 128  ;;  %v3763_v23 = vpop.trf.xlu1 }
 0x381   : > { %4397 = vst [vmem:[%s6083_s13 + $0x580] sm:$0xff] %v3763_v23  ;;  %v6712_v6 = vpop.f32.mrf.mxu1 }
 0x382   : > { %4099 = vxpose.xlu0.b32.cont [7/16] %v3581_v44, 128  ;;  %v3732_v58 = vpop.trf.xlu0  ;;  %v3635_v44 = vadd.f32 %v6624_v30, %v5886_v29  ;;  %v3643_v30 = vadd.f32 %v6648_v60, %v5895_v47  ;;  %v3651_v60 = vadd.f32 %v6672_v62, %v5886_v29  ;;  %v3657_v62 = vadd.f32 %v6696_v51, %v5895_v47 }
 0x383   : > { %4277 = vst [vmem:[%s6083_s13 + $0x1c0] sm:$0xff] %v3732_v58  ;;  %v6720_v16 = vpop.f32.mrf.mxu1  ;;  %v3645_v58 = vadd.f32 %v6656_v9, %v5886_v29  ;;  %v3653_v9 = vadd.f32 %v6680_v34, %v5895_v47  ;;  %v3661_v34 = vadd.f32 %v6704_v0, %v5886_v29 }
 0x384   : > { %4131 = vxpose.xlu1.b32.cont [7/16] %v3583_v33, 128  ;;  %v3764_v54 = vpop.trf.xlu1  ;;  %v3641_v33 = vadd.f32 %v6640_v48, %v5886_v29  ;;  %v3647_v48 = vadd.f32 %v6664_v7, %v5895_v47  ;;  %v3655_v7 = vadd.f32 %v6688_v41, %v5886_v29  ;;  %v3663_v41 = vadd.f32 %v6712_v6, %v5895_v47 }
 0x385   : > { %4405 = vst [vmem:[%s6083_s13 + $0x5c0] sm:$0xff] %v3764_v54  ;;  %v6728_v2 = vpop.f32.mrf.mxu1 }
 0x386   : > { %4100 = vxpose.xlu0.b32.cont [8/16] %v3585_v26, 128  ;;  %v3733_v10 = vpop.trf.xlu0 }
 0x387   : > { %4285 = vst [vmem:[%s6083_s13 + $0x200] sm:$0xff] %v3733_v10  ;;  %v6736_v36 = vpop.f32.mrf.mxu1 }
 0x388   : > { %4132 = vxpose.xlu1.b32.cont [8/16] %v3587_v43, 128  ;;  %v3765_v42 = vpop.trf.xlu1 }
 0x389   : > { %4413 = vst [vmem:[%s6083_s13 + $0x600] sm:$0xff] %v3765_v42  ;;  %v6744_v46 = vpop.f32.mrf.mxu1 }
 0x38a   : > { %4101 = vxpose.xlu0.b32.cont [9/16] %v3591_v5, 128  ;;  %v3734_v25 = vpop.trf.xlu0 }
 0x38b   : > { %4293 = vst [vmem:[%s6083_s13 + $0x240] sm:$0xff] %v3734_v25  ;;  %v6752_v21 = vpop.f32.mrf.mxu1 }
 0x38c   : > { %4133 = vxpose.xlu1.b32.cont [9/16] %v3593_v56, 128  ;;  %v3766_v55 = vpop.trf.xlu1 }
 0x38d   : > { %4421 = vst [vmem:[%s6083_s13 + $0x640] sm:$0xff] %v3766_v55  ;;  %v3676_v40 = vpop.f32.mrf.mxu1 }
 0x38e   : > { %4102 = vxpose.xlu0.b32.cont [10/16] %v3595_v28, 128  ;;  %v3735_v15 = vpop.trf.xlu0 }
 0x38f   : > { %4301 = vst [vmem:[%s6083_s13 + $0x280] sm:$0xff] %v3735_v15  ;;  %v3680_v42 = vpop.f32.mrf.mxu1 }
 0x390   : > { %4134 = vxpose.xlu1.b32.cont [10/16] %v3597_v63, 128  ;;  %v3767_v19 = vpop.trf.xlu1 }
 0x391   : > { %4429 = vst [vmem:[%s6083_s13 + $0x680] sm:$0xff] %v3767_v19  ;;  %v3682_v28 = vpop.f32.mrf.mxu1 }
 0x392   : > { %4103 = vxpose.xlu0.b32.cont [11/16] %v3601_v52, 128  ;;  %v3736_v4 = vpop.trf.xlu0 }
 0x393   : > { %4309 = vst [vmem:[%s6083_s13 + $0x2c0] sm:$0xff] %v3736_v4  ;;  %v3684_v63 = vpop.f32.mrf.mxu1 }
 0x394   : > { %4135 = vxpose.xlu1.b32.cont [11/16] %v3603_v12, 128  ;;  %v3768_v13 = vpop.trf.xlu1  ;;  %v3665_v12 = vadd.f32 %v6720_v16, %v5886_v29 }
 0x395   : > { %4437 = vst [vmem:[%s6083_s13 + $0x6c0] sm:$0xff] %v3768_v13  ;;  %v3686_v15 = vpop.f32.mrf.mxu1  ;;  %v3667_v13 = vadd.f32 %v6728_v2, %v5895_v47 }
 0x396   : > { %4104 = vxpose.xlu0.b32.cont [12/16] %v3605_v35, 128  ;;  %v3737_v32 = vpop.trf.xlu0 }
 0x397   : > { %4317 = vst [vmem:[%s6083_s13 + $0x300] sm:$0xff] %v3737_v32  ;;  %v3690_v4 = vpop.f32.mrf.mxu1 }
 0x398   : > { %4136 = vxpose.xlu1.b32.cont [12/16] %v3607_v17, 128  ;;  %v3769_v24 = vpop.trf.xlu1  ;;  %v3671_v17 = vadd.f32 %v6736_v36, %v5886_v29 }
 0x399   : > { %4445 = vst [vmem:[%s6083_s13 + $0x700] sm:$0xff] %v3769_v24  ;;  %v3673_v24 = vadd.f32 %v6744_v46, %v5895_v47  ;;  %v3692_v32 = vpop.f32.mrf.mxu1 }
 0x39a   : > { %4105 = vxpose.xlu0.b32.cont [13/16] %v3611_v37, 128  ;;  %v3738_v50 = vpop.trf.xlu0 }
 0x39b   : > { %4325 = vst [vmem:[%s6083_s13 + $0x340] sm:$0xff] %v3738_v50  ;;  %v3694_v50 = vpop.f32.mrf.mxu1 }
 0x39c   : > { %4137 = vxpose.xlu1.b32.cont [13/16] %v3613_v27, 128  ;;  %v3770_v20 = vpop.trf.xlu1  ;;  %v3675_v27 = vadd.f32 %v6752_v21, %v5886_v29 }
 0x39d   : > { %4453 = vst [vmem:[%s6083_s13 + $0x740] sm:$0xff] %v3770_v20  ;;  %v3677_v20 = vadd.f32 %v3676_v40, %v5895_v47 }
 0x39e   : > { %4106 = vxpose.xlu0.b32.cont [14/16] %v3615_v49, 128  ;;  %v3739_v59 = vpop.trf.xlu0 }
 0x39f   : > { %4333 = vst [vmem:[%s6083_s13 + $0x380] sm:$0xff] %v3739_v59  ;;  %v3696_v59 = vpop.f32.mrf.mxu1 }
 0x3a0   : > { %4138 = vxpose.xlu1.b32.cont [14/16] %v3617_v22, 128  ;;  %v3771_v38 = vpop.trf.xlu1  ;;  %v3681_v22 = vadd.f32 %v3680_v42, %v5886_v29 }
 0x3a1   : > { %4461 = vst [vmem:[%s6083_s13 + $0x780] sm:$0xff] %v3771_v38  ;;  %v3683_v38 = vadd.f32 %v3682_v28, %v5895_v47 }
 0x3a2   : > { %4107 = vxpose.xlu0.b32.cont [15/16] %v3621_v61, 128  ;;  %v3740_v8 = vpop.trf.xlu0 }
 0x3a3   : > { %4341 = vst [vmem:[%s6083_s13 + $0x3c0] sm:$0xff] %v3740_v8  ;;  %v3700_v8 = vpop.f32.mrf.mxu1 }
 0x3a4   : > { %4139 = vxpose.xlu1.b32.cont [15/16] %v3623_v1, 128  ;;  %v3772_v11 = vpop.trf.xlu1  ;;  %v3685_v1 = vadd.f32 %v3684_v63, %v5886_v29 }
 0x3a5   : > { %4469 = vst [vmem:[%s6083_s13 + $0x7c0] sm:$0xff] %v3772_v11  ;;  %v3687_v11 = vadd.f32 %v3686_v15, %v5895_v47 }
 0x3a6   : > { %4108 = vxpose.xlu0.b32.end [16/16] %v3625_v31, 128  ;;  %v4045_v18 = vpop.trf.xlu0 }
 0x3a7   : > { %4226 = vst [vmem:[%s6083_s13 + $0x28] sm:$0xff] %v4045_v18  ;;  %v3702_v18 = vpop.f32.mrf.mxu1 }
 0x3a8   : > { %4140 = vxpose.xlu1.b32.end [16/16] %v3627_v53, 128  ;;  %v4077_v14 = vpop.trf.xlu1  ;;  %v3691_v53 = vadd.f32 %v3690_v4, %v5886_v29 }
 0x3a9   : > { %4354 = vst [vmem:[%s6083_s13 + $0x428] sm:$0xff] %v4077_v14  ;;  %v3693_v14 = vadd.f32 %v3692_v32, %v5895_v47 }
 0x3aa   : > { %4157 = vxpose.xlu0.b32.start [1/16] %v3631_v45, 128  ;;  %v4046_v57 = vpop.trf.xlu0 }
 0x3ab   : > { %4234 = vst [vmem:[%s6083_s13 + $0x68] sm:$0xff] %v4046_v57  ;;  %v3704_v57 = vpop.f32.mrf.mxu1 }
 0x3ac   : > { %4189 = vxpose.xlu1.b32.start [1/16] %v3633_v3, 128  ;;  %v4078_v23 = vpop.trf.xlu1  ;;  %v3695_v3 = vadd.f32 %v3694_v50, %v5886_v29 }
 0x3ad   : > { %4362 = vst [vmem:[%s6083_s13 + $0x468] sm:$0xff] %v4078_v23  ;;  %v3697_v23 = vadd.f32 %v3696_v59, %v5895_v47 }
 0x3ae   : > { %4158 = vxpose.xlu0.b32.cont [2/16] %v3635_v44, 128  ;;  %v4047_v54 = vpop.trf.xlu0 }
 0x3af   : > { %4242 = vst [vmem:[%s6083_s13 + $0xa8] sm:$0xff] %v4047_v54  ;;  %v3706_v54 = vpop.f32.mrf.mxu1 }
 0x3b0   : > { %4190 = vxpose.xlu1.b32.cont [2/16] %v3637_v39, 128  ;;  %v4079_v26 = vpop.trf.xlu1  ;;  %v3701_v39 = vadd.f32 %v3700_v8, %v5886_v29 }
 0x3b1   : > { %4370 = vst [vmem:[%s6083_s13 + $0x4a8] sm:$0xff] %v4079_v26  ;;  %v3703_v26 = vadd.f32 %v3702_v18, %v5895_v47 }
 0x3b2   : > { %4159 = vxpose.xlu0.b32.cont [3/16] %v3641_v33, 128  ;;  %v4048_v5 = vpop.trf.xlu0 }
 0x3b3   : > { %4250 = vst [vmem:[%s6083_s13 + $0xe8] sm:$0xff] %v4048_v5 }
 0x3b4   : > { %4191 = vxpose.xlu1.b32.cont [3/16] %v3643_v30, 128  ;;  %v4080_v43 = vpop.trf.xlu1  ;;  %v3705_v30 = vadd.f32 %v3704_v57, %v5886_v29 }
 0x3b5   : > { %4378 = vst [vmem:[%s6083_s13 + $0x4e8] sm:$0xff] %v4080_v43  ;;  %v3707_v43 = vadd.f32 %v3706_v54, %v5895_v47 }
 0x3b6   : > { %4160 = vxpose.xlu0.b32.cont [4/16] %v3645_v58, 128  ;;  %v4049_v56 = vpop.trf.xlu0 }
 0x3b7   : > { %4258 = vst [vmem:[%s6083_s13 + $0x128] sm:$0xff] %v4049_v56 }
 0x3b8   : > { %4192 = vxpose.xlu1.b32.cont [4/16] %v3647_v48, 128  ;;  %v4081_v10 = vpop.trf.xlu1 }
 0x3b9   : > { %4386 = vst [vmem:[%s6083_s13 + $0x528] sm:$0xff] %v4081_v10 }
 0x3ba   : > { %4161 = vxpose.xlu0.b32.cont [5/16] %v3651_v60, 128  ;;  %v4050_v25 = vpop.trf.xlu0 }
 0x3bb   : > { %4266 = vst [vmem:[%s6083_s13 + $0x168] sm:$0xff] %v4050_v25 }
 0x3bc   : > { %4193 = vxpose.xlu1.b32.cont [5/16] %v3653_v9, 128  ;;  %v4082_v55 = vpop.trf.xlu1 }
 0x3bd   : > { %4394 = vst [vmem:[%s6083_s13 + $0x568] sm:$0xff] %v4082_v55 }
 0x3be   : > { %4162 = vxpose.xlu0.b32.cont [6/16] %v3655_v7, 128  ;;  %v4051_v19 = vpop.trf.xlu0 }
 0x3bf   : > { %4274 = vst [vmem:[%s6083_s13 + $0x1a8] sm:$0xff] %v4051_v19 }
 0x3c0   : > { %4194 = vxpose.xlu1.b32.cont [6/16] %v3657_v62, 128  ;;  %v4083_v52 = vpop.trf.xlu1 }
 0x3c1   : > { %4402 = vst [vmem:[%s6083_s13 + $0x5a8] sm:$0xff] %v4083_v52 }
 0x3c2   : > { %4163 = vxpose.xlu0.b32.cont [7/16] %v3661_v34, 128  ;;  %v4052_v35 = vpop.trf.xlu0 }
 0x3c3   : > { %4282 = vst [vmem:[%s6083_s13 + $0x1e8] sm:$0xff] %v4052_v35 }
 0x3c4   : > { %4195 = vxpose.xlu1.b32.cont [7/16] %v3663_v41, 128  ;;  %v4084_v51 = vpop.trf.xlu1 }
 0x3c5   : > { %4410 = vst [vmem:[%s6083_s13 + $0x5e8] sm:$0xff] %v4084_v51 }
 0x3c6   : > { %4164 = vxpose.xlu0.b32.cont [8/16] %v3665_v12, 128  ;;  %v4053_v37 = vpop.trf.xlu0 }
 0x3c7   : > { %4290 = vst [vmem:[%s6083_s13 + $0x228] sm:$0xff] %v4053_v37 }
 0x3c8   : > { %4196 = vxpose.xlu1.b32.cont [8/16] %v3667_v13, 128  ;;  %v4085_v0 = vpop.trf.xlu1 }
 0x3c9   : > { %4418 = vst [vmem:[%s6083_s13 + $0x628] sm:$0xff] %v4085_v0 }
 0x3ca   : > { %4165 = vxpose.xlu0.b32.cont [9/16] %v3671_v17, 128  ;;  %v4054_v49 = vpop.trf.xlu0 }
 0x3cb   : > { %4298 = vst [vmem:[%s6083_s13 + $0x268] sm:$0xff] %v4054_v49 }
 0x3cc   : > { %4197 = vxpose.xlu1.b32.cont [9/16] %v3673_v24, 128  ;;  %v4086_v6 = vpop.trf.xlu1 }
 0x3cd   : > { %4426 = vst [vmem:[%s6083_s13 + $0x668] sm:$0xff] %v4086_v6 }
 0x3ce   : > { %4166 = vxpose.xlu0.b32.cont [10/16] %v3675_v27, 128  ;;  %v4055_v61 = vpop.trf.xlu0 }
 0x3cf   : > { %4306 = vst [vmem:[%s6083_s13 + $0x2a8] sm:$0xff] %v4055_v61 }
 0x3d0   : > { %4198 = vxpose.xlu1.b32.cont [10/16] %v3677_v20, 128  ;;  %v4087_v16 = vpop.trf.xlu1 }
 0x3d1   : > { %4434 = vst [vmem:[%s6083_s13 + $0x6a8] sm:$0xff] %v4087_v16 }
 0x3d2   : > { %4167 = vxpose.xlu0.b32.cont [11/16] %v3681_v22, 128  ;;  %v4056_v31 = vpop.trf.xlu0 }
 0x3d3   : > { %4314 = vst [vmem:[%s6083_s13 + $0x2e8] sm:$0xff] %v4056_v31 }
 0x3d4   : > { %4199 = vxpose.xlu1.b32.cont [11/16] %v3683_v38, 128  ;;  %v4088_v2 = vpop.trf.xlu1 }
 0x3d5   : > { %4442 = vst [vmem:[%s6083_s13 + $0x6e8] sm:$0xff] %v4088_v2 }
 0x3d6   : > { %4168 = vxpose.xlu0.b32.cont [12/16] %v3685_v1, 128  ;;  %v4057_v45 = vpop.trf.xlu0 }
 0x3d7   : > { %4322 = vst [vmem:[%s6083_s13 + $0x328] sm:$0xff] %v4057_v45 }
 0x3d8   : > { %4200 = vxpose.xlu1.b32.cont [12/16] %v3687_v11, 128  ;;  %v4089_v36 = vpop.trf.xlu1 }
 0x3d9   : > { %4450 = vst [vmem:[%s6083_s13 + $0x728] sm:$0xff] %v4089_v36 }
 0x3da   : > { %4169 = vxpose.xlu0.b32.cont [13/16] %v3691_v53, 128  ;;  %v4058_v44 = vpop.trf.xlu0 }
 0x3db   : > { %4330 = vst [vmem:[%s6083_s13 + $0x368] sm:$0xff] %v4058_v44 }
 0x3dc   : > { %4201 = vxpose.xlu1.b32.cont [13/16] %v3693_v14, 128  ;;  %v4090_v46 = vpop.trf.xlu1 }
 0x3dd   : > { %4458 = vst [vmem:[%s6083_s13 + $0x768] sm:$0xff] %v4090_v46 }
 0x3de   : > { %4170 = vxpose.xlu0.b32.cont [14/16] %v3695_v3, 128  ;;  %v4059_v33 = vpop.trf.xlu0 }
 0x3df   : > { %4338 = vst [vmem:[%s6083_s13 + $0x3a8] sm:$0xff] %v4059_v33 }
 0x3e0   : > { %4202 = vxpose.xlu1.b32.cont [14/16] %v3697_v23, 128  ;;  %v4091_v21 = vpop.trf.xlu1 }
 0x3e1   : > { %4466 = vst [vmem:[%s6083_s13 + $0x7a8] sm:$0xff] %v4091_v21 }
 0x3e2   : > { %4171 = vxpose.xlu0.b32.cont [15/16] %v3701_v39, 128  ;;  %v4060_v58 = vpop.trf.xlu0 }
 0x3e3   : > { %4346 = vst [vmem:[%s6083_s13 + $0x3e8] sm:$0xff] %v4060_v58 }
 0x3e4   : > { %4203 = vxpose.xlu1.b32.cont [15/16] %v3703_v26, 128  ;;  %v4092_v40 = vpop.trf.xlu1 }
 0x3e5   : > { %4474 = vst [vmem:[%s6083_s13 + $0x7e8] sm:$0xff] %v4092_v40 }
 0x3e6   : > { %4172 = vxpose.xlu0.b32.end [16/16] %v3705_v30, 128  ;;  %v4109_v48 = vpop.trf.xlu0 }
 0x3e7   : > { %4227 = vst [vmem:[%s6083_s13 + $0x30] sm:$0xff] %v4109_v48 }
 0x3e8   : > { %4204 = vxpose.xlu1.b32.end [16/16] %v3707_v43, 128  ;;  %v4141_v5 = vpop.trf.xlu1 }
 0x3e9   : > { %4355 = vst [vmem:[%s6083_s13 + $0x430] sm:$0xff] %v4141_v5 }
 0x3ea   : > { %v4110_v42 = vpop.trf.xlu0 }
 0x3eb   : > { %4235 = vst [vmem:[%s6083_s13 + $0x70] sm:$0xff] %v4110_v42 }
 0x3ec   : > { %v4142_v29 = vpop.trf.xlu1 }
 0x3ed   : > { %4363 = vst [vmem:[%s6083_s13 + $0x470] sm:$0xff] %v4142_v29 }
 0x3ee   : > { %v4111_v10 = vpop.trf.xlu0 }
 0x3ef   : > { %4243 = vst [vmem:[%s6083_s13 + $0xb0] sm:$0xff] %v4111_v10 }
 0x3f0   : > { %v4143_v60 = vpop.trf.xlu1 }
 0x3f1   : > { %4371 = vst [vmem:[%s6083_s13 + $0x4b0] sm:$0xff] %v4143_v60 }
 0x3f2   : > { %v4112_v56 = vpop.trf.xlu0 }
 0x3f3   : > { %4251 = vst [vmem:[%s6083_s13 + $0xf0] sm:$0xff] %v4112_v56 }
 0x3f4   : > { %v4144_v47 = vpop.trf.xlu1 }
 0x3f5   : > { %4379 = vst [vmem:[%s6083_s13 + $0x4f0] sm:$0xff] %v4144_v47 }
 0x3f6   : > { %v4113_v28 = vpop.trf.xlu0 }
 0x3f7   : > { %4259 = vst [vmem:[%s6083_s13 + $0x130] sm:$0xff] %v4113_v28 }
 0x3f8   : > { %v4145_v9 = vpop.trf.xlu1 }
 0x3f9   : > { %4387 = vst [vmem:[%s6083_s13 + $0x530] sm:$0xff] %v4145_v9 }
 0x3fa   : > { %v4114_v55 = vpop.trf.xlu0 }
 0x3fb   : > { %4267 = vst [vmem:[%s6083_s13 + $0x170] sm:$0xff] %v4114_v55 }
 0x3fc   : > { %v4146_v7 = vpop.trf.xlu1 }
 0x3fd   : > { %4395 = vst [vmem:[%s6083_s13 + $0x570] sm:$0xff] %v4146_v7 }
 0x3fe   : > { %v4115_v62 = vpop.trf.xlu0 }
 0x3ff   : > { %4275 = vst [vmem:[%s6083_s13 + $0x1b0] sm:$0xff] %v4115_v62 }
 0x400   : > { %v4147_v25 = vpop.trf.xlu1 }
 0x401   : > { %4403 = vst [vmem:[%s6083_s13 + $0x5b0] sm:$0xff] %v4147_v25 }
 0x402   : > { %v4116_v34 = vpop.trf.xlu0 }
 0x403   : > { %4283 = vst [vmem:[%s6083_s13 + $0x1f0] sm:$0xff] %v4116_v34 }
 0x404   : > { %v4148_v63 = vpop.trf.xlu1 }
 0x405   : > { %4411 = vst [vmem:[%s6083_s13 + $0x5f0] sm:$0xff] %v4148_v63 }
 0x406   : > { %v4117_v19 = vpop.trf.xlu0 }
 0x407   : > { %4291 = vst [vmem:[%s6083_s13 + $0x230] sm:$0xff] %v4117_v19 }
 0x408   : > { %v4149_v52 = vpop.trf.xlu1 }
 0x409   : > { %4419 = vst [vmem:[%s6083_s13 + $0x630] sm:$0xff] %v4149_v52 }
 0x40a   : > { %v4118_v15 = vpop.trf.xlu0 }
 0x40b   : > { %4299 = vst [vmem:[%s6083_s13 + $0x270] sm:$0xff] %v4118_v15 }
 0x40c   : > { %v4150_v41 = vpop.trf.xlu1 }
 0x40d   : > { %4427 = vst [vmem:[%s6083_s13 + $0x670] sm:$0xff] %v4150_v41 }
 0x40e   : > { %v4119_v51 = vpop.trf.xlu0 }
 0x40f   : > { %4307 = vst [vmem:[%s6083_s13 + $0x2b0] sm:$0xff] %v4119_v51 }
 0x410   : > { %v4151_v12 = vpop.trf.xlu1 }
 0x411   : > { %4435 = vst [vmem:[%s6083_s13 + $0x6b0] sm:$0xff] %v4151_v12 }
 0x412   : > { %v4120_v13 = vpop.trf.xlu0 }
 0x413   : > { %4315 = vst [vmem:[%s6083_s13 + $0x2f0] sm:$0xff] %v4120_v13 }
 0x414   : > { %v4152_v35 = vpop.trf.xlu1 }
 0x415   : > { %4443 = vst [vmem:[%s6083_s13 + $0x6f0] sm:$0xff] %v4152_v35 }
 0x416   : > { %v4121_v17 = vpop.trf.xlu0 }
 0x417   : > { %4323 = vst [vmem:[%s6083_s13 + $0x330] sm:$0xff] %v4121_v17 }
 0x418   : > { %v4153_v4 = vpop.trf.xlu1 }
 0x419   : > { %4451 = vst [vmem:[%s6083_s13 + $0x730] sm:$0xff] %v4153_v4 }
 0x41a   : > { %v4122_v37 = vpop.trf.xlu0 }
 0x41b   : > { %4331 = vst [vmem:[%s6083_s13 + $0x370] sm:$0xff] %v4122_v37 }
 0x41c   : > { %v4154_v0 = vpop.trf.xlu1 }
 0x41d   : > { %4459 = vst [vmem:[%s6083_s13 + $0x770] sm:$0xff] %v4154_v0 }
 0x41e   : > { %v4123_v32 = vpop.trf.xlu0 }
 0x41f   : > { %4339 = vst [vmem:[%s6083_s13 + $0x3b0] sm:$0xff] %v4123_v32 }
 0x420   : > { %v4155_v24 = vpop.trf.xlu1 }
 0x421   : > { %4467 = vst [vmem:[%s6083_s13 + $0x7b0] sm:$0xff] %v4155_v24 }
 0x422   : > { %v4124_v6 = vpop.trf.xlu0 }
 0x423   : > { %4347 = vst [vmem:[%s6083_s13 + $0x3f0] sm:$0xff] %v4124_v6 }
 0x424   : > { %v4156_v27 = vpop.trf.xlu1 }
 0x425   : > { %4475 = vst [vmem:[%s6083_s13 + $0x7f0] sm:$0xff] %v4156_v27 }
 0x426   : > { %v4173_v20 = vpop.trf.xlu0 }
 0x427   : > { %4228 = vst [vmem:[%s6083_s13 + $0x38] sm:$0xff] %v4173_v20 }
 0x428   : > { %v4205_v49 = vpop.trf.xlu1 }
 0x429   : > { %4356 = vst [vmem:[%s6083_s13 + $0x438] sm:$0xff] %v4205_v49 }
 0x42a   : > { %v4174_v22 = vpop.trf.xlu0 }
 0x42b   : > { %4236 = vst [vmem:[%s6083_s13 + $0x78] sm:$0xff] %v4174_v22 }
 0x42c   : > { %v4206_v50 = vpop.trf.xlu1 }
 0x42d   : > { %4364 = vst [vmem:[%s6083_s13 + $0x478] sm:$0xff] %v4206_v50 }
 0x42e   : > { %v4175_v61 = vpop.trf.xlu0 }
 0x42f   : > { %4244 = vst [vmem:[%s6083_s13 + $0xb8] sm:$0xff] %v4175_v61 }
 0x430   : > { %v4207_v16 = vpop.trf.xlu1 }
 0x431   : > { %4372 = vst [vmem:[%s6083_s13 + $0x4b8] sm:$0xff] %v4207_v16 }
 0x432   : > { %v4176_v59 = vpop.trf.xlu0 }
 0x433   : > { %4252 = vst [vmem:[%s6083_s13 + $0xf8] sm:$0xff] %v4176_v59 }
 0x434   : > { %v4208_v38 = vpop.trf.xlu1 }
 0x435   : > { %4380 = vst [vmem:[%s6083_s13 + $0x4f8] sm:$0xff] %v4208_v38 }
 0x436   : > { %v4177_v2 = vpop.trf.xlu0 }
 0x437   : > { %4260 = vst [vmem:[%s6083_s13 + $0x138] sm:$0xff] %v4177_v2 }
 0x438   : > { %v4209_v1 = vpop.trf.xlu1 }
 0x439   : > { %4388 = vst [vmem:[%s6083_s13 + $0x538] sm:$0xff] %v4209_v1 }
 0x43a   : > { %v4178_v11 = vpop.trf.xlu0 }
 0x43b   : > { %4268 = vst [vmem:[%s6083_s13 + $0x178] sm:$0xff] %v4178_v11 }
 0x43c   : > { %v4210_v31 = vpop.trf.xlu1 }
 0x43d   : > { %4396 = vst [vmem:[%s6083_s13 + $0x578] sm:$0xff] %v4210_v31 }
 0x43e   : > { %v4179_v53 = vpop.trf.xlu0 }
 0x43f   : > { %4276 = vst [vmem:[%s6083_s13 + $0x1b8] sm:$0xff] %v4179_v53 }
 0x440   : > { %v4211_v8 = vpop.trf.xlu1 }
 0x441   : > { %4404 = vst [vmem:[%s6083_s13 + $0x5b8] sm:$0xff] %v4211_v8 }
 0x442   : > { %v4180_v45 = vpop.trf.xlu0 }
 0x443   : > { %4284 = vst [vmem:[%s6083_s13 + $0x1f8] sm:$0xff] %v4180_v45 }
 0x444   : > { %v4212_v36 = vpop.trf.xlu1 }
 0x445   : > { %4412 = vst [vmem:[%s6083_s13 + $0x5f8] sm:$0xff] %v4212_v36 }
 0x446   : > { %v4181_v18 = vpop.trf.xlu0 }
 0x447   : > { %4292 = vst [vmem:[%s6083_s13 + $0x238] sm:$0xff] %v4181_v18 }
 0x448   : > { %v4213_v14 = vpop.trf.xlu1 }
 0x449   : > { %4420 = vst [vmem:[%s6083_s13 + $0x638] sm:$0xff] %v4213_v14 }
 0x44a   : > { %v4182_v46 = vpop.trf.xlu0 }
 0x44b   : > { %4300 = vst [vmem:[%s6083_s13 + $0x278] sm:$0xff] %v4182_v46 }
 0x44c   : > { %v4214_v3 = vpop.trf.xlu1 }
 0x44d   : > { %4428 = vst [vmem:[%s6083_s13 + $0x678] sm:$0xff] %v4214_v3 }
 0x44e   : > { %v4183_v23 = vpop.trf.xlu0 }
 0x44f   : > { %4308 = vst [vmem:[%s6083_s13 + $0x2b8] sm:$0xff] %v4183_v23 }
 0x450   : > { %v4215_v44 = vpop.trf.xlu1 }
 0x451   : > { %4436 = vst [vmem:[%s6083_s13 + $0x6b8] sm:$0xff] %v4215_v44 }
 0x452   : > { %v4184_v39 = vpop.trf.xlu0 }
 0x453   : > { %4316 = vst [vmem:[%s6083_s13 + $0x2f8] sm:$0xff] %v4184_v39 }
 0x454   : > { %v4216_v57 = vpop.trf.xlu1 }
 0x455   : > { %4444 = vst [vmem:[%s6083_s13 + $0x6f8] sm:$0xff] %v4216_v57 }
 0x456   : > { %v4185_v33 = vpop.trf.xlu0 }
 0x457   : > { %4324 = vst [vmem:[%s6083_s13 + $0x338] sm:$0xff] %v4185_v33 }
 0x458   : > { %v4217_v21 = vpop.trf.xlu1 }
 0x459   : > { %4452 = vst [vmem:[%s6083_s13 + $0x738] sm:$0xff] %v4217_v21 }
 0x45a   : > { %v4186_v54 = vpop.trf.xlu0 }
 0x45b   : > { %4332 = vst [vmem:[%s6083_s13 + $0x378] sm:$0xff] %v4186_v54 }
 0x45c   : > { %v4218_v26 = vpop.trf.xlu1 }
 0x45d   : > { %4460 = vst [vmem:[%s6083_s13 + $0x778] sm:$0xff] %v4218_v26 }
 0x45e   : > { %v4187_v40 = vpop.trf.xlu0 }
 0x45f   : > { %4340 = vst [vmem:[%s6083_s13 + $0x3b8] sm:$0xff] %v4187_v40 }
 0x460   : > { %v4219_v30 = vpop.trf.xlu1 }
 0x461   : > { %4468 = vst [vmem:[%s6083_s13 + $0x7b8] sm:$0xff] %v4219_v30 }
 0x462   : > { %v4188_v43 = vpop.trf.xlu0 }
 0x463   : > { %4348 = vst [vmem:[%s6083_s13 + $0x3f8] sm:$0xff] %v4188_v43 }
 0x464   : > { %v4220_v58 = vpop.trf.xlu1 }
 0x465   : > { %4476 = vst [vmem:[%s6083_s13 + $0x7f8] sm:$0xff] %v4220_v58 }
 0x466 PF: > { %s17_s23 = sadd.s32 1, %s5258_s23   ;;  %s6905_s21 = smov %s5254_s22 }
 0x467   : > { %p14_p5 = scmp.ge.s32.totalorder %s17_s23, 4   ;;  %s6906_s22 = smov %s6908_s24 }
 0x469   :  { %16 = sbr.rel (!%p14_p5) target bundleno = 2 (0x2), region = 82 }

// kernel: sam2_backbone_forward.5
= control target key start
LH: loop header
LB: loop body
LE: loop exit
PB: predicated region body
PF: predicated region fallthrough
CT: control target
= control target key end

     0   :  { %13 = vsyncpa [#allocation5], 0  ;;  %s4019_s0 = inlined_call_operand.vmem [shape: bf16[2,8,2,8,512], index: 0, kind: input, shape index: {}, may-alias: {0,1}]   ;;  %s4020_s1 = inlined_call_operand.vmem [shape: bf16[2,8,2,8,512], index: 1, kind: input, shape index: {}, may-alias: {0,1}]   ;;  %s4021_s2 = inlined_call_operand.vmem [shape: bf16[2,512,256], index: 2, kind: input, shape index: {}]   ;;  %s4022_s3 = inlined_call_operand.vmem [shape: f32[1,256], index: 3, kind: input, shape index: {}]   ;;  %s4023_s4 = inlined_call_operand.vmem [shape: bf16[256,256], index: 4, kind: input, shape index: {}]   ;;  %s4024_s5 = inlined_call_operand.vmem [shape: f32[1,256], index: 5, kind: input, shape index: {}]   ;;  %s4025_s6 = inlined_call_operand.hbm [shape: bf16[2,64,256], index: 6, kind: output, shape index: {0}]   ;;  %s4026_s7 = inlined_call_operand.vmem [shape: f32[2,256,64], index: 7, kind: output, shape index: {1}]  }
   0x1   :  { %15 = vsyncpa [#allocation5 + $0x1], 0  ;;  %s3153_s24 = smov 0   ;;  %s3155_s25 = smov 0  }
   0x2   :  { %s3157_s26 = smov 0   ;;  %s3159_s27 = smov 0  }
   0x3   :  { %s3161_s28 = smov 0   ;;  %s3163_s29 = smov 0  }
   0x4 LB: > { %s2341_s30 = sadd.s32 4294967295, %s3108_s29   ;;  %s2342_s8 = sadd.s32 4294967294, %s3108_s29   ;;  %s3108_s29 = sphi %s3163_s29, %s21_s29   ;;  %s3104_s28 = sphi %s3161_s28, %s4034_s28   ;;  %s3100_s27 = sphi %s3159_s27, %s4033_s27   ;;  %s3096_s26 = sphi %s3157_s26, %s4032_s26   ;;  %s3092_s25 = sphi %s3155_s25, %s4031_s25   ;;  %s3088_s24 = sphi %s3153_s24, %s4030_s24  }
   0x5   : > { %s33_s9 = sadd.s32 1, %s3104_s28  ;;  %s42_s10 = sadd.s32 1, %s3096_s26 }
   0x6   : > { %p35_p0 = scmp.ge.s32.totalorder %s33_s9, 2  ;;  %p49_p1 = scmp.ne.s32.totalorder %s3096_s26, %s3092_s25 }
   0x7   : > { %p50_p2 = scmp.eq.s32.totalorder %s3108_s29, 0  ;;  %p193_p3 = scmp.eq.s32.totalorder %s2341_s30, 1 }
   0x8   : > { %s4036_s9 = smov (%p35_p0, %s33_s9), 0  ;;  %p198_p6 = scmp.ne.s32.totalorder %s3092_s25, %s3088_s24 }
   0x9   : > { %p3192_p4 = por %p50_p2, %p49_p1  ;;  %p3196_p5 = por %p193_p3, %p49_p1 }
   0xa   : > { %s37_s13 = ssub.s32 %s3104_s28, %s4036_s9  ;;  %p199_p8 = scmp.eq.s32.totalorder %s2342_s8, 1 }
   0xb   : > { %p40_p7 = scmp.eq.s32.totalorder %s37_s13, 0  ;;  %p2344_p10 = scmp.ge.s32.totalorder %s3108_s29, 2 }
   0xc   : > { %p3207_p9 = por %p199_p8, %p198_p6 }
   0xd   : > { %s3205_s14 = scalar_select %p40_p7, %s3096_s26, %s42_s10  }
   0xe   : > { %255 = sbr.rel (%p2344_p10) target bundleno = 43 (0x2b), region = 32 }
  0x13   : > { %258 = sbr.rel (!%p3192_p4) target bundleno = 31 (0x1f), region = 36  ;;  %s260_s16 = sand.u32 (%p3192_p4), 1, %s3096_s26  }
  0x14   : > { %s2642_s17 = sshll.u32 (%p3192_p4), %s3104_s28, 8  ;;  %s2345_s18 = sshll.u32 (%p3192_p4), %s260_s16, 7 }
  0x15   : > { %s3221_s21 = scalar_lea.vmem (%p3192_p4), %s4019_s0, %s2642_s17  ;;  %s262_s22 = scalar_lea.vmem (%p3192_p4), [#allocation2], %s2345_s18 }
  0x16   : > { %v281_v0 = vld [vmem:[%s3221_s21] sm:$0xff] (%p3192_p4)  ;;  %v283_v1 = vld [vmem:[%s3221_s21 + $0x8] sm:$0xff] (%p3192_p4) }
  0x17   : > { %v285_v2 = vld [vmem:[%s3221_s21 + $0x20] sm:$0xff] (%p3192_p4)  ;;  %282 = vst [vmem:[%s262_s22] sm:$0xff] (%p3192_p4), %v281_v0  ;;  %284 = vst [vmem:[%s262_s22 + $0x8] sm:$0xff] (%p3192_p4), %v283_v1  ;;  %v287_v3 = vld [vmem:[%s3221_s21 + $0x28] sm:$0xff] (%p3192_p4) }
  0x18   : > { %286 = vst [vmem:[%s262_s22 + $0x10] sm:$0xff] %v285_v2  ;;  %v289_v4 = vld [vmem:[%s3221_s21 + $0x40] sm:$0xff]  ;;  %v291_v5 = vld [vmem:[%s3221_s21 + $0x48] sm:$0xff]  ;;  %288 = vst [vmem:[%s262_s22 + $0x18] sm:$0xff] %v287_v3 }
  0x19   : > { %290 = vst [vmem:[%s262_s22 + $0x20] sm:$0xff] %v289_v4  ;;  %292 = vst [vmem:[%s262_s22 + $0x28] sm:$0xff] %v291_v5  ;;  %v293_v6 = vld [vmem:[%s3221_s21 + $0x60] sm:$0xff]  ;;  %v295_v7 = vld [vmem:[%s3221_s21 + $0x68] sm:$0xff] }
  0x1a   : > { %v297_v8 = vld [vmem:[%s3221_s21 + $0x80] sm:$0xff]  ;;  %294 = vst [vmem:[%s262_s22 + $0x30] sm:$0xff] %v293_v6  ;;  %296 = vst [vmem:[%s262_s22 + $0x38] sm:$0xff] %v295_v7  ;;  %v299_v9 = vld [vmem:[%s3221_s21 + $0x88] sm:$0xff] }
  0x1b   : > { %298 = vst [vmem:[%s262_s22 + $0x40] sm:$0xff] %v297_v8  ;;  %v301_v10 = vld [vmem:[%s3221_s21 + $0xa0] sm:$0xff]  ;;  %v303_v11 = vld [vmem:[%s3221_s21 + $0xa8] sm:$0xff]  ;;  %300 = vst [vmem:[%s262_s22 + $0x48] sm:$0xff] %v299_v9 }
  0x1c   : > { %302 = vst [vmem:[%s262_s22 + $0x50] sm:$0xff] %v301_v10  ;;  %304 = vst [vmem:[%s262_s22 + $0x58] sm:$0xff] %v303_v11  ;;  %v305_v12 = vld [vmem:[%s3221_s21 + $0xc0] sm:$0xff]  ;;  %v307_v13 = vld [vmem:[%s3221_s21 + $0xc8] sm:$0xff] }
  0x1d   : > { %v309_v14 = vld [vmem:[%s3221_s21 + $0xe0] sm:$0xff]  ;;  %306 = vst [vmem:[%s262_s22 + $0x60] sm:$0xff] %v305_v12  ;;  %308 = vst [vmem:[%s262_s22 + $0x68] sm:$0xff] %v307_v13  ;;  %v311_v15 = vld [vmem:[%s3221_s21 + $0xe8] sm:$0xff] }
  0x1e   : > { %310 = vst [vmem:[%s262_s22 + $0x70] sm:$0xff] %v309_v14  ;;  %312 = vst [vmem:[%s262_s22 + $0x78] sm:$0xff] %v311_v15 }
  0x1f PF: > { %318 = sbr.rel (!%p3192_p4) target bundleno = 43 (0x2b), region = 59  ;;  %s320_s23 = sand.u32 (%p3192_p4), 1, %s3096_s26  }
  0x20   : > { %s2643_s30 = sshll.u32 (%p3192_p4), %s3104_s28, 8  ;;  %s2348_s8 = sshll.u32 (%p3192_p4), %s320_s23, 7 }
  0x21   : > { %s3246_s16 = scalar_lea.vmem (%p3192_p4), %s4020_s1, %s2643_s30  ;;  %s322_s11 = scalar_lea.vmem (%p3192_p4), [#allocation3], %s2348_s8 }
  0x22   : > { %v2351_v16 = vld [vmem:[%s3246_s16 + $0x10] sm:$0xff] (%p3192_p4)  ;;  %v2352_v17 = vld [vmem:[%s3246_s16 + $0x18] sm:$0xff] (%p3192_p4) }
  0x23   : > { %v2353_v18 = vld [vmem:[%s3246_s16 + $0x30] sm:$0xff] (%p3192_p4)  ;;  %343 = vst [vmem:[%s322_s11] sm:$0xff] (%p3192_p4), %v2351_v16  ;;  %345 = vst [vmem:[%s322_s11 + $0x8] sm:$0xff] (%p3192_p4), %v2352_v17  ;;  %v2354_v19 = vld [vmem:[%s3246_s16 + $0x38] sm:$0xff] (%p3192_p4) }
  0x24   : > { %347 = vst [vmem:[%s322_s11 + $0x10] sm:$0xff] %v2353_v18  ;;  %v2355_v20 = vld [vmem:[%s3246_s16 + $0x50] sm:$0xff]  ;;  %v2356_v21 = vld [vmem:[%s3246_s16 + $0x58] sm:$0xff]  ;;  %349 = vst [vmem:[%s322_s11 + $0x18] sm:$0xff] %v2354_v19 }
  0x25   : > { %351 = vst [vmem:[%s322_s11 + $0x20] sm:$0xff] %v2355_v20  ;;  %353 = vst [vmem:[%s322_s11 + $0x28] sm:$0xff] %v2356_v21  ;;  %v2357_v22 = vld [vmem:[%s3246_s16 + $0x70] sm:$0xff]  ;;  %v2358_v23 = vld [vmem:[%s3246_s16 + $0x78] sm:$0xff] }
  0x26   : > { %v2359_v24 = vld [vmem:[%s3246_s16 + $0x90] sm:$0xff]  ;;  %355 = vst [vmem:[%s322_s11 + $0x30] sm:$0xff] %v2357_v22  ;;  %357 = vst [vmem:[%s322_s11 + $0x38] sm:$0xff] %v2358_v23  ;;  %v2360_v25 = vld [vmem:[%s3246_s16 + $0x98] sm:$0xff] }
  0x27   : > { %359 = vst [vmem:[%s322_s11 + $0x40] sm:$0xff] %v2359_v24  ;;  %v2361_v26 = vld [vmem:[%s3246_s16 + $0xb0] sm:$0xff]  ;;  %v2362_v27 = vld [vmem:[%s3246_s16 + $0xb8] sm:$0xff]  ;;  %361 = vst [vmem:[%s322_s11 + $0x48] sm:$0xff] %v2360_v25 }
  0x28   : > { %363 = vst [vmem:[%s322_s11 + $0x50] sm:$0xff] %v2361_v26  ;;  %365 = vst [vmem:[%s322_s11 + $0x58] sm:$0xff] %v2362_v27  ;;  %v2363_v28 = vld [vmem:[%s3246_s16 + $0xd0] sm:$0xff]  ;;  %v2364_v29 = vld [vmem:[%s3246_s16 + $0xd8] sm:$0xff] }
  0x29   : > { %v2365_v30 = vld [vmem:[%s3246_s16 + $0xf0] sm:$0xff]  ;;  %367 = vst [vmem:[%s322_s11 + $0x60] sm:$0xff] %v2363_v28  ;;  %369 = vst [vmem:[%s322_s11 + $0x68] sm:$0xff] %v2364_v29  ;;  %v2366_v31 = vld [vmem:[%s3246_s16 + $0xf8] sm:$0xff] }
  0x2a   : > { %371 = vst [vmem:[%s322_s11 + $0x70] sm:$0xff] %v2365_v30  ;;  %373 = vst [vmem:[%s322_s11 + $0x78] sm:$0xff] %v2366_v31 }
  0x2b PF: > { %p2367_p11 = scmp.ge.s32.totalorder %s3108_s29, 1  ;;  %p378_p12 = scmp.lt.s32.totalorder %s3108_s29, 3 }
  0x2d   : > { %p379_p13 = pnand %p2367_p11, %p378_p12 }
  0x2e   : > { %s3381_s16 = sand.u32 (!%p379_p13), 1, %s3092_s25   ;;  %s3110_s13 = smov (!%p379_p13), [#allocation4]  }
  0x2f   : > { %382 = sbr.rel (%p379_p13) target bundleno = 775 (0x307), region = 82  ;;  %s2368_s30 = sshll.u32 (!%p379_p13), %s3381_s16, 7 }
  0x30   : > { %s3416_s10 = scalar_lea.vmem (!%p379_p13), [#allocation3], %s2368_s30  ;;  %s3598_s21 = scalar_lea.vmem (!%p379_p13), [#allocation2], %s2368_s30 }
  0x31   : > { %s2370_s11 = sshll.u32 (!%p379_p13), %s3381_s16, 6  ;;  %s2174_s23 = scalar_lea.sflag (!%p379_p13), [#allocation5], %s3381_s16 }
  0x32   : > { %s3848_s30 = scalar_lea.vmem (!%p379_p13), [#allocation4], %s2370_s11  ;;  %s3036_s11 = sshll.u32 (!%p379_p13), %s3110_s13, 4  ;;  %s3037_s11 = int_to_ptr.vmem [resolvable:$false] %s3036_s11 }
  0x33   : > { %s2198_s19 = sshll.u32 (!%p379_p13), %s3848_s30, 4  ;;  %s3900_s19 = int_to_ptr.vmem [resolvable:$true] %s2198_s19 }
  0x34   : > { %v2744_v32 = vld [vmem:[%s4021_s2 + $0x274] ss:$8 sps:$4 sm:$0xff]   ;;  %v2748_v34 = vld [vmem:[%s4021_s2 + $0x270] ss:$8 sps:$4 sm:$0xff]   ;;  %v2750_v36 = vld [vmem:[%s4021_s2 + $0x264] ss:$8 sps:$4 sm:$0xff]   ;;  %p3039_p3 = scmp.lt.s32.totalorder %s3900_s19, %s3037_s11 }
  0x35   : > { %v2746_v33 = vld [vmem:[%s4021_s2 + $0x374] ss:$8 sps:$4 sm:$0xff]   ;;  %1007 = vmatprep.subr.bf16.mxu0 %v2744_v32  ;;  %v2749_v35 = vld [vmem:[%s4021_s2 + $0x370] ss:$8 sps:$4 sm:$0xff]   ;;  %v2752_v37 = vld [vmem:[%s4021_s2 + $0x364] ss:$8 sps:$4 sm:$0xff]  }
  0x36   : > { %1080 = vmatprep.subr.bf16.mxu1 %v2746_v33  ;;  %1008 = vmatpush1.bf16.msra.mxu0 %v2748_v34  ;;  %v2754_v38 = vld [vmem:[%s4021_s2 + $0x260] ss:$8 sps:$4 sm:$0xff]   ;;  %v2756_v40 = vld [vmem:[%s4021_s2 + $0x254] ss:$8 sps:$4 sm:$0xff]   ;;  %v2760_v42 = vld [vmem:[%s4021_s2 + $0x250] ss:$8 sps:$4 sm:$0xff]  }
  0x37   : > { %1081 = vmatpush1.bf16.msra.mxu1 %v2749_v35  ;;  %1009 = vmatprep.subr.bf16.mxu0 %v2750_v36  ;;  %v2755_v39 = vld [vmem:[%s4021_s2 + $0x360] ss:$8 sps:$4 sm:$0xff]   ;;  %v2758_v41 = vld [vmem:[%s4021_s2 + $0x354] ss:$8 sps:$4 sm:$0xff]   ;;  %v2761_v43 = vld [vmem:[%s4021_s2 + $0x350] ss:$8 sps:$4 sm:$0xff]  }
  0x38   : > { %1082 = vmatprep.subr.bf16.mxu1 %v2752_v37  ;;  %v2762_v44 = vld [vmem:[%s4021_s2 + $0x244] ss:$8 sps:$4 sm:$0xff]   ;;  %v2766_v46 = vld [vmem:[%s4021_s2 + $0x240] ss:$8 sps:$4 sm:$0xff]   ;;  %v2768_v48 = vld [vmem:[%s4021_s2 + $0x234] ss:$8 sps:$4 sm:$0xff]  }
  0x39   : > { %v2764_v45 = vld [vmem:[%s4021_s2 + $0x344] ss:$8 sps:$4 sm:$0xff]   ;;  %v2767_v47 = vld [vmem:[%s4021_s2 + $0x340] ss:$8 sps:$4 sm:$0xff]   ;;  %v2770_v49 = vld [vmem:[%s4021_s2 + $0x334] ss:$8 sps:$4 sm:$0xff]  }
  0x3a   : > { %1010 = vmatpush1.bf16.msra.mxu0 %v2754_v38  ;;  %v2772_v50 = vld [vmem:[%s4021_s2 + $0x230] ss:$8 sps:$4 sm:$0xff]   ;;  %v2774_v52 = vld [vmem:[%s4021_s2 + $0x224] ss:$8 sps:$4 sm:$0xff]   ;;  %v2778_v54 = vld [vmem:[%s4021_s2 + $0x220] ss:$8 sps:$4 sm:$0xff]  }
  0x3b   : > { %1083 = vmatpush1.bf16.msra.mxu1 %v2755_v39  ;;  %1011 = vmatprep.subr.bf16.mxu0 %v2756_v40  ;;  %v2773_v51 = vld [vmem:[%s4021_s2 + $0x330] ss:$8 sps:$4 sm:$0xff]   ;;  %v2776_v53 = vld [vmem:[%s4021_s2 + $0x324] ss:$8 sps:$4 sm:$0xff]   ;;  %v2779_v55 = vld [vmem:[%s4021_s2 + $0x320] ss:$8 sps:$4 sm:$0xff]  }
  0x3c   : > { %1084 = vmatprep.subr.bf16.mxu1 %v2758_v41  ;;  %v2780_v56 = vld [vmem:[%s4021_s2 + $0x214] ss:$8 sps:$4 sm:$0xff]   ;;  %v2784_v58 = vld [vmem:[%s4021_s2 + $0x210] ss:$8 sps:$4 sm:$0xff]   ;;  %v2786_v60 = vld [vmem:[%s4021_s2 + $0x204] ss:$8 sps:$4 sm:$0xff]  }
  0x3d   : > { %v2782_v57 = vld [vmem:[%s4021_s2 + $0x314] ss:$8 sps:$4 sm:$0xff]   ;;  %v2785_v59 = vld [vmem:[%s4021_s2 + $0x310] ss:$8 sps:$4 sm:$0xff]   ;;  %v2788_v61 = vld [vmem:[%s4021_s2 + $0x304] ss:$8 sps:$4 sm:$0xff]  }
  0x3e   : > { %1012 = vmatpush1.bf16.msra.mxu0 %v2760_v42  ;;  %v2790_v62 = vld [vmem:[%s4021_s2 + $0x200] ss:$8 sps:$4 sm:$0xff]   ;;  %v2792_v0 = vld [vmem:[%s4021_s2 + $0x2f4] ss:$8 sps:$4 sm:$0xff]   ;;  %v2796_v2 = vld [vmem:[%s4021_s2 + $0x2f0] ss:$8 sps:$4 sm:$0xff]  }
  0x3f   : > { %1085 = vmatpush1.bf16.msra.mxu1 %v2761_v43  ;;  %1013 = vmatprep.subr.bf16.mxu0 %v2762_v44  ;;  %v2791_v63 = vld [vmem:[%s4021_s2 + $0x300] ss:$8 sps:$4 sm:$0xff]   ;;  %v2794_v1 = vld [vmem:[%s4021_s2 + $0x3f4] ss:$8 sps:$4 sm:$0xff]   ;;  %v2797_v3 = vld [vmem:[%s4021_s2 + $0x3f0] ss:$8 sps:$4 sm:$0xff]  }
  0x40   : > { %1086 = vmatprep.subr.bf16.mxu1 %v2764_v45  ;;  %v2798_v4 = vld [vmem:[%s4021_s2 + $0x2e4] ss:$8 sps:$4 sm:$0xff]   ;;  %v2802_v6 = vld [vmem:[%s4021_s2 + $0x2e0] ss:$8 sps:$4 sm:$0xff]   ;;  %v2804_v8 = vld [vmem:[%s4021_s2 + $0x2d4] ss:$8 sps:$4 sm:$0xff]  }
  0x41   : > { %v2800_v5 = vld [vmem:[%s4021_s2 + $0x3e4] ss:$8 sps:$4 sm:$0xff]   ;;  %v2803_v7 = vld [vmem:[%s4021_s2 + $0x3e0] ss:$8 sps:$4 sm:$0xff]   ;;  %v2806_v9 = vld [vmem:[%s4021_s2 + $0x3d4] ss:$8 sps:$4 sm:$0xff]  }
  0x42   : > { %1014 = vmatpush1.bf16.msra.mxu0 %v2766_v46  ;;  %v2808_v10 = vld [vmem:[%s4021_s2 + $0x2d0] ss:$8 sps:$4 sm:$0xff]   ;;  %v2810_v12 = vld [vmem:[%s4021_s2 + $0x2c4] ss:$8 sps:$4 sm:$0xff]   ;;  %v2814_v14 = vld [vmem:[%s4021_s2 + $0x2c0] ss:$8 sps:$4 sm:$0xff]  }
  0x43   : > { %1087 = vmatpush1.bf16.msra.mxu1 %v2767_v47  ;;  %1015 = vmatprep.subr.bf16.mxu0 %v2768_v48  ;;  %v2809_v11 = vld [vmem:[%s4021_s2 + $0x3d0] ss:$8 sps:$4 sm:$0xff]   ;;  %v2812_v13 = vld [vmem:[%s4021_s2 + $0x3c4] ss:$8 sps:$4 sm:$0xff]   ;;  %v2815_v15 = vld [vmem:[%s4021_s2 + $0x3c0] ss:$8 sps:$4 sm:$0xff]  }
  0x44   : > { %1088 = vmatprep.subr.bf16.mxu1 %v2770_v49  ;;  %v2816_v16 = vld [vmem:[%s4021_s2 + $0x2b4] ss:$8 sps:$4 sm:$0xff]   ;;  %v2820_v20 = vld [vmem:[%s4021_s2 + $0x2b0] ss:$8 sps:$4 sm:$0xff]   ;;  %v2822_v22 = vld [vmem:[%s4021_s2 + $0x2a4] ss:$8 sps:$4 sm:$0xff]  }
  0x45   : > { %v2842_v17 = vld [vmem:[%s3416_s10 + $0x4] ss:$16 sps:$4 sm:$0xff]   ;;  %v2845_v19 = vld [vmem:[%s3416_s10 + $0xc] ss:$16 sps:$4 sm:$0xff]   ;;  %v2821_v21 = vld [vmem:[%s4021_s2 + $0x3b0] ss:$8 sps:$4 sm:$0xff]  }
  0x46   : > { %1016 = vmatpush1.bf16.msra.mxu0 %v2772_v50  ;;  %v2818_v18 = vld [vmem:[%s4021_s2 + $0x3b4] ss:$8 sps:$4 sm:$0xff]   ;;  %1039 = vmatprep.mubr.bf16.mxu0 %v2842_v17  ;;  %v2824_v23 = vld [vmem:[%s4021_s2 + $0x3a4] ss:$8 sps:$4 sm:$0xff]   ;;  %v2826_v24 = vld [vmem:[%s4021_s2 + $0x2a0] ss:$8 sps:$4 sm:$0xff]  }
  0x47   : > { %1089 = vmatpush1.bf16.msra.mxu1 %v2773_v51  ;;  %1017 = vmatprep.subr.bf16.mxu0 %v2774_v52  ;;  %v2827_v25 = vld [vmem:[%s4021_s2 + $0x3a0] ss:$8 sps:$4 sm:$0xff]   ;;  %v2828_v26 = vld [vmem:[%s4021_s2 + $0x294] ss:$8 sps:$4 sm:$0xff]   ;;  %v2832_v28 = vld [vmem:[%s4021_s2 + $0x290] ss:$8 sps:$4 sm:$0xff]  }
  0x48   : > { %1090 = vmatprep.subr.bf16.mxu1 %v2776_v53  ;;  %1112 = vmatprep.mubr.bf16.mxu1 %v2845_v19  ;;  %v2830_v27 = vld [vmem:[%s4021_s2 + $0x394] ss:$8 sps:$4 sm:$0xff]   ;;  %v2833_v29 = vld [vmem:[%s4021_s2 + $0x390] ss:$8 sps:$4 sm:$0xff]   ;;  %v2834_v30 = vld [vmem:[%s4021_s2 + $0x284] ss:$8 sps:$4 sm:$0xff]  }
  0x49   : > { %v2836_v31 = vld [vmem:[%s4021_s2 + $0x384] ss:$8 sps:$4 sm:$0xff]   ;;  %v2838_v32 = vld [vmem:[%s4021_s2 + $0x280] ss:$8 sps:$4 sm:$0xff]   ;;  %v2848_v34 = vld [vmem:[%s4021_s2 + $0x74] ss:$8 sps:$4 sm:$0xff]  }
  0x4a   : > { %1018 = vmatpush1.bf16.msra.mxu0 %v2778_v54  ;;  %v2839_v33 = vld [vmem:[%s4021_s2 + $0x380] ss:$8 sps:$4 sm:$0xff]   ;;  %v2851_v35 = vld [vmem:[%s4021_s2 + $0x174] ss:$8 sps:$4 sm:$0xff]   ;;  %v2846_v38 = vld [vmem:[%s4021_s2 + $0x70] ss:$8 sps:$4 sm:$0xff]  }
  0x4b   : > { %1091 = vmatpush1.bf16.msra.mxu1 %v2779_v55  ;;  %1019 = vmatprep.subr.bf16.mxu0 %v2780_v56  ;;  %v2840_v36 = vld [vmem:[%s3416_s10] ss:$16 sps:$4 sm:$0xff]   ;;  %v2843_v37 = vld [vmem:[%s3416_s10 + $0x8] ss:$16 sps:$4 sm:$0xff]   ;;  %v2854_v40 = vld [vmem:[%s4021_s2 + $0x64] ss:$8 sps:$4 sm:$0xff]  }
  0x4c   : > { %1092 = vmatprep.subr.bf16.mxu1 %v2782_v57  ;;  %v2849_v39 = vld [vmem:[%s4021_s2 + $0x170] ss:$8 sps:$4 sm:$0xff]   ;;  %v2857_v41 = vld [vmem:[%s4021_s2 + $0x164] ss:$8 sps:$4 sm:$0xff]   ;;  %v2852_v42 = vld [vmem:[%s4021_s2 + $0x60] ss:$8 sps:$4 sm:$0xff]  }
  0x4d   : > { %v2855_v43 = vld [vmem:[%s4021_s2 + $0x160] ss:$8 sps:$4 sm:$0xff]   ;;  %v2860_v44 = vld [vmem:[%s4021_s2 + $0x54] ss:$8 sps:$4 sm:$0xff]   ;;  %v2858_v46 = vld [vmem:[%s4021_s2 + $0x50] ss:$8 sps:$4 sm:$0xff]  }
  0x4e   : > { %1020 = vmatpush1.bf16.msra.mxu0 %v2784_v58  ;;  %v2863_v45 = vld [vmem:[%s4021_s2 + $0x154] ss:$8 sps:$4 sm:$0xff]   ;;  %v2861_v47 = vld [vmem:[%s4021_s2 + $0x150] ss:$8 sps:$4 sm:$0xff]   ;;  %v2866_v52 = vld [vmem:[%s4021_s2 + $0x44] ss:$8 sps:$4 sm:$0xff]  }
  0x4f   : > { %1093 = vmatpush1.bf16.msra.mxu1 %v2785_v59  ;;  %1021 = vmatprep.subr.bf16.mxu0 %v2786_v60  ;;  %v2900_v48 = vld [vmem:[%s3416_s10 + $0x24] ss:$16 sps:$4 sm:$0xff]   ;;  %v2902_v49 = vld [vmem:[%s3416_s10 + $0x2c] ss:$16 sps:$4 sm:$0xff]   ;;  %v2904_v50 = vld [vmem:[%s3416_s10 + $0x20] ss:$16 sps:$4 sm:$0xff]  }
  0x50   : > { %1094 = vmatprep.subr.bf16.mxu1 %v2788_v61  ;;  %v2905_v51 = vld [vmem:[%s3416_s10 + $0x28] ss:$16 sps:$4 sm:$0xff]   ;;  %v2869_v53 = vld [vmem:[%s4021_s2 + $0x144] ss:$8 sps:$4 sm:$0xff]   ;;  %v2872_v56 = vld [vmem:[%s4021_s2 + $0x34] ss:$8 sps:$4 sm:$0xff]  }
  0x51   : > { %v2864_v54 = vld [vmem:[%s4021_s2 + $0x40] ss:$8 sps:$4 sm:$0xff]   ;;  %v2875_v57 = vld [vmem:[%s4021_s2 + $0x134] ss:$8 sps:$4 sm:$0xff]   ;;  %v2870_v58 = vld [vmem:[%s4021_s2 + $0x30] ss:$8 sps:$4 sm:$0xff]  }
  0x52   : > { %1022 = vmatpush1.bf16.msra.mxu0 %v2790_v62  ;;  %v2867_v55 = vld [vmem:[%s4021_s2 + $0x140] ss:$8 sps:$4 sm:$0xff]   ;;  %v2873_v59 = vld [vmem:[%s4021_s2 + $0x130] ss:$8 sps:$4 sm:$0xff]   ;;  %v2918_v60 = vld [vmem:[%s3416_s10 + $0x44] ss:$16 sps:$4 sm:$0xff]  }
  0x53   : > { %1095 = vmatpush1.bf16.msra.mxu1 %v2791_v63  ;;  %1023 = vmatprep.subr.bf16.mxu0 %v2792_v0  ;;  %v2920_v61 = vld [vmem:[%s3416_s10 + $0x4c] ss:$16 sps:$4 sm:$0xff]   ;;  %v2922_v62 = vld [vmem:[%s3416_s10 + $0x40] ss:$16 sps:$4 sm:$0xff]   ;;  %v2923_v63 = vld [vmem:[%s3416_s10 + $0x48] ss:$16 sps:$4 sm:$0xff]  }
  0x54   : > { %1096 = vmatprep.subr.bf16.mxu1 %v2794_v1  ;;  %v2878_v0 = vld [vmem:[%s4021_s2 + $0x24] ss:$8 sps:$4 sm:$0xff]   ;;  %v2899_v17 = vld [vmem:[%s4021_s2 + $0x1f4] ss:$8 sps:$4 sm:$0xff]   ;;  %v2897_v19 = vld [vmem:[%s4021_s2 + $0x1f0] ss:$8 sps:$4 sm:$0xff]  }
  0x55   : > { %v2881_v1 = vld [vmem:[%s4021_s2 + $0x124] ss:$8 sps:$4 sm:$0xff]   ;;  %s3032_s8 = scalar_lea.vmem %s3900_s19, 1024 }
  0x56   : > { %1024 = vmatpush2.bf16.msra.mxu0 %v2796_v2  ;;  %v2876_v2 = vld [vmem:[%s4021_s2 + $0x20] ss:$8 sps:$4 sm:$0xff]   ;;  %p3033_p0 = scmp.ne.s32.totalorder %s3900_s19, %s3032_s8 }
  0x57   : > { %1097 = vmatpush2.bf16.msra.mxu1 %v2797_v3  ;;  %1025 = vmatprep.subr.bf16.mxu0 %v2798_v4  ;;  %v2879_v3 = vld [vmem:[%s4021_s2 + $0x120] ss:$8 sps:$4 sm:$0xff]   ;;  %v2884_v4 = vld [vmem:[%s4021_s2 + $0x14] ss:$8 sps:$4 sm:$0xff]  }
  0x58   : > { %1098 = vmatprep.subr.bf16.mxu1 %v2800_v5  ;;  %v2887_v5 = vld [vmem:[%s4021_s2 + $0x114] ss:$8 sps:$4 sm:$0xff]   ;;  %p3034_p1 = pnand %p3033_p0, %p3196_p5 }
  0x5a   : > { %1026 = vmatpush2.bf16.msra.mxu0 %v2802_v6  ;;  %v2882_v6 = vld [vmem:[%s4021_s2 + $0x10] ss:$8 sps:$4 sm:$0xff]   ;;  %p3035_p2 = pneg %p3034_p1 }
  0x5b   : > { %1099 = vmatpush2.bf16.msra.mxu1 %v2803_v7  ;;  %1027 = vmatprep.subr.bf16.mxu0 %v2804_v8  ;;  %v2885_v7 = vld [vmem:[%s4021_s2 + $0x110] ss:$8 sps:$4 sm:$0xff]   ;;  %v2936_v8 = vld [vmem:[%s3416_s10 + $0x64] ss:$16 sps:$4 sm:$0xff]  }
  0x5c   : > { %1100 = vmatprep.subr.bf16.mxu1 %v2806_v9  ;;  %v2938_v9 = vld [vmem:[%s3416_s10 + $0x6c] ss:$16 sps:$4 sm:$0xff]  }
  0x5e   : > { %1028 = vmatpush2.bf16.msra.mxu0 %v2808_v10  ;;  %v2940_v10 = vld [vmem:[%s3416_s10 + $0x60] ss:$16 sps:$4 sm:$0xff]  }
  0x5f   : > { %1101 = vmatpush2.bf16.msra.mxu1 %v2809_v11  ;;  %1029 = vmatprep.subr.bf16.mxu0 %v2810_v12  ;;  %v2941_v11 = vld [vmem:[%s3416_s10 + $0x68] ss:$16 sps:$4 sm:$0xff]   ;;  %v2890_v12 = vld [vmem:[%s4021_s2 + $0x4] ss:$8 sps:$4 sm:$0xff]  }
  0x60   : > { %1102 = vmatprep.subr.bf16.mxu1 %v2812_v13  ;;  %v2893_v13 = vld [vmem:[%s4021_s2 + $0x104] ss:$8 sps:$4 sm:$0xff]  }
  0x62   : > { %1030 = vmatpush2.bf16.msra.mxu0 %v2814_v14  ;;  %v2888_v14 = vld [vmem:[%s4021_s2] ss:$8 sps:$4 sm:$0xff]  }
  0x63   : > { %1103 = vmatpush2.bf16.msra.mxu1 %v2815_v15  ;;  %1031 = vmatprep.subr.bf16.mxu0 %v2816_v16  ;;  %v2891_v15 = vld [vmem:[%s4021_s2 + $0x100] ss:$8 sps:$4 sm:$0xff]   ;;  %v2896_v16 = vld [vmem:[%s4021_s2 + $0xf4] ss:$8 sps:$4 sm:$0xff]  }
  0x64   : > { %1104 = vmatprep.subr.bf16.mxu1 %v2818_v18  ;;  %v2894_v18 = vld [vmem:[%s4021_s2 + $0xf0] ss:$8 sps:$4 sm:$0xff]  }
  0x66   : > { %1032 = vmatpush2.bf16.msra.mxu0 %v2820_v20  ;;  %v2908_v20 = vld [vmem:[%s4021_s2 + $0xe4] ss:$8 sps:$4 sm:$0xff]  }
  0x67   : > { %1105 = vmatpush2.bf16.msra.mxu1 %v2821_v21  ;;  %1033 = vmatprep.subr.bf16.mxu0 %v2822_v22  ;;  %v2911_v21 = vld [vmem:[%s4021_s2 + $0x1e4] ss:$8 sps:$4 sm:$0xff]  }
  0x68   : > { %1106 = vmatprep.subr.bf16.mxu1 %v2824_v23  ;;  %v2962_v22 = vld [vmem:[%s3598_s21 + $0x4] ss:$16 sps:$4 sm:$0xff]   ;;  %v2965_v23 = vld [vmem:[%s3598_s21 + $0xc] ss:$16 sps:$4 sm:$0xff]  }
  0x6a   : > { %1034 = vmatpush2.bf16.msra.mxu0 %v2826_v24  ;;  %v2906_v24 = vld [vmem:[%s4021_s2 + $0xe0] ss:$8 sps:$4 sm:$0xff]  }
  0x6b   : > { %1107 = vmatpush2.bf16.msra.mxu1 %v2827_v25  ;;  %1035 = vmatprep.subr.bf16.mxu0 %v2828_v26  ;;  %v2909_v25 = vld [vmem:[%s4021_s2 + $0x1e0] ss:$8 sps:$4 sm:$0xff]   ;;  %v2914_v26 = vld [vmem:[%s4021_s2 + $0xd4] ss:$8 sps:$4 sm:$0xff]  }
  0x6c   : > { %1108 = vmatprep.subr.bf16.mxu1 %v2830_v27  ;;  %v2917_v27 = vld [vmem:[%s4021_s2 + $0x1d4] ss:$8 sps:$4 sm:$0xff]  }
  0x6e   : > { %1036 = vmatpush2.bf16.msra.mxu0 %v2832_v28  ;;  %v2912_v28 = vld [vmem:[%s4021_s2 + $0xd0] ss:$8 sps:$4 sm:$0xff]  }
  0x6f   : > { %1109 = vmatpush2.bf16.msra.mxu1 %v2833_v29  ;;  %1037 = vmatprep.subr.bf16.mxu0 %v2834_v30  ;;  %v2915_v29 = vld [vmem:[%s4021_s2 + $0x1d0] ss:$8 sps:$4 sm:$0xff]   ;;  %v2926_v30 = vld [vmem:[%s4021_s2 + $0xc4] ss:$8 sps:$4 sm:$0xff]  }
  0x70   : > { %1110 = vmatprep.subr.bf16.mxu1 %v2836_v31  ;;  %v2929_v31 = vld [vmem:[%s4021_s2 + $0x1c4] ss:$8 sps:$4 sm:$0xff]  }
  0x72   : > { %1038 = vmatpush2.bf16.msra.mxu0 %v2838_v32  ;;  %v2924_v32 = vld [vmem:[%s4021_s2 + $0xc0] ss:$8 sps:$4 sm:$0xff]  }
  0x73   : > { %1111 = vmatpush2.bf16.msra.mxu1 %v2839_v33  ;;  %1553 = vmatprep.subr.bf16.mxu0 %v2848_v34  ;;  %v2927_v33 = vld [vmem:[%s4021_s2 + $0x1c0] ss:$8 sps:$4 sm:$0xff]   ;;  %v2932_v34 = vld [vmem:[%s4021_s2 + $0xb4] ss:$8 sps:$4 sm:$0xff]  }
  0x74   : > { %1626 = vmatprep.subr.bf16.mxu1 %v2851_v35  ;;  %v2935_v35 = vld [vmem:[%s4021_s2 + $0x1b4] ss:$8 sps:$4 sm:$0xff]  }
  0x75   : > { %1040 = vmatmul.mubr.bf16.vlgmr.msra.gmra.mxu0 %v2840_v36  ;;  %v2930_v36 = vld [vmem:[%s4021_s2 + $0xb0] ss:$8 sps:$4 sm:$0xff]  }
  0x76   : > { %1113 = vmatmul.mubr.bf16.vlgmr.msra.gmra.mxu1 %v2843_v37  ;;  %1554 = vmatpush1.bf16.msra.mxu0 %v2846_v38  ;;  %v2933_v37 = vld [vmem:[%s4021_s2 + $0x1b0] ss:$8 sps:$4 sm:$0xff]   ;;  %v2944_v38 = vld [vmem:[%s4021_s2 + $0xa4] ss:$8 sps:$4 sm:$0xff]  }
  0x77   : > { %1627 = vmatpush1.bf16.msra.mxu1 %v2849_v39  ;;  %1555 = vmatprep.subr.bf16.mxu0 %v2854_v40  ;;  %v2947_v39 = vld [vmem:[%s4021_s2 + $0x1a4] ss:$8 sps:$4 sm:$0xff]   ;;  %v2942_v40 = vld [vmem:[%s4021_s2 + $0xa0] ss:$8 sps:$4 sm:$0xff]  }
  0x78   : > { %1628 = vmatprep.subr.bf16.mxu1 %v2857_v41  ;;  %1049 = vmatprep.mubr.bf16.mxu0 %v2900_v48  ;;  %v2945_v41 = vld [vmem:[%s4021_s2 + $0x1a0] ss:$8 sps:$4 sm:$0xff]  }
  0x79   : > { %1122 = vmatprep.mubr.bf16.mxu1 %v2902_v49  ;;  %v2954_v48 = vld [vmem:[%s4021_s2 + $0x80] ss:$8 sps:$4 sm:$0xff]  }
  0x7a   : > { %1556 = vmatpush1.bf16.msra.mxu0 %v2852_v42  ;;  %v2950_v42 = vld [vmem:[%s4021_s2 + $0x94] ss:$8 sps:$4 sm:$0xff]   ;;  %v2957_v49 = vld [vmem:[%s4021_s2 + $0x180] ss:$8 sps:$4 sm:$0xff]  }
  0x7b   : > { %1629 = vmatpush1.bf16.msra.mxu1 %v2855_v43  ;;  %1557 = vmatprep.subr.bf16.mxu0 %v2860_v44  ;;  %v2953_v43 = vld [vmem:[%s4021_s2 + $0x194] ss:$8 sps:$4 sm:$0xff]   ;;  %v2948_v44 = vld [vmem:[%s4021_s2 + $0x90] ss:$8 sps:$4 sm:$0xff]  }
  0x7c   : > { %1630 = vmatprep.subr.bf16.mxu1 %v2863_v45  ;;  %v2951_v45 = vld [vmem:[%s4021_s2 + $0x190] ss:$8 sps:$4 sm:$0xff]  }
  0x7d   : > { %1050 = vmatmul.mubr.bf16.gmra.mxu0 %v2904_v50  ;;  %v2960_v50 = vld [vmem:[%s3598_s21] ss:$16 sps:$4 sm:$0xff]  }
  0x7e   : > { %1123 = vmatmul.mubr.bf16.gmra.mxu1 %v2905_v51  ;;  %1558 = vmatpush1.bf16.msra.mxu0 %v2858_v46  ;;  %v2956_v46 = vld [vmem:[%s4021_s2 + $0x84] ss:$8 sps:$4 sm:$0xff]   ;;  %v2963_v51 = vld [vmem:[%s3598_s21 + $0x8] ss:$16 sps:$4 sm:$0xff]  }
  0x7f   : > { %1631 = vmatpush1.bf16.msra.mxu1 %v2861_v47  ;;  %1559 = vmatprep.subr.bf16.mxu0 %v2866_v52  ;;  %v2959_v47 = vld [vmem:[%s4021_s2 + $0x184] ss:$8 sps:$4 sm:$0xff]  }
  0x80   : > { %1632 = vmatprep.subr.bf16.mxu1 %v2869_v53  ;;  %1059 = vmatprep.mubr.bf16.mxu0 %v2918_v60  ;;  %v2966_v52 = vld [vmem:[%s3598_s21 + $0x24] ss:$16 sps:$4 sm:$0xff]   ;;  %v2968_v53 = vld [vmem:[%s3598_s21 + $0x2c] ss:$16 sps:$4 sm:$0xff]  }
  0x81   : > { %1132 = vmatprep.mubr.bf16.mxu1 %v2920_v61  ;;  %v2989_v60 = vld [vmem:[%s4023_s4 + $0x64] ss:$8 sps:$4 sm:$0xff]   ;;  %v2987_v61 = vld [vmem:[%s4023_s4 + $0x60] ss:$8 sps:$4 sm:$0xff]  }
  0x82   : > { %1560 = vmatpush1.bf16.msra.mxu0 %v2864_v54  ;;  %v2970_v54 = vld [vmem:[%s3598_s21 + $0x20] ss:$16 sps:$4 sm:$0xff]  }
  0x83   : > { %1633 = vmatpush1.bf16.msra.mxu1 %v2867_v55  ;;  %1561 = vmatprep.subr.bf16.mxu0 %v2872_v56  ;;  %v2971_v55 = vld [vmem:[%s3598_s21 + $0x28] ss:$16 sps:$4 sm:$0xff]   ;;  %v2972_v56 = vld [vmem:[%s3598_s21 + $0x44] ss:$16 sps:$4 sm:$0xff]  }
  0x84   : > { %1634 = vmatprep.subr.bf16.mxu1 %v2875_v57  ;;  %v2974_v57 = vld [vmem:[%s3598_s21 + $0x4c] ss:$16 sps:$4 sm:$0xff]  }
  0x85   : > { %1060 = vmatmul.mubr.bf16.gmra.mxu0 %v2922_v62  ;;  %v2976_v62 = vld [vmem:[%s3598_s21 + $0x40] ss:$16 sps:$4 sm:$0xff]  }
  0x86   : > { %1133 = vmatmul.mubr.bf16.gmra.mxu1 %v2923_v63  ;;  %1562 = vmatpush1.bf16.msra.mxu0 %v2870_v58  ;;  %v2984_v58 = vld [vmem:[%s4023_s4 + $0x70] ss:$8 sps:$4 sm:$0xff]  }
  0x87   : > { %1635 = vmatpush1.bf16.msra.mxu1 %v2873_v59  ;;  %1563 = vmatprep.subr.bf16.mxu0 %v2878_v0  ;;  %v2986_v59 = vld [vmem:[%s4023_s4 + $0x74] ss:$8 sps:$4 sm:$0xff]   ;;  %v2977_v63 = vld [vmem:[%s3598_s21 + $0x48] ss:$16 sps:$4 sm:$0xff]  }
  0x88   : > { %1636 = vmatprep.subr.bf16.mxu1 %v2881_v1  ;;  %1069 = vmatprep.mubr.bf16.mxu0 %v2936_v8  ;;  %v2978_v0 = vld [vmem:[%s3598_s21 + $0x64] ss:$16 sps:$4 sm:$0xff]   ;;  %v2980_v1 = vld [vmem:[%s3598_s21 + $0x6c] ss:$16 sps:$4 sm:$0xff]  }
  0x89   : > { %1142 = vmatprep.mubr.bf16.mxu1 %v2938_v9  ;;  %v2998_v8 = vld [vmem:[%s4023_s4 + $0x34] ss:$8 sps:$4 sm:$0xff]   ;;  %v2996_v9 = vld [vmem:[%s4023_s4 + $0x30] ss:$8 sps:$4 sm:$0xff]  }
  0x8a   : > { %1564 = vmatpush1.bf16.msra.mxu0 %v2876_v2  ;;  %v2992_v2 = vld [vmem:[%s4023_s4 + $0x54] ss:$8 sps:$4 sm:$0xff]  }
  0x8b   : > { %1637 = vmatpush1.bf16.msra.mxu1 %v2879_v3  ;;  %1565 = vmatprep.subr.bf16.mxu0 %v2884_v4  ;;  %v2990_v3 = vld [vmem:[%s4023_s4 + $0x50] ss:$8 sps:$4 sm:$0xff]   ;;  %v2995_v4 = vld [vmem:[%s4023_s4 + $0x44] ss:$8 sps:$4 sm:$0xff]  }
  0x8c   : > { %1638 = vmatprep.subr.bf16.mxu1 %v2887_v5  ;;  %v2993_v5 = vld [vmem:[%s4023_s4 + $0x40] ss:$8 sps:$4 sm:$0xff]  }
  0x8d   : > { %1070 = vmatmul.mubr.bf16.gmra.mxu0 %v2940_v10  ;;  %v3001_v10 = vld [vmem:[%s4023_s4 + $0x24] ss:$8 sps:$4 sm:$0xff]  }
  0x8e   : > { %1143 = vmatmul.mubr.bf16.gmra.mxu1 %v2941_v11  ;;  %1566 = vmatpush1.bf16.msra.mxu0 %v2882_v6  ;;  %v2982_v6 = vld [vmem:[%s3598_s21 + $0x60] ss:$16 sps:$4 sm:$0xff]  }
  0x8f   : > { %1639 = vmatpush1.bf16.msra.mxu1 %v2885_v7  ;;  %1567 = vmatprep.subr.bf16.mxu0 %v2890_v12  ;;  %v2983_v7 = vld [vmem:[%s3598_s21 + $0x68] ss:$16 sps:$4 sm:$0xff]   ;;  %v3004_v12 = vld [vmem:[%s4023_s4 + $0x14] ss:$8 sps:$4 sm:$0xff]   ;;  %s2653_s21 = sshll.u32 %s3100_s27, 10 }
  0x90   : > { %1640 = vmatprep.subr.bf16.mxu1 %v2893_v13  ;;  %1585 = vmatprep.mubr.bf16.mxu0 %v2962_v22  ;;  %v2999_v11 = vld [vmem:[%s4023_s4 + $0x20] ss:$8 sps:$4 sm:$0xff]   ;;  %v3002_v13 = vld [vmem:[%s4023_s4 + $0x10] ss:$8 sps:$4 sm:$0xff]   ;;  %v3019_v22 = vld [vmem:[%s4023_s4 + $0xc4] ss:$8 sps:$4 sm:$0xff]   ;;  %s3898_s22 = scalar_lea.hbm %s4025_s6, %s2653_s21 }
  0x91   : > { %1658 = vmatprep.mubr.bf16.mxu1 %v2965_v23  ;;  %v3017_v23 = vld [vmem:[%s4023_s4 + $0xc0] ss:$8 sps:$4 sm:$0xff]  }
  0x92   : > { %1568 = vmatpush1.bf16.msra.mxu0 %v2888_v14  ;;  %v3007_v14 = vld [vmem:[%s4023_s4 + $0x4] ss:$8 sps:$4 sm:$0xff]  }
  0x93   : > { %1641 = vmatpush1.bf16.msra.mxu1 %v2891_v15  ;;  %1569 = vmatprep.subr.bf16.mxu0 %v2896_v16  ;;  %v3005_v15 = vld [vmem:[%s4023_s4] ss:$8 sps:$4 sm:$0xff]   ;;  %v3010_v16 = vld [vmem:[%s4023_s4 + $0xf4] ss:$8 sps:$4 sm:$0xff]  }
  0x94   : > { %1642 = vmatprep.subr.bf16.mxu1 %v2899_v17  ;;  %v3008_v17 = vld [vmem:[%s4023_s4 + $0xf0] ss:$8 sps:$4 sm:$0xff]  }
  0x96   : > { %1570 = vmatpush2.bf16.msra.mxu0 %v2894_v18  ;;  %v3013_v18 = vld [vmem:[%s4023_s4 + $0xe4] ss:$8 sps:$4 sm:$0xff]  }
  0x97   : > { %1643 = vmatpush2.bf16.msra.mxu1 %v2897_v19  ;;  %1571 = vmatprep.subr.bf16.mxu0 %v2908_v20  ;;  %v3011_v19 = vld [vmem:[%s4023_s4 + $0xe0] ss:$8 sps:$4 sm:$0xff]   ;;  %v3016_v20 = vld [vmem:[%s4023_s4 + $0xd4] ss:$8 sps:$4 sm:$0xff]  }
  0x98   : > { %1644 = vmatprep.subr.bf16.mxu1 %v2911_v21  ;;  %v3014_v21 = vld [vmem:[%s4023_s4 + $0xd0] ss:$8 sps:$4 sm:$0xff]  }
  0x9a   : > { %1572 = vmatpush2.bf16.msra.mxu0 %v2906_v24  ;;  %v3022_v24 = vld [vmem:[%s4023_s4 + $0xb4] ss:$8 sps:$4 sm:$0xff]  }
  0x9b   : > { %1645 = vmatpush2.bf16.msra.mxu1 %v2909_v25  ;;  %1573 = vmatprep.subr.bf16.mxu0 %v2914_v26  ;;  %v3020_v25 = vld [vmem:[%s4023_s4 + $0xb0] ss:$8 sps:$4 sm:$0xff]   ;;  %v3025_v26 = vld [vmem:[%s4023_s4 + $0xa4] ss:$8 sps:$4 sm:$0xff]  }
  0x9c   : > { %1646 = vmatprep.subr.bf16.mxu1 %v2917_v27  ;;  %v3023_v27 = vld [vmem:[%s4023_s4 + $0xa0] ss:$8 sps:$4 sm:$0xff]  }
  0x9e   : > { %1574 = vmatpush2.bf16.msra.mxu0 %v2912_v28  ;;  %v3028_v28 = vld [vmem:[%s4023_s4 + $0x94] ss:$8 sps:$4 sm:$0xff]  }
  0x9f   : > { %1647 = vmatpush2.bf16.msra.mxu1 %v2915_v29  ;;  %1575 = vmatprep.subr.bf16.mxu0 %v2926_v30  ;;  %v3026_v29 = vld [vmem:[%s4023_s4 + $0x90] ss:$8 sps:$4 sm:$0xff]   ;;  %v3031_v30 = vld [vmem:[%s4023_s4 + $0x84] ss:$8 sps:$4 sm:$0xff]  }
  0xa0   : > { %1648 = vmatprep.subr.bf16.mxu1 %v2929_v31  ;;  %v3029_v31 = vld [vmem:[%s4023_s4 + $0x80] ss:$8 sps:$4 sm:$0xff]  }
  0xa2   : > { %1576 = vmatpush2.bf16.msra.mxu0 %v2924_v32 }
  0xa3   : > { %1649 = vmatpush2.bf16.msra.mxu1 %v2927_v33  ;;  %1577 = vmatprep.subr.bf16.mxu0 %v2932_v34 }
  0xa4   : > { %1650 = vmatprep.subr.bf16.mxu1 %v2935_v35 }
  0xa6   : > { %1578 = vmatpush2.bf16.msra.mxu0 %v2930_v36 }
  0xa7   : > { %1651 = vmatpush2.bf16.msra.mxu1 %v2933_v37  ;;  %1579 = vmatprep.subr.bf16.mxu0 %v2944_v38 }
  0xa8   : > { %1652 = vmatprep.subr.bf16.mxu1 %v2947_v39 }
  0xaa   : > { %1580 = vmatpush2.bf16.msra.mxu0 %v2942_v40 }
  0xab   : > { %1653 = vmatpush2.bf16.msra.mxu1 %v2945_v41  ;;  %1581 = vmatprep.subr.bf16.mxu0 %v2950_v42 }
  0xac   : > { %1654 = vmatprep.subr.bf16.mxu1 %v2953_v43 }
  0xae   : > { %1582 = vmatpush2.bf16.msra.mxu0 %v2948_v44 }
  0xaf   : > { %1655 = vmatpush2.bf16.msra.mxu1 %v2951_v45  ;;  %1583 = vmatprep.subr.bf16.mxu0 %v2956_v46 }
  0xb0   : > { %1656 = vmatprep.subr.bf16.mxu1 %v2959_v47 }
  0xb2   : > { %1584 = vmatpush2.bf16.msra.mxu0 %v2954_v48 }
  0xb3   : > { %1657 = vmatpush2.bf16.msra.mxu1 %v2957_v49  ;;  %2003 = vmatprep.subr.bf16.mxu0 %v2986_v59 }
  0xb4   : > { %2654 = vmatprep.subr.bf16.mxu1 %v2986_v59 }
  0xb5   : > { %1586 = vmatmul.mubr.bf16.vlgmr.msra.gmra.mxu0 %v2960_v50 }
  0xb6   : > { %1659 = vmatmul.mubr.bf16.vlgmr.msra.gmra.mxu1 %v2963_v51  ;;  %1595 = vmatprep.mubr.bf16.mxu0 %v2966_v52 }
  0xb7   : > { %1668 = vmatprep.mubr.bf16.mxu1 %v2968_v53  ;;  %2004 = vmatpush1.bf16.msra.mxu0 %v2984_v58 }
  0xb8   : > { %2670 = vmatpush1.bf16.msra.mxu1 %v2984_v58  ;;  %2005 = vmatprep.subr.bf16.mxu0 %v2989_v60  ;;  %v1701_v58 = vlaneseq }
  0xb9   : > { %2655 = vmatprep.subr.bf16.mxu1 %v2989_v60 }
  0xbb   : > { %2006 = vmatpush1.bf16.msra.mxu0 %v2987_v61 }
  0xbc   : > { %2671 = vmatpush1.bf16.msra.mxu1 %v2987_v61  ;;  %2007 = vmatprep.subr.bf16.mxu0 %v2992_v2  ;;  %v3818_v61 = vshrl.u32 %v1701_v58, 7 }
  0xbd   : > { %1596 = vmatmul.mubr.bf16.gmra.mxu0 %v2970_v54  ;;  %2656 = vmatprep.subr.bf16.mxu1 %v2992_v2 }
  0xbe   : > { %1669 = vmatmul.mubr.bf16.gmra.mxu1 %v2971_v55  ;;  %1605 = vmatprep.mubr.bf16.mxu0 %v2972_v56 }
  0xbf   : > { %1678 = vmatprep.mubr.bf16.mxu1 %v2974_v57  ;;  %2008 = vmatpush1.bf16.msra.mxu0 %v2990_v3 }
  0xc0   : > { %2672 = vmatpush1.bf16.msra.mxu1 %v2990_v3  ;;  %2009 = vmatprep.subr.bf16.mxu0 %v2995_v4  ;;  %v1699_v3 = vld [vmem:[%s4022_s3] sm:$0x3] }
  0xc1   : > { %2657 = vmatprep.subr.bf16.mxu1 %v2995_v4 }
  0xc3   : > { %2010 = vmatpush1.bf16.msra.mxu0 %v2993_v5 }
  0xc4   : > { %2673 = vmatpush1.bf16.msra.mxu1 %v2993_v5  ;;  %2011 = vmatprep.subr.bf16.mxu0 %v2998_v8  ;;  %v1707_v5 = vsub.s32 1, %v3818_v61 }
  0xc5   : > { %1606 = vmatmul.mubr.bf16.gmra.mxu0 %v2976_v62  ;;  %2658 = vmatprep.subr.bf16.mxu1 %v2998_v8 }
  0xc6   : > { %1679 = vmatmul.mubr.bf16.gmra.mxu1 %v2977_v63  ;;  %1615 = vmatprep.mubr.bf16.mxu0 %v2978_v0  ;;  %v1703_v0 = vsub.s32 0, %v3818_v61 }
  0xc7   : > { %1688 = vmatprep.mubr.bf16.mxu1 %v2980_v1  ;;  %2012 = vmatpush1.bf16.msra.mxu0 %v2996_v9 }
  0xc8   : > { %2674 = vmatpush1.bf16.msra.mxu1 %v2996_v9  ;;  %2013 = vmatprep.subr.bf16.mxu0 %v3001_v10 }
  0xc9   : > { %2659 = vmatprep.subr.bf16.mxu1 %v3001_v10  ;;  %v3835_v10 = vrot.slane %v1699_v3, %v1703_v0 }
  0xcb   : > { %2014 = vmatpush1.bf16.msra.mxu0 %v2999_v11 }
  0xcc   : > { %2675 = vmatpush1.bf16.msra.mxu1 %v2999_v11  ;;  %2015 = vmatprep.subr.bf16.mxu0 %v3004_v12 }
  0xcd   : > { %1616 = vmatmul.mubr.bf16.gmra.mxu0 %v2982_v6  ;;  %2660 = vmatprep.subr.bf16.mxu1 %v3004_v12 }
  0xce   : > { %1689 = vmatmul.mubr.bf16.gmra.mxu1 %v2983_v7 }
  0xcf   : > { %2016 = vmatpush1.bf16.msra.mxu0 %v3002_v13 }
  0xd0   : > { %2676 = vmatpush1.bf16.msra.mxu1 %v3002_v13  ;;  %2017 = vmatprep.subr.bf16.mxu0 %v3007_v14 }
  0xd1   : > { %2661 = vmatprep.subr.bf16.mxu1 %v3007_v14 }
  0xd3   : > { %2018 = vmatpush1.bf16.msra.mxu0 %v3005_v15 }
  0xd4   : > { %2677 = vmatpush1.bf16.msra.mxu1 %v3005_v15  ;;  %2019 = vmatprep.subr.bf16.mxu0 %v3010_v16 }
  0xd5   : > { %2662 = vmatprep.subr.bf16.mxu1 %v3010_v16  ;;  %v3839_v16 = vrot.slane %v1699_v3, %v1707_v5 }
  0xd7   : > { %2020 = vmatpush2.bf16.msra.mxu0 %v3008_v17 }
  0xd8   : > { %2678 = vmatpush2.bf16.msra.mxu1 %v3008_v17  ;;  %2021 = vmatprep.subr.bf16.mxu0 %v3013_v18 }
  0xd9   : > { %2663 = vmatprep.subr.bf16.mxu1 %v3013_v18 }
  0xdb   : > { %2022 = vmatpush2.bf16.msra.mxu0 %v3011_v19 }
  0xdc   : > { %2679 = vmatpush2.bf16.msra.mxu1 %v3011_v19  ;;  %2023 = vmatprep.subr.bf16.mxu0 %v3016_v20 }
  0xdd   : > { %2664 = vmatprep.subr.bf16.mxu1 %v3016_v20 }
  0xdf   : > { %2024 = vmatpush2.bf16.msra.mxu0 %v3014_v21 }
  0xe0   : > { %2680 = vmatpush2.bf16.msra.mxu1 %v3014_v21  ;;  %2025 = vmatprep.subr.bf16.mxu0 %v3019_v22 }
  0xe1   : > { %2665 = vmatprep.subr.bf16.mxu1 %v3019_v22 }
  0xe3   : > { %2026 = vmatpush2.bf16.msra.mxu0 %v3017_v23 }
  0xe4   : > { %2681 = vmatpush2.bf16.msra.mxu1 %v3017_v23  ;;  %2027 = vmatprep.subr.bf16.mxu0 %v3022_v24 }
  0xe5   : > { %2666 = vmatprep.subr.bf16.mxu1 %v3022_v24 }
  0xe7   : > { %2028 = vmatpush2.bf16.msra.mxu0 %v3020_v25 }
  0xe8   : > { %2682 = vmatpush2.bf16.msra.mxu1 %v3020_v25  ;;  %2029 = vmatprep.subr.bf16.mxu0 %v3025_v26 }
  0xe9   : > { %2667 = vmatprep.subr.bf16.mxu1 %v3025_v26 }
  0xeb   : > { %2030 = vmatpush2.bf16.msra.mxu0 %v3023_v27 }
  0xec   : > { %2683 = vmatpush2.bf16.msra.mxu1 %v3023_v27  ;;  %2031 = vmatprep.subr.bf16.mxu0 %v3028_v28 }
  0xed   : > { %2668 = vmatprep.subr.bf16.mxu1 %v3028_v28 }
  0xef   : > { %2032 = vmatpush2.bf16.msra.mxu0 %v3026_v29 }
  0xf0   : > { %2684 = vmatpush2.bf16.msra.mxu1 %v3026_v29  ;;  %2033 = vmatprep.subr.bf16.mxu0 %v3031_v30 }
  0xf1   : > { %2669 = vmatprep.subr.bf16.mxu1 %v3031_v30 }
  0xf3   : > { %2034 = vmatpush2.bf16.msra.mxu0 %v3029_v31 }
  0xf4   : > { %2685 = vmatpush2.bf16.msra.mxu1 %v3029_v31 }
 0x135   : > { %v1041_v32 = vpop.f32.mrf.mxu0 }
 0x136   : > { %v1114_v33 = vpop.f32.mrf.mxu1 }
 0x137   : > { %v1043_v34 = vpop.f32.mrf.mxu0  ;;  %v1115_v4 = vadd.f32 %v1114_v33, %v1041_v32 }
 0x138   : > { %v1116_v35 = vpop.f32.mrf.mxu1 }
 0x139   : > { %v1045_v36 = vpop.f32.mrf.mxu0  ;;  %v1117_v8 = vadd.f32 %v1116_v35, %v1043_v34 }
 0x13a   : > { %v1118_v37 = vpop.f32.mrf.mxu1 }
 0x13b   : > { %v1047_v38 = vpop.f32.mrf.mxu0  ;;  %v1119_v13 = vadd.f32 %v1118_v37, %v1045_v36 }
 0x13c   : > { %v1120_v39 = vpop.f32.mrf.mxu1 }
 0x13d   : > { %v1051_v40 = vpop.f32.mrf.mxu0  ;;  %v1121_v19 = vadd.f32 %v1120_v39, %v1047_v38 }
 0x13e   : > { %v1124_v41 = vpop.f32.mrf.mxu1 }
 0x13f   : > { %v1053_v42 = vpop.f32.mrf.mxu0  ;;  %v1125_v25 = vadd.f32 %v1124_v41, %v1051_v40 }
 0x140   : > { %v1126_v43 = vpop.f32.mrf.mxu1 }
 0x141   : > { %v1055_v44 = vpop.f32.mrf.mxu0  ;;  %v1127_v36 = vadd.f32 %v1126_v43, %v1053_v42 }
 0x142   : > { %v1128_v45 = vpop.f32.mrf.mxu1 }
 0x143   : > { %v3790_v46 = vpop.f32.mrf.mxu0  ;;  %v1129_v39 = vadd.f32 %v1128_v45, %v1055_v44 }
 0x144   : > { %v3792_v47 = vpop.f32.mrf.mxu1 }
 0x145   : > { %v3794_v48 = vpop.f32.mrf.mxu0 }
 0x146   : > { %v3796_v49 = vpop.f32.mrf.mxu1 }
 0x147   : > { %v3798_v50 = vpop.f32.mrf.mxu0 }
 0x148   : > { %v3800_v51 = vpop.f32.mrf.mxu1 }
 0x149   : > { %v3802_v52 = vpop.f32.mrf.mxu0 }
 0x14a   : > { %v3804_v53 = vpop.f32.mrf.mxu1 }
 0x14b   : > { %v3806_v54 = vpop.f32.mrf.mxu0 }
 0x14c   : > { %v3808_v55 = vpop.f32.mrf.mxu1 }
 0x14d   : > { %v3810_v56 = vpop.f32.mrf.mxu0 }
 0x14e   : > { %v3812_v57 = vpop.f32.mrf.mxu1 }
 0x14f   : > { %v3814_v59 = vpop.f32.mrf.mxu0 }
 0x150   : > { %v3816_v60 = vpop.f32.mrf.mxu1 }
 0x151   : > { %v3820_v62 = vpop.f32.mrf.mxu0 }
 0x152   : > { %v3822_v63 = vpop.f32.mrf.mxu1 }
 0x153   : > { %v3825_v1 = vpop.f32.mrf.mxu0 }
 0x154   : > { %v3827_v2 = vpop.f32.mrf.mxu1 }
 0x175   : > { %v1587_v6 = vpop.f32.mrf.mxu0 }
 0x176   : > { %v1660_v7 = vpop.f32.mrf.mxu1  ;;  %v1588_v9 = vadd.f32 %v1587_v6, %v1115_v4 }
 0x177   : > { %v1589_v11 = vpop.f32.mrf.mxu0 }
 0x178   : > { %v1662_v12 = vpop.f32.mrf.mxu1  ;;  %v1661_v14 = vadd.f32 %v1660_v7, %v1588_v9  ;;  %v1590_v15 = vadd.f32 %v1589_v11, %v1117_v8  ;;  %v1131_v7 = vadd.f32 %v3792_v47, %v3790_v46  ;;  %v1137_v46 = vadd.f32 %v3800_v51, %v3798_v50 }
 0x179   : > { %v1591_v17 = vpop.f32.mrf.mxu0  ;;  %v1139_v50 = vadd.f32 %v3804_v53, %v3802_v52 }
 0x17a   : > { %v1664_v18 = vpop.f32.mrf.mxu1  ;;  %v1711_v20 = vadd.f32 %v3835_v10, %v1661_v14  ;;  %v1663_v21 = vadd.f32 %v1662_v12, %v1590_v15  ;;  %v1592_v22 = vadd.f32 %v1591_v17, %v1119_v13  ;;  %v1135_v12 = vadd.f32 %v3796_v49, %v3794_v48 }
 0x17b   : > { %v1593_v23 = vpop.f32.mrf.mxu0 }
 0x17c   : > { %v1666_v24 = vpop.f32.mrf.mxu1  ;;  %v1712_v26 = vadd.f32 %v3839_v16, %v1663_v21  ;;  %v1665_v27 = vadd.f32 %v1664_v18, %v1592_v22  ;;  %v1594_v28 = vadd.f32 %v1593_v23, %v1121_v19  ;;  %v1727_v29 = vmax.f32 %v1711_v20, 0.0 }
 0x17d   : > { %v1597_v30 = vpop.f32.mrf.mxu0 }
 0x17e   : > { %v1670_v31 = vpop.f32.mrf.mxu1  ;;  %v1728_v32 = vmax.f32 %v1712_v26, 0.0  ;;  %v1713_v33 = vadd.f32 %v3835_v10, %v1665_v27  ;;  %v1667_v34 = vadd.f32 %v1666_v24, %v1594_v28  ;;  %v1598_v35 = vadd.f32 %v1597_v30, %v1125_v25 }
 0x17f   : > { %v1599_v37 = vpop.f32.mrf.mxu0 }
 0x180   : > { %v1672_v38 = vpop.f32.mrf.mxu1  ;;  %v2645_v58 = vpack.c.bf16 %v1728_v32, %v1727_v29  ;;  %v1714_v40 = vadd.f32 %v3839_v16, %v1667_v34  ;;  %v1671_v41 = vadd.f32 %v1670_v31, %v1598_v35  ;;  %v1600_v3 = vadd.f32 %v1599_v37, %v1127_v36 }
 0x181   : > { %v1601_v4 = vpop.f32.mrf.mxu0  ;;  %v1729_v8 = vmax.f32 %v1713_v33, 0.0  ;;  %v1141_v36 = vadd.f32 %v3808_v55, %v3806_v54  ;;  %v1145_v37 = vadd.f32 %v3812_v57, %v3810_v56 }
 0x182   : > { %v1674_v6 = vpop.f32.mrf.mxu1  ;;  %1791 = vst [vmem:[%s3848_s30] sm:$0xff] %v2645_v58  ;;  %v1730_v9 = vmax.f32 %v1714_v40, 0.0  ;;  %v1602_v42 = vadd.f32 %v1601_v4, %v1129_v39  ;;  %v1715_v43 = vadd.f32 %v3835_v10, %v1671_v41  ;;  %v1673_v44 = vadd.f32 %v1672_v38, %v1600_v3 }
 0x183   : > { %v1603_v45 = vpop.f32.mrf.mxu0  ;;  %v1743_v20 = vpack.c.bf16 %v1729_v8, %v1727_v29  ;;  %v1147_v40 = vadd.f32 %v3816_v60, %v3814_v59 }
 0x184   : > { %v1676_v11 = vpop.f32.mrf.mxu1  ;;  %v2646_v13 = vpack.c.bf16 %v1730_v9, %v1729_v8  ;;  %v1675_v14 = vadd.f32 %v1674_v6, %v1602_v42  ;;  %v1604_v15 = vadd.f32 %v1603_v45, %v1131_v7  ;;  %v1716_v47 = vadd.f32 %v3839_v16, %v1673_v44 }
 0x185   : > { %v1607_v17 = vpop.f32.mrf.mxu0  ;;  %v1744_v19 = vpack.c.bf16 %v1730_v9, %v1728_v32  ;;  %v1731_v24 = vmax.f32 %v1715_v43, 0.0  ;;  %v1149_v43 = vadd.f32 %v3822_v63, %v3820_v62 }
 0x186   : > { %v1680_v18 = vpop.f32.mrf.mxu1  ;;  %1792 = vst [vmem:[%s3848_s30 + $0x8] sm:$0xff] %v2646_v13  ;;  %v1717_v21 = vadd.f32 %v3835_v10, %v1675_v14  ;;  %v1677_v22 = vadd.f32 %v1676_v11, %v1604_v15  ;;  %v1608_v23 = vadd.f32 %v1607_v17, %v1135_v12  ;;  %v1732_v25 = vmax.f32 %v1716_v47, 0.0 }
 0x187   : > { %2035 = vmatprep.mubr.bf16.mxu0 %v1744_v19  ;;  %v1609_v48 = vpop.f32.mrf.mxu0  ;;  %v1151_v14 = vadd.f32 %v3827_v2, %v3825_v1 }
 0x188   : > { %v1682_v49 = vpop.f32.mrf.mxu1  ;;  %v1718_v51 = vadd.f32 %v3839_v16, %v1677_v22  ;;  %v1681_v26 = vadd.f32 %v1680_v18, %v1608_v23  ;;  %v1610_v27 = vadd.f32 %v1609_v48, %v1137_v46  ;;  %2036 = vmatmul.mubr.bf16.vlgmr.msra.gmra.mxu0 %v1743_v20  ;;  %v2647_v28 = vpack.c.bf16 %v1732_v25, %v1731_v24 }
 0x189   : > { %v1733_v29 = vmax.f32 %v1717_v21, 0.0  ;;  %v1611_v30 = vpop.f32.mrf.mxu0 }
 0x18a   : > { %v1684_v31 = vpop.f32.mrf.mxu1  ;;  %v1734_v32 = vmax.f32 %v1718_v51, 0.0  ;;  %v1719_v33 = vadd.f32 %v3835_v10, %v1681_v26  ;;  %v1683_v34 = vadd.f32 %v1682_v49, %v1610_v27  ;;  %v1612_v35 = vadd.f32 %v1611_v30, %v1139_v50  ;;  %1793 = vst [vmem:[%s3848_s30 + $0x10] sm:$0xff] %v2647_v28 }
 0x18b   : > { %v1613_v52 = vpop.f32.mrf.mxu0  ;;  %v1745_v7 = vpack.c.bf16 %v1733_v29, %v1731_v24 }
 0x18c   : > { %v1686_v53 = vpop.f32.mrf.mxu1  ;;  %v2648_v38 = vpack.c.bf16 %v1734_v32, %v1733_v29  ;;  %v1720_v39 = vadd.f32 %v3839_v16, %v1683_v34  ;;  %v1685_v58 = vadd.f32 %v1684_v31, %v1612_v35  ;;  %v1614_v41 = vadd.f32 %v1613_v52, %v1141_v36 }
 0x18d   : > { %v1617_v3 = vpop.f32.mrf.mxu0  ;;  %v1746_v6 = vpack.c.bf16 %v1734_v32, %v1732_v25  ;;  %v1735_v54 = vmax.f32 %v1719_v33, 0.0 }
 0x18e   : > { %v1690_v4 = vpop.f32.mrf.mxu1  ;;  %1794 = vst [vmem:[%s3848_s30 + $0x18] sm:$0xff] %v2648_v38  ;;  %v1736_v55 = vmax.f32 %v1720_v39, 0.0  ;;  %v1721_v8 = vadd.f32 %v3835_v10, %v1685_v58  ;;  %v1618_v9 = vadd.f32 %v1617_v3, %v1145_v37  ;;  %v1687_v56 = vadd.f32 %v1686_v53, %v1614_v41 }
 0x18f   : > { %2045 = vmatprep.mubr.bf16.mxu0 %v1746_v6  ;;  %v1619_v57 = vpop.f32.mrf.mxu0 }
 0x190   : > { %v1692_v42 = vpop.f32.mrf.mxu1  ;;  %v2649_v59 = vpack.c.bf16 %v1736_v55, %v1735_v54  ;;  %v1691_v60 = vadd.f32 %v1690_v4, %v1618_v9  ;;  %v1620_v44 = vadd.f32 %v1619_v57, %v1147_v40  ;;  %2046 = vmatmul.mubr.bf16.gmra.mxu0 %v1745_v7  ;;  %v1737_v45 = vmax.f32 %v1721_v8, 0.0 }
 0x191   : > { %v1722_v11 = vadd.f32 %v3839_v16, %v1687_v56  ;;  %v1621_v12 = vpop.f32.mrf.mxu0 }
 0x192   : > { %v1694_v13 = vpop.f32.mrf.mxu1  ;;  %1795 = vst [vmem:[%s3848_s30 + $0x20] sm:$0xff] %v2649_v59  ;;  %v1723_v15 = vadd.f32 %v3835_v10, %v1691_v60  ;;  %v1693_v46 = vadd.f32 %v1692_v42, %v1620_v44  ;;  %v1622_v47 = vadd.f32 %v1621_v12, %v1149_v43  ;;  %v1747_v20 = vpack.c.bf16 %v1737_v45, %v1735_v54 }
 0x193   : > { %v1738_v17 = vmax.f32 %v1722_v11, 0.0  ;;  %v1623_v62 = vpop.f32.mrf.mxu0 }
 0x194   : > { %v1724_v63 = vadd.f32 %v3839_v16, %v1693_v46  ;;  %v1695_v18 = vadd.f32 %v1694_v13, %v1622_v47  ;;  %v1624_v19 = vadd.f32 %v1623_v62, %v1151_v14  ;;  %v1696_v22 = vpop.f32.mrf.mxu1  ;;  %v1739_v24 = vmax.f32 %v1723_v15, 0.0 }
 0x195   : > { %v2650_v21 = vpack.c.bf16 %v1738_v17, %v1737_v45  ;;  %v1748_v23 = vpack.c.bf16 %v1738_v17, %v1736_v55 }
 0x196   : > { %v1740_v1 = vmax.f32 %v1724_v63, 0.0  ;;  %v1725_v2 = vadd.f32 %v3835_v10, %v1695_v18  ;;  %v1697_v25 = vadd.f32 %v1696_v22, %v1624_v19  ;;  %v1831_v10 = vld [vmem:[%s4024_s5] sm:$0x3] }
 0x197   : > { %1796 = vst [vmem:[%s3848_s30 + $0x28] sm:$0xff] %v2650_v21  ;;  %2055 = vmatprep.mubr.bf16.mxu1 %v1748_v23  ;;  %v1836_v29 = vrot.slane %v1831_v10, %v1703_v0 }
 0x198   : > { %v2651_v48 = vpack.c.bf16 %v1740_v1, %v1739_v24  ;;  %v1726_v49 = vadd.f32 %v3839_v16, %v1697_v25  ;;  %2056 = vmatmul.mubr.bf16.vlgmr.msra.gmra.mxu1 %v1747_v20  ;;  %v1741_v50 = vmax.f32 %v1725_v2, 0.0  ;;  %v1840_v16 = vrot.slane %v1831_v10, %v1707_v5 }
 0x19a   : > { %1797 = vst [vmem:[%s3848_s30 + $0x30] sm:$0xff] %v2651_v48  ;;  %v1742_v51 = vmax.f32 %v1726_v49, 0.0  ;;  %v1749_v28 = vpack.c.bf16 %v1741_v50, %v1739_v24 }
 0x19c   : > { %v2652_v26 = vpack.c.bf16 %v1742_v51, %v1741_v50  ;;  %v1750_v27 = vpack.c.bf16 %v1742_v51, %v1740_v1 }
 0x19e   : > { %1798 = vst [vmem:[%s3848_s30 + $0x38] sm:$0xff] %v2652_v26  ;;  %2065 = vmatprep.mubr.bf16.mxu1 %v1750_v27  ;;  %s3038_s30 = scalar_lea.vmem %s3037_s11, 2048 }
 0x19f   : > { %p3040_p4 = scmp.lt.s32.totalorder %s3038_s30, %s3032_s8 }
 0x1a0   : > { %2066 = vmatmul.mubr.bf16.gmra.mxu1 %v1749_v28 }
 0x1a1   : > { %p3041_p6 = por %p3040_p4, %p3039_p3 }
 0x1a3   : > { %p3042_p7 = pnand %p3041_p6, %p3035_p2 }
 0x248   : > { %v2037_v30 = vpop.f32.mrf.mxu0 }
 0x249   : > { %v2038_v31 = vadd.f32 %v2037_v30, %v1836_v29 }
 0x24a   : > { %v2039_v32 = vpop.f32.mrf.mxu0 }
 0x24b   : > { %2076 = vxpose.xlu0.b32.start [1/8] (short) %v2038_v31, 128  ;;  %v2040_v33 = vadd.f32 %v2039_v32, %v1840_v16 }
 0x24c   : > { %v2041_v34 = vpop.f32.mrf.mxu0 }
 0x24d   : > { %v2042_v35 = vadd.f32 %v2041_v34, %v1836_v29  ;;  %2108 = vxpose.xlu1.b32.start [1/8] (short) %v2040_v33, 128 }
 0x24e   : > { %v2043_v36 = vpop.f32.mrf.mxu0 }
 0x24f   : > { %v2044_v52 = vadd.f32 %v2043_v36, %v1840_v16  ;;  %2077 = vxpose.xlu0.b32.cont [2/8] (short) %v2042_v35, 128 }
 0x250   : > { %v2047_v53 = vpop.f32.mrf.mxu0 }
 0x251   : > { %v2048_v37 = vadd.f32 %v2047_v53, %v1836_v29  ;;  %2109 = vxpose.xlu1.b32.cont [2/8] (short) %v2044_v52, 128 }
 0x252   : > { %v2049_v38 = vpop.f32.mrf.mxu0 }
 0x253   : > { %v2050_v39 = vadd.f32 %v2049_v38, %v1840_v16  ;;  %2078 = vxpose.xlu0.b32.cont [3/8] (short) %v2048_v37, 128 }
 0x254   : > { %v2051_v0 = vpop.f32.mrf.mxu0 }
 0x255   : > { %v2052_v61 = vadd.f32 %v2051_v0, %v1836_v29  ;;  %2110 = vxpose.xlu1.b32.cont [3/8] (short) %v2050_v39, 128 }
 0x256   : > { %v2053_v5 = vpop.f32.mrf.mxu0 }
 0x257   : > { %v2054_v58 = vadd.f32 %v2053_v5, %v1840_v16  ;;  %2079 = vxpose.xlu0.b32.cont [4/8] (short) %v2052_v61, 128 }
 0x258   : > { %v2057_v40 = vpop.f32.mrf.mxu1 }
 0x259   : > { %v2058_v41 = vadd.f32 %v2057_v40, %v1836_v29  ;;  %2111 = vxpose.xlu1.b32.cont [4/8] (short) %v2054_v58, 128 }
 0x25a   : > { %v2059_v3 = vpop.f32.mrf.mxu1 }
 0x25b   : > { %v2060_v4 = vadd.f32 %v2059_v3, %v1840_v16  ;;  %2080 = vxpose.xlu0.b32.cont [5/8] (short) %v2058_v41, 128 }
 0x25c   : > { %v2061_v6 = vpop.f32.mrf.mxu1 }
 0x25d   : > { %v2062_v7 = vadd.f32 %v2061_v6, %v1836_v29  ;;  %2112 = vxpose.xlu1.b32.cont [5/8] (short) %v2060_v4, 128 }
 0x25e   : > { %v2063_v54 = vpop.f32.mrf.mxu1 }
 0x25f   : > { %v2064_v55 = vadd.f32 %v2063_v54, %v1840_v16  ;;  %2081 = vxpose.xlu0.b32.cont [6/8] (short) %v2062_v7, 128 }
 0x260   : > { %v2067_v8 = vpop.f32.mrf.mxu1 }
 0x261   : > { %v2068_v9 = vadd.f32 %v2067_v8, %v1836_v29  ;;  %2113 = vxpose.xlu1.b32.cont [6/8] (short) %v2064_v55, 128 }
 0x262   : > { %v2069_v56 = vpop.f32.mrf.mxu1 }
 0x263   : > { %v2070_v57 = vadd.f32 %v2069_v56, %v1840_v16  ;;  %2082 = vxpose.xlu0.b32.cont [7/8] (short) %v2068_v9, 128 }
 0x264   : > { %v2071_v42 = vpop.f32.mrf.mxu1 }
 0x265   : > { %v2072_v43 = vadd.f32 %v2071_v42, %v1836_v29  ;;  %2114 = vxpose.xlu1.b32.cont [7/8] (short) %v2070_v57, 128 }
 0x266   : > { %v2073_v59 = vpop.f32.mrf.mxu1 }
 0x267   : > { %v2074_v60 = vadd.f32 %v2073_v59, %v1840_v16  ;;  %2083 = vxpose.xlu0.b32.end [8/8] (short) %v2072_v43, 128 }
 0x269   : > { %2115 = vxpose.xlu1.b32.end [8/8] (short) %v2074_v60, 128 }
 0x26a   : > { %3045 = shalt.err (!%p3042_p7)
}
 0x26b   : > { %s3046_s17 = scalar_lea.hbm %s3898_s22, 1024  ;;  %s3050_s10 = scalar_lea.hbm %s4025_s6, 2048 }
 0x26c   : > { %p3047_p8 = scmp.ne.s32.totalorder %s3898_s22, %s3046_s17  ;;  %p3051_p13 = scmp.lt.s32.totalorder %s3898_s22, %s4025_s6 }
 0x26d   : > { %p3052_p0 = scmp.lt.s32.totalorder %s3050_s10, %s3046_s17 }
 0x26e   : > { %p3048_p11 = pnand %p3047_p8, %p3196_p5 }
 0x26f   : > { %p3053_p1 = por %p3052_p0, %p3051_p13 }
 0x270   : > { %p3049_p12 = pneg %p3048_p11 }
 0x272   : > { %p3054_p2 = pnand %p3053_p1, %p3049_p12 }
 0x274   : > { %3057 = shalt.err (!%p3054_p2)
}
 0x275   : > { %s3111_s8 = smov 128   ;;  %s3112_s11 = smov 8   ;;  %vm2140_vm0 = vcmask 523264  }
 0x276   : > { %2686 = dma.vmem_to_hbm [thread:$0]  (%p3196_p5), %s3900_s19, 1024, %s3898_s22, %s2174_s23, %s3111_s8, %s3111_s8, %s3112_s11  }
 0x277   : > { %p438_p3 = scmp.lt.s32.totalorder %s3100_s27, 1 }
 0x279   : > { %s4038_s27 = smov (!%p438_p3, %s3100_s27), 1 }
 0x27a   : > { %s2644_s30 = sshll.u32 %s4038_s27, 8 }
 0x27b   : > { %s3930_s17 = scalar_lea.vmem %s4026_s7, %s2644_s30 }
 0x2c7   : > { %v2092_v44 = vpop.trf.xlu0 }
 0x2c8   : > { %2141 = vst.msk [vmem:[%s3930_s17] sm:$0xff] %vm2140_vm0, %v2092_v44 }
 0x2c9   : > { %v2124_v45 = vpop.trf.xlu1 }
 0x2ca   : > { %2157 = vst.msk [vmem:[%s3930_s17 + $0x80] sm:$0xff] %vm2140_vm0, %v2124_v45 }
 0x2cb   : > { %v2093_v11 = vpop.trf.xlu0 }
 0x2cc   : > { %2142 = vst.msk [vmem:[%s3930_s17 + $0x8] sm:$0xff] %vm2140_vm0, %v2093_v11 }
 0x2cd   : > { %v2125_v12 = vpop.trf.xlu1 }
 0x2ce   : > { %2158 = vst.msk [vmem:[%s3930_s17 + $0x88] sm:$0xff] %vm2140_vm0, %v2125_v12 }
 0x2cf   : > { %v2094_v13 = vpop.trf.xlu0 }
 0x2d0   : > { %2143 = vst.msk [vmem:[%s3930_s17 + $0x10] sm:$0xff] %vm2140_vm0, %v2094_v13 }
 0x2d1   : > { %v2126_v14 = vpop.trf.xlu1 }
 0x2d2   : > { %2159 = vst.msk [vmem:[%s3930_s17 + $0x90] sm:$0xff] %vm2140_vm0, %v2126_v14 }
 0x2d3   : > { %v2095_v15 = vpop.trf.xlu0 }
 0x2d4   : > { %2144 = vst.msk [vmem:[%s3930_s17 + $0x18] sm:$0xff] %vm2140_vm0, %v2095_v15 }
 0x2d5   : > { %v2127_v46 = vpop.trf.xlu1 }
 0x2d6   : > { %2160 = vst.msk [vmem:[%s3930_s17 + $0x98] sm:$0xff] %vm2140_vm0, %v2127_v46 }
 0x2d7   : > { %v2096_v47 = vpop.trf.xlu0 }
 0x2d8   : > { %2145 = vst.msk [vmem:[%s3930_s17 + $0x20] sm:$0xff] %vm2140_vm0, %v2096_v47 }
 0x2d9   : > { %v2128_v17 = vpop.trf.xlu1 }
 0x2da   : > { %2161 = vst.msk [vmem:[%s3930_s17 + $0xa0] sm:$0xff] %vm2140_vm0, %v2128_v17 }
 0x2db   : > { %v2097_v62 = vpop.trf.xlu0 }
 0x2dc   : > { %2146 = vst.msk [vmem:[%s3930_s17 + $0x28] sm:$0xff] %vm2140_vm0, %v2097_v62 }
 0x2dd   : > { %v2129_v63 = vpop.trf.xlu1 }
 0x2de   : > { %2162 = vst.msk [vmem:[%s3930_s17 + $0xa8] sm:$0xff] %vm2140_vm0, %v2129_v63 }
 0x2df   : > { %v2098_v18 = vpop.trf.xlu0 }
 0x2e0   : > { %2147 = vst.msk [vmem:[%s3930_s17 + $0x30] sm:$0xff] %vm2140_vm0, %v2098_v18 }
 0x2e1   : > { %v2130_v19 = vpop.trf.xlu1 }
 0x2e2   : > { %2163 = vst.msk [vmem:[%s3930_s17 + $0xb0] sm:$0xff] %vm2140_vm0, %v2130_v19 }
 0x2e3   : > { %v2099_v20 = vpop.trf.xlu0 }
 0x2e4   : > { %2148 = vst.msk [vmem:[%s3930_s17 + $0x38] sm:$0xff] %vm2140_vm0, %v2099_v20 }
 0x2e5   : > { %v2131_v21 = vpop.trf.xlu1 }
 0x2e6   : > { %2164 = vst.msk [vmem:[%s3930_s17 + $0xb8] sm:$0xff] %vm2140_vm0, %v2131_v21 }
 0x2e7   : > { %v2100_v22 = vpop.trf.xlu0 }
 0x2e8   : > { %2149 = vst.msk [vmem:[%s3930_s17 + $0x40] sm:$0xff] %vm2140_vm0, %v2100_v22 }
 0x2e9   : > { %v2132_v23 = vpop.trf.xlu1 }
 0x2ea   : > { %2165 = vst.msk [vmem:[%s3930_s17 + $0xc0] sm:$0xff] %vm2140_vm0, %v2132_v23 }
 0x2eb   : > { %v2101_v24 = vpop.trf.xlu0 }
 0x2ec   : > { %2150 = vst.msk [vmem:[%s3930_s17 + $0x48] sm:$0xff] %vm2140_vm0, %v2101_v24 }
 0x2ed   : > { %v2133_v1 = vpop.trf.xlu1 }
 0x2ee   : > { %2166 = vst.msk [vmem:[%s3930_s17 + $0xc8] sm:$0xff] %vm2140_vm0, %v2133_v1 }
 0x2ef   : > { %v2102_v2 = vpop.trf.xlu0 }
 0x2f0   : > { %2151 = vst.msk [vmem:[%s3930_s17 + $0x50] sm:$0xff] %vm2140_vm0, %v2102_v2 }
 0x2f1   : > { %v2134_v25 = vpop.trf.xlu1 }
 0x2f2   : > { %2167 = vst.msk [vmem:[%s3930_s17 + $0xd0] sm:$0xff] %vm2140_vm0, %v2134_v25 }
 0x2f3   : > { %v2103_v48 = vpop.trf.xlu0 }
 0x2f4   : > { %2152 = vst.msk [vmem:[%s3930_s17 + $0x58] sm:$0xff] %vm2140_vm0, %v2103_v48 }
 0x2f5   : > { %v2135_v49 = vpop.trf.xlu1 }
 0x2f6   : > { %2168 = vst.msk [vmem:[%s3930_s17 + $0xd8] sm:$0xff] %vm2140_vm0, %v2135_v49 }
 0x2f7   : > { %v2104_v50 = vpop.trf.xlu0 }
 0x2f8   : > { %2153 = vst.msk [vmem:[%s3930_s17 + $0x60] sm:$0xff] %vm2140_vm0, %v2104_v50 }
 0x2f9   : > { %v2136_v51 = vpop.trf.xlu1 }
 0x2fa   : > { %2169 = vst.msk [vmem:[%s3930_s17 + $0xe0] sm:$0xff] %vm2140_vm0, %v2136_v51 }
 0x2fb   : > { %v2105_v26 = vpop.trf.xlu0 }
 0x2fc   : > { %2154 = vst.msk [vmem:[%s3930_s17 + $0x68] sm:$0xff] %vm2140_vm0, %v2105_v26 }
 0x2fd   : > { %v2137_v27 = vpop.trf.xlu1 }
 0x2fe   : > { %2170 = vst.msk [vmem:[%s3930_s17 + $0xe8] sm:$0xff] %vm2140_vm0, %v2137_v27 }
 0x2ff   : > { %v2106_v28 = vpop.trf.xlu0 }
 0x300   : > { %2155 = vst.msk [vmem:[%s3930_s17 + $0x70] sm:$0xff] %vm2140_vm0, %v2106_v28 }
 0x301   : > { %v2138_v10 = vpop.trf.xlu1 }
 0x302   : > { %2171 = vst.msk [vmem:[%s3930_s17 + $0xf0] sm:$0xff] %vm2140_vm0, %v2138_v10 }
 0x303   : > { %v2107_v29 = vpop.trf.xlu0 }
 0x304   : > { %2156 = vst.msk [vmem:[%s3930_s17 + $0x78] sm:$0xff] %vm2140_vm0, %v2107_v29 }
 0x305   : > { %v2139_v16 = vpop.trf.xlu1 }
 0x306   : > { %2172 = vst.msk [vmem:[%s3930_s17 + $0xf8] sm:$0xff] %vm2140_vm0, %v2139_v16 }
 0x307 PF: > { %s2216_s27 = sand.u32 1, %s3088_s24   ;;  %p2689_p5 = pnand %p2344_p10, %p3207_p9 }
 0x308   : > { %s2217_s12 = scalar_lea.sflag [#allocation5], %s2216_s27 }
 0x309   : > { %p2690_p4 = pneg %p2689_p5 }
 0x30b   : > { %3083 = dma.done.wait (%p2690_p4), %s2217_s12, 1024  }
 0x30c   : > { %3085 = vsyncadd (%p2690_p4), %s2217_s12, 4294966272  ;;  %s21_s29 = sadd.s32 1, %s3108_s29   ;;  %s4030_s24 = smov %s3092_s25 }
 0x30d   : > { %p18_p6 = scmp.ge.s32.totalorder %s21_s29, 4   ;;  %s4031_s25 = smov %s3096_s26 }
 0x30e   : > { %s4032_s26 = smov %s3205_s14  ;;  %s4033_s27 = smov %s3104_s28 }
 0x30f   : > { %s4034_s28 = smov %s4036_s9  ;;  %20 = sbr.rel (!%p18_p6) target bundleno = 4 (0x4), region = 151 }
 0x314   :  { %2233 = vsyncpa [#allocation5], 1 }
 0x315   :  { %2235 = vsyncpa [#allocation5 + $0x1], 1 }

// kernel: sam2_backbone_forward.4
= control target key start
LH: loop header
LB: loop body
LE: loop exit
PB: predicated region body
PF: predicated region fallthrough
CT: control target
= control target key end

     0   :  { %s5170_s24 = smov 0   ;;  %s5172_s25 = smov 0   ;;  %s6945_s0 = inlined_call_operand.vmem [shape: bf16[2,16,2,16,512], index: 0, kind: input, shape index: {}, may-alias: {0,1}]   ;;  %s6946_s1 = inlined_call_operand.vmem [shape: bf16[2,16,2,16,512], index: 1, kind: input, shape index: {}, may-alias: {0,1}]   ;;  %s6947_s2 = inlined_call_operand.vmem [shape: bf16[2,512,256], index: 2, kind: input, shape index: {}]   ;;  %s6948_s3 = inlined_call_operand.vmem [shape: f32[1,256], index: 3, kind: input, shape index: {}]   ;;  %s6949_s4 = inlined_call_operand.vmem [shape: bf16[256,256], index: 4, kind: input, shape index: {}]   ;;  %s6950_s5 = inlined_call_operand.vmem [shape: f32[1,256], index: 5, kind: input, shape index: {}]   ;;  %s6951_s6 = inlined_call_operand.vmem [shape: bf16[2,256,256], index: 6, kind: output, shape index: {0}]   ;;  %s6952_s7 = inlined_call_operand.vmem [shape: f32[2,256,256], index: 7, kind: output, shape index: {1}]  }
   0x1   :  { %s5174_s26 = smov 0   ;;  %s5176_s27 = smov 0  }
   0x2   :  { %s5178_s28 = smov 0  }
   0x3 LB: > { %s30_s29 = sadd.s32 1, %s5124_s27  ;;  %p46_p1 = scmp.ne.s32.totalorder %s5116_s25, %s5112_s24  ;;  %s5128_s28 = sphi %s5178_s28, %s18_s28   ;;  %s5124_s27 = sphi %s5176_s27, %s7149_s27   ;;  %s5120_s26 = sphi %s5174_s26, %s7148_s26   ;;  %s5116_s25 = sphi %s5172_s25, %s7147_s25   ;;  %s5112_s24 = sphi %s5170_s24, %s7146_s24  }
   0x4   : > { %p32_p0 = scmp.ge.s32.totalorder %s30_s29, 2  ;;  %p47_p2 = scmp.eq.s32.totalorder %s5128_s28, 0 }
   0x5   : > { %s39_s9 = sadd.s32 1, %s5116_s25  ;;  %p4086_p5 = scmp.ge.s32.totalorder %s5128_s28, 2 }
   0x6   : > { %s7151_s29 = smov (%p32_p0, %s30_s29), 0  ;;  %p5201_p3 = por %p47_p2, %p46_p1 }
   0x7   : > { %s34_s8 = ssub.s32 %s5124_s27, %s7151_s29  ;;  %252 = sbr.rel (%p4086_p5) target bundleno = 84 (0x54), region = 32 }
   0x8   : > { %p37_p4 = scmp.eq.s32.totalorder %s34_s8, 0 }
   0xa   : > { %s5209_s10 = scalar_select %p37_p4, %s5116_s25, %s39_s9  }
   0xc   : > { %255 = sbr.rel (!%p5201_p3) target bundleno = 48 (0x30), region = 36  ;;  %s257_s11 = sand.u32 (%p5201_p3), 1, %s5116_s25  }
   0xd   : > { %s4550_s12 = sshll.u32 (%p5201_p3), %s5124_s27, 10  ;;  %s4087_s13 = sshll.u32 (%p5201_p3), %s257_s11, 9 }
   0xe   : > { %s5219_s16 = scalar_lea.vmem (%p5201_p3), %s6945_s0, %s4550_s12  ;;  %s5224_s17 = scalar_lea.vmem (%p5201_p3), [#allocation2], %s4087_s13 }
   0xf   : > { %v278_v0 = vld [vmem:[%s5219_s16] sm:$0xff] (%p5201_p3)  ;;  %v280_v1 = vld [vmem:[%s5219_s16 + $0x8] sm:$0xff] (%p5201_p3)  ;;  %v282_v2 = vld [vmem:[%s5219_s16 + $0x10] sm:$0xff] (%p5201_p3) }
  0x10   : > { %279 = vst [vmem:[%s5224_s17] sm:$0xff] (%p5201_p3), %v278_v0  ;;  %281 = vst [vmem:[%s5224_s17 + $0x8] sm:$0xff] (%p5201_p3), %v280_v1  ;;  %v284_v3 = vld [vmem:[%s5219_s16 + $0x18] sm:$0xff] (%p5201_p3)  ;;  %v286_v4 = vld [vmem:[%s5219_s16 + $0x40] sm:$0xff] (%p5201_p3) }
  0x11   : > { %283 = vst [vmem:[%s5224_s17 + $0x10] sm:$0xff] %v282_v2  ;;  %v288_v5 = vld [vmem:[%s5219_s16 + $0x48] sm:$0xff]  ;;  %285 = vst [vmem:[%s5224_s17 + $0x18] sm:$0xff] %v284_v3  ;;  %v290_v6 = vld [vmem:[%s5219_s16 + $0x50] sm:$0xff] }
  0x12   : > { %287 = vst [vmem:[%s5224_s17 + $0x20] sm:$0xff] %v286_v4  ;;  %289 = vst [vmem:[%s5224_s17 + $0x28] sm:$0xff] %v288_v5  ;;  %v292_v7 = vld [vmem:[%s5219_s16 + $0x58] sm:$0xff]  ;;  %v294_v8 = vld [vmem:[%s5219_s16 + $0x80] sm:$0xff] }
  0x13   : > { %291 = vst [vmem:[%s5224_s17 + $0x30] sm:$0xff] %v290_v6  ;;  %293 = vst [vmem:[%s5224_s17 + $0x38] sm:$0xff] %v292_v7  ;;  %v296_v9 = vld [vmem:[%s5219_s16 + $0x88] sm:$0xff]  ;;  %v298_v10 = vld [vmem:[%s5219_s16 + $0x90] sm:$0xff] }
  0x14   : > { %295 = vst [vmem:[%s5224_s17 + $0x40] sm:$0xff] %v294_v8  ;;  %v300_v11 = vld [vmem:[%s5219_s16 + $0x98] sm:$0xff]  ;;  %297 = vst [vmem:[%s5224_s17 + $0x48] sm:$0xff] %v296_v9  ;;  %v302_v12 = vld [vmem:[%s5219_s16 + $0xc0] sm:$0xff] }
  0x15   : > { %299 = vst [vmem:[%s5224_s17 + $0x50] sm:$0xff] %v298_v10  ;;  %301 = vst [vmem:[%s5224_s17 + $0x58] sm:$0xff] %v300_v11  ;;  %v304_v13 = vld [vmem:[%s5219_s16 + $0xc8] sm:$0xff]  ;;  %v306_v14 = vld [vmem:[%s5219_s16 + $0xd0] sm:$0xff] }
  0x16   : > { %303 = vst [vmem:[%s5224_s17 + $0x60] sm:$0xff] %v302_v12  ;;  %305 = vst [vmem:[%s5224_s17 + $0x68] sm:$0xff] %v304_v13  ;;  %v308_v15 = vld [vmem:[%s5219_s16 + $0xd8] sm:$0xff]  ;;  %v310_v16 = vld [vmem:[%s5219_s16 + $0x100] sm:$0xff] }
  0x17   : > { %307 = vst [vmem:[%s5224_s17 + $0x70] sm:$0xff] %v306_v14  ;;  %v312_v17 = vld [vmem:[%s5219_s16 + $0x108] sm:$0xff]  ;;  %309 = vst [vmem:[%s5224_s17 + $0x78] sm:$0xff] %v308_v15  ;;  %v314_v18 = vld [vmem:[%s5219_s16 + $0x110] sm:$0xff] }
  0x18   : > { %311 = vst [vmem:[%s5224_s17 + $0x80] sm:$0xff] %v310_v16  ;;  %313 = vst [vmem:[%s5224_s17 + $0x88] sm:$0xff] %v312_v17  ;;  %v316_v19 = vld [vmem:[%s5219_s16 + $0x118] sm:$0xff]  ;;  %v318_v20 = vld [vmem:[%s5219_s16 + $0x140] sm:$0xff] }
  0x19   : > { %315 = vst [vmem:[%s5224_s17 + $0x90] sm:$0xff] %v314_v18  ;;  %317 = vst [vmem:[%s5224_s17 + $0x98] sm:$0xff] %v316_v19  ;;  %v320_v21 = vld [vmem:[%s5219_s16 + $0x148] sm:$0xff]  ;;  %v322_v22 = vld [vmem:[%s5219_s16 + $0x150] sm:$0xff] }
  0x1a   : > { %319 = vst [vmem:[%s5224_s17 + $0xa0] sm:$0xff] %v318_v20  ;;  %v324_v23 = vld [vmem:[%s5219_s16 + $0x158] sm:$0xff]  ;;  %321 = vst [vmem:[%s5224_s17 + $0xa8] sm:$0xff] %v320_v21  ;;  %v326_v24 = vld [vmem:[%s5219_s16 + $0x180] sm:$0xff] }
  0x1b   : > { %323 = vst [vmem:[%s5224_s17 + $0xb0] sm:$0xff] %v322_v22  ;;  %325 = vst [vmem:[%s5224_s17 + $0xb8] sm:$0xff] %v324_v23  ;;  %v328_v25 = vld [vmem:[%s5219_s16 + $0x188] sm:$0xff]  ;;  %v330_v26 = vld [vmem:[%s5219_s16 + $0x190] sm:$0xff] }
  0x1c   : > { %327 = vst [vmem:[%s5224_s17 + $0xc0] sm:$0xff] %v326_v24  ;;  %329 = vst [vmem:[%s5224_s17 + $0xc8] sm:$0xff] %v328_v25  ;;  %v332_v27 = vld [vmem:[%s5219_s16 + $0x198] sm:$0xff]  ;;  %v334_v28 = vld [vmem:[%s5219_s16 + $0x1c0] sm:$0xff] }
  0x1d   : > { %331 = vst [vmem:[%s5224_s17 + $0xd0] sm:$0xff] %v330_v26  ;;  %v336_v29 = vld [vmem:[%s5219_s16 + $0x1c8] sm:$0xff]  ;;  %333 = vst [vmem:[%s5224_s17 + $0xd8] sm:$0xff] %v332_v27  ;;  %v338_v30 = vld [vmem:[%s5219_s16 + $0x1d0] sm:$0xff] }
  0x1e   : > { %335 = vst [vmem:[%s5224_s17 + $0xe0] sm:$0xff] %v334_v28  ;;  %337 = vst [vmem:[%s5224_s17 + $0xe8] sm:$0xff] %v336_v29  ;;  %v340_v31 = vld [vmem:[%s5219_s16 + $0x1d8] sm:$0xff]  ;;  %v342_v32 = vld [vmem:[%s5219_s16 + $0x200] sm:$0xff] }
  0x1f   : > { %339 = vst [vmem:[%s5224_s17 + $0xf0] sm:$0xff] %v338_v30  ;;  %341 = vst [vmem:[%s5224_s17 + $0xf8] sm:$0xff] %v340_v31  ;;  %v344_v33 = vld [vmem:[%s5219_s16 + $0x208] sm:$0xff]  ;;  %v346_v34 = vld [vmem:[%s5219_s16 + $0x210] sm:$0xff] }
  0x20   : > { %343 = vst [vmem:[%s5224_s17 + $0x100] sm:$0xff] %v342_v32  ;;  %v348_v35 = vld [vmem:[%s5219_s16 + $0x218] sm:$0xff]  ;;  %345 = vst [vmem:[%s5224_s17 + $0x108] sm:$0xff] %v344_v33  ;;  %v350_v36 = vld [vmem:[%s5219_s16 + $0x240] sm:$0xff] }
  0x21   : > { %347 = vst [vmem:[%s5224_s17 + $0x110] sm:$0xff] %v346_v34  ;;  %349 = vst [vmem:[%s5224_s17 + $0x118] sm:$0xff] %v348_v35  ;;  %v352_v37 = vld [vmem:[%s5219_s16 + $0x248] sm:$0xff]  ;;  %v354_v38 = vld [vmem:[%s5219_s16 + $0x250] sm:$0xff] }
  0x22   : > { %351 = vst [vmem:[%s5224_s17 + $0x120] sm:$0xff] %v350_v36  ;;  %353 = vst [vmem:[%s5224_s17 + $0x128] sm:$0xff] %v352_v37  ;;  %v356_v39 = vld [vmem:[%s5219_s16 + $0x258] sm:$0xff]  ;;  %v358_v40 = vld [vmem:[%s5219_s16 + $0x280] sm:$0xff] }
  0x23   : > { %355 = vst [vmem:[%s5224_s17 + $0x130] sm:$0xff] %v354_v38  ;;  %v360_v41 = vld [vmem:[%s5219_s16 + $0x288] sm:$0xff]  ;;  %357 = vst [vmem:[%s5224_s17 + $0x138] sm:$0xff] %v356_v39  ;;  %v362_v42 = vld [vmem:[%s5219_s16 + $0x290] sm:$0xff] }
  0x24   : > { %359 = vst [vmem:[%s5224_s17 + $0x140] sm:$0xff] %v358_v40  ;;  %361 = vst [vmem:[%s5224_s17 + $0x148] sm:$0xff] %v360_v41  ;;  %v364_v43 = vld [vmem:[%s5219_s16 + $0x298] sm:$0xff]  ;;  %v366_v44 = vld [vmem:[%s5219_s16 + $0x2c0] sm:$0xff] }
  0x25   : > { %363 = vst [vmem:[%s5224_s17 + $0x150] sm:$0xff] %v362_v42  ;;  %365 = vst [vmem:[%s5224_s17 + $0x158] sm:$0xff] %v364_v43  ;;  %v368_v45 = vld [vmem:[%s5219_s16 + $0x2c8] sm:$0xff]  ;;  %v370_v46 = vld [vmem:[%s5219_s16 + $0x2d0] sm:$0xff] }
  0x26   : > { %367 = vst [vmem:[%s5224_s17 + $0x160] sm:$0xff] %v366_v44  ;;  %v372_v47 = vld [vmem:[%s5219_s16 + $0x2d8] sm:$0xff]  ;;  %369 = vst [vmem:[%s5224_s17 + $0x168] sm:$0xff] %v368_v45  ;;  %v374_v48 = vld [vmem:[%s5219_s16 + $0x300] sm:$0xff] }
  0x27   : > { %371 = vst [vmem:[%s5224_s17 + $0x170] sm:$0xff] %v370_v46  ;;  %373 = vst [vmem:[%s5224_s17 + $0x178] sm:$0xff] %v372_v47  ;;  %v376_v49 = vld [vmem:[%s5219_s16 + $0x308] sm:$0xff]  ;;  %v378_v50 = vld [vmem:[%s5219_s16 + $0x310] sm:$0xff] }
  0x28   : > { %375 = vst [vmem:[%s5224_s17 + $0x180] sm:$0xff] %v374_v48  ;;  %377 = vst [vmem:[%s5224_s17 + $0x188] sm:$0xff] %v376_v49  ;;  %v380_v51 = vld [vmem:[%s5219_s16 + $0x318] sm:$0xff]  ;;  %v382_v52 = vld [vmem:[%s5219_s16 + $0x340] sm:$0xff] }
  0x29   : > { %379 = vst [vmem:[%s5224_s17 + $0x190] sm:$0xff] %v378_v50  ;;  %v384_v53 = vld [vmem:[%s5219_s16 + $0x348] sm:$0xff]  ;;  %381 = vst [vmem:[%s5224_s17 + $0x198] sm:$0xff] %v380_v51  ;;  %v386_v54 = vld [vmem:[%s5219_s16 + $0x350] sm:$0xff] }
  0x2a   : > { %383 = vst [vmem:[%s5224_s17 + $0x1a0] sm:$0xff] %v382_v52  ;;  %385 = vst [vmem:[%s5224_s17 + $0x1a8] sm:$0xff] %v384_v53  ;;  %v388_v55 = vld [vmem:[%s5219_s16 + $0x358] sm:$0xff]  ;;  %v390_v56 = vld [vmem:[%s5219_s16 + $0x380] sm:$0xff] }
  0x2b   : > { %387 = vst [vmem:[%s5224_s17 + $0x1b0] sm:$0xff] %v386_v54  ;;  %389 = vst [vmem:[%s5224_s17 + $0x1b8] sm:$0xff] %v388_v55  ;;  %v392_v57 = vld [vmem:[%s5219_s16 + $0x388] sm:$0xff]  ;;  %v394_v58 = vld [vmem:[%s5219_s16 + $0x390] sm:$0xff] }
  0x2c   : > { %391 = vst [vmem:[%s5224_s17 + $0x1c0] sm:$0xff] %v390_v56  ;;  %v396_v59 = vld [vmem:[%s5219_s16 + $0x398] sm:$0xff]  ;;  %393 = vst [vmem:[%s5224_s17 + $0x1c8] sm:$0xff] %v392_v57  ;;  %v398_v60 = vld [vmem:[%s5219_s16 + $0x3c0] sm:$0xff] }
  0x2d   : > { %395 = vst [vmem:[%s5224_s17 + $0x1d0] sm:$0xff] %v394_v58  ;;  %397 = vst [vmem:[%s5224_s17 + $0x1d8] sm:$0xff] %v396_v59  ;;  %v400_v61 = vld [vmem:[%s5219_s16 + $0x3c8] sm:$0xff]  ;;  %v402_v62 = vld [vmem:[%s5219_s16 + $0x3d0] sm:$0xff] }
  0x2e   : > { %399 = vst [vmem:[%s5224_s17 + $0x1e0] sm:$0xff] %v398_v60  ;;  %401 = vst [vmem:[%s5224_s17 + $0x1e8] sm:$0xff] %v400_v61  ;;  %v404_v63 = vld [vmem:[%s5219_s16 + $0x3d8] sm:$0xff] }
  0x2f   : > { %403 = vst [vmem:[%s5224_s17 + $0x1f0] sm:$0xff] %v402_v62  ;;  %405 = vst [vmem:[%s5224_s17 + $0x1f8] sm:$0xff] %v404_v63 }
  0x30 PF: > { %411 = sbr.rel (!%p5201_p3) target bundleno = 84 (0x54), region = 59  ;;  %s413_s18 = sand.u32 (%p5201_p3), 1, %s5116_s25  }
  0x31   : > { %s4551_s19 = sshll.u32 (%p5201_p3), %s5124_s27, 10  ;;  %s4090_s20 = sshll.u32 (%p5201_p3), %s413_s18, 9 }
  0x32   : > { %s5358_s23 = scalar_lea.vmem (%p5201_p3), %s6946_s1, %s4551_s19  ;;  %s5363_s30 = scalar_lea.vmem (%p5201_p3), [#allocation3], %s4090_s20 }
  0x33   : > { %v4093_v0 = vld [vmem:[%s5358_s23 + $0x20] sm:$0xff] (%p5201_p3)  ;;  %v4094_v1 = vld [vmem:[%s5358_s23 + $0x28] sm:$0xff] (%p5201_p3)  ;;  %v4095_v2 = vld [vmem:[%s5358_s23 + $0x30] sm:$0xff] (%p5201_p3) }
  0x34   : > { %436 = vst [vmem:[%s5363_s30] sm:$0xff] (%p5201_p3), %v4093_v0  ;;  %438 = vst [vmem:[%s5363_s30 + $0x8] sm:$0xff] (%p5201_p3), %v4094_v1  ;;  %v4096_v3 = vld [vmem:[%s5358_s23 + $0x38] sm:$0xff] (%p5201_p3)  ;;  %v4097_v4 = vld [vmem:[%s5358_s23 + $0x60] sm:$0xff] (%p5201_p3) }
  0x35   : > { %440 = vst [vmem:[%s5363_s30 + $0x10] sm:$0xff] %v4095_v2  ;;  %v4098_v5 = vld [vmem:[%s5358_s23 + $0x68] sm:$0xff]  ;;  %442 = vst [vmem:[%s5363_s30 + $0x18] sm:$0xff] %v4096_v3  ;;  %v4099_v6 = vld [vmem:[%s5358_s23 + $0x70] sm:$0xff] }
  0x36   : > { %444 = vst [vmem:[%s5363_s30 + $0x20] sm:$0xff] %v4097_v4  ;;  %446 = vst [vmem:[%s5363_s30 + $0x28] sm:$0xff] %v4098_v5  ;;  %v4100_v7 = vld [vmem:[%s5358_s23 + $0x78] sm:$0xff]  ;;  %v4101_v8 = vld [vmem:[%s5358_s23 + $0xa0] sm:$0xff] }
  0x37   : > { %448 = vst [vmem:[%s5363_s30 + $0x30] sm:$0xff] %v4099_v6  ;;  %450 = vst [vmem:[%s5363_s30 + $0x38] sm:$0xff] %v4100_v7  ;;  %v4102_v9 = vld [vmem:[%s5358_s23 + $0xa8] sm:$0xff]  ;;  %v4103_v10 = vld [vmem:[%s5358_s23 + $0xb0] sm:$0xff] }
  0x38   : > { %452 = vst [vmem:[%s5363_s30 + $0x40] sm:$0xff] %v4101_v8  ;;  %v4104_v11 = vld [vmem:[%s5358_s23 + $0xb8] sm:$0xff]  ;;  %454 = vst [vmem:[%s5363_s30 + $0x48] sm:$0xff] %v4102_v9  ;;  %v4105_v12 = vld [vmem:[%s5358_s23 + $0xe0] sm:$0xff] }
  0x39   : > { %456 = vst [vmem:[%s5363_s30 + $0x50] sm:$0xff] %v4103_v10  ;;  %458 = vst [vmem:[%s5363_s30 + $0x58] sm:$0xff] %v4104_v11  ;;  %v4106_v13 = vld [vmem:[%s5358_s23 + $0xe8] sm:$0xff]  ;;  %v4107_v14 = vld [vmem:[%s5358_s23 + $0xf0] sm:$0xff] }
  0x3a   : > { %460 = vst [vmem:[%s5363_s30 + $0x60] sm:$0xff] %v4105_v12  ;;  %462 = vst [vmem:[%s5363_s30 + $0x68] sm:$0xff] %v4106_v13  ;;  %v4108_v15 = vld [vmem:[%s5358_s23 + $0xf8] sm:$0xff]  ;;  %v4109_v16 = vld [vmem:[%s5358_s23 + $0x120] sm:$0xff] }
  0x3b   : > { %464 = vst [vmem:[%s5363_s30 + $0x70] sm:$0xff] %v4107_v14  ;;  %v4110_v17 = vld [vmem:[%s5358_s23 + $0x128] sm:$0xff]  ;;  %466 = vst [vmem:[%s5363_s30 + $0x78] sm:$0xff] %v4108_v15  ;;  %v4111_v18 = vld [vmem:[%s5358_s23 + $0x130] sm:$0xff] }
  0x3c   : > { %468 = vst [vmem:[%s5363_s30 + $0x80] sm:$0xff] %v4109_v16  ;;  %470 = vst [vmem:[%s5363_s30 + $0x88] sm:$0xff] %v4110_v17  ;;  %v4112_v19 = vld [vmem:[%s5358_s23 + $0x138] sm:$0xff]  ;;  %v4113_v20 = vld [vmem:[%s5358_s23 + $0x160] sm:$0xff] }
  0x3d   : > { %472 = vst [vmem:[%s5363_s30 + $0x90] sm:$0xff] %v4111_v18  ;;  %474 = vst [vmem:[%s5363_s30 + $0x98] sm:$0xff] %v4112_v19  ;;  %v4114_v21 = vld [vmem:[%s5358_s23 + $0x168] sm:$0xff]  ;;  %v4115_v22 = vld [vmem:[%s5358_s23 + $0x170] sm:$0xff] }
  0x3e   : > { %476 = vst [vmem:[%s5363_s30 + $0xa0] sm:$0xff] %v4113_v20  ;;  %v4116_v23 = vld [vmem:[%s5358_s23 + $0x178] sm:$0xff]  ;;  %478 = vst [vmem:[%s5363_s30 + $0xa8] sm:$0xff] %v4114_v21  ;;  %v4117_v24 = vld [vmem:[%s5358_s23 + $0x1a0] sm:$0xff] }
  0x3f   : > { %480 = vst [vmem:[%s5363_s30 + $0xb0] sm:$0xff] %v4115_v22  ;;  %482 = vst [vmem:[%s5363_s30 + $0xb8] sm:$0xff] %v4116_v23  ;;  %v4118_v25 = vld [vmem:[%s5358_s23 + $0x1a8] sm:$0xff]  ;;  %v4119_v26 = vld [vmem:[%s5358_s23 + $0x1b0] sm:$0xff] }
  0x40   : > { %484 = vst [vmem:[%s5363_s30 + $0xc0] sm:$0xff] %v4117_v24  ;;  %486 = vst [vmem:[%s5363_s30 + $0xc8] sm:$0xff] %v4118_v25  ;;  %v4120_v27 = vld [vmem:[%s5358_s23 + $0x1b8] sm:$0xff]  ;;  %v4121_v28 = vld [vmem:[%s5358_s23 + $0x1e0] sm:$0xff] }
  0x41   : > { %488 = vst [vmem:[%s5363_s30 + $0xd0] sm:$0xff] %v4119_v26  ;;  %v4122_v29 = vld [vmem:[%s5358_s23 + $0x1e8] sm:$0xff]  ;;  %490 = vst [vmem:[%s5363_s30 + $0xd8] sm:$0xff] %v4120_v27  ;;  %v4123_v30 = vld [vmem:[%s5358_s23 + $0x1f0] sm:$0xff] }
  0x42   : > { %492 = vst [vmem:[%s5363_s30 + $0xe0] sm:$0xff] %v4121_v28  ;;  %494 = vst [vmem:[%s5363_s30 + $0xe8] sm:$0xff] %v4122_v29  ;;  %v4124_v31 = vld [vmem:[%s5358_s23 + $0x1f8] sm:$0xff]  ;;  %v4125_v32 = vld [vmem:[%s5358_s23 + $0x220] sm:$0xff] }
  0x43   : > { %496 = vst [vmem:[%s5363_s30 + $0xf0] sm:$0xff] %v4123_v30  ;;  %498 = vst [vmem:[%s5363_s30 + $0xf8] sm:$0xff] %v4124_v31  ;;  %v4126_v33 = vld [vmem:[%s5358_s23 + $0x228] sm:$0xff]  ;;  %v4127_v34 = vld [vmem:[%s5358_s23 + $0x230] sm:$0xff] }
  0x44   : > { %500 = vst [vmem:[%s5363_s30 + $0x100] sm:$0xff] %v4125_v32  ;;  %v4128_v35 = vld [vmem:[%s5358_s23 + $0x238] sm:$0xff]  ;;  %502 = vst [vmem:[%s5363_s30 + $0x108] sm:$0xff] %v4126_v33  ;;  %v4129_v36 = vld [vmem:[%s5358_s23 + $0x260] sm:$0xff] }
  0x45   : > { %504 = vst [vmem:[%s5363_s30 + $0x110] sm:$0xff] %v4127_v34  ;;  %506 = vst [vmem:[%s5363_s30 + $0x118] sm:$0xff] %v4128_v35  ;;  %v4130_v37 = vld [vmem:[%s5358_s23 + $0x268] sm:$0xff]  ;;  %v4131_v38 = vld [vmem:[%s5358_s23 + $0x270] sm:$0xff] }
  0x46   : > { %508 = vst [vmem:[%s5363_s30 + $0x120] sm:$0xff] %v4129_v36  ;;  %510 = vst [vmem:[%s5363_s30 + $0x128] sm:$0xff] %v4130_v37  ;;  %v4132_v39 = vld [vmem:[%s5358_s23 + $0x278] sm:$0xff]  ;;  %v4133_v40 = vld [vmem:[%s5358_s23 + $0x2a0] sm:$0xff] }
  0x47   : > { %512 = vst [vmem:[%s5363_s30 + $0x130] sm:$0xff] %v4131_v38  ;;  %v4134_v41 = vld [vmem:[%s5358_s23 + $0x2a8] sm:$0xff]  ;;  %514 = vst [vmem:[%s5363_s30 + $0x138] sm:$0xff] %v4132_v39  ;;  %v4135_v42 = vld [vmem:[%s5358_s23 + $0x2b0] sm:$0xff] }
  0x48   : > { %516 = vst [vmem:[%s5363_s30 + $0x140] sm:$0xff] %v4133_v40  ;;  %518 = vst [vmem:[%s5363_s30 + $0x148] sm:$0xff] %v4134_v41  ;;  %v4136_v43 = vld [vmem:[%s5358_s23 + $0x2b8] sm:$0xff]  ;;  %v4137_v44 = vld [vmem:[%s5358_s23 + $0x2e0] sm:$0xff] }
  0x49   : > { %520 = vst [vmem:[%s5363_s30 + $0x150] sm:$0xff] %v4135_v42  ;;  %522 = vst [vmem:[%s5363_s30 + $0x158] sm:$0xff] %v4136_v43  ;;  %v4138_v45 = vld [vmem:[%s5358_s23 + $0x2e8] sm:$0xff]  ;;  %v4139_v46 = vld [vmem:[%s5358_s23 + $0x2f0] sm:$0xff] }
  0x4a   : > { %524 = vst [vmem:[%s5363_s30 + $0x160] sm:$0xff] %v4137_v44  ;;  %v4140_v47 = vld [vmem:[%s5358_s23 + $0x2f8] sm:$0xff]  ;;  %526 = vst [vmem:[%s5363_s30 + $0x168] sm:$0xff] %v4138_v45  ;;  %v4141_v48 = vld [vmem:[%s5358_s23 + $0x320] sm:$0xff] }
  0x4b   : > { %528 = vst [vmem:[%s5363_s30 + $0x170] sm:$0xff] %v4139_v46  ;;  %530 = vst [vmem:[%s5363_s30 + $0x178] sm:$0xff] %v4140_v47  ;;  %v4142_v49 = vld [vmem:[%s5358_s23 + $0x328] sm:$0xff]  ;;  %v4143_v50 = vld [vmem:[%s5358_s23 + $0x330] sm:$0xff] }
  0x4c   : > { %532 = vst [vmem:[%s5363_s30 + $0x180] sm:$0xff] %v4141_v48  ;;  %534 = vst [vmem:[%s5363_s30 + $0x188] sm:$0xff] %v4142_v49  ;;  %v4144_v51 = vld [vmem:[%s5358_s23 + $0x338] sm:$0xff]  ;;  %v4145_v52 = vld [vmem:[%s5358_s23 + $0x360] sm:$0xff] }
  0x4d   : > { %536 = vst [vmem:[%s5363_s30 + $0x190] sm:$0xff] %v4143_v50  ;;  %v4146_v53 = vld [vmem:[%s5358_s23 + $0x368] sm:$0xff]  ;;  %538 = vst [vmem:[%s5363_s30 + $0x198] sm:$0xff] %v4144_v51  ;;  %v4147_v54 = vld [vmem:[%s5358_s23 + $0x370] sm:$0xff] }
  0x4e   : > { %540 = vst [vmem:[%s5363_s30 + $0x1a0] sm:$0xff] %v4145_v52  ;;  %542 = vst [vmem:[%s5363_s30 + $0x1a8] sm:$0xff] %v4146_v53  ;;  %v4148_v55 = vld [vmem:[%s5358_s23 + $0x378] sm:$0xff]  ;;  %v4149_v56 = vld [vmem:[%s5358_s23 + $0x3a0] sm:$0xff] }
  0x4f   : > { %544 = vst [vmem:[%s5363_s30 + $0x1b0] sm:$0xff] %v4147_v54  ;;  %546 = vst [vmem:[%s5363_s30 + $0x1b8] sm:$0xff] %v4148_v55  ;;  %v4150_v57 = vld [vmem:[%s5358_s23 + $0x3a8] sm:$0xff]  ;;  %v4151_v58 = vld [vmem:[%s5358_s23 + $0x3b0] sm:$0xff] }
  0x50   : > { %548 = vst [vmem:[%s5363_s30 + $0x1c0] sm:$0xff] %v4149_v56  ;;  %v4152_v59 = vld [vmem:[%s5358_s23 + $0x3b8] sm:$0xff]  ;;  %550 = vst [vmem:[%s5363_s30 + $0x1c8] sm:$0xff] %v4150_v57  ;;  %v4153_v60 = vld [vmem:[%s5358_s23 + $0x3e0] sm:$0xff] }
  0x51   : > { %552 = vst [vmem:[%s5363_s30 + $0x1d0] sm:$0xff] %v4151_v58  ;;  %554 = vst [vmem:[%s5363_s30 + $0x1d8] sm:$0xff] %v4152_v59  ;;  %v4154_v61 = vld [vmem:[%s5358_s23 + $0x3e8] sm:$0xff]  ;;  %v4155_v62 = vld [vmem:[%s5358_s23 + $0x3f0] sm:$0xff] }
  0x52   : > { %556 = vst [vmem:[%s5363_s30 + $0x1e0] sm:$0xff] %v4153_v60  ;;  %558 = vst [vmem:[%s5363_s30 + $0x1e8] sm:$0xff] %v4154_v61  ;;  %v4156_v63 = vld [vmem:[%s5358_s23 + $0x3f8] sm:$0xff] }
  0x53   : > { %560 = vst [vmem:[%s5363_s30 + $0x1f0] sm:$0xff] %v4155_v62  ;;  %562 = vst [vmem:[%s5363_s30 + $0x1f8] sm:$0xff] %v4156_v63 }
  0x54 PF: > { %p4157_p6 = scmp.ge.s32.totalorder %s5128_s28, 1  ;;  %p567_p7 = scmp.lt.s32.totalorder %s5128_s28, 3 }
  0x56   : > { %p568_p8 = pnand %p4157_p6, %p567_p7 }
  0x58   : > { %571 = sbr.rel (%p568_p8) target bundleno = 1005 (0x3ed), region = 82 }
  0x5d   : > { %v4658_v0 = vld [vmem:[%s6947_s2 + $0x274] ss:$8 sps:$4 sm:$0xff]   ;;  %v4660_v1 = vld [vmem:[%s6947_s2 + $0x270] ss:$8 sps:$4 sm:$0xff]   ;;  %v4661_v2 = vld [vmem:[%s6947_s2 + $0x264] ss:$8 sps:$4 sm:$0xff]  }
  0x5e   : > { %4586 = vmatprep.subr.bf16.mxu1 %v4658_v0  ;;  %1550 = vmatprep.subr.bf16.mxu0 %v4658_v0  ;;  %v4663_v3 = vld [vmem:[%s6947_s2 + $0x260] ss:$8 sps:$4 sm:$0xff]   ;;  %v4664_v4 = vld [vmem:[%s6947_s2 + $0x254] ss:$8 sps:$4 sm:$0xff]   ;;  %v4666_v5 = vld [vmem:[%s6947_s2 + $0x250] ss:$8 sps:$4 sm:$0xff]  }
  0x5f   : > { %4602 = vmatpush1.bf16.msra.mxu1 %v4660_v1  ;;  %1551 = vmatpush1.bf16.msra.mxu0 %v4660_v1  ;;  %v4667_v6 = vld [vmem:[%s6947_s2 + $0x244] ss:$8 sps:$4 sm:$0xff]   ;;  %v4669_v7 = vld [vmem:[%s6947_s2 + $0x240] ss:$8 sps:$4 sm:$0xff]   ;;  %v4670_v8 = vld [vmem:[%s6947_s2 + $0x234] ss:$8 sps:$4 sm:$0xff]  }
  0x60   : > { %4587 = vmatprep.subr.bf16.mxu1 %v4661_v2  ;;  %1552 = vmatprep.subr.bf16.mxu0 %v4661_v2  ;;  %s574_s11 = sand.u32 1, %s5112_s24   ;;  %v4672_v9 = vld [vmem:[%s6947_s2 + $0x230] ss:$8 sps:$4 sm:$0xff]   ;;  %v4673_v10 = vld [vmem:[%s6947_s2 + $0x224] ss:$8 sps:$4 sm:$0xff]   ;;  %p633_p9 = scmp.lt.s32.totalorder %s5120_s26, 1 }
  0x61   : > { %s5526_s16 = sshll.u32 %s574_s11, 9  ;;  %v4675_v11 = vld [vmem:[%s6947_s2 + $0x220] ss:$8 sps:$4 sm:$0xff]   ;;  %v4676_v12 = vld [vmem:[%s6947_s2 + $0x214] ss:$8 sps:$4 sm:$0xff]  }
  0x62   : > { %s5535_s20 = scalar_lea.vmem [#allocation3], %s5526_s16  ;;  %v4678_v14 = vld [vmem:[%s6947_s2 + $0x210] ss:$8 sps:$4 sm:$0xff]   ;;  %v4679_v15 = vld [vmem:[%s6947_s2 + $0x204] ss:$8 sps:$4 sm:$0xff]   ;;  %s5702_s13 = scalar_lea.vmem [#allocation2], %s5526_s16 }
  0x63   : > { %4603 = vmatpush1.bf16.msra.mxu1 %v4663_v3  ;;  %1553 = vmatpush1.bf16.msra.mxu0 %v4663_v3  ;;  %v4708_v13 = vld [vmem:[%s5535_s20 + $0x104] ss:$16 sps:$4 sm:$0xff]   ;;  %v4681_v17 = vld [vmem:[%s6947_s2 + $0x200] ss:$8 sps:$4 sm:$0xff]   ;;  %v4684_v19 = vld [vmem:[%s6947_s2 + $0x2f0] ss:$8 sps:$4 sm:$0xff]  }
  0x64   : > { %4588 = vmatprep.subr.bf16.mxu1 %v4664_v4  ;;  %1554 = vmatprep.subr.bf16.mxu0 %v4664_v4  ;;  %v4714_v16 = vld [vmem:[%s5535_s20 + $0x4] ss:$16 sps:$4 sm:$0xff]   ;;  %v4687_v21 = vld [vmem:[%s6947_s2 + $0x2e0] ss:$8 sps:$4 sm:$0xff]   ;;  %v4690_v23 = vld [vmem:[%s6947_s2 + $0x2d0] ss:$8 sps:$4 sm:$0xff]  }
  0x65   : > { %1662 = vmatprep.mubr.bf16.mxu1 %v4708_v13  ;;  %v4682_v18 = vld [vmem:[%s6947_s2 + $0x2f4] ss:$8 sps:$4 sm:$0xff]   ;;  %1582 = vmatprep.mubr.bf16.mxu0 %v4714_v16  ;;  %v4685_v20 = vld [vmem:[%s6947_s2 + $0x2e4] ss:$8 sps:$4 sm:$0xff]   ;;  %v4693_v25 = vld [vmem:[%s6947_s2 + $0x2c0] ss:$8 sps:$4 sm:$0xff]  }
  0x66   : > { %v4688_v22 = vld [vmem:[%s6947_s2 + $0x2d4] ss:$8 sps:$4 sm:$0xff]   ;;  %v4691_v24 = vld [vmem:[%s6947_s2 + $0x2c4] ss:$8 sps:$4 sm:$0xff]   ;;  %v4696_v27 = vld [vmem:[%s6947_s2 + $0x2b0] ss:$8 sps:$4 sm:$0xff]  }
  0x67   : > { %4604 = vmatpush1.bf16.msra.mxu1 %v4666_v5  ;;  %1555 = vmatpush1.bf16.msra.mxu0 %v4666_v5  ;;  %v4694_v26 = vld [vmem:[%s6947_s2 + $0x2b4] ss:$8 sps:$4 sm:$0xff]   ;;  %v4697_v28 = vld [vmem:[%s6947_s2 + $0x2a4] ss:$8 sps:$4 sm:$0xff]   ;;  %v4699_v29 = vld [vmem:[%s6947_s2 + $0x2a0] ss:$8 sps:$4 sm:$0xff]  }
  0x68   : > { %4589 = vmatprep.subr.bf16.mxu1 %v4667_v6  ;;  %1556 = vmatprep.subr.bf16.mxu0 %v4667_v6  ;;  %v4700_v30 = vld [vmem:[%s6947_s2 + $0x294] ss:$8 sps:$4 sm:$0xff]   ;;  %v4702_v31 = vld [vmem:[%s6947_s2 + $0x290] ss:$8 sps:$4 sm:$0xff]   ;;  %v4703_v32 = vld [vmem:[%s6947_s2 + $0x284] ss:$8 sps:$4 sm:$0xff]  }
  0x69   : > { %v4705_v33 = vld [vmem:[%s6947_s2 + $0x280] ss:$8 sps:$4 sm:$0xff]   ;;  %v4711_v34 = vld [vmem:[%s6947_s2 + $0x374] ss:$8 sps:$4 sm:$0xff]   ;;  %v4709_v37 = vld [vmem:[%s6947_s2 + $0x370] ss:$8 sps:$4 sm:$0xff]  }
  0x6a   : > { %v4706_v35 = vld [vmem:[%s5535_s20 + $0x100] ss:$16 sps:$4 sm:$0xff]   ;;  %v4717_v36 = vld [vmem:[%s6947_s2 + $0x74] ss:$8 sps:$4 sm:$0xff]   ;;  %v4720_v40 = vld [vmem:[%s6947_s2 + $0x364] ss:$8 sps:$4 sm:$0xff]  }
  0x6b   : > { %4605 = vmatpush1.bf16.msra.mxu1 %v4669_v7  ;;  %1557 = vmatpush1.bf16.msra.mxu0 %v4669_v7  ;;  %v4712_v38 = vld [vmem:[%s5535_s20] ss:$16 sps:$4 sm:$0xff]   ;;  %v4723_v41 = vld [vmem:[%s6947_s2 + $0x64] ss:$8 sps:$4 sm:$0xff]   ;;  %v4729_v46 = vld [vmem:[%s6947_s2 + $0x354] ss:$8 sps:$4 sm:$0xff]  }
  0x6c   : > { %4590 = vmatprep.subr.bf16.mxu1 %v4670_v8  ;;  %1558 = vmatprep.subr.bf16.mxu0 %v4670_v8  ;;  %v4715_v39 = vld [vmem:[%s6947_s2 + $0x70] ss:$8 sps:$4 sm:$0xff]   ;;  %v4724_v42 = vld [vmem:[%s5535_s20 + $0x124] ss:$16 sps:$4 sm:$0xff]   ;;  %v4718_v44 = vld [vmem:[%s6947_s2 + $0x360] ss:$8 sps:$4 sm:$0xff]  }
  0x6d   : > { %v4730_v43 = vld [vmem:[%s5535_s20 + $0x24] ss:$16 sps:$4 sm:$0xff]   ;;  %v4721_v45 = vld [vmem:[%s6947_s2 + $0x60] ss:$8 sps:$4 sm:$0xff]   ;;  %v4727_v49 = vld [vmem:[%s6947_s2 + $0x350] ss:$8 sps:$4 sm:$0xff]  }
  0x6e   : > { %v4726_v47 = vld [vmem:[%s5535_s20 + $0x120] ss:$16 sps:$4 sm:$0xff]   ;;  %v4735_v48 = vld [vmem:[%s6947_s2 + $0x54] ss:$8 sps:$4 sm:$0xff]   ;;  %v4738_v52 = vld [vmem:[%s6947_s2 + $0x344] ss:$8 sps:$4 sm:$0xff]  }
  0x6f   : > { %4606 = vmatpush1.bf16.msra.mxu1 %v4672_v9  ;;  %1559 = vmatpush1.bf16.msra.mxu0 %v4672_v9  ;;  %v4732_v50 = vld [vmem:[%s5535_s20 + $0x20] ss:$16 sps:$4 sm:$0xff]   ;;  %v4741_v53 = vld [vmem:[%s6947_s2 + $0x44] ss:$8 sps:$4 sm:$0xff]   ;;  %v4747_v58 = vld [vmem:[%s6947_s2 + $0x334] ss:$8 sps:$4 sm:$0xff]  }
  0x70   : > { %4591 = vmatprep.subr.bf16.mxu1 %v4673_v10  ;;  %1560 = vmatprep.subr.bf16.mxu0 %v4673_v10  ;;  %v4733_v51 = vld [vmem:[%s6947_s2 + $0x50] ss:$8 sps:$4 sm:$0xff]   ;;  %v4742_v54 = vld [vmem:[%s5535_s20 + $0x144] ss:$16 sps:$4 sm:$0xff]   ;;  %v4736_v56 = vld [vmem:[%s6947_s2 + $0x340] ss:$8 sps:$4 sm:$0xff]  }
  0x71   : > { %v4748_v55 = vld [vmem:[%s5535_s20 + $0x44] ss:$16 sps:$4 sm:$0xff]   ;;  %v4739_v57 = vld [vmem:[%s6947_s2 + $0x40] ss:$8 sps:$4 sm:$0xff]   ;;  %v4745_v61 = vld [vmem:[%s6947_s2 + $0x330] ss:$8 sps:$4 sm:$0xff]  }
  0x72   : > { %v4744_v59 = vld [vmem:[%s5535_s20 + $0x140] ss:$16 sps:$4 sm:$0xff]   ;;  %v4753_v60 = vld [vmem:[%s6947_s2 + $0x34] ss:$8 sps:$4 sm:$0xff]   ;;  %v4756_v0 = vld [vmem:[%s6947_s2 + $0x324] ss:$8 sps:$4 sm:$0xff]  }
  0x73   : > { %4607 = vmatpush1.bf16.msra.mxu1 %v4675_v11  ;;  %1561 = vmatpush1.bf16.msra.mxu0 %v4675_v11  ;;  %v4750_v62 = vld [vmem:[%s5535_s20 + $0x40] ss:$16 sps:$4 sm:$0xff]   ;;  %v4759_v1 = vld [vmem:[%s6947_s2 + $0x24] ss:$8 sps:$4 sm:$0xff]   ;;  %v4765_v6 = vld [vmem:[%s6947_s2 + $0x314] ss:$8 sps:$4 sm:$0xff]  }
  0x74   : > { %4592 = vmatprep.subr.bf16.mxu1 %v4676_v12  ;;  %1562 = vmatprep.subr.bf16.mxu0 %v4676_v12  ;;  %v4751_v63 = vld [vmem:[%s6947_s2 + $0x30] ss:$8 sps:$4 sm:$0xff]   ;;  %v4760_v2 = vld [vmem:[%s5535_s20 + $0x164] ss:$16 sps:$4 sm:$0xff]   ;;  %v4754_v4 = vld [vmem:[%s6947_s2 + $0x320] ss:$8 sps:$4 sm:$0xff]  }
  0x75   : > { %v4766_v3 = vld [vmem:[%s5535_s20 + $0x64] ss:$16 sps:$4 sm:$0xff]   ;;  %v4757_v5 = vld [vmem:[%s6947_s2 + $0x20] ss:$8 sps:$4 sm:$0xff]   ;;  %v4763_v9 = vld [vmem:[%s6947_s2 + $0x310] ss:$8 sps:$4 sm:$0xff]  }
  0x76   : > { %v4762_v7 = vld [vmem:[%s5535_s20 + $0x160] ss:$16 sps:$4 sm:$0xff]   ;;  %v4771_v8 = vld [vmem:[%s6947_s2 + $0x14] ss:$8 sps:$4 sm:$0xff]   ;;  %v4774_v12 = vld [vmem:[%s6947_s2 + $0x304] ss:$8 sps:$4 sm:$0xff]  }
  0x77   : > { %4608 = vmatpush1.bf16.msra.mxu1 %v4678_v14  ;;  %1563 = vmatpush1.bf16.msra.mxu0 %v4678_v14  ;;  %v4768_v10 = vld [vmem:[%s5535_s20 + $0x60] ss:$16 sps:$4 sm:$0xff]   ;;  %v4777_v13 = vld [vmem:[%s6947_s2 + $0x4] ss:$8 sps:$4 sm:$0xff]   ;;  %s7153_s26 = smov (!%p633_p9, %s5120_s26), 1 }
  0x78   : > { %4593 = vmatprep.subr.bf16.mxu1 %v4679_v15  ;;  %1564 = vmatprep.subr.bf16.mxu0 %v4679_v15  ;;  %v4769_v11 = vld [vmem:[%s6947_s2 + $0x10] ss:$8 sps:$4 sm:$0xff]   ;;  %v4778_v14 = vld [vmem:[%s5535_s20 + $0x184] ss:$16 sps:$4 sm:$0xff]   ;;  %v4772_v16 = vld [vmem:[%s6947_s2 + $0x300] ss:$8 sps:$4 sm:$0xff]  }
  0x79   : > { %v4784_v15 = vld [vmem:[%s5535_s20 + $0x84] ss:$16 sps:$4 sm:$0xff]   ;;  %s4552_s12 = sshll.u32 %s7153_s26, 8  ;;  %s4553_s19 = sshll.u32 %s7153_s26, 9 }
  0x7a   : > { %s6494_s17 = scalar_lea.vmem %s6951_s6, %s4552_s12  ;;  %s6863_s21 = scalar_lea.vmem %s6952_s7, %s4553_s19 }
  0x7b   : > { %4609 = vmatpush1.bf16.msra.mxu1 %v4681_v17  ;;  %1565 = vmatpush1.bf16.msra.mxu0 %v4681_v17  ;;  %v4775_v17 = vld [vmem:[%s6947_s2] ss:$8 sps:$4 sm:$0xff]  }
  0x7c   : > { %4594 = vmatprep.subr.bf16.mxu1 %v4682_v18  ;;  %1566 = vmatprep.subr.bf16.mxu0 %v4682_v18  ;;  %v4783_v18 = vld [vmem:[%s6947_s2 + $0x3f4] ss:$8 sps:$4 sm:$0xff]  }
  0x7f   : > { %4610 = vmatpush2.bf16.msra.mxu1 %v4684_v19  ;;  %1567 = vmatpush2.bf16.msra.mxu0 %v4684_v19  ;;  %v4780_v19 = vld [vmem:[%s5535_s20 + $0x180] ss:$16 sps:$4 sm:$0xff]  }
  0x80   : > { %4595 = vmatprep.subr.bf16.mxu1 %v4685_v20  ;;  %1568 = vmatprep.subr.bf16.mxu0 %v4685_v20  ;;  %v4789_v20 = vld [vmem:[%s6947_s2 + $0xf4] ss:$8 sps:$4 sm:$0xff]  }
  0x83   : > { %4611 = vmatpush2.bf16.msra.mxu1 %v4687_v21  ;;  %1569 = vmatpush2.bf16.msra.mxu0 %v4687_v21  ;;  %v4781_v21 = vld [vmem:[%s6947_s2 + $0x3f0] ss:$8 sps:$4 sm:$0xff]  }
  0x84   : > { %4596 = vmatprep.subr.bf16.mxu1 %v4688_v22  ;;  %1570 = vmatprep.subr.bf16.mxu0 %v4688_v22  ;;  %v4786_v22 = vld [vmem:[%s5535_s20 + $0x80] ss:$16 sps:$4 sm:$0xff]  }
  0x87   : > { %4612 = vmatpush2.bf16.msra.mxu1 %v4690_v23  ;;  %1571 = vmatpush2.bf16.msra.mxu0 %v4690_v23  ;;  %v4787_v23 = vld [vmem:[%s6947_s2 + $0xf0] ss:$8 sps:$4 sm:$0xff]  }
  0x88   : > { %4597 = vmatprep.subr.bf16.mxu1 %v4691_v24  ;;  %1572 = vmatprep.subr.bf16.mxu0 %v4691_v24  ;;  %v4792_v24 = vld [vmem:[%s6947_s2 + $0x3e4] ss:$8 sps:$4 sm:$0xff]  }
  0x8b   : > { %4613 = vmatpush2.bf16.msra.mxu1 %v4693_v25  ;;  %1573 = vmatpush2.bf16.msra.mxu0 %v4693_v25  ;;  %v4795_v25 = vld [vmem:[%s6947_s2 + $0xe4] ss:$8 sps:$4 sm:$0xff]  }
  0x8c   : > { %4598 = vmatprep.subr.bf16.mxu1 %v4694_v26  ;;  %1574 = vmatprep.subr.bf16.mxu0 %v4694_v26  ;;  %v4796_v26 = vld [vmem:[%s5535_s20 + $0x1a4] ss:$16 sps:$4 sm:$0xff]  }
  0x8f   : > { %4614 = vmatpush2.bf16.msra.mxu1 %v4696_v27  ;;  %1575 = vmatpush2.bf16.msra.mxu0 %v4696_v27  ;;  %v4802_v27 = vld [vmem:[%s5535_s20 + $0xa4] ss:$16 sps:$4 sm:$0xff]  }
  0x90   : > { %4599 = vmatprep.subr.bf16.mxu1 %v4697_v28  ;;  %1576 = vmatprep.subr.bf16.mxu0 %v4697_v28  ;;  %v4790_v28 = vld [vmem:[%s6947_s2 + $0x3e0] ss:$8 sps:$4 sm:$0xff]  }
  0x93   : > { %4615 = vmatpush2.bf16.msra.mxu1 %v4699_v29  ;;  %1577 = vmatpush2.bf16.msra.mxu0 %v4699_v29  ;;  %v4793_v29 = vld [vmem:[%s6947_s2 + $0xe0] ss:$8 sps:$4 sm:$0xff]  }
  0x94   : > { %4600 = vmatprep.subr.bf16.mxu1 %v4700_v30  ;;  %1578 = vmatprep.subr.bf16.mxu0 %v4700_v30  ;;  %v4801_v30 = vld [vmem:[%s6947_s2 + $0x3d4] ss:$8 sps:$4 sm:$0xff]  }
  0x97   : > { %4616 = vmatpush2.bf16.msra.mxu1 %v4702_v31  ;;  %1579 = vmatpush2.bf16.msra.mxu0 %v4702_v31  ;;  %v4798_v31 = vld [vmem:[%s5535_s20 + $0x1a0] ss:$16 sps:$4 sm:$0xff]  }
  0x98   : > { %4601 = vmatprep.subr.bf16.mxu1 %v4703_v32  ;;  %1580 = vmatprep.subr.bf16.mxu0 %v4703_v32  ;;  %v4807_v32 = vld [vmem:[%s6947_s2 + $0xd4] ss:$8 sps:$4 sm:$0xff]  }
  0x9b   : > { %4617 = vmatpush2.bf16.msra.mxu1 %v4705_v33  ;;  %1581 = vmatpush2.bf16.msra.mxu0 %v4705_v33  ;;  %v4799_v33 = vld [vmem:[%s6947_s2 + $0x3d0] ss:$8 sps:$4 sm:$0xff]  }
  0x9c   : > { %1743 = vmatprep.subr.bf16.mxu1 %v4711_v34  ;;  %2576 = vmatprep.subr.bf16.mxu0 %v4717_v36  ;;  %v4804_v34 = vld [vmem:[%s5535_s20 + $0xa0] ss:$16 sps:$4 sm:$0xff]   ;;  %v4810_v36 = vld [vmem:[%s6947_s2 + $0x3c4] ss:$8 sps:$4 sm:$0xff]  }
  0x9e   : > { %1663 = vmatmul.mubr.bf16.vlgmr.msra.gmra.mxu1 %v4706_v35  ;;  %1583 = vmatmul.mubr.bf16.vlgmr.msra.gmra.mxu0 %v4712_v38  ;;  %v4805_v35 = vld [vmem:[%s6947_s2 + $0xd0] ss:$8 sps:$4 sm:$0xff]   ;;  %v4814_v38 = vld [vmem:[%s5535_s20 + $0x1c4] ss:$16 sps:$4 sm:$0xff]  }
  0x9f   : > { %1744 = vmatpush1.bf16.msra.mxu1 %v4709_v37  ;;  %2577 = vmatpush1.bf16.msra.mxu0 %v4715_v39  ;;  %v4813_v37 = vld [vmem:[%s6947_s2 + $0xc4] ss:$8 sps:$4 sm:$0xff]  }
  0xa0   : > { %1745 = vmatprep.subr.bf16.mxu1 %v4720_v40  ;;  %2578 = vmatprep.subr.bf16.mxu0 %v4723_v41  ;;  %v4820_v39 = vld [vmem:[%s5535_s20 + $0xc4] ss:$16 sps:$4 sm:$0xff]   ;;  %v4808_v40 = vld [vmem:[%s6947_s2 + $0x3c0] ss:$8 sps:$4 sm:$0xff]  }
  0xa1   : > { %1672 = vmatprep.mubr.bf16.mxu1 %v4724_v42  ;;  %1592 = vmatprep.mubr.bf16.mxu0 %v4730_v43  ;;  %v4811_v41 = vld [vmem:[%s6947_s2 + $0xc0] ss:$8 sps:$4 sm:$0xff]   ;;  %v4819_v42 = vld [vmem:[%s6947_s2 + $0x3b4] ss:$8 sps:$4 sm:$0xff]  }
  0xa2   : > { %v4816_v43 = vld [vmem:[%s5535_s20 + $0x1c0] ss:$16 sps:$4 sm:$0xff]  }
  0xa3   : > { %1746 = vmatpush1.bf16.msra.mxu1 %v4718_v44  ;;  %2579 = vmatpush1.bf16.msra.mxu0 %v4721_v45  ;;  %v4825_v44 = vld [vmem:[%s6947_s2 + $0xb4] ss:$8 sps:$4 sm:$0xff]   ;;  %v4817_v45 = vld [vmem:[%s6947_s2 + $0x3b0] ss:$8 sps:$4 sm:$0xff]  }
  0xa4   : > { %1747 = vmatprep.subr.bf16.mxu1 %v4729_v46  ;;  %2580 = vmatprep.subr.bf16.mxu0 %v4735_v48  ;;  %v4822_v46 = vld [vmem:[%s5535_s20 + $0xc0] ss:$16 sps:$4 sm:$0xff]   ;;  %v4828_v48 = vld [vmem:[%s6947_s2 + $0x3a4] ss:$8 sps:$4 sm:$0xff]  }
  0xa6   : > { %1673 = vmatmul.mubr.bf16.gmra.mxu1 %v4726_v47  ;;  %1593 = vmatmul.mubr.bf16.gmra.mxu0 %v4732_v50  ;;  %v4823_v47 = vld [vmem:[%s6947_s2 + $0xb0] ss:$8 sps:$4 sm:$0xff]   ;;  %v4832_v50 = vld [vmem:[%s5535_s20 + $0x1e4] ss:$16 sps:$4 sm:$0xff]  }
  0xa7   : > { %1748 = vmatpush1.bf16.msra.mxu1 %v4727_v49  ;;  %2581 = vmatpush1.bf16.msra.mxu0 %v4733_v51  ;;  %v4831_v49 = vld [vmem:[%s6947_s2 + $0xa4] ss:$8 sps:$4 sm:$0xff]  }
  0xa8   : > { %1749 = vmatprep.subr.bf16.mxu1 %v4738_v52  ;;  %2582 = vmatprep.subr.bf16.mxu0 %v4741_v53  ;;  %v4838_v51 = vld [vmem:[%s5535_s20 + $0xe4] ss:$16 sps:$4 sm:$0xff]   ;;  %v4826_v52 = vld [vmem:[%s6947_s2 + $0x3a0] ss:$8 sps:$4 sm:$0xff]  }
  0xa9   : > { %1682 = vmatprep.mubr.bf16.mxu1 %v4742_v54  ;;  %1602 = vmatprep.mubr.bf16.mxu0 %v4748_v55  ;;  %v4829_v53 = vld [vmem:[%s6947_s2 + $0xa0] ss:$8 sps:$4 sm:$0xff]   ;;  %v4837_v54 = vld [vmem:[%s6947_s2 + $0x394] ss:$8 sps:$4 sm:$0xff]  }
  0xaa   : > { %v4834_v55 = vld [vmem:[%s5535_s20 + $0x1e0] ss:$16 sps:$4 sm:$0xff]  }
  0xab   : > { %1750 = vmatpush1.bf16.msra.mxu1 %v4736_v56  ;;  %2583 = vmatpush1.bf16.msra.mxu0 %v4739_v57  ;;  %v4843_v56 = vld [vmem:[%s6947_s2 + $0x94] ss:$8 sps:$4 sm:$0xff]   ;;  %v4835_v57 = vld [vmem:[%s6947_s2 + $0x390] ss:$8 sps:$4 sm:$0xff]  }
  0xac   : > { %1751 = vmatprep.subr.bf16.mxu1 %v4747_v58  ;;  %2584 = vmatprep.subr.bf16.mxu0 %v4753_v60  ;;  %v4840_v58 = vld [vmem:[%s5535_s20 + $0xe0] ss:$16 sps:$4 sm:$0xff]   ;;  %v4846_v60 = vld [vmem:[%s6947_s2 + $0x384] ss:$8 sps:$4 sm:$0xff]  }
  0xae   : > { %1683 = vmatmul.mubr.bf16.gmra.mxu1 %v4744_v59  ;;  %1603 = vmatmul.mubr.bf16.gmra.mxu0 %v4750_v62  ;;  %v4841_v59 = vld [vmem:[%s6947_s2 + $0x90] ss:$8 sps:$4 sm:$0xff]   ;;  %v4852_v62 = vld [vmem:[%s5535_s20 + $0xc] ss:$16 sps:$4 sm:$0xff]  }
  0xaf   : > { %1752 = vmatpush1.bf16.msra.mxu1 %v4745_v61  ;;  %2585 = vmatpush1.bf16.msra.mxu0 %v4751_v63  ;;  %v4849_v61 = vld [vmem:[%s6947_s2 + $0x84] ss:$8 sps:$4 sm:$0xff]  }
  0xb0   : > { %1753 = vmatprep.subr.bf16.mxu1 %v4756_v0  ;;  %2586 = vmatprep.subr.bf16.mxu0 %v4759_v1  ;;  %v4858_v63 = vld [vmem:[%s5702_s13 + $0x4] ss:$16 sps:$4 sm:$0xff]   ;;  %v4844_v0 = vld [vmem:[%s6947_s2 + $0x380] ss:$8 sps:$4 sm:$0xff]  }
  0xb1   : > { %1692 = vmatprep.mubr.bf16.mxu1 %v4760_v2  ;;  %1612 = vmatprep.mubr.bf16.mxu0 %v4766_v3  ;;  %v4847_v1 = vld [vmem:[%s6947_s2 + $0x80] ss:$8 sps:$4 sm:$0xff]   ;;  %v4855_v2 = vld [vmem:[%s6947_s2 + $0x174] ss:$8 sps:$4 sm:$0xff]  }
  0xb2   : > { %v4850_v3 = vld [vmem:[%s5535_s20 + $0x8] ss:$16 sps:$4 sm:$0xff]  }
  0xb3   : > { %1754 = vmatpush1.bf16.msra.mxu1 %v4754_v4  ;;  %2587 = vmatpush1.bf16.msra.mxu0 %v4757_v5  ;;  %v4853_v4 = vld [vmem:[%s6947_s2 + $0x170] ss:$8 sps:$4 sm:$0xff]  }
  0xb4   : > { %1755 = vmatprep.subr.bf16.mxu1 %v4765_v6  ;;  %2588 = vmatprep.subr.bf16.mxu0 %v4771_v8  ;;  %v4856_v5 = vld [vmem:[%s5702_s13] ss:$16 sps:$4 sm:$0xff]   ;;  %v4859_v6 = vld [vmem:[%s5535_s20 + $0x2c] ss:$16 sps:$4 sm:$0xff]   ;;  %v4865_v8 = vld [vmem:[%s5702_s13 + $0x24] ss:$16 sps:$4 sm:$0xff]  }
  0xb6   : > { %1693 = vmatmul.mubr.bf16.gmra.mxu1 %v4762_v7  ;;  %1613 = vmatmul.mubr.bf16.gmra.mxu0 %v4768_v10  ;;  %v4864_v7 = vld [vmem:[%s6947_s2 + $0x164] ss:$8 sps:$4 sm:$0xff]   ;;  %v4873_v10 = vld [vmem:[%s6947_s2 + $0x154] ss:$8 sps:$4 sm:$0xff]  }
  0xb7   : > { %1756 = vmatpush1.bf16.msra.mxu1 %v4763_v9  ;;  %2589 = vmatpush1.bf16.msra.mxu0 %v4769_v11  ;;  %v4862_v9 = vld [vmem:[%s6947_s2 + $0x160] ss:$8 sps:$4 sm:$0xff]  }
  0xb8   : > { %1757 = vmatprep.subr.bf16.mxu1 %v4774_v12  ;;  %2590 = vmatprep.subr.bf16.mxu0 %v4777_v13  ;;  %v4861_v11 = vld [vmem:[%s5535_s20 + $0x28] ss:$16 sps:$4 sm:$0xff]   ;;  %v4867_v12 = vld [vmem:[%s5702_s13 + $0x20] ss:$16 sps:$4 sm:$0xff]   ;;  %v4868_v13 = vld [vmem:[%s5535_s20 + $0x4c] ss:$16 sps:$4 sm:$0xff]  }
  0xb9   : > { %1702 = vmatprep.mubr.bf16.mxu1 %v4778_v14  ;;  %1622 = vmatprep.mubr.bf16.mxu0 %v4784_v15  ;;  %v4874_v14 = vld [vmem:[%s5702_s13 + $0x44] ss:$16 sps:$4 sm:$0xff]   ;;  %v4871_v15 = vld [vmem:[%s6947_s2 + $0x150] ss:$8 sps:$4 sm:$0xff]  }
  0xbb   : > { %1758 = vmatpush1.bf16.msra.mxu1 %v4772_v16  ;;  %2591 = vmatpush1.bf16.msra.mxu0 %v4775_v17  ;;  %v4882_v16 = vld [vmem:[%s6947_s2 + $0x144] ss:$8 sps:$4 sm:$0xff]   ;;  %v4880_v17 = vld [vmem:[%s6947_s2 + $0x140] ss:$8 sps:$4 sm:$0xff]  }
  0xbc   : > { %1759 = vmatprep.subr.bf16.mxu1 %v4783_v18  ;;  %2592 = vmatprep.subr.bf16.mxu0 %v4789_v20  ;;  %v4891_v18 = vld [vmem:[%s6947_s2 + $0x134] ss:$8 sps:$4 sm:$0xff]   ;;  %v4876_v20 = vld [vmem:[%s5702_s13 + $0x40] ss:$16 sps:$4 sm:$0xff]  }
  0xbe   : > { %1703 = vmatmul.mubr.bf16.gmra.mxu1 %v4780_v19  ;;  %1623 = vmatmul.mubr.bf16.gmra.mxu0 %v4786_v22  ;;  %v4870_v19 = vld [vmem:[%s5535_s20 + $0x48] ss:$16 sps:$4 sm:$0xff]   ;;  %v4883_v22 = vld [vmem:[%s5702_s13 + $0x64] ss:$16 sps:$4 sm:$0xff]  }
  0xbf   : > { %1760 = vmatpush2.bf16.msra.mxu1 %v4781_v21  ;;  %2593 = vmatpush2.bf16.msra.mxu0 %v4787_v23  ;;  %v4877_v21 = vld [vmem:[%s5535_s20 + $0x6c] ss:$16 sps:$4 sm:$0xff]   ;;  %v4889_v23 = vld [vmem:[%s6947_s2 + $0x130] ss:$8 sps:$4 sm:$0xff]  }
  0xc0   : > { %1761 = vmatprep.subr.bf16.mxu1 %v4792_v24  ;;  %2594 = vmatprep.subr.bf16.mxu0 %v4795_v25  ;;  %v4900_v24 = vld [vmem:[%s6947_s2 + $0x124] ss:$8 sps:$4 sm:$0xff]   ;;  %v4898_v25 = vld [vmem:[%s6947_s2 + $0x120] ss:$8 sps:$4 sm:$0xff]  }
  0xc1   : > { %1712 = vmatprep.mubr.bf16.mxu1 %v4796_v26  ;;  %1632 = vmatprep.mubr.bf16.mxu0 %v4802_v27  ;;  %v4909_v26 = vld [vmem:[%s6947_s2 + $0x114] ss:$8 sps:$4 sm:$0xff]   ;;  %v4879_v27 = vld [vmem:[%s5535_s20 + $0x68] ss:$16 sps:$4 sm:$0xff]  }
  0xc3   : > { %1762 = vmatpush2.bf16.msra.mxu1 %v4790_v28  ;;  %2595 = vmatpush2.bf16.msra.mxu0 %v4793_v29  ;;  %v4885_v28 = vld [vmem:[%s5702_s13 + $0x60] ss:$16 sps:$4 sm:$0xff]   ;;  %v4886_v29 = vld [vmem:[%s5535_s20 + $0x8c] ss:$16 sps:$4 sm:$0xff]  }
  0xc4   : > { %1763 = vmatprep.subr.bf16.mxu1 %v4801_v30  ;;  %2596 = vmatprep.subr.bf16.mxu0 %v4807_v32  ;;  %v4892_v30 = vld [vmem:[%s5702_s13 + $0x84] ss:$16 sps:$4 sm:$0xff]  }
  0xc5   : > { %v4918_v32 = vld [vmem:[%s6947_s2 + $0x104] ss:$8 sps:$4 sm:$0xff]  }
  0xc6   : > { %1713 = vmatmul.mubr.bf16.gmra.mxu1 %v4798_v31  ;;  %1633 = vmatmul.mubr.bf16.gmra.mxu0 %v4804_v34  ;;  %v4907_v31 = vld [vmem:[%s6947_s2 + $0x110] ss:$8 sps:$4 sm:$0xff]   ;;  %v4927_v34 = vld [vmem:[%s6947_s2 + $0x1f4] ss:$8 sps:$4 sm:$0xff]  }
  0xc7   : > { %1764 = vmatpush2.bf16.msra.mxu1 %v4799_v33  ;;  %2597 = vmatpush2.bf16.msra.mxu0 %v4805_v35  ;;  %v4916_v33 = vld [vmem:[%s6947_s2 + $0x100] ss:$8 sps:$4 sm:$0xff]  }
  0xc8   : > { %1765 = vmatprep.subr.bf16.mxu1 %v4810_v36  ;;  %2598 = vmatprep.subr.bf16.mxu0 %v4813_v37  ;;  %v4888_v35 = vld [vmem:[%s5535_s20 + $0x88] ss:$16 sps:$4 sm:$0xff]   ;;  %v4894_v36 = vld [vmem:[%s5702_s13 + $0x80] ss:$16 sps:$4 sm:$0xff]   ;;  %v4895_v37 = vld [vmem:[%s5535_s20 + $0xac] ss:$16 sps:$4 sm:$0xff]  }
  0xc9   : > { %1722 = vmatprep.mubr.bf16.mxu1 %v4814_v38  ;;  %1642 = vmatprep.mubr.bf16.mxu0 %v4820_v39  ;;  %v4901_v38 = vld [vmem:[%s5702_s13 + $0xa4] ss:$16 sps:$4 sm:$0xff]   ;;  %v4925_v39 = vld [vmem:[%s6947_s2 + $0x1f0] ss:$8 sps:$4 sm:$0xff]  }
  0xcb   : > { %1766 = vmatpush2.bf16.msra.mxu1 %v4808_v40  ;;  %2599 = vmatpush2.bf16.msra.mxu0 %v4811_v41  ;;  %v4936_v40 = vld [vmem:[%s6947_s2 + $0x1e4] ss:$8 sps:$4 sm:$0xff]   ;;  %v4934_v41 = vld [vmem:[%s6947_s2 + $0x1e0] ss:$8 sps:$4 sm:$0xff]  }
  0xcc   : > { %1767 = vmatprep.subr.bf16.mxu1 %v4819_v42  ;;  %2600 = vmatprep.subr.bf16.mxu0 %v4825_v44  ;;  %v4945_v42 = vld [vmem:[%s6947_s2 + $0x1d4] ss:$8 sps:$4 sm:$0xff]   ;;  %v4903_v44 = vld [vmem:[%s5702_s13 + $0xa0] ss:$16 sps:$4 sm:$0xff]  }
  0xce   : > { %1723 = vmatmul.mubr.bf16.gmra.mxu1 %v4816_v43  ;;  %1643 = vmatmul.mubr.bf16.gmra.mxu0 %v4822_v46  ;;  %v4897_v43 = vld [vmem:[%s5535_s20 + $0xa8] ss:$16 sps:$4 sm:$0xff]   ;;  %v4910_v46 = vld [vmem:[%s5702_s13 + $0xc4] ss:$16 sps:$4 sm:$0xff]  }
  0xcf   : > { %1768 = vmatpush2.bf16.msra.mxu1 %v4817_v45  ;;  %2601 = vmatpush2.bf16.msra.mxu0 %v4823_v47  ;;  %v4904_v45 = vld [vmem:[%s5535_s20 + $0xcc] ss:$16 sps:$4 sm:$0xff]   ;;  %v4943_v47 = vld [vmem:[%s6947_s2 + $0x1d0] ss:$8 sps:$4 sm:$0xff]  }
  0xd0   : > { %1769 = vmatprep.subr.bf16.mxu1 %v4828_v48  ;;  %2602 = vmatprep.subr.bf16.mxu0 %v4831_v49  ;;  %v4954_v48 = vld [vmem:[%s6947_s2 + $0x1c4] ss:$8 sps:$4 sm:$0xff]   ;;  %v4952_v49 = vld [vmem:[%s6947_s2 + $0x1c0] ss:$8 sps:$4 sm:$0xff]  }
  0xd1   : > { %1732 = vmatprep.mubr.bf16.mxu1 %v4832_v50  ;;  %1652 = vmatprep.mubr.bf16.mxu0 %v4838_v51  ;;  %v4963_v50 = vld [vmem:[%s6947_s2 + $0x1b4] ss:$8 sps:$4 sm:$0xff]   ;;  %v4906_v51 = vld [vmem:[%s5535_s20 + $0xc8] ss:$16 sps:$4 sm:$0xff]  }
  0xd3   : > { %1770 = vmatpush2.bf16.msra.mxu1 %v4826_v52  ;;  %2603 = vmatpush2.bf16.msra.mxu0 %v4829_v53  ;;  %v4912_v52 = vld [vmem:[%s5702_s13 + $0xc0] ss:$16 sps:$4 sm:$0xff]   ;;  %v4913_v53 = vld [vmem:[%s5535_s20 + $0xec] ss:$16 sps:$4 sm:$0xff]  }
  0xd4   : > { %1771 = vmatprep.subr.bf16.mxu1 %v4837_v54  ;;  %2604 = vmatprep.subr.bf16.mxu0 %v4843_v56  ;;  %v4919_v54 = vld [vmem:[%s5702_s13 + $0xe4] ss:$16 sps:$4 sm:$0xff]  }
  0xd5   : > { %v4972_v56 = vld [vmem:[%s6947_s2 + $0x1a4] ss:$8 sps:$4 sm:$0xff]  }
  0xd6   : > { %1733 = vmatmul.mubr.bf16.gmra.mxu1 %v4834_v55  ;;  %1653 = vmatmul.mubr.bf16.gmra.mxu0 %v4840_v58  ;;  %v4961_v55 = vld [vmem:[%s6947_s2 + $0x1b0] ss:$8 sps:$4 sm:$0xff]   ;;  %v4981_v58 = vld [vmem:[%s6947_s2 + $0x194] ss:$8 sps:$4 sm:$0xff]  }
  0xd7   : > { %1772 = vmatpush2.bf16.msra.mxu1 %v4835_v57  ;;  %2605 = vmatpush2.bf16.msra.mxu0 %v4841_v59  ;;  %v4970_v57 = vld [vmem:[%s6947_s2 + $0x1a0] ss:$8 sps:$4 sm:$0xff]  }
  0xd8   : > { %1773 = vmatprep.subr.bf16.mxu1 %v4846_v60  ;;  %2606 = vmatprep.subr.bf16.mxu0 %v4849_v61  ;;  %v4915_v59 = vld [vmem:[%s5535_s20 + $0xe8] ss:$16 sps:$4 sm:$0xff]   ;;  %v4921_v60 = vld [vmem:[%s5702_s13 + $0xe0] ss:$16 sps:$4 sm:$0xff]   ;;  %v4922_v61 = vld [vmem:[%s5535_s20 + $0x10c] ss:$16 sps:$4 sm:$0xff]  }
  0xd9   : > { %1775 = vmatprep.mubr.bf16.mxu1 %v4852_v62  ;;  %2608 = vmatprep.mubr.bf16.mxu0 %v4858_v63  ;;  %v4928_v62 = vld [vmem:[%s5702_s13 + $0x104] ss:$16 sps:$4 sm:$0xff]   ;;  %v4979_v63 = vld [vmem:[%s6947_s2 + $0x190] ss:$8 sps:$4 sm:$0xff]  }
  0xdb   : > { %1774 = vmatpush2.bf16.msra.mxu1 %v4844_v0  ;;  %2607 = vmatpush2.bf16.msra.mxu0 %v4847_v1  ;;  %v4990_v0 = vld [vmem:[%s6947_s2 + $0x184] ss:$8 sps:$4 sm:$0xff]   ;;  %v4988_v1 = vld [vmem:[%s6947_s2 + $0x180] ss:$8 sps:$4 sm:$0xff]  }
  0xdc   : > { %2769 = vmatprep.subr.bf16.mxu1 %v4855_v2  ;;  %v4924_v2 = vld [vmem:[%s5535_s20 + $0x108] ss:$16 sps:$4 sm:$0xff]  }
  0xde   : > { %1776 = vmatmul.mubr.bf16.vlgmr.msra.gmra.mxu1 %v4850_v3  ;;  %2609 = vmatmul.mubr.bf16.vlgmr.msra.gmra.mxu0 %v4856_v5  ;;  %v4930_v3 = vld [vmem:[%s5702_s13 + $0x100] ss:$16 sps:$4 sm:$0xff]   ;;  %v4937_v5 = vld [vmem:[%s5702_s13 + $0x124] ss:$16 sps:$4 sm:$0xff]  }
  0xdf   : > { %2770 = vmatpush1.bf16.msra.mxu1 %v4853_v4  ;;  %1785 = vmatprep.mubr.bf16.mxu1 %v4859_v6  ;;  %v4931_v4 = vld [vmem:[%s5535_s20 + $0x12c] ss:$16 sps:$4 sm:$0xff]   ;;  %v4933_v6 = vld [vmem:[%s5535_s20 + $0x128] ss:$16 sps:$4 sm:$0xff]  }
  0xe0   : > { %2771 = vmatprep.subr.bf16.mxu1 %v4864_v7  ;;  %2618 = vmatprep.mubr.bf16.mxu0 %v4865_v8  ;;  %v4939_v7 = vld [vmem:[%s5702_s13 + $0x120] ss:$16 sps:$4 sm:$0xff]   ;;  %v4940_v8 = vld [vmem:[%s5535_s20 + $0x14c] ss:$16 sps:$4 sm:$0xff]  }
  0xe3   : > { %2772 = vmatpush1.bf16.msra.mxu1 %v4862_v9  ;;  %v4946_v9 = vld [vmem:[%s5702_s13 + $0x144] ss:$16 sps:$4 sm:$0xff]  }
  0xe4   : > { %2773 = vmatprep.subr.bf16.mxu1 %v4873_v10  ;;  %v4942_v10 = vld [vmem:[%s5535_s20 + $0x148] ss:$16 sps:$4 sm:$0xff]  }
  0xe6   : > { %1786 = vmatmul.mubr.bf16.gmra.mxu1 %v4861_v11  ;;  %2619 = vmatmul.mubr.bf16.gmra.mxu0 %v4867_v12  ;;  %v4948_v11 = vld [vmem:[%s5702_s13 + $0x140] ss:$16 sps:$4 sm:$0xff]   ;;  %v4949_v12 = vld [vmem:[%s5535_s20 + $0x16c] ss:$16 sps:$4 sm:$0xff]  }
  0xe7   : > { %1795 = vmatprep.mubr.bf16.mxu1 %v4868_v13  ;;  %2628 = vmatprep.mubr.bf16.mxu0 %v4874_v14  ;;  %v4955_v13 = vld [vmem:[%s5702_s13 + $0x164] ss:$16 sps:$4 sm:$0xff]   ;;  %v5027_v14 = vld [vmem:[%s6949_s4 + $0x70] ss:$8 sps:$4 sm:$0xff]  }
  0xe8   : > { %2774 = vmatpush1.bf16.msra.mxu1 %v4871_v15  ;;  %v5029_v15 = vld [vmem:[%s6949_s4 + $0x74] ss:$8 sps:$4 sm:$0xff]  }
  0xe9   : > { %2775 = vmatprep.subr.bf16.mxu1 %v4882_v16  ;;  %3530 = vmatprep.subr.bf16.mxu0 %v5029_v15  ;;  %v4951_v16 = vld [vmem:[%s5535_s20 + $0x168] ss:$16 sps:$4 sm:$0xff]  }
  0xea   : > { %3531 = vmatpush1.bf16.msra.mxu0 %v5027_v14  ;;  %v5005_v15 = vld [vmem:[%s5702_s13 + $0x68] ss:$16 sps:$4 sm:$0xff]  }
  0xec   : > { %2776 = vmatpush1.bf16.msra.mxu1 %v4880_v17  ;;  %v4957_v17 = vld [vmem:[%s5702_s13 + $0x160] ss:$16 sps:$4 sm:$0xff]  }
  0xed   : > { %2777 = vmatprep.subr.bf16.mxu1 %v4891_v18  ;;  %v4958_v18 = vld [vmem:[%s5535_s20 + $0x18c] ss:$16 sps:$4 sm:$0xff]  }
  0xee   : > { %1796 = vmatmul.mubr.bf16.gmra.mxu1 %v4870_v19  ;;  %2629 = vmatmul.mubr.bf16.gmra.mxu0 %v4876_v20  ;;  %v4964_v19 = vld [vmem:[%s5702_s13 + $0x184] ss:$16 sps:$4 sm:$0xff]   ;;  %v5033_v20 = vld [vmem:[%s6949_s4 + $0x60] ss:$8 sps:$4 sm:$0xff]  }
  0xef   : > { %1805 = vmatprep.mubr.bf16.mxu1 %v4877_v21  ;;  %2638 = vmatprep.mubr.bf16.mxu0 %v4883_v22  ;;  %v5035_v21 = vld [vmem:[%s6949_s4 + $0x64] ss:$8 sps:$4 sm:$0xff]   ;;  %v4960_v22 = vld [vmem:[%s5535_s20 + $0x188] ss:$16 sps:$4 sm:$0xff]  }
  0xf0   : > { %2778 = vmatpush1.bf16.msra.mxu1 %v4889_v23  ;;  %3532 = vmatprep.subr.bf16.mxu0 %v5035_v21  ;;  %v4966_v23 = vld [vmem:[%s5702_s13 + $0x180] ss:$16 sps:$4 sm:$0xff]  }
  0xf1   : > { %2779 = vmatprep.subr.bf16.mxu1 %v4900_v24  ;;  %3533 = vmatpush1.bf16.msra.mxu0 %v5033_v20  ;;  %v4967_v24 = vld [vmem:[%s5535_s20 + $0x1ac] ss:$16 sps:$4 sm:$0xff]   ;;  %v5069_v21 = vld [vmem:[%s6949_s4 + $0xe0] ss:$8 sps:$4 sm:$0xff]  }
  0xf4   : > { %2780 = vmatpush1.bf16.msra.mxu1 %v4898_v25  ;;  %v4973_v25 = vld [vmem:[%s5702_s13 + $0x1a4] ss:$16 sps:$4 sm:$0xff]  }
  0xf5   : > { %2781 = vmatprep.subr.bf16.mxu1 %v4909_v26  ;;  %v5039_v26 = vld [vmem:[%s6949_s4 + $0x50] ss:$8 sps:$4 sm:$0xff]  }
  0xf6   : > { %1806 = vmatmul.mubr.bf16.gmra.mxu1 %v4879_v27  ;;  %2639 = vmatmul.mubr.bf16.gmra.mxu0 %v4885_v28  ;;  %v5041_v27 = vld [vmem:[%s6949_s4 + $0x54] ss:$8 sps:$4 sm:$0xff]   ;;  %v4969_v28 = vld [vmem:[%s5535_s20 + $0x1a8] ss:$16 sps:$4 sm:$0xff]  }
  0xf7   : > { %1815 = vmatprep.mubr.bf16.mxu1 %v4886_v29  ;;  %2648 = vmatprep.mubr.bf16.mxu0 %v4892_v30  ;;  %v4975_v29 = vld [vmem:[%s5702_s13 + $0x1a0] ss:$16 sps:$4 sm:$0xff]   ;;  %v4976_v30 = vld [vmem:[%s5535_s20 + $0x1cc] ss:$16 sps:$4 sm:$0xff]  }
  0xf8   : > { %2782 = vmatpush1.bf16.msra.mxu1 %v4907_v31  ;;  %3534 = vmatprep.subr.bf16.mxu0 %v5041_v27  ;;  %v4982_v31 = vld [vmem:[%s5702_s13 + $0x1c4] ss:$16 sps:$4 sm:$0xff]   ;;  %v5006_v27 = vld [vmem:[%s5702_s13 + $0x88] ss:$16 sps:$4 sm:$0xff]  }
  0xf9   : > { %2783 = vmatprep.subr.bf16.mxu1 %v4918_v32  ;;  %3535 = vmatpush1.bf16.msra.mxu0 %v5039_v26  ;;  %v5045_v32 = vld [vmem:[%s6949_s4 + $0x40] ss:$8 sps:$4 sm:$0xff]  }
  0xfc   : > { %2784 = vmatpush1.bf16.msra.mxu1 %v4916_v33  ;;  %v5047_v33 = vld [vmem:[%s6949_s4 + $0x44] ss:$8 sps:$4 sm:$0xff]  }
  0xfd   : > { %2785 = vmatprep.subr.bf16.mxu1 %v4927_v34  ;;  %3536 = vmatprep.subr.bf16.mxu0 %v5047_v33  ;;  %v4978_v34 = vld [vmem:[%s5535_s20 + $0x1c8] ss:$16 sps:$4 sm:$0xff]  }
  0xfe   : > { %1816 = vmatmul.mubr.bf16.gmra.mxu1 %v4888_v35  ;;  %2649 = vmatmul.mubr.bf16.gmra.mxu0 %v4894_v36  ;;  %v4984_v35 = vld [vmem:[%s5702_s13 + $0x1c0] ss:$16 sps:$4 sm:$0xff]   ;;  %v4985_v36 = vld [vmem:[%s5535_s20 + $0x1ec] ss:$16 sps:$4 sm:$0xff]  }
  0xff   : > { %1825 = vmatprep.mubr.bf16.mxu1 %v4895_v37  ;;  %2658 = vmatprep.mubr.bf16.mxu0 %v4901_v38  ;;  %v4991_v37 = vld [vmem:[%s5702_s13 + $0x1e4] ss:$16 sps:$4 sm:$0xff]   ;;  %v5051_v38 = vld [vmem:[%s6949_s4 + $0x30] ss:$8 sps:$4 sm:$0xff]  }
 0x100   : > { %2786 = vmatpush2.bf16.msra.mxu1 %v4925_v39  ;;  %3537 = vmatpush1.bf16.msra.mxu0 %v5045_v32  ;;  %v5053_v39 = vld [vmem:[%s6949_s4 + $0x34] ss:$8 sps:$4 sm:$0xff]   ;;  %v5072_v33 = vld [vmem:[%s6949_s4 + $0xd0] ss:$8 sps:$4 sm:$0xff]  }
 0x101   : > { %2787 = vmatprep.subr.bf16.mxu1 %v4936_v40  ;;  %3538 = vmatprep.subr.bf16.mxu0 %v5053_v39  ;;  %v4987_v40 = vld [vmem:[%s5535_s20 + $0x1e8] ss:$16 sps:$4 sm:$0xff]  }
 0x102   : > { %v5009_v39 = vld [vmem:[%s5702_s13 + $0xa8] ss:$16 sps:$4 sm:$0xff]  }
 0x104   : > { %2788 = vmatpush2.bf16.msra.mxu1 %v4934_v41  ;;  %v4993_v41 = vld [vmem:[%s5702_s13 + $0x1e0] ss:$16 sps:$4 sm:$0xff]   ;;  %3539 = vmatpush1.bf16.msra.mxu0 %v5051_v38 }
 0x105   : > { %2789 = vmatprep.subr.bf16.mxu1 %v4945_v42  ;;  %v4996_v42 = vld [vmem:[%s5702_s13 + $0xc] ss:$16 sps:$4 sm:$0xff]  }
 0x106   : > { %1826 = vmatmul.mubr.bf16.gmra.mxu1 %v4897_v43  ;;  %2659 = vmatmul.mubr.bf16.gmra.mxu0 %v4903_v44  ;;  %v5057_v43 = vld [vmem:[%s6949_s4 + $0x20] ss:$8 sps:$4 sm:$0xff]   ;;  %v5059_v44 = vld [vmem:[%s6949_s4 + $0x24] ss:$8 sps:$4 sm:$0xff]  }
 0x107   : > { %1835 = vmatprep.mubr.bf16.mxu1 %v4904_v45  ;;  %2668 = vmatprep.mubr.bf16.mxu0 %v4910_v46  ;;  %v4994_v45 = vld [vmem:[%s5702_s13 + $0x8] ss:$16 sps:$4 sm:$0xff]   ;;  %v4997_v46 = vld [vmem:[%s5702_s13 + $0x2c] ss:$16 sps:$4 sm:$0xff]  }
 0x108   : > { %2790 = vmatpush2.bf16.msra.mxu1 %v4943_v47  ;;  %3540 = vmatprep.subr.bf16.mxu0 %v5059_v44 }
 0x109   : > { %2791 = vmatprep.subr.bf16.mxu1 %v4954_v48  ;;  %3541 = vmatpush1.bf16.msra.mxu0 %v5057_v43 }
 0x10c   : > { %2792 = vmatpush2.bf16.msra.mxu1 %v4952_v49  ;;  %v5060_v49 = vld [vmem:[%s6949_s4 + $0x10] ss:$8 sps:$4 sm:$0xff]  }
 0x10d   : > { %2793 = vmatprep.subr.bf16.mxu1 %v4963_v50  ;;  %v5062_v50 = vld [vmem:[%s6949_s4 + $0x14] ss:$8 sps:$4 sm:$0xff]  }
 0x10e   : > { %1836 = vmatmul.mubr.bf16.gmra.mxu1 %v4906_v51  ;;  %2669 = vmatmul.mubr.bf16.gmra.mxu0 %v4912_v52 }
 0x10f   : > { %1845 = vmatprep.mubr.bf16.mxu1 %v4913_v53  ;;  %2678 = vmatprep.mubr.bf16.mxu0 %v4919_v54 }
 0x110   : > { %2794 = vmatpush2.bf16.msra.mxu1 %v4961_v55  ;;  %3542 = vmatprep.subr.bf16.mxu0 %v5062_v50  ;;  %v4999_v55 = vld [vmem:[%s5702_s13 + $0x28] ss:$16 sps:$4 sm:$0xff]  }
 0x111   : > { %2795 = vmatprep.subr.bf16.mxu1 %v4972_v56  ;;  %3543 = vmatpush1.bf16.msra.mxu0 %v5060_v49  ;;  %v5000_v56 = vld [vmem:[%s5702_s13 + $0x4c] ss:$16 sps:$4 sm:$0xff]  }
 0x114   : > { %2796 = vmatpush2.bf16.msra.mxu1 %v4970_v57 }
 0x115   : > { %2797 = vmatprep.subr.bf16.mxu1 %v4981_v58 }
 0x116   : > { %1846 = vmatmul.mubr.bf16.gmra.mxu1 %v4915_v59  ;;  %2679 = vmatmul.mubr.bf16.gmra.mxu0 %v4921_v60 }
 0x117   : > { %1855 = vmatprep.mubr.bf16.mxu1 %v4922_v61  ;;  %2688 = vmatprep.mubr.bf16.mxu0 %v4928_v62  ;;  %v5063_v61 = vld [vmem:[%s6949_s4] ss:$8 sps:$4 sm:$0xff]   ;;  %v5065_v62 = vld [vmem:[%s6949_s4 + $0x4] ss:$8 sps:$4 sm:$0xff]  }
 0x118   : > { %2798 = vmatpush2.bf16.msra.mxu1 %v4979_v63  ;;  %3544 = vmatprep.subr.bf16.mxu0 %v5065_v62  ;;  %v5017_v62 = vld [vmem:[%s5702_s13 + $0xec] ss:$16 sps:$4 sm:$0xff]  }
 0x119   : > { %2799 = vmatprep.subr.bf16.mxu1 %v4990_v0  ;;  %3545 = vmatpush1.bf16.msra.mxu0 %v5063_v61  ;;  %v5012_v61 = vld [vmem:[%s5702_s13 + $0xc8] ss:$16 sps:$4 sm:$0xff]  }
 0x11c   : > { %2800 = vmatpush2.bf16.msra.mxu1 %v4988_v1 }
 0x11e   : > { %1856 = vmatmul.mubr.bf16.gmra.mxu1 %v4924_v2  ;;  %2689 = vmatmul.mubr.bf16.gmra.mxu0 %v4930_v3  ;;  %v5002_v3 = vld [vmem:[%s5702_s13 + $0x48] ss:$16 sps:$4 sm:$0xff]  }
 0x11f   : > { %1865 = vmatprep.mubr.bf16.mxu1 %v4931_v4  ;;  %2698 = vmatprep.mubr.bf16.mxu0 %v4937_v5  ;;  %v5003_v4 = vld [vmem:[%s5702_s13 + $0x6c] ss:$16 sps:$4 sm:$0xff]  }
 0x126   : > { %1866 = vmatmul.mubr.bf16.gmra.mxu1 %v4933_v6  ;;  %2699 = vmatmul.mubr.bf16.gmra.mxu0 %v4939_v7 }
 0x127   : > { %1875 = vmatprep.mubr.bf16.mxu1 %v4940_v8  ;;  %2708 = vmatprep.mubr.bf16.mxu0 %v4946_v9  ;;  %v5066_v9 = vld [vmem:[%s6949_s4 + $0xf0] ss:$8 sps:$4 sm:$0xff]  }
 0x12e   : > { %1876 = vmatmul.mubr.bf16.gmra.mxu1 %v4942_v10  ;;  %2709 = vmatmul.mubr.bf16.gmra.mxu0 %v4948_v11  ;;  %v5068_v10 = vld [vmem:[%s6949_s4 + $0xf4] ss:$8 sps:$4 sm:$0xff]  }
 0x12f   : > { %1885 = vmatprep.mubr.bf16.mxu1 %v4949_v12  ;;  %2718 = vmatprep.mubr.bf16.mxu0 %v4955_v13 }
 0x130   : > { %3546 = vmatprep.subr.bf16.mxu0 %v5068_v10 }
 0x131   : > { %3547 = vmatpush2.bf16.msra.mxu0 %v5066_v9 }
 0x136   : > { %1886 = vmatmul.mubr.bf16.gmra.mxu1 %v4951_v16  ;;  %2719 = vmatmul.mubr.bf16.gmra.mxu0 %v4957_v17  ;;  %v5008_v16 = vld [vmem:[%s5702_s13 + $0x8c] ss:$16 sps:$4 sm:$0xff]  }
 0x137   : > { %1895 = vmatprep.mubr.bf16.mxu1 %v4958_v18  ;;  %2728 = vmatprep.mubr.bf16.mxu0 %v4964_v19 }
 0x13e   : > { %1896 = vmatmul.mubr.bf16.gmra.mxu1 %v4960_v22  ;;  %2729 = vmatmul.mubr.bf16.gmra.mxu0 %v4966_v23  ;;  %v5071_v22 = vld [vmem:[%s6949_s4 + $0xe4] ss:$8 sps:$4 sm:$0xff]  }
 0x13f   : > { %1905 = vmatprep.mubr.bf16.mxu1 %v4967_v24  ;;  %2738 = vmatprep.mubr.bf16.mxu0 %v4973_v25 }
 0x140   : > { %3548 = vmatprep.subr.bf16.mxu0 %v5071_v22 }
 0x141   : > { %3549 = vmatpush2.bf16.msra.mxu0 %v5069_v21 }
 0x146   : > { %1906 = vmatmul.mubr.bf16.gmra.mxu1 %v4969_v28  ;;  %2739 = vmatmul.mubr.bf16.gmra.mxu0 %v4975_v29  ;;  %v5011_v28 = vld [vmem:[%s5702_s13 + $0xac] ss:$16 sps:$4 sm:$0xff]  }
 0x147   : > { %1915 = vmatprep.mubr.bf16.mxu1 %v4976_v30  ;;  %2748 = vmatprep.mubr.bf16.mxu0 %v4982_v31 }
 0x14e   : > { %1916 = vmatmul.mubr.bf16.gmra.mxu1 %v4978_v34  ;;  %2749 = vmatmul.mubr.bf16.gmra.mxu0 %v4984_v35  ;;  %v5074_v34 = vld [vmem:[%s6949_s4 + $0xd4] ss:$8 sps:$4 sm:$0xff]  }
 0x14f   : > { %1925 = vmatprep.mubr.bf16.mxu1 %v4985_v36  ;;  %2758 = vmatprep.mubr.bf16.mxu0 %v4991_v37 }
 0x150   : > { %3550 = vmatprep.subr.bf16.mxu0 %v5074_v34  ;;  %v5020_v34 = vld [vmem:[%s5702_s13 + $0x10c] ss:$16 sps:$4 sm:$0xff]  }
 0x151   : > { %3551 = vmatpush2.bf16.msra.mxu0 %v5072_v33  ;;  %v5015_v33 = vld [vmem:[%s5702_s13 + $0xe8] ss:$16 sps:$4 sm:$0xff]  }
 0x156   : > { %1926 = vmatmul.mubr.bf16.gmra.mxu1 %v4987_v40  ;;  %2759 = vmatmul.mubr.bf16.gmra.mxu0 %v4993_v41  ;;  %v5014_v40 = vld [vmem:[%s5702_s13 + $0xcc] ss:$16 sps:$4 sm:$0xff]  }
 0x157   : > { %2801 = vmatprep.mubr.bf16.mxu1 %v4996_v42 }
 0x15e   : > { %v6020_v47 = vpop.f32.mrf.mxu1  ;;  %2802 = vmatmul.mubr.bf16.vlgmr.msra.gmra.mxu1 %v4994_v45  ;;  %v6022_v48 = vpop.f32.mrf.mxu0  ;;  %v5075_v45 = vld [vmem:[%s6949_s4 + $0xc0] ss:$8 sps:$4 sm:$0xff]  }
 0x15f   : > { %6958 = vst [vmem:[#allocation4_spill] sm:$0xff] %v6020_v47  ;;  %2811 = vmatprep.mubr.bf16.mxu1 %v4997_v46  ;;  %v5077_v46 = vld [vmem:[%s6949_s4 + $0xc4] ss:$8 sps:$4 sm:$0xff]  }
 0x160   : > { %v6030_v51 = vpop.f32.mrf.mxu1  ;;  %v6032_v52 = vpop.f32.mrf.mxu0  ;;  %3552 = vmatprep.subr.bf16.mxu0 %v5077_v46 }
 0x161   : > { %6959 = vst [vmem:[#allocation5_spill] sm:$0xff] %v6030_v51  ;;  %3553 = vmatpush2.bf16.msra.mxu0 %v5075_v45  ;;  %v5048_v51 = vld [vmem:[%s5702_s13 + $0x1c8] ss:$16 sps:$4 sm:$0xff]  }
 0x162   : > { %v6034_v53 = vpop.f32.mrf.mxu1  ;;  %v6036_v54 = vpop.f32.mrf.mxu0 }
 0x163   : > { %6960 = vst [vmem:[#allocation6_spill] sm:$0xff] %v6034_v53 }
 0x164   : > { %v6040_v57 = vpop.f32.mrf.mxu1  ;;  %v6042_v58 = vpop.f32.mrf.mxu0 }
 0x165   : > { %6961 = vst [vmem:[#allocation7_spill] sm:$0xff] %v6040_v57 }
 0x166   : > { %v6044_v59 = vpop.f32.mrf.mxu1  ;;  %2812 = vmatmul.mubr.bf16.gmra.mxu1 %v4999_v55  ;;  %v6046_v60 = vpop.f32.mrf.mxu0 }
 0x167   : > { %6962 = vst [vmem:[#allocation8_spill] sm:$0xff] %v6044_v59  ;;  %2821 = vmatprep.mubr.bf16.mxu1 %v5000_v56 }
 0x168   : > { %v6054_v63 = vpop.f32.mrf.mxu1  ;;  %v6056_v0 = vpop.f32.mrf.mxu0 }
 0x169   : > { %6963 = vst [vmem:[#allocation9_spill] sm:$0xff] %v6054_v63  ;;  %v5050_v63 = vld [vmem:[%s5702_s13 + $0x1cc] ss:$16 sps:$4 sm:$0xff]  }
 0x16a   : > { %v6058_v1 = vpop.f32.mrf.mxu1  ;;  %v6060_v2 = vpop.f32.mrf.mxu0 }
 0x16b   : > { %6964 = vst [vmem:[#allocation10_spill] sm:$0xff] %v6058_v1 }
 0x16c   : > { %v6064_v5 = vpop.f32.mrf.mxu1  ;;  %v6066_v6 = vpop.f32.mrf.mxu0 }
 0x16d   : > { %6965 = vst [vmem:[#allocation11_spill] sm:$0xff] %v6064_v5 }
 0x16e   : > { %v6068_v7 = vpop.f32.mrf.mxu1  ;;  %2822 = vmatmul.mubr.bf16.gmra.mxu1 %v5002_v3  ;;  %v6070_v8 = vpop.f32.mrf.mxu0 }
 0x16f   : > { %6966 = vst [vmem:[#allocation12_spill] sm:$0xff] %v6068_v7  ;;  %2831 = vmatprep.mubr.bf16.mxu1 %v5003_v4 }
 0x170   : > { %v6078_v11 = vpop.f32.mrf.mxu1  ;;  %v6080_v12 = vpop.f32.mrf.mxu0 }
 0x171   : > { %6967 = vst [vmem:[#allocation13_spill] sm:$0xff] %v6078_v11  ;;  %v5044_v11 = vld [vmem:[%s5702_s13 + $0x1ac] ss:$16 sps:$4 sm:$0xff]  }
 0x172   : > { %v6082_v13 = vpop.f32.mrf.mxu1  ;;  %v6084_v14 = vpop.f32.mrf.mxu0 }
 0x173   : > { %6968 = vst [vmem:[#allocation14_spill] sm:$0xff] %v6082_v13 }
 0x174   : > { %v6088_v17 = vpop.f32.mrf.mxu1  ;;  %v6090_v18 = vpop.f32.mrf.mxu0 }
 0x175   : > { %6969 = vst [vmem:[#allocation15_spill] sm:$0xff] %v6088_v17 }
 0x176   : > { %v6092_v19 = vpop.f32.mrf.mxu1  ;;  %2832 = vmatmul.mubr.bf16.gmra.mxu1 %v5005_v15  ;;  %v6094_v20 = vpop.f32.mrf.mxu0  ;;  %v5078_v15 = vld [vmem:[%s6949_s4 + $0xb0] ss:$8 sps:$4 sm:$0xff]  }
 0x177   : > { %6970 = vst [vmem:[#allocation16_spill] sm:$0xff] %v6092_v19  ;;  %2841 = vmatprep.mubr.bf16.mxu1 %v5008_v16  ;;  %v5080_v16 = vld [vmem:[%s6949_s4 + $0xb4] ss:$8 sps:$4 sm:$0xff]  }
 0x178   : > { %v6102_v23 = vpop.f32.mrf.mxu1  ;;  %v6104_v24 = vpop.f32.mrf.mxu0  ;;  %3554 = vmatprep.subr.bf16.mxu0 %v5080_v16 }
 0x179   : > { %6971 = vst [vmem:[#allocation17_spill] sm:$0xff] %v6102_v23  ;;  %3555 = vmatpush2.bf16.msra.mxu0 %v5078_v15 }
 0x17a   : > { %v6106_v25 = vpop.f32.mrf.mxu1  ;;  %v6108_v26 = vpop.f32.mrf.mxu0 }
 0x17b   : > { %6972 = vst [vmem:[#allocation18_spill] sm:$0xff] %v6106_v25 }
 0x17c   : > { %v6112_v29 = vpop.f32.mrf.mxu1  ;;  %v6114_v30 = vpop.f32.mrf.mxu0 }
 0x17d   : > { %6973 = vst [vmem:[#allocation19_spill] sm:$0xff] %v6112_v29 }
 0x17e   : > { %v6116_v31 = vpop.f32.mrf.mxu1  ;;  %2842 = vmatmul.mubr.bf16.gmra.mxu1 %v5006_v27  ;;  %v6118_v32 = vpop.f32.mrf.mxu0 }
 0x17f   : > { %6974 = vst [vmem:[#allocation20_spill] sm:$0xff] %v6116_v31  ;;  %2851 = vmatprep.mubr.bf16.mxu1 %v5011_v28 }
 0x180   : > { %v6126_v35 = vpop.f32.mrf.mxu1  ;;  %v6128_v36 = vpop.f32.mrf.mxu0 }
 0x181   : > { %6975 = vst [vmem:[#allocation21_spill] sm:$0xff] %v6126_v35  ;;  %v5087_v35 = vld [vmem:[%s6949_s4 + $0x80] ss:$8 sps:$4 sm:$0xff]  }
 0x182   : > { %v6130_v37 = vpop.f32.mrf.mxu1  ;;  %v6132_v38 = vpop.f32.mrf.mxu0 }
 0x183   : > { %6976 = vst [vmem:[#allocation22_spill] sm:$0xff] %v6130_v37  ;;  %v5089_v37 = vld [vmem:[%s6949_s4 + $0x84] ss:$8 sps:$4 sm:$0xff]  }
 0x184   : > { %v6136_v41 = vpop.f32.mrf.mxu1  ;;  %v6138_v42 = vpop.f32.mrf.mxu0 }
 0x185   : > { %6977 = vst [vmem:[#allocation23_spill] sm:$0xff] %v6136_v41 }
 0x186   : > { %v6140_v43 = vpop.f32.mrf.mxu1  ;;  %2852 = vmatmul.mubr.bf16.gmra.mxu1 %v5009_v39  ;;  %v6142_v44 = vpop.f32.mrf.mxu0 }
 0x187   : > { %6978 = vst [vmem:[#allocation24_spill] sm:$0xff] %v6140_v43  ;;  %2861 = vmatprep.mubr.bf16.mxu1 %v5014_v40 }
 0x188   : > { %v6150_v49 = vpop.f32.mrf.mxu1  ;;  %v6152_v50 = vpop.f32.mrf.mxu0 }
 0x189   : > { %6979 = vst [vmem:[#allocation25_spill] sm:$0xff] %v6150_v49  ;;  %v5021_v49 = vld [vmem:[%s5702_s13 + $0x128] ss:$16 sps:$4 sm:$0xff]  }
 0x18a   : > { %v6154_v55 = vpop.f32.mrf.mxu1  ;;  %v6156_v56 = vpop.f32.mrf.mxu0 }
 0x18b   : > { %6980 = vst [vmem:[#allocation26_spill] sm:$0xff] %v6154_v55 }
 0x18c   : > { %v6160_v3 = vpop.f32.mrf.mxu1  ;;  %v6162_v4 = vpop.f32.mrf.mxu0 }
 0x18d   : > { %6981 = vst [vmem:[#allocation27_spill] sm:$0xff] %v6160_v3  ;;  %6982 = vst [vmem:[#allocation28_spill] sm:$0xff] %v6162_v4 }
 0x18e   : > { %v6164_v9 = vpop.f32.mrf.mxu1  ;;  %2862 = vmatmul.mubr.bf16.gmra.mxu1 %v5012_v61  ;;  %v6166_v10 = vpop.f32.mrf.mxu0  ;;  %v5081_v61 = vld [vmem:[%s6949_s4 + $0xa0] ss:$8 sps:$4 sm:$0xff]  }
 0x18f   : > { %6983 = vst [vmem:[#allocation29_spill] sm:$0xff] %v6164_v9  ;;  %2871 = vmatprep.mubr.bf16.mxu1 %v5017_v62  ;;  %v5083_v62 = vld [vmem:[%s6949_s4 + $0xa4] ss:$8 sps:$4 sm:$0xff]  }
 0x190   : > { %v6174_v21 = vpop.f32.mrf.mxu1  ;;  %v6176_v22 = vpop.f32.mrf.mxu0  ;;  %3556 = vmatprep.subr.bf16.mxu0 %v5083_v62 }
 0x191   : > { %6984 = vst [vmem:[#allocation30_spill] sm:$0xff] %v6174_v21  ;;  %6985 = vst [vmem:[#allocation31_spill] sm:$0xff] %v6176_v22  ;;  %3557 = vmatpush2.bf16.msra.mxu0 %v5081_v61 }
 0x192   : > { %v6178_v27 = vpop.f32.mrf.mxu1  ;;  %v6180_v28 = vpop.f32.mrf.mxu0 }
 0x193   : > { %6986 = vst [vmem:[#allocation32_spill] sm:$0xff] %v6178_v27 }
 0x194   : > { %v6184_v39 = vpop.f32.mrf.mxu1  ;;  %v6186_v40 = vpop.f32.mrf.mxu0 }
 0x195   : > { %6987 = vst [vmem:[#allocation33_spill] sm:$0xff] %v6184_v39  ;;  %6988 = vst [vmem:[#allocation34_spill] sm:$0xff] %v6186_v40  ;;  %v5054_v40 = vld [vmem:[%s5702_s13 + $0x1e8] ss:$16 sps:$4 sm:$0xff]  }
 0x196   : > { %v6188_v45 = vpop.f32.mrf.mxu1  ;;  %2872 = vmatmul.mubr.bf16.gmra.mxu1 %v5015_v33  ;;  %v6190_v46 = vpop.f32.mrf.mxu0 }
 0x197   : > { %6989 = vst [vmem:[#allocation35_spill] sm:$0xff] %v6188_v45  ;;  %2881 = vmatprep.mubr.bf16.mxu1 %v5020_v34  ;;  %v5018_v34 = vld [vmem:[%s5702_s13 + $0x108] ss:$16 sps:$4 sm:$0xff]   ;;  %v5023_v45 = vld [vmem:[%s5702_s13 + $0x12c] ss:$16 sps:$4 sm:$0xff]  }
 0x198   : > { %v6198_v15 = vpop.f32.mrf.mxu1  ;;  %v6200_v16 = vpop.f32.mrf.mxu0 }
 0x199   : > { %6990 = vst [vmem:[#allocation36_spill] sm:$0xff] %v6198_v15  ;;  %6991 = vst [vmem:[#allocation37_spill] sm:$0xff] %v6200_v16 }
 0x19a   : > { %v6202_v39 = vpop.f32.mrf.mxu1  ;;  %v6204_v33 = vpop.f32.mrf.mxu0 }
 0x19b   : > { %6992 = vst [vmem:[#allocation38_spill] sm:$0xff] %v6202_v39 }
 0x19c   : > { %v6208_v27 = vpop.f32.mrf.mxu1  ;;  %v6210_v21 = vpop.f32.mrf.mxu0 }
 0x19d   : > { %6993 = vst [vmem:[#allocation39_spill] sm:$0xff] %v6208_v27  ;;  %6994 = vst [vmem:[#allocation40_spill] sm:$0xff] %v6210_v21  ;;  %v5026_v27 = vld [vmem:[%s5702_s13 + $0x14c] ss:$16 sps:$4 sm:$0xff]  }
 0x19e   : > { %v1777_v9 = vpop.f32.mrf.mxu1  ;;  %2882 = vmatmul.mubr.bf16.gmra.mxu1 %v5018_v34  ;;  %v6212_v3 = vpop.f32.mrf.mxu0  ;;  %v5084_v34 = vld [vmem:[%s6949_s4 + $0x90] ss:$8 sps:$4 sm:$0xff]  }
 0x19f   : > { %v6215_v15 = vadd.f32 %v1777_v9, %v6022_v48  ;;  %2891 = vmatprep.mubr.bf16.mxu1 %v5023_v45  ;;  %v5086_v48 = vld [vmem:[%s6949_s4 + $0x94] ss:$8 sps:$4 sm:$0xff]  }
 0x1a0   : > { %v6217_v62 = vpop.f32.mrf.mxu1  ;;  %v6219_v39 = vpop.f32.mrf.mxu0  ;;  %3558 = vmatprep.subr.bf16.mxu0 %v5086_v48 }
 0x1a1   : > { %3559 = vmatpush2.bf16.msra.mxu0 %v5084_v34 }
 0x1a2   : > { %v1781_v55 = vpop.f32.mrf.mxu1  ;;  %v6234_v45 = vpop.f32.mrf.mxu0  ;;  %3560 = vmatprep.subr.bf16.mxu0 %v5089_v37  ;;  %v5030_v37 = vld [vmem:[%s5702_s13 + $0x168] ss:$16 sps:$4 sm:$0xff]  }
 0x1a3   : > { %v6223_v61 = vadd.f32 %v1781_v55, %v6036_v54 }
 0x1a4   : > { %v6232_v9 = vpop.f32.mrf.mxu1  ;;  %v6239_v55 = vpop.f32.mrf.mxu0 }
 0x1a5   : > { %3561 = vmatpush2.bf16.msra.mxu0 %v5087_v35 }
 0x1a6   : > { %v1787_v43 = vpop.f32.mrf.mxu1  ;;  %2892 = vmatmul.mubr.bf16.gmra.mxu1 %v5021_v49  ;;  %v5024_v49 = vld [vmem:[%s5702_s13 + $0x148] ss:$16 sps:$4 sm:$0xff]  }
 0x1a7   : > { %v6237_v54 = vadd.f32 %v1787_v43, %v6046_v60  ;;  %2901 = vmatprep.mubr.bf16.mxu1 %v5026_v27  ;;  %v5032_v43 = vld [vmem:[%s5702_s13 + $0x16c] ss:$16 sps:$4 sm:$0xff]   ;;  %v6254_v27 = vpop.f32.mrf.mxu0 }
 0x1a8   : > { %v6241_v41 = vpop.f32.mrf.mxu1 }
 0x1a9   : > { %v6261_v25 = vpop.f32.mrf.mxu0 }
 0x1aa   : > { %v1791_v48 = vpop.f32.mrf.mxu1 }
 0x1ab   : > { %v6251_v60 = vadd.f32 %v1791_v48, %v6060_v2  ;;  %v5038_v48 = vld [vmem:[%s5702_s13 + $0x18c] ss:$16 sps:$4 sm:$0xff]   ;;  %v6270_v19 = vpop.f32.mrf.mxu0 }
 0x1ac   : > { %v6256_v34 = vpop.f32.mrf.mxu1 }
 0x1ae   : > { %v1797_v31 = vpop.f32.mrf.mxu1  ;;  %2902 = vmatmul.mubr.bf16.gmra.mxu1 %v5024_v49 }
 0x1af   : > { %v6259_v29 = vadd.f32 %v1797_v31, %v6070_v8  ;;  %2911 = vmatprep.mubr.bf16.mxu1 %v5032_v43  ;;  %v6277_v31 = vpop.f32.mrf.mxu0 }
 0x1b0   : > { %v6263_v23 = vpop.f32.mrf.mxu1 }
 0x1b1   : > { %v6286_v7 = vpop.f32.mrf.mxu0 }
 0x1b2   : > { %v1801_v2 = vpop.f32.mrf.mxu1 }
 0x1b3   : > { %v6267_v35 = vadd.f32 %v1801_v2, %v6084_v14  ;;  %v5036_v14 = vld [vmem:[%s5702_s13 + $0x188] ss:$16 sps:$4 sm:$0xff]  }
 0x1b4   : > { %v6272_v17 = vpop.f32.mrf.mxu1 }
 0x1b6   : > { %v1807_v49 = vpop.f32.mrf.mxu1  ;;  %2912 = vmatmul.mubr.bf16.gmra.mxu1 %v5030_v37 }
 0x1b7   : > { %v6275_v8 = vadd.f32 %v1807_v49, %v6094_v20  ;;  %2921 = vmatprep.mubr.bf16.mxu1 %v5038_v48  ;;  %v6293_v48 = vpop.f32.mrf.mxu0 }
 0x1b8   : > { %v6279_v43 = vpop.f32.mrf.mxu1 }
 0x1b9   : > { %v6302_v59 = vpop.f32.mrf.mxu0 }
 0x1ba   : > { %v1811_v13 = vpop.f32.mrf.mxu1 }
 0x1bb   : > { %v6283_v2 = vadd.f32 %v1811_v13, %v6108_v26  ;;  %v5042_v13 = vld [vmem:[%s5702_s13 + $0x1a8] ss:$16 sps:$4 sm:$0xff]  }
 0x1bc   : > { %v6288_v5 = vpop.f32.mrf.mxu1 }
 0x1be   : > { %v1817_v37 = vpop.f32.mrf.mxu1  ;;  %2922 = vmatmul.mubr.bf16.gmra.mxu1 %v5036_v14 }
 0x1bf   : > { %v6291_v20 = vadd.f32 %v1817_v37, %v6118_v32  ;;  %2931 = vmatprep.mubr.bf16.mxu1 %v5044_v11  ;;  %v6309_v32 = vpop.f32.mrf.mxu0 }
 0x1c0   : > { %v6295_v49 = vpop.f32.mrf.mxu1 }
 0x1c1   : > { %v6318_v47 = vpop.f32.mrf.mxu0 }
 0x1c2   : > { %v1821_v1 = vpop.f32.mrf.mxu1 }
 0x1c3   : > { %v6299_v26 = vadd.f32 %v1821_v1, %v6132_v38  ;;  %v5056_v38 = vld [vmem:[%s5702_s13 + $0x1ec] ss:$16 sps:$4 sm:$0xff]  }
 0x1c4   : > { %v6304_v57 = vpop.f32.mrf.mxu1 }
 0x1c6   : > { %v1827_v14 = vpop.f32.mrf.mxu1  ;;  %2932 = vmatmul.mubr.bf16.gmra.mxu1 %v5042_v13 }
 0x1c7   : > { %v6307_v11 = vadd.f32 %v1827_v14, %v6142_v44  ;;  %2941 = vmatprep.mubr.bf16.mxu1 %v5050_v63  ;;  %v6325_v63 = vpop.f32.mrf.mxu0 }
 0x1c8   : > { %v6311_v37 = vpop.f32.mrf.mxu1 }
 0x1ca   : > { %v1831_v53 = vpop.f32.mrf.mxu1 }
 0x1cb   : > { %v6315_v1 = vadd.f32 %v1831_v53, %v6156_v56  ;;  %v6333_v56 = vpop.f32.mrf.mxu0 }
 0x1cc   : > { %v6320_v21 = vpop.f32.mrf.mxu1 }
 0x1cd   : > { %6995 = vst [vmem:[#allocation41_spill] sm:$0xff] %v6315_v1  ;;  %6996 = vst [vmem:[#allocation42_spill] sm:$0xff] %v6320_v21 }
 0x1ce   : > { %v1837_v13 = vpop.f32.mrf.mxu1  ;;  %2942 = vmatmul.mubr.bf16.gmra.mxu1 %v5048_v51 }
 0x1cf   : > { %v6323_v44 = vadd.f32 %v1837_v13, %v6166_v10  ;;  %2951 = vmatprep.mubr.bf16.mxu1 %v5056_v38  ;;  %v6340_v10 = vpop.f32.mrf.mxu0 }
 0x1d0   : > { %v6327_v14 = vpop.f32.mrf.mxu1 }
 0x1d1   : > { %6997 = vst [vmem:[#allocation43_spill] sm:$0xff] %v6323_v44  ;;  %6998 = vst [vmem:[#allocation44_spill] sm:$0xff] %v6327_v14  ;;  %v6347_v14 = vpop.f32.mrf.mxu0 }
 0x1d2   : > { %v1841_v16 = vpop.f32.mrf.mxu1 }
 0x1d3   : > { %v6331_v53 = vadd.f32 %v1841_v16, %v6180_v28 }
 0x1d4   : > { %v6335_v22 = vpop.f32.mrf.mxu1 }
 0x1d5   : > { %6999 = vst [vmem:[#allocation45_spill] sm:$0xff] %v6331_v53  ;;  %7000 = vst [vmem:[#allocation46_spill] sm:$0xff] %v6335_v22  ;;  %v6353_v53 = vpop.f32.mrf.mxu0 }
 0x1d6   : > { %v1847_v1 = vpop.f32.mrf.mxu1  ;;  %2952 = vmatmul.mubr.bf16.gmra.mxu1 %v5054_v40 }
 0x1d7   : > { %v6338_v51 = vadd.f32 %v1847_v1, %v6190_v46  ;;  %v6359_v1 = vpop.f32.mrf.mxu0 }
 0x1d8   : > { %v6342_v38 = vpop.f32.mrf.mxu1 }
 0x1d9   : > { %7001 = vst [vmem:[#allocation47_spill] sm:$0xff] %v6338_v51  ;;  %7002 = vst [vmem:[#allocation48_spill] sm:$0xff] %v6342_v38 }
 0x1da   : > { %v1851_v13 = vpop.f32.mrf.mxu1 }
 0x1db   : > { %v6345_v44 = vadd.f32 %v1851_v13, %v6204_v33  ;;  %v6365_v33 = vpop.f32.mrf.mxu0 }
 0x1dc   : > { %v6349_v28 = vpop.f32.mrf.mxu1 }
 0x1dd   : > { %7003 = vst [vmem:[#allocation49_spill] sm:$0xff] %v6345_v44  ;;  %7004 = vst [vmem:[#allocation50_spill] sm:$0xff] %v6349_v28  ;;  %v6371_v28 = vpop.f32.mrf.mxu0 }
 0x1de   : > { %v6351_v16 = vpop.f32.mrf.mxu1  ;;  %7012 = vst [vmem:[#allocation58_spill] sm:$0xff] %v6371_v28 }
 0x1df   : > { %7005 = vst [vmem:[#allocation51_spill] sm:$0xff] %v6351_v16 }
 0x1e0   : > { %v6355_v40 = vpop.f32.mrf.mxu1 }
 0x1e1   : > { %7006 = vst [vmem:[#allocation52_spill] sm:$0xff] %v6355_v40  ;;  %v6377_v40 = vpop.f32.mrf.mxu0 }
 0x1e2   : > { %v6357_v46 = vpop.f32.mrf.mxu1  ;;  %7015 = vst [vmem:[#allocation61_spill] sm:$0xff] %v6377_v40 }
 0x1e3   : > { %7007 = vst [vmem:[#allocation53_spill] sm:$0xff] %v6357_v46 }
 0x1e4   : > { %v6361_v51 = vpop.f32.mrf.mxu1 }
 0x1e5   : > { %7008 = vst [vmem:[#allocation54_spill] sm:$0xff] %v6361_v51  ;;  %v6383_v51 = vpop.f32.mrf.mxu0 }
 0x1e6   : > { %v6363_v38 = vpop.f32.mrf.mxu1  ;;  %7018 = vst [vmem:[#allocation64_spill] sm:$0xff] %v6383_v51 }
 0x1e7   : > { %7009 = vst [vmem:[#allocation55_spill] sm:$0xff] %v6363_v38 }
 0x1e8   : > { %v6367_v13 = vpop.f32.mrf.mxu1 }
 0x1e9   : > { %7010 = vst [vmem:[#allocation56_spill] sm:$0xff] %v6367_v13  ;;  %v6389_v13 = vpop.f32.mrf.mxu0 }
 0x1ea   : > { %v6369_v44 = vpop.f32.mrf.mxu1  ;;  %7021 = vst [vmem:[#allocation67_spill] sm:$0xff] %v6389_v13 }
 0x1eb   : > { %7011 = vst [vmem:[#allocation57_spill] sm:$0xff] %v6369_v44 }
 0x1ec   : > { %v6373_v16 = vpop.f32.mrf.mxu1 }
 0x1ed   : > { %7013 = vst [vmem:[#allocation59_spill] sm:$0xff] %v6373_v16  ;;  %v6395_v16 = vpop.f32.mrf.mxu0 }
 0x1ee   : > { %v6375_v22 = vpop.f32.mrf.mxu1  ;;  %7024 = vst [vmem:[#allocation70_spill] sm:$0xff] %v6395_v16 }
 0x1ef   : > { %7014 = vst [vmem:[#allocation60_spill] sm:$0xff] %v6375_v22 }
 0x1f0   : > { %v6379_v46 = vpop.f32.mrf.mxu1 }
 0x1f1   : > { %7016 = vst [vmem:[#allocation62_spill] sm:$0xff] %v6379_v46  ;;  %v6401_v46 = vpop.f32.mrf.mxu0 }
 0x1f2   : > { %v6381_v21 = vpop.f32.mrf.mxu1  ;;  %7027 = vst [vmem:[#allocation73_spill] sm:$0xff] %v6401_v46 }
 0x1f3   : > { %7017 = vst [vmem:[#allocation63_spill] sm:$0xff] %v6381_v21 }
 0x1f4   : > { %v6385_v38 = vpop.f32.mrf.mxu1 }
 0x1f5   : > { %7019 = vst [vmem:[#allocation65_spill] sm:$0xff] %v6385_v38  ;;  %v6407_v38 = vpop.f32.mrf.mxu0 }
 0x1f6   : > { %v6387_v4 = vpop.f32.mrf.mxu1  ;;  %7030 = vst [vmem:[#allocation76_spill] sm:$0xff] %v6407_v38 }
 0x1f7   : > { %7020 = vst [vmem:[#allocation66_spill] sm:$0xff] %v6387_v4 }
 0x1f8   : > { %v6391_v44 = vpop.f32.mrf.mxu1 }
 0x1f9   : > { %7022 = vst [vmem:[#allocation68_spill] sm:$0xff] %v6391_v44  ;;  %v6413_v44 = vpop.f32.mrf.mxu0 }
 0x1fa   : > { %v6393_v28 = vpop.f32.mrf.mxu1  ;;  %7033 = vst [vmem:[#allocation79_spill] sm:$0xff] %v6413_v44 }
 0x1fb   : > { %7023 = vst [vmem:[#allocation69_spill] sm:$0xff] %v6393_v28 }
 0x1fc   : > { %v6397_v22 = vpop.f32.mrf.mxu1 }
 0x1fd   : > { %7025 = vst [vmem:[#allocation71_spill] sm:$0xff] %v6397_v22  ;;  %v6419_v22 = vpop.f32.mrf.mxu0 }
 0x1fe   : > { %v6399_v40 = vpop.f32.mrf.mxu1  ;;  %7036 = vst [vmem:[#allocation82_spill] sm:$0xff] %v6419_v22 }
 0x1ff   : > { %7026 = vst [vmem:[#allocation72_spill] sm:$0xff] %v6399_v40 }
 0x200   : > { %v6403_v21 = vpop.f32.mrf.mxu1 }
 0x201   : > { %7028 = vst [vmem:[#allocation74_spill] sm:$0xff] %v6403_v21 }
 0x202   : > { %v6405_v51 = vpop.f32.mrf.mxu1 }
 0x203   : > { %7029 = vst [vmem:[#allocation75_spill] sm:$0xff] %v6405_v51  ;;  %v6425_v51 = vpop.f32.mrf.mxu0 }
 0x204   : > { %v6409_v4 = vpop.f32.mrf.mxu1  ;;  %7039 = vst [vmem:[#allocation85_spill] sm:$0xff] %v6425_v51 }
 0x205   : > { %7031 = vst [vmem:[#allocation77_spill] sm:$0xff] %v6409_v4  ;;  %v2964_v4 = vlaneseq }
 0x206   : > { %v6411_v13 = vpop.f32.mrf.mxu1 }
 0x207   : > { %7032 = vst [vmem:[#allocation78_spill] sm:$0xff] %v6411_v13  ;;  %v6431_v13 = vpop.f32.mrf.mxu0 }
 0x208   : > { %v6415_v28 = vpop.f32.mrf.mxu1  ;;  %7042 = vst [vmem:[#allocation88_spill] sm:$0xff] %v6431_v13 }
 0x209   : > { %7034 = vst [vmem:[#allocation80_spill] sm:$0xff] %v6415_v28  ;;  %v6435_v28 = vshrl.u32 %v2964_v4, 7  ;;  %v6439_v22 = vpop.f32.mrf.mxu0 }
 0x20a   : > { %v6417_v16 = vpop.f32.mrf.mxu1  ;;  %7046 = vst [vmem:[#allocation92_spill] sm:$0xff] %v6439_v22 }
 0x20b   : > { %7035 = vst [vmem:[#allocation81_spill] sm:$0xff] %v6417_v16  ;;  %7044 = vst [vmem:[#allocation90_spill] sm:$0xff] %v6435_v28  ;;  %v6954_v4 = vsub.s32 1, %v6435_v28 }
 0x20c   : > { %v6421_v40 = vpop.f32.mrf.mxu1 }
 0x20d   : > { %7037 = vst [vmem:[#allocation83_spill] sm:$0xff] %v6421_v40 }
 0x20e   : > { %v6423_v21 = vpop.f32.mrf.mxu1 }
 0x20f   : > { %7038 = vst [vmem:[#allocation84_spill] sm:$0xff] %v6423_v21  ;;  %v6953_v21 = vsub.s32 0, %v6435_v28 }
 0x210   : > { %v6427_v38 = vpop.f32.mrf.mxu1 }
 0x211   : > { %7040 = vst [vmem:[#allocation86_spill] sm:$0xff] %v6427_v38 }
 0x212   : > { %v6429_v46 = vpop.f32.mrf.mxu1 }
 0x213   : > { %7041 = vst [vmem:[#allocation87_spill] sm:$0xff] %v6429_v46  ;;  %v2962_v46 = vld [vmem:[%s6948_s3] sm:$0x3] }
 0x214   : > { %v6433_v44 = vpop.f32.mrf.mxu1 }
 0x215   : > { %7043 = vst [vmem:[#allocation89_spill] sm:$0xff] %v6433_v44  ;;  %v1780_v44 = vadd.f32 %v6217_v62, %v6032_v52  ;;  %v1784_v52 = vadd.f32 %v6232_v9, %v6042_v58  ;;  %v1790_v58 = vadd.f32 %v6241_v41, %v6056_v0  ;;  %v1794_v41 = vadd.f32 %v6256_v34, %v6066_v6 }
 0x216   : > { %v6437_v16 = vpop.f32.mrf.mxu1 }
 0x217   : > { %7045 = vst [vmem:[#allocation91_spill] sm:$0xff] %v6437_v16  ;;  %v6453_v16 = vpop.f32.mrf.mxu0  ;;  %v2613_v13 = vadd.f32 %v6219_v39, %v1780_v44  ;;  %v2617_v9 = vadd.f32 %v6239_v55, %v1784_v52  ;;  %v2623_v0 = vadd.f32 %v6261_v25, %v1790_v58  ;;  %v1800_v58 = vadd.f32 %v6263_v23, %v6080_v12 }
 0x218   : > { %v6441_v40 = vpop.f32.mrf.mxu1  ;;  %7049 = vst [vmem:[#allocation95_spill] sm:$0xff] %v6453_v16 }
 0x219   : > { %7047 = vst [vmem:[#allocation93_spill] sm:$0xff] %v6441_v40  ;;  %v2611_v40 = vadd.f32 %v6212_v3, %v6215_v15  ;;  %v6473_v16 = vpop.f32.mrf.mxu0  ;;  %v2615_v15 = vadd.f32 %v6234_v45, %v6223_v61 }
 0x21a   : > { %v6444_v51 = vpop.f32.mrf.mxu1 }
 0x21b   : > { %7048 = vst [vmem:[#allocation94_spill] sm:$0xff] %v6444_v51  ;;  %v6461_v51 = vrot.slane %v2962_v46, %v6953_v21 }
 0x21c   : > { %v6455_v38 = vpop.f32.mrf.mxu1 }
 0x21d   : > { %7050 = vst [vmem:[#allocation96_spill] sm:$0xff] %v6455_v38  ;;  %v6471_v38 = vrot.slane %v2962_v46, %v6954_v4  ;;  %v2621_v46 = vadd.f32 %v6254_v27, %v6237_v54  ;;  %v6485_v4 = vpop.f32.mrf.mxu0 }
 0x21e   : > { %v2803_v22 = vpop.f32.mrf.mxu1 }
 0x21f   : > { %v2804_v62 = vadd.f32 %v2803_v22, %v2611_v40 }
 0x220   : > { %v2805_v3 = vpop.f32.mrf.mxu1 }
 0x221   : > { %v2974_v21 = vadd.f32 %v6461_v51, %v2804_v62  ;;  %v2806_v39 = vadd.f32 %v2805_v3, %v2613_v13  ;;  %v6499_v3 = vpop.f32.mrf.mxu0 }
 0x222   : > { %v2807_v22 = vpop.f32.mrf.mxu1 }
 0x223   : > { %v2975_v44 = vadd.f32 %v6471_v38, %v2806_v39  ;;  %v2808_v40 = vadd.f32 %v2807_v22, %v2615_v15  ;;  %v3038_v61 = vmax.f32 %v2974_v21, 0.0 }
 0x224   : > { %v2809_v28 = vpop.f32.mrf.mxu1 }
 0x225   : > { %v3039_v45 = vmax.f32 %v2975_v44, 0.0  ;;  %v2976_v13 = vadd.f32 %v6461_v51, %v2808_v40  ;;  %v2810_v62 = vadd.f32 %v2809_v28, %v2617_v9  ;;  %v2625_v28 = vadd.f32 %v6270_v19, %v6251_v60 }
 0x226   : > { %v2813_v54 = vpop.f32.mrf.mxu1  ;;  %v2627_v9 = vadd.f32 %v6277_v31, %v1794_v41  ;;  %v2631_v60 = vadd.f32 %v6286_v7, %v6259_v29  ;;  %v2633_v31 = vadd.f32 %v6293_v48, %v1800_v58  ;;  %v1804_v41 = vadd.f32 %v6272_v17, %v6090_v18 }
 0x227   : > { %v4554_v55 = vpack.c.bf16 %v3039_v45, %v3038_v61  ;;  %v3040_v27 = vmax.f32 %v2976_v13, 0.0  ;;  %v2977_v21 = vadd.f32 %v6471_v38, %v2810_v62  ;;  %v2814_v52 = vadd.f32 %v2813_v54, %v2621_v46  ;;  %v6509_v46 = vpop.f32.mrf.mxu0 }
 0x228   : > { %v2815_v25 = vpop.f32.mrf.mxu1 }
 0x229   : > { %3294 = vst [vmem:[%s6494_s17] sm:$0xff] %v4554_v55  ;;  %v3102_v6 = vpack.c.bf16 %v3040_v27, %v3038_v61  ;;  %v3041_v34 = vmax.f32 %v2977_v21, 0.0  ;;  %v2978_v15 = vadd.f32 %v6461_v51, %v2814_v52  ;;  %v2816_v39 = vadd.f32 %v2815_v25, %v2623_v0  ;;  %v6519_v21 = vpop.f32.mrf.mxu0 }
 0x22a   : > { %v2817_v22 = vpop.f32.mrf.mxu1  ;;  %v1810_v25 = vadd.f32 %v6279_v43, %v6104_v24 }
 0x22b   : > { %v4555_v44 = vpack.c.bf16 %v3041_v34, %v3040_v27  ;;  %v2979_v40 = vadd.f32 %v6471_v38, %v2816_v39  ;;  %v2818_v19 = vadd.f32 %v2817_v22, %v2625_v28  ;;  %v3103_v13 = vpack.c.bf16 %v3041_v34, %v3039_v45  ;;  %v6529_v58 = vpop.f32.mrf.mxu0 }
 0x22c   : > { %v2819_v61 = vpop.f32.mrf.mxu1  ;;  %v3042_v62 = vmax.f32 %v2978_v15, 0.0  ;;  %v2635_v45 = vadd.f32 %v6302_v59, %v6267_v35  ;;  %v2637_v15 = vadd.f32 %v6309_v32, %v1804_v41  ;;  %v2641_v35 = vadd.f32 %v6318_v47, %v6275_v8 }
 0x22d   : > { %3295 = vst [vmem:[%s6494_s17 + $0x8] sm:$0xff] %v4555_v44  ;;  %v3043_v0 = vmax.f32 %v2979_v40, 0.0  ;;  %v2980_v12 = vadd.f32 %v6461_v51, %v2818_v19  ;;  %v2820_v23 = vadd.f32 %v2819_v61, %v2627_v9  ;;  %3562 = vmatprep.mubr.bf16.mxu0 %v3103_v13  ;;  %v2643_v32 = vadd.f32 %v6325_v63, %v1810_v25 }
 0x22e   : > { %v2823_v54 = vpop.f32.mrf.mxu1  ;;  %3563 = vmatmul.mubr.bf16.vlgmr.msra.gmra.mxu0 %v3102_v6  ;;  %v1814_v19 = vadd.f32 %v6288_v5, %v6114_v30 }
 0x22f   : > { %v4556_v55 = vpack.c.bf16 %v3043_v0, %v3042_v62  ;;  %v3044_v7 = vmax.f32 %v2980_v12, 0.0  ;;  %v2981_v29 = vadd.f32 %v6471_v38, %v2820_v23  ;;  %v2824_v27 = vadd.f32 %v2823_v54, %v2631_v60 }
 0x230   : > { %v2825_v52 = vpop.f32.mrf.mxu1  ;;  %v2647_v54 = vadd.f32 %v6340_v10, %v1814_v19 }
 0x231   : > { %3296 = vst [vmem:[%s6494_s17 + $0x10] sm:$0xff] %v4556_v55  ;;  %v3045_v48 = vmax.f32 %v2981_v29, 0.0  ;;  %v2982_v28 = vadd.f32 %v6461_v51, %v2824_v27  ;;  %v2826_v17 = vadd.f32 %v2825_v52, %v2633_v31  ;;  %v3104_v18 = vpack.c.bf16 %v3044_v7, %v3042_v62 }
 0x232   : > { %v2827_v34 = vpop.f32.mrf.mxu1  ;;  %v2645_v62 = vadd.f32 %v6333_v56, %v6283_v2  ;;  %v1820_v31 = vadd.f32 %v6295_v49, %v6128_v36  ;;  %v2651_v56 = vadd.f32 %v6347_v14, %v6291_v20 }
 0x233   : > { %v4557_v6 = vpack.c.bf16 %v3045_v48, %v3044_v7  ;;  %v2983_v39 = vadd.f32 %v6471_v38, %v2826_v17  ;;  %v2828_v59 = vadd.f32 %v2827_v34, %v2635_v45  ;;  %v3105_v9 = vpack.c.bf16 %v3045_v48, %v3043_v0  ;;  %v6539_v0 = vpop.f32.mrf.mxu0 }
 0x234   : > { %v2829_v22 = vpop.f32.mrf.mxu1  ;;  %v3046_v44 = vmax.f32 %v2982_v28, 0.0  ;;  %v2653_v10 = vadd.f32 %v6353_v53, %v1820_v31  ;;  %v1824_v28 = vadd.f32 %v6304_v57, %v6138_v42  ;;  %v2655_v34 = vadd.f32 %v6359_v1, %v6299_v26  ;;  %v7051_v1 = vld [vmem:[#allocation58_spill] sm:$0xff] }
 0x235   : > { %3297 = vst [vmem:[%s6494_s17 + $0x18] sm:$0xff] %v4557_v6  ;;  %v3047_v40 = vmax.f32 %v2983_v39, 0.0  ;;  %v2984_v24 = vadd.f32 %v6461_v51, %v2828_v59  ;;  %v2830_v43 = vadd.f32 %v2829_v22, %v2637_v15  ;;  %3572 = vmatprep.mubr.bf16.mxu0 %v3105_v9  ;;  %v6549_v29 = vpop.f32.mrf.mxu0  ;;  %v1830_v59 = vadd.f32 %v6311_v37, %v6152_v50 }
 0x236   : > { %v2833_v60 = vpop.f32.mrf.mxu1  ;;  %3573 = vmatmul.mubr.bf16.gmra.mxu0 %v3104_v18  ;;  %v2657_v22 = vadd.f32 %v6365_v33, %v1824_v28 }
 0x237   : > { %v4558_v61 = vpack.c.bf16 %v3047_v40, %v3046_v44  ;;  %v3048_v47 = vmax.f32 %v2984_v24, 0.0  ;;  %v2985_v8 = vadd.f32 %v6471_v38, %v2830_v43  ;;  %v2834_v13 = vadd.f32 %v2833_v60, %v2641_v35  ;;  %v6559_v15 = vpop.f32.mrf.mxu0 }
 0x238   : > { %v2835_v12 = vpop.f32.mrf.mxu1 }
 0x239   : > { %3298 = vst [vmem:[%s6494_s17 + $0x20] sm:$0xff] %v4558_v61  ;;  %v3049_v63 = vmax.f32 %v2985_v8, 0.0  ;;  %v2986_v23 = vadd.f32 %v6461_v51, %v2834_v13  ;;  %v2836_v5 = vadd.f32 %v2835_v12, %v2643_v32  ;;  %v3106_v30 = vpack.c.bf16 %v3048_v47, %v3046_v44  ;;  %v6569_v24 = vpop.f32.mrf.mxu0  ;;  %v7052_v61 = vld [vmem:[#allocation61_spill] sm:$0xff]  ;;  %v7054_v8 = vld [vmem:[#allocation42_spill] sm:$0xff] }
 0x23a   : > { %v2837_v41 = vpop.f32.mrf.mxu1  ;;  %v2663_v33 = vadd.f32 %v7052_v61, %v1830_v59  ;;  %v7062_v59 = vld [vmem:[#allocation73_spill] sm:$0xff] }
 0x23b   : > { %v4559_v55 = vpack.c.bf16 %v3049_v63, %v3048_v47  ;;  %v2987_v7 = vadd.f32 %v6471_v38, %v2836_v5  ;;  %v2838_v2 = vadd.f32 %v2837_v41, %v2645_v62  ;;  %v3107_v45 = vpack.c.bf16 %v3049_v63, %v3047_v40  ;;  %v7053_v47 = vld [vmem:[#allocation28_spill] sm:$0xff]  ;;  %v7055_v5 = vld [vmem:[#allocation41_spill] sm:$0xff]  ;;  %v6579_v41 = vpop.f32.mrf.mxu0 }
 0x23c   : > { %v2839_v27 = vpop.f32.mrf.mxu1  ;;  %v3050_v52 = vmax.f32 %v2986_v23, 0.0  ;;  %v2661_v40 = vadd.f32 %v7051_v1, %v6307_v11  ;;  %v1834_v13 = vadd.f32 %v7054_v8, %v7053_v47 }
 0x23d   : > { %3299 = vst [vmem:[%s6494_s17 + $0x28] sm:$0xff] %v4559_v55  ;;  %v3051_v48 = vmax.f32 %v2987_v7, 0.0  ;;  %v2988_v36 = vadd.f32 %v6461_v51, %v2838_v2  ;;  %v2840_v49 = vadd.f32 %v2839_v27, %v2647_v54  ;;  %3582 = vmatprep.mubr.bf16.mxu0 %v3107_v45  ;;  %v7057_v27 = vld [vmem:[#allocation31_spill] sm:$0xff]  ;;  %v7058_v45 = vld [vmem:[#allocation44_spill] sm:$0xff] }
 0x23e   : > { %v2843_v17 = vpop.f32.mrf.mxu1  ;;  %3583 = vmatmul.mubr.bf16.gmra.mxu0 %v3106_v30  ;;  %v7056_v30 = vld [vmem:[#allocation64_spill] sm:$0xff] }
 0x23f   : > { %v4560_v18 = vpack.c.bf16 %v3051_v48, %v3050_v52  ;;  %v3052_v20 = vmax.f32 %v2988_v36, 0.0  ;;  %v2989_v14 = vadd.f32 %v6471_v38, %v2840_v49  ;;  %v2844_v25 = vadd.f32 %v2843_v17, %v2651_v56  ;;  %v7059_v36 = vld [vmem:[#allocation67_spill] sm:$0xff] }
 0x240   : > { %v2845_v6 = vpop.f32.mrf.mxu1  ;;  %v2665_v31 = vadd.f32 %v7056_v30, %v7055_v5  ;;  %v2667_v49 = vadd.f32 %v7059_v36, %v1834_v13 }
 0x241   : > { %3300 = vst [vmem:[%s6494_s17 + $0x30] sm:$0xff] %v4560_v18  ;;  %v3053_v53 = vmax.f32 %v2989_v14, 0.0  ;;  %v2990_v39 = vadd.f32 %v6461_v51, %v2844_v25  ;;  %v2846_v57 = vadd.f32 %v2845_v6, %v2653_v10  ;;  %v3108_v42 = vpack.c.bf16 %v3052_v20, %v3050_v52  ;;  %v7060_v18 = vld [vmem:[#allocation43_spill] sm:$0xff]  ;;  %v6589_v25 = vpop.f32.mrf.mxu0 }
 0x242   : > { %v2847_v35 = vpop.f32.mrf.mxu1  ;;  %v1840_v52 = vadd.f32 %v7058_v45, %v7057_v27 }
 0x243   : > { %v4561_v9 = vpack.c.bf16 %v3053_v53, %v3052_v20  ;;  %v2991_v44 = vadd.f32 %v6471_v38, %v2846_v57  ;;  %v2848_v26 = vadd.f32 %v2847_v35, %v2655_v34  ;;  %v3109_v32 = vpack.c.bf16 %v3053_v53, %v3051_v48  ;;  %v7061_v20 = vld [vmem:[#allocation70_spill] sm:$0xff] }
 0x244   : > { %v2849_v43 = vpop.f32.mrf.mxu1  ;;  %v3054_v19 = vmax.f32 %v2990_v39, 0.0  ;;  %v2671_v14 = vadd.f32 %v7061_v20, %v7060_v18  ;;  %v2673_v35 = vadd.f32 %v7062_v59, %v1840_v52  ;;  %v7074_v18 = vld [vmem:[#allocation50_spill] sm:$0xff] }
 0x245   : > { %3301 = vst [vmem:[%s6494_s17 + $0x38] sm:$0xff] %v4561_v9  ;;  %v3055_v60 = vmax.f32 %v2991_v44, 0.0  ;;  %v2992_v50 = vadd.f32 %v6461_v51, %v2848_v26  ;;  %v2850_v37 = vadd.f32 %v2849_v43, %v2657_v22  ;;  %3592 = vmatprep.mubr.bf16.mxu0 %v3109_v32  ;;  %v7063_v22 = vld [vmem:[#allocation34_spill] sm:$0xff] }
 0x246   : > { %v2853_v62 = vpop.f32.mrf.mxu1  ;;  %3593 = vmatmul.mubr.bf16.gmra.mxu0 %v3108_v42  ;;  %v7064_v9 = vld [vmem:[#allocation46_spill] sm:$0xff] }
 0x247   : > { %v4562_v12 = vpack.c.bf16 %v3055_v60, %v3054_v19  ;;  %v3056_v11 = vmax.f32 %v2992_v50, 0.0  ;;  %v2993_v63 = vadd.f32 %v6471_v38, %v2850_v37  ;;  %v2854_v23 = vadd.f32 %v2853_v62, %v2661_v40  ;;  %v6599_v37 = vpop.f32.mrf.mxu0  ;;  %v7067_v62 = vld [vmem:[#allocation37_spill] sm:$0xff] }
 0x248   : > { %v2855_v54 = vpop.f32.mrf.mxu1  ;;  %v1844_v44 = vadd.f32 %v7064_v9, %v7063_v22  ;;  %v7078_v22 = vld [vmem:[#allocation51_spill] sm:$0xff] }
 0x249   : > { %3302 = vst [vmem:[%s6494_s17 + $0x40] sm:$0xff] %v4562_v12  ;;  %v3110_v55 = vpack.c.bf16 %v3056_v11, %v3054_v19  ;;  %v3057_v7 = vmax.f32 %v2993_v63, 0.0  ;;  %v2994_v2 = vadd.f32 %v6461_v51, %v2854_v23  ;;  %v2856_v56 = vadd.f32 %v2855_v54, %v2663_v33  ;;  %v7065_v19 = vld [vmem:[#allocation45_spill] sm:$0xff]  ;;  %v7068_v12 = vld [vmem:[#allocation48_spill] sm:$0xff]  ;;  %v7069_v23 = vld [vmem:[#allocation79_spill] sm:$0xff] }
 0x24a   : > { %v2857_v48 = vpop.f32.mrf.mxu1  ;;  %v2677_v5 = vadd.f32 %v7069_v23, %v1844_v44  ;;  %v7084_v23 = vld [vmem:[#allocation53_spill] sm:$0xff] }
 0x24b   : > { %v4563_v10 = vpack.c.bf16 %v3057_v7, %v3056_v11  ;;  %v2995_v28 = vadd.f32 %v6471_v38, %v2856_v56  ;;  %v2858_v17 = vadd.f32 %v2857_v48, %v2665_v31  ;;  %v3111_v6 = vpack.c.bf16 %v3057_v7, %v3055_v60  ;;  %v7066_v60 = vld [vmem:[#allocation76_spill] sm:$0xff]  ;;  %v7071_v7 = vld [vmem:[#allocation82_spill] sm:$0xff]  ;;  %v6609_v56 = vpop.f32.mrf.mxu0 }
 0x24c   : > { %v2859_v34 = vpop.f32.mrf.mxu1  ;;  %v3058_v53 = vmax.f32 %v2994_v2, 0.0  ;;  %v2675_v50 = vadd.f32 %v7066_v60, %v7065_v19  ;;  %v1850_v11 = vadd.f32 %v7068_v12, %v7067_v62  ;;  %v7079_v19 = vld [vmem:[#allocation5_spill] sm:$0xff]  ;;  %v7080_v60 = vld [vmem:[#allocation52_spill] sm:$0xff]  ;;  %v7082_v12 = vld [vmem:[#allocation95_spill] sm:$0xff] }
 0x24d   : > { %3303 = vst [vmem:[%s6494_s17 + $0x48] sm:$0xff] %v4563_v10  ;;  %v3059_v39 = vmax.f32 %v2995_v28, 0.0  ;;  %v2996_v57 = vadd.f32 %v6461_v51, %v2858_v17  ;;  %v2860_v42 = vadd.f32 %v2859_v34, %v2667_v49  ;;  %3602 = vmatprep.mubr.bf16.mxu0 %v3111_v6  ;;  %v7072_v10 = vld [vmem:[#allocation85_spill] sm:$0xff]  ;;  %v7073_v17 = vld [vmem:[#allocation40_spill] sm:$0xff]  ;;  %v6621_v44 = vpop.f32.mrf.mxu0 }
 0x24e   : > { %v2863_v26 = vpop.f32.mrf.mxu1  ;;  %3603 = vmatmul.mubr.bf16.gmra.mxu0 %v3110_v55  ;;  %v7070_v55 = vld [vmem:[#allocation47_spill] sm:$0xff]  ;;  %v2683_v28 = vadd.f32 %v7072_v10, %v1850_v11  ;;  %v1854_v20 = vadd.f32 %v7074_v18, %v7073_v17 }
 0x24f   : > { %v4564_v1 = vpack.c.bf16 %v3059_v39, %v3058_v53  ;;  %v3060_v40 = vmax.f32 %v2996_v57, 0.0  ;;  %v2997_v43 = vadd.f32 %v6471_v38, %v2860_v42  ;;  %v2864_v32 = vadd.f32 %v2863_v26, %v2671_v14  ;;  %v7076_v42 = vld [vmem:[#allocation88_spill] sm:$0xff] }
 0x250   : > { %v2865_v61 = vpop.f32.mrf.mxu1  ;;  %v2681_v2 = vadd.f32 %v7071_v7, %v7070_v55 }
 0x251   : > { %3304 = vst [vmem:[%s6494_s17 + $0x50] sm:$0xff] %v4564_v1  ;;  %v3112_v33 = vpack.c.bf16 %v3060_v40, %v3058_v53  ;;  %v3061_v47 = vmax.f32 %v2997_v43, 0.0  ;;  %v2998_v8 = vadd.f32 %v6461_v51, %v2864_v32  ;;  %v2866_v13 = vadd.f32 %v2865_v61, %v2673_v35  ;;  %v7077_v35 = vld [vmem:[#allocation4_spill] sm:$0xff] }
 0x252   : > { %v2867_v63 = vpop.f32.mrf.mxu1  ;;  %v1858_v9 = vadd.f32 %v7078_v22, %v7077_v35  ;;  %v7089_v35 = vld [vmem:[#allocation9_spill] sm:$0xff]  ;;  %v7090_v22 = vld [vmem:[#allocation56_spill] sm:$0xff] }
 0x253   : > { %v4565_v30 = vpack.c.bf16 %v3061_v47, %v3060_v40  ;;  %v2999_v31 = vadd.f32 %v6471_v38, %v2866_v13  ;;  %v2868_v54 = vadd.f32 %v2867_v63, %v2675_v50  ;;  %v3113_v45 = vpack.c.bf16 %v3061_v47, %v3059_v39  ;;  %v7075_v39 = vld [vmem:[#allocation49_spill] sm:$0xff]  ;;  %v7083_v63 = vld [vmem:[#allocation6_spill] sm:$0xff] }
 0x254   : > { %v2869_v27 = vpop.f32.mrf.mxu1  ;;  %v3062_v52 = vmax.f32 %v2998_v8, 0.0  ;;  %v2685_v59 = vadd.f32 %v7076_v42, %v7075_v39  ;;  %v1860_v50 = vadd.f32 %v7080_v60, %v7079_v19  ;;  %v2691_v11 = vadd.f32 %v7082_v12, %v1858_v9  ;;  %v7091_v19 = vld [vmem:[#allocation10_spill] sm:$0xff]  ;;  %v7092_v60 = vld [vmem:[#allocation57_spill] sm:$0xff] }
 0x255   : > { %3305 = vst [vmem:[%s6494_s17 + $0x58] sm:$0xff] %v4565_v30  ;;  %v3063_v48 = vmax.f32 %v2999_v31, 0.0  ;;  %v3000_v36 = vadd.f32 %v6461_v51, %v2868_v54  ;;  %v2870_v49 = vadd.f32 %v2869_v27, %v2677_v5  ;;  %3612 = vmatprep.mubr.bf16.mxu0 %v3113_v45  ;;  %v1862_v5 = vadd.f32 %v7084_v23, %v7083_v63  ;;  %v6632_v30 = vpop.f32.mrf.mxu0  ;;  %v7094_v63 = vld [vmem:[#allocation59_spill] sm:$0xff] }
 0x256   : > { %v2873_v14 = vpop.f32.mrf.mxu1  ;;  %3613 = vmatmul.mubr.bf16.gmra.mxu0 %v3112_v33  ;;  %v7081_v33 = vld [vmem:[#allocation92_spill] sm:$0xff]  ;;  %v2693_v45 = vadd.f32 %v6473_v16, %v1860_v50  ;;  %v1870_v9 = vadd.f32 %v7090_v22, %v7089_v35  ;;  %v1872_v50 = vadd.f32 %v7092_v60, %v7091_v19 }
 0x257   : > { %v4566_v34 = vpack.c.bf16 %v3063_v48, %v3062_v52  ;;  %v3064_v6 = vmax.f32 %v3000_v36, 0.0  ;;  %v3001_v53 = vadd.f32 %v6471_v38, %v2870_v49  ;;  %v2874_v57 = vadd.f32 %v2873_v14, %v2681_v2  ;;  %v7086_v36 = vld [vmem:[#allocation54_spill] sm:$0xff]  ;;  %v7087_v14 = vld [vmem:[#allocation8_spill] sm:$0xff] }
 0x258   : > { %v2875_v26 = vpop.f32.mrf.mxu1  ;;  %v2687_v47 = vadd.f32 %v7081_v33, %v1854_v20  ;;  %v2703_v12 = vadd.f32 %v6519_v21, %v1870_v9 }
 0x259   : > { %3306 = vst [vmem:[%s6494_s17 + $0x60] sm:$0xff] %v4566_v34  ;;  %v3114_v1 = vpack.c.bf16 %v3064_v6, %v3062_v52  ;;  %v3065_v40 = vmax.f32 %v3001_v53, 0.0  ;;  %v3002_v43 = vadd.f32 %v6461_v51, %v2874_v57  ;;  %v2876_v32 = vadd.f32 %v2875_v26, %v2683_v28  ;;  %v7085_v52 = vld [vmem:[#allocation7_spill] sm:$0xff]  ;;  %v6643_v53 = vpop.f32.mrf.mxu0 }
 0x25a   : > { %v2877_v61 = vpop.f32.mrf.mxu1  ;;  %v1864_v49 = vadd.f32 %v7086_v36, %v7085_v52  ;;  %v7088_v34 = vld [vmem:[#allocation55_spill] sm:$0xff] }
 0x25b   : > { %v4567_v8 = vpack.c.bf16 %v3065_v40, %v3064_v6  ;;  %v3003_v13 = vadd.f32 %v6471_v38, %v2876_v32  ;;  %v2878_v62 = vadd.f32 %v2877_v61, %v2685_v59  ;;  %v3115_v54 = vpack.c.bf16 %v3065_v40, %v3063_v48  ;;  %v6654_v61 = vpop.f32.mrf.mxu0 }
 0x25c   : > { %v2879_v31 = vpop.f32.mrf.mxu1  ;;  %v3066_v55 = vmax.f32 %v3002_v43, 0.0  ;;  %v2695_v48 = vadd.f32 %v6485_v4, %v1862_v5  ;;  %v1868_v6 = vadd.f32 %v7088_v34, %v7087_v14 }
 0x25d   : > { %3307 = vst [vmem:[%s6494_s17 + $0x68] sm:$0xff] %v4567_v8  ;;  %v3067_v7 = vmax.f32 %v3003_v13, 0.0  ;;  %v3004_v2 = vadd.f32 %v6461_v51, %v2878_v62  ;;  %v2880_v27 = vadd.f32 %v2879_v31, %v2687_v47  ;;  %3622 = vmatprep.mubr.bf16.mxu0 %v3115_v54  ;;  %v6665_v52 = vpop.f32.mrf.mxu0 }
 0x25e   : > { %v2883_v10 = vpop.f32.mrf.mxu1  ;;  %3623 = vmatmul.mubr.bf16.gmra.mxu0 %v3114_v1  ;;  %v2697_v1 = vadd.f32 %v6499_v3, %v1864_v49  ;;  %v2701_v32 = vadd.f32 %v6509_v46, %v1868_v6 }
 0x25f   : > { %v4568_v28 = vpack.c.bf16 %v3067_v7, %v3066_v55  ;;  %v3068_v17 = vmax.f32 %v3004_v2, 0.0  ;;  %v3005_v18 = vadd.f32 %v6471_v38, %v2880_v27  ;;  %v2884_v20 = vadd.f32 %v2883_v10, %v2691_v11  ;;  %v7093_v11 = vld [vmem:[#allocation11_spill] sm:$0xff]  ;;  %v7095_v2 = vld [vmem:[#allocation12_spill] sm:$0xff] }
 0x260   : > { %v2885_v57 = vpop.f32.mrf.mxu1  ;;  %v1874_v23 = vadd.f32 %v7094_v63, %v7093_v11  ;;  %v7096_v27 = vld [vmem:[#allocation60_spill] sm:$0xff] }
 0x261   : > { %3308 = vst [vmem:[%s6494_s17 + $0x70] sm:$0xff] %v4568_v28  ;;  %v3116_v16 = vpack.c.bf16 %v3068_v17, %v3066_v55  ;;  %v3069_v39 = vmax.f32 %v3005_v18, 0.0  ;;  %v3006_v42 = vadd.f32 %v6461_v51, %v2884_v20  ;;  %v2886_v59 = vadd.f32 %v2885_v57, %v2693_v45  ;;  %v7098_v18 = vld [vmem:[#allocation62_spill] sm:$0xff] }
 0x262   : > { %v2887_v26 = vpop.f32.mrf.mxu1  ;;  %v1878_v45 = vadd.f32 %v7096_v27, %v7095_v2  ;;  %v2707_v14 = vadd.f32 %v6539_v0, %v1874_v23 }
 0x263   : > { %v4569_v4 = vpack.c.bf16 %v3069_v39, %v3068_v17  ;;  %v3007_v40 = vadd.f32 %v6471_v38, %v2886_v59  ;;  %v2888_v43 = vadd.f32 %v2887_v26, %v2695_v48  ;;  %v3117_v47 = vpack.c.bf16 %v3069_v39, %v3067_v7  ;;  %v7097_v17 = vld [vmem:[#allocation13_spill] sm:$0xff]  ;;  %v7100_v39 = vld [vmem:[#allocation63_spill] sm:$0xff]  ;;  %v6676_v59 = vpop.f32.mrf.mxu0 }
 0x264   : > { %v2889_v33 = vpop.f32.mrf.mxu1  ;;  %v3070_v8 = vmax.f32 %v3006_v42, 0.0  ;;  %v2705_v7 = vadd.f32 %v6529_v58, %v1872_v50  ;;  %v1880_v20 = vadd.f32 %v7098_v18, %v7097_v17  ;;  %v2711_v57 = vadd.f32 %v6549_v29, %v1878_v45  ;;  %v7107_v45 = vld [vmem:[#allocation18_spill] sm:$0xff] }
 0x265   : > { %3309 = vst [vmem:[%s6494_s17 + $0x78] sm:$0xff] %v4569_v4  ;;  %v3071_v13 = vmax.f32 %v3007_v40, 0.0  ;;  %v3008_v62 = vadd.f32 %v6461_v51, %v2888_v43  ;;  %v2890_v3 = vadd.f32 %v2889_v33, %v2697_v1  ;;  %3632 = vmatprep.mubr.bf16.mxu0 %v3117_v47  ;;  %v7101_v40 = vld [vmem:[#allocation15_spill] sm:$0xff]  ;;  %v7102_v43 = vld [vmem:[#allocation65_spill] sm:$0xff] }
 0x266   : > { %v2893_v46 = vpop.f32.mrf.mxu1  ;;  %3633 = vmatmul.mubr.bf16.gmra.mxu0 %v3116_v16  ;;  %v7099_v16 = vld [vmem:[#allocation14_spill] sm:$0xff]  ;;  %v2713_v4 = vadd.f32 %v6559_v15, %v1880_v20 }
 0x267   : > { %v4570_v5 = vpack.c.bf16 %v3071_v13, %v3070_v8  ;;  %v3072_v31 = vmax.f32 %v3008_v62, 0.0  ;;  %v3009_v54 = vadd.f32 %v6471_v38, %v2890_v3  ;;  %v2894_v55 = vadd.f32 %v2893_v46, %v2701_v32  ;;  %v6687_v3 = vpop.f32.mrf.mxu0  ;;  %v7105_v46 = vld [vmem:[#allocation17_spill] sm:$0xff] }
 0x268   : > { %v2895_v36 = vpop.f32.mrf.mxu1  ;;  %v1882_v42 = vadd.f32 %v7100_v39, %v7099_v16  ;;  %v1884_v32 = vadd.f32 %v7102_v43, %v7101_v40  ;;  %v7113_v43 = vld [vmem:[#allocation21_spill] sm:$0xff] }
 0x269   : > { %3310 = vst [vmem:[%s6494_s17 + $0x80] sm:$0xff] %v4570_v5  ;;  %v3118_v21 = vpack.c.bf16 %v3072_v31, %v3070_v8  ;;  %v3073_v49 = vmax.f32 %v3009_v54, 0.0  ;;  %v3010_v10 = vadd.f32 %v6461_v51, %v2894_v55  ;;  %v2896_v28 = vadd.f32 %v2895_v36, %v2703_v12  ;;  %v7103_v8 = vld [vmem:[#allocation16_spill] sm:$0xff]  ;;  %v7108_v36 = vld [vmem:[#allocation69_spill] sm:$0xff] }
 0x26a   : > { %v2897_v48 = vpop.f32.mrf.mxu1  ;;  %v2715_v47 = vadd.f32 %v6569_v24, %v1882_v42  ;;  %v7106_v5 = vld [vmem:[#allocation68_spill] sm:$0xff]  ;;  %v2717_v55 = vadd.f32 %v6579_v41, %v1884_v32  ;;  %v7114_v32 = vld [vmem:[#allocation74_spill] sm:$0xff] }
 0x26b   : > { %v4571_v58 = vpack.c.bf16 %v3073_v49, %v3072_v31  ;;  %v3011_v34 = vadd.f32 %v6471_v38, %v2896_v28  ;;  %v2898_v6 = vadd.f32 %v2897_v48, %v2705_v7  ;;  %v3119_v22 = vpack.c.bf16 %v3073_v49, %v3071_v13  ;;  %v7104_v13 = vld [vmem:[#allocation66_spill] sm:$0xff]  ;;  %v6698_v49 = vpop.f32.mrf.mxu0 }
 0x26c   : > { %v2899_v35 = vpop.f32.mrf.mxu1  ;;  %v3074_v9 = vmax.f32 %v3010_v10, 0.0  ;;  %v1888_v62 = vadd.f32 %v7104_v13, %v7103_v8  ;;  %v1890_v31 = vadd.f32 %v7106_v5, %v7105_v46  ;;  %v7115_v8 = vld [vmem:[#allocation22_spill] sm:$0xff]  ;;  %v7116_v13 = vld [vmem:[#allocation75_spill] sm:$0xff] }
 0x26d   : > { %3311 = vst [vmem:[%s6494_s17 + $0x88] sm:$0xff] %v4571_v58  ;;  %v3075_v26 = vmax.f32 %v3011_v34, 0.0  ;;  %v3012_v1 = vadd.f32 %v6461_v51, %v2898_v6  ;;  %v2900_v0 = vadd.f32 %v2899_v35, %v2707_v14  ;;  %3642 = vmatprep.mubr.bf16.mxu0 %v3119_v22  ;;  %v7109_v14 = vld [vmem:[#allocation19_spill] sm:$0xff]  ;;  %v7111_v35 = vld [vmem:[#allocation20_spill] sm:$0xff] }
 0x26e   : > { %v2903_v29 = vpop.f32.mrf.mxu1  ;;  %3643 = vmatmul.mubr.bf16.gmra.mxu0 %v3118_v21  ;;  %v2721_v27 = vadd.f32 %v6589_v25, %v1888_v62  ;;  %v1892_v21 = vadd.f32 %v7108_v36, %v7107_v45  ;;  %v2723_v48 = vadd.f32 %v6599_v37, %v1890_v31  ;;  %v7110_v58 = vld [vmem:[#allocation71_spill] sm:$0xff]  ;;  %v7112_v22 = vld [vmem:[#allocation72_spill] sm:$0xff]  ;;  %v1902_v62 = vadd.f32 %v7116_v13, %v7115_v8 }
 0x26f   : > { %v4572_v19 = vpack.c.bf16 %v3075_v26, %v3074_v9  ;;  %v3076_v60 = vmax.f32 %v3012_v1, 0.0  ;;  %v3013_v50 = vadd.f32 %v6471_v38, %v2900_v0  ;;  %v2904_v33 = vadd.f32 %v2903_v29, %v2711_v57  ;;  %v7117_v31 = vld [vmem:[#allocation23_spill] sm:$0xff]  ;;  %v7119_v36 = vld [vmem:[#allocation24_spill] sm:$0xff] }
 0x270   : > { %v2905_v12 = vpop.f32.mrf.mxu1  ;;  %v1894_v34 = vadd.f32 %v7110_v58, %v7109_v14  ;;  %v2725_v42 = vadd.f32 %v6609_v56, %v1892_v21  ;;  %v1900_v29 = vadd.f32 %v7114_v32, %v7113_v43  ;;  %v2735_v45 = vadd.f32 %v6654_v61, %v1902_v62  ;;  %v7120_v21 = vld [vmem:[#allocation78_spill] sm:$0xff]  ;;  %v7122_v14 = vld [vmem:[#allocation80_spill] sm:$0xff]  ;;  %v7125_v43 = vld [vmem:[#allocation27_spill] sm:$0xff] }
 0x271   : > { %3312 = vst [vmem:[%s6494_s17 + $0x90] sm:$0xff] %v4572_v19  ;;  %v3120_v15 = vpack.c.bf16 %v3076_v60, %v3074_v9  ;;  %v3077_v11 = vmax.f32 %v3013_v50, 0.0  ;;  %v3014_v63 = vadd.f32 %v6461_v51, %v2904_v33  ;;  %v2906_v23 = vadd.f32 %v2905_v12, %v2713_v4  ;;  %v7126_v32 = vld [vmem:[#allocation83_spill] sm:$0xff]  ;;  %v7128_v8 = vld [vmem:[#allocation84_spill] sm:$0xff] }
 0x272   : > { %v2907_v54 = vpop.f32.mrf.mxu1  ;;  %v1898_v9 = vadd.f32 %v7112_v22, %v7111_v35  ;;  %v2733_v5 = vadd.f32 %v6643_v53, %v1900_v29  ;;  %v1914_v29 = vadd.f32 %v7126_v32, %v7125_v43 }
 0x273   : > { %v4573_v24 = vpack.c.bf16 %v3077_v11, %v3076_v60  ;;  %v3015_v7 = vadd.f32 %v6471_v38, %v2906_v23  ;;  %v2908_v2 = vadd.f32 %v2907_v54, %v2715_v47  ;;  %v3121_v28 = vpack.c.bf16 %v3077_v11, %v3075_v26  ;;  %v6709_v26 = vpop.f32.mrf.mxu0  ;;  %v7118_v54 = vld [vmem:[#allocation77_spill] sm:$0xff] }
 0x274   : > { %v2909_v10 = vpop.f32.mrf.mxu1  ;;  %v3078_v17 = vmax.f32 %v3014_v63, 0.0  ;;  %v2727_v60 = vadd.f32 %v6621_v44, %v1894_v34  ;;  %v2731_v47 = vadd.f32 %v6632_v30, %v1898_v9 }
 0x275   : > { %3313 = vst [vmem:[%s6494_s17 + $0x98] sm:$0xff] %v4573_v24  ;;  %v3079_v18 = vmax.f32 %v3015_v7, 0.0  ;;  %v3016_v20 = vadd.f32 %v6461_v51, %v2908_v2  ;;  %v2910_v41 = vadd.f32 %v2909_v10, %v2717_v55  ;;  %3652 = vmatprep.mubr.bf16.mxu0 %v3121_v28  ;;  %v6720_v12 = vpop.f32.mrf.mxu0  ;;  %v1904_v55 = vadd.f32 %v7118_v54, %v7117_v31 }
 0x276   : > { %v2913_v25 = vpop.f32.mrf.mxu1  ;;  %3653 = vmatmul.mubr.bf16.gmra.mxu0 %v3120_v15  ;;  %v1908_v10 = vadd.f32 %v7120_v21, %v7119_v36  ;;  %v2747_v54 = vadd.f32 %v6709_v26, %v1914_v29 }
 0x277   : > { %v4574_v6 = vpack.c.bf16 %v3079_v18, %v3078_v17  ;;  %v3080_v57 = vmax.f32 %v3016_v20, 0.0  ;;  %v3017_v16 = vadd.f32 %v6471_v38, %v2910_v41  ;;  %v2914_v39 = vadd.f32 %v2913_v25, %v2721_v27  ;;  %v2752_v28 = vpop.f32.mrf.mxu0 }
 0x278   : > { %v2915_v1 = vpop.f32.mrf.mxu1  ;;  %v2737_v25 = vadd.f32 %v6665_v52, %v1904_v55 }
 0x279   : > { %3314 = vst [vmem:[%s6494_s17 + $0xa0] sm:$0xff] %v4574_v6  ;;  %v3122_v37 = vpack.c.bf16 %v3080_v57, %v3078_v17  ;;  %v3081_v0 = vmax.f32 %v3017_v16, 0.0  ;;  %v3018_v4 = vadd.f32 %v6461_v51, %v2914_v39  ;;  %v2916_v40 = vadd.f32 %v2915_v1, %v2723_v48  ;;  %v7121_v48 = vld [vmem:[#allocation25_spill] sm:$0xff]  ;;  %v7123_v39 = vld [vmem:[#allocation26_spill] sm:$0xff]  ;;  %v2754_v22 = vpop.f32.mrf.mxu0 }
 0x27a   : > { %v2917_v19 = vpop.f32.mrf.mxu1  ;;  %v1910_v58 = vadd.f32 %v7122_v14, %v7121_v48  ;;  %v2741_v16 = vadd.f32 %v6676_v59, %v1908_v10 }
 0x27b   : > { %v4575_v56 = vpack.c.bf16 %v3081_v0, %v3080_v57  ;;  %v3019_v50 = vadd.f32 %v6471_v38, %v2916_v40  ;;  %v2918_v33 = vadd.f32 %v2917_v19, %v2725_v42  ;;  %v3123_v11 = vpack.c.bf16 %v3081_v0, %v3079_v18  ;;  %v7124_v42 = vld [vmem:[#allocation81_spill] sm:$0xff]  ;;  %v2756_v62 = vpop.f32.mrf.mxu0 }
 0x27c   : > { %v2919_v15 = vpop.f32.mrf.mxu1  ;;  %v3082_v63 = vmax.f32 %v3018_v4, 0.0  ;;  %v1912_v35 = vadd.f32 %v7124_v42, %v7123_v39  ;;  %v2743_v52 = vadd.f32 %v6687_v3, %v1910_v58 }
 0x27d   : > { %3315 = vst [vmem:[%s6494_s17 + $0xa8] sm:$0xff] %v4575_v56  ;;  %v3083_v23 = vmax.f32 %v3019_v50, 0.0  ;;  %v3020_v46 = vadd.f32 %v6461_v51, %v2918_v33  ;;  %v2920_v44 = vadd.f32 %v2919_v15, %v2727_v60  ;;  %3662 = vmatprep.mubr.bf16.mxu0 %v3123_v11 }
 0x27e   : > { %v2923_v30 = vpop.f32.mrf.mxu1  ;;  %3663 = vmatmul.mubr.bf16.gmra.mxu0 %v3122_v37  ;;  %v2745_v33 = vadd.f32 %v6698_v49, %v1912_v35 }
 0x27f   : > { %v4576_v24 = vpack.c.bf16 %v3083_v23, %v3082_v63  ;;  %v3084_v7 = vmax.f32 %v3020_v46, 0.0  ;;  %v3021_v2 = vadd.f32 %v6471_v38, %v2920_v44  ;;  %v2924_v27 = vadd.f32 %v2923_v30, %v2731_v47  ;;  %v7127_v47 = vld [vmem:[#allocation29_spill] sm:$0xff]  ;;  %v7129_v46 = vld [vmem:[#allocation30_spill] sm:$0xff] }
 0x280   : > { %v2925_v17 = vpop.f32.mrf.mxu1  ;;  %v1918_v13 = vadd.f32 %v7128_v8, %v7127_v47  ;;  %v7130_v44 = vld [vmem:[#allocation86_spill] sm:$0xff] }
 0x281   : > { %3316 = vst [vmem:[%s6494_s17 + $0xb0] sm:$0xff] %v4576_v24  ;;  %v3124_v53 = vpack.c.bf16 %v3084_v7, %v3082_v63  ;;  %v3085_v18 = vmax.f32 %v3021_v2, 0.0  ;;  %v3022_v20 = vadd.f32 %v6461_v51, %v2924_v27  ;;  %v2926_v41 = vadd.f32 %v2925_v17, %v2733_v5  ;;  %v7132_v2 = vld [vmem:[#allocation87_spill] sm:$0xff] }
 0x282   : > { %v2927_v34 = vpop.f32.mrf.mxu1  ;;  %v1920_v5 = vadd.f32 %v7130_v44, %v7129_v46  ;;  %v2751_v24 = vadd.f32 %v6720_v12, %v1918_v13 }
 0x283   : > { %v4577_v6 = vpack.c.bf16 %v3085_v18, %v3084_v7  ;;  %v3023_v61 = vadd.f32 %v6471_v38, %v2926_v41  ;;  %v2928_v57 = vadd.f32 %v2927_v34, %v2735_v45  ;;  %v3125_v1 = vpack.c.bf16 %v3085_v18, %v3083_v23  ;;  %v7131_v7 = vld [vmem:[#allocation32_spill] sm:$0xff]  ;;  %v2760_v45 = vpop.f32.mrf.mxu0  ;;  %v7134_v41 = vld [vmem:[#allocation89_spill] sm:$0xff] }
 0x284   : > { %v2929_v9 = vpop.f32.mrf.mxu1  ;;  %v3086_v37 = vmax.f32 %v3022_v20, 0.0  ;;  %v1922_v27 = vadd.f32 %v7132_v2, %v7131_v7  ;;  %v2753_v26 = vadd.f32 %v2752_v28, %v1920_v5  ;;  %v7133_v20 = vld [vmem:[#allocation33_spill] sm:$0xff] }
 0x285   : > { %3317 = vst [vmem:[%s6494_s17 + $0xb8] sm:$0xff] %v4577_v6  ;;  %v3087_v0 = vmax.f32 %v3023_v61, 0.0  ;;  %v3024_v4 = vadd.f32 %v6461_v51, %v2928_v57  ;;  %v2930_v40 = vadd.f32 %v2929_v9, %v2737_v25  ;;  %3672 = vmatprep.mubr.bf16.mxu0 %v3125_v1  ;;  %v1924_v48 = vadd.f32 %v7134_v41, %v7133_v20  ;;  %v7135_v61 = vld [vmem:[#allocation35_spill] sm:$0xff]  ;;  %v2762_v39 = vpop.f32.mrf.mxu0 }
 0x286   : > { %v2933_v59 = vpop.f32.mrf.mxu1  ;;  %3673 = vmatmul.mubr.bf16.gmra.mxu0 %v3124_v53  ;;  %v2755_v6 = vadd.f32 %v2754_v22, %v1922_v27  ;;  %v7136_v57 = vld [vmem:[#allocation91_spill] sm:$0xff] }
 0x287   : > { %v4578_v19 = vpack.c.bf16 %v3087_v0, %v3086_v37  ;;  %v3088_v60 = vmax.f32 %v3024_v4, 0.0  ;;  %v3025_v56 = vadd.f32 %v6471_v38, %v2930_v40  ;;  %v2934_v50 = vadd.f32 %v2933_v59, %v2741_v16  ;;  %v7139_v59 = vld [vmem:[#allocation38_spill] sm:$0xff] }
 0x288   : > { %v2935_v15 = vpop.f32.mrf.mxu1  ;;  %v1928_v16 = vadd.f32 %v7136_v57, %v7135_v61  ;;  %v3358_v61 = vld [vmem:[%s6950_s5] sm:$0x3] }
 0x289   : > { %3318 = vst [vmem:[%s6494_s17 + $0xc0] sm:$0xff] %v4578_v19  ;;  %v3126_v3 = vpack.c.bf16 %v3088_v60, %v3086_v37  ;;  %v3089_v11 = vmax.f32 %v3025_v56, 0.0  ;;  %v3026_v63 = vadd.f32 %v6461_v51, %v2934_v50  ;;  %v2936_v23 = vadd.f32 %v2935_v15, %v2743_v52  ;;  %v7137_v37 = vld [vmem:[#allocation36_spill] sm:$0xff]  ;;  %v7140_v19 = vld [vmem:[#allocation94_spill] sm:$0xff]  ;;  %v2764_v56 = vpop.f32.mrf.mxu0 }
 0x28a   : > { %v2937_v31 = vpop.f32.mrf.mxu1  ;;  %v2757_v52 = vadd.f32 %v2756_v62, %v1924_v48  ;;  %v2761_v29 = vadd.f32 %v2760_v45, %v1928_v16  ;;  %v7141_v62 = vld [vmem:[#allocation39_spill] sm:$0xff] }
 0x28b   : > { %v4579_v55 = vpack.c.bf16 %v3089_v11, %v3088_v60  ;;  %v3027_v49 = vadd.f32 %v6471_v38, %v2936_v23  ;;  %v2938_v30 = vadd.f32 %v2937_v31, %v2745_v33  ;;  %v3127_v21 = vpack.c.bf16 %v3089_v11, %v3087_v0  ;;  %v7138_v0 = vld [vmem:[#allocation93_spill] sm:$0xff]  ;;  %v7142_v11 = vld [vmem:[#allocation96_spill] sm:$0xff] }
 0x28c   : > { %v2939_v36 = vpop.f32.mrf.mxu1  ;;  %v3090_v10 = vmax.f32 %v3026_v63, 0.0  ;;  %v1930_v4 = vadd.f32 %v7138_v0, %v7137_v37  ;;  %v1932_v60 = vadd.f32 %v7140_v19, %v7139_v59  ;;  %v1934_v63 = vadd.f32 %v7142_v11, %v7141_v62 }
 0x28d   : > { %3319 = vst [vmem:[%s6494_s17 + $0xc8] sm:$0xff] %v4579_v55  ;;  %v3091_v17 = vmax.f32 %v3027_v49, 0.0  ;;  %v3028_v53 = vadd.f32 %v6461_v51, %v2938_v30  ;;  %v2940_v18 = vadd.f32 %v2939_v36, %v2747_v54  ;;  %3682 = vmatprep.mubr.bf16.mxu0 %v3127_v21  ;;  %v2766_v55 = vpop.f32.mrf.mxu0 }
 0x28e   : > { %v2943_v14 = vpop.f32.mrf.mxu1  ;;  %3683 = vmatmul.mubr.bf16.gmra.mxu0 %v3126_v3  ;;  %v2763_v3 = vadd.f32 %v2762_v39, %v1930_v4  ;;  %v2765_v54 = vadd.f32 %v2764_v56, %v1932_v60  ;;  %v2767_v45 = vadd.f32 %v2766_v55, %v1934_v63 }
 0x28f   : > { %v4580_v12 = vpack.c.bf16 %v3091_v17, %v3090_v10  ;;  %v3092_v58 = vmax.f32 %v3028_v53, 0.0  ;;  %v3029_v34 = vadd.f32 %v6471_v38, %v2940_v18  ;;  %v2944_v25 = vadd.f32 %v2943_v14, %v2751_v24 }
 0x290   : > { %v2945_v42 = vpop.f32.mrf.mxu1 }
 0x291   : > { %3320 = vst [vmem:[%s6494_s17 + $0xd0] sm:$0xff] %v4580_v12  ;;  %v3128_v28 = vpack.c.bf16 %v3092_v58, %v3090_v10  ;;  %v3093_v35 = vmax.f32 %v3029_v34, 0.0  ;;  %v3030_v9 = vadd.f32 %v6461_v51, %v2944_v25  ;;  %v2946_v1 = vadd.f32 %v2945_v42, %v2753_v26 }
 0x292   : > { %v2947_v40 = vpop.f32.mrf.mxu1 }
 0x293   : > { %v4581_v43 = vpack.c.bf16 %v3093_v35, %v3092_v58  ;;  %v3031_v22 = vadd.f32 %v6471_v38, %v2946_v1  ;;  %v2948_v32 = vadd.f32 %v2947_v40, %v2755_v6  ;;  %v3129_v33 = vpack.c.bf16 %v3093_v35, %v3091_v17 }
 0x294   : > { %v2949_v50 = vpop.f32.mrf.mxu1  ;;  %v3094_v47 = vmax.f32 %v3030_v9, 0.0 }
 0x295   : > { %3321 = vst [vmem:[%s6494_s17 + $0xd8] sm:$0xff] %v4581_v43  ;;  %v3095_v8 = vmax.f32 %v3031_v22, 0.0  ;;  %v3032_v13 = vadd.f32 %v6461_v51, %v2948_v32  ;;  %v2950_v15 = vadd.f32 %v2949_v50, %v2757_v52  ;;  %3692 = vmatprep.mubr.bf16.mxu0 %v3129_v33 }
 0x296   : > { %v2953_v23 = vpop.f32.mrf.mxu1  ;;  %3693 = vmatmul.mubr.bf16.gmra.mxu0 %v3128_v28 }
 0x297   : > { %v4582_v46 = vpack.c.bf16 %v3095_v8, %v3094_v47  ;;  %v3096_v44 = vmax.f32 %v3032_v13, 0.0  ;;  %v3033_v5 = vadd.f32 %v6471_v38, %v2950_v15  ;;  %v2954_v31 = vadd.f32 %v2953_v23, %v2761_v29 }
 0x298   : > { %v2955_v49 = vpop.f32.mrf.mxu1 }
 0x299   : > { %3322 = vst [vmem:[%s6494_s17 + $0xe0] sm:$0xff] %v4582_v46  ;;  %v3130_v30 = vpack.c.bf16 %v3096_v44, %v3094_v47  ;;  %v3097_v24 = vmax.f32 %v3033_v5, 0.0  ;;  %v3034_v7 = vadd.f32 %v6461_v51, %v2954_v31  ;;  %v2956_v2 = vadd.f32 %v2955_v49, %v2763_v3 }
 0x29a   : > { %v2957_v27 = vpop.f32.mrf.mxu1 }
 0x29b   : > { %v4583_v36 = vpack.c.bf16 %v3097_v24, %v3096_v44  ;;  %v3035_v21 = vadd.f32 %v6471_v38, %v2956_v2  ;;  %v2958_v10 = vadd.f32 %v2957_v27, %v2765_v54  ;;  %v3131_v53 = vpack.c.bf16 %v3097_v24, %v3095_v8 }
 0x29c   : > { %v2959_v17 = vpop.f32.mrf.mxu1  ;;  %v3098_v18 = vmax.f32 %v3034_v7, 0.0 }
 0x29d   : > { %3323 = vst [vmem:[%s6494_s17 + $0xe8] sm:$0xff] %v4583_v36  ;;  %v3099_v26 = vmax.f32 %v3035_v21, 0.0  ;;  %v3036_v20 = vadd.f32 %v6461_v51, %v2958_v10  ;;  %v2960_v41 = vadd.f32 %v2959_v17, %v2767_v45  ;;  %3702 = vmatprep.mubr.bf16.mxu0 %v3131_v53  ;;  %v7143_v51 = vld [vmem:[#allocation90_spill] sm:$0xff] }
 0x29e   : > { %3703 = vmatmul.mubr.bf16.gmra.mxu0 %v3130_v30  ;;  %v7144_v57 = vsub.s32 0, %v7143_v51  ;;  %v7145_v39 = vsub.s32 1, %v7143_v51 }
 0x29f   : > { %v4584_v48 = vpack.c.bf16 %v3099_v26, %v3098_v18  ;;  %v3100_v14 = vmax.f32 %v3036_v20, 0.0  ;;  %v3037_v12 = vadd.f32 %v6471_v38, %v2960_v41 }
 0x2a0   : > { %v6790_v16 = vrot.slane %v3358_v61, %v7144_v57  ;;  %v6794_v38 = vrot.slane %v3358_v61, %v7145_v39 }
 0x2a1   : > { %3324 = vst [vmem:[%s6494_s17 + $0xf0] sm:$0xff] %v4584_v48  ;;  %v3132_v58 = vpack.c.bf16 %v3100_v14, %v3098_v18  ;;  %v3101_v34 = vmax.f32 %v3037_v12, 0.0 }
 0x2a3   : > { %v4585_v25 = vpack.c.bf16 %v3101_v34, %v3100_v14  ;;  %v3133_v6 = vpack.c.bf16 %v3101_v34, %v3099_v26 }
 0x2a5   : > { %3325 = vst [vmem:[%s6494_s17 + $0xf8] sm:$0xff] %v4585_v25  ;;  %3712 = vmatprep.mubr.bf16.mxu0 %v3133_v6 }
 0x2a6   : > { %3713 = vmatmul.mubr.bf16.gmra.mxu0 %v3132_v58 }
 0x2ee   : > { %v3564_v42 = vpop.f32.mrf.mxu0 }
 0x2ef   : > { %v3565_v28 = vadd.f32 %v3564_v42, %v6790_v16 }
 0x2f0   : > { %v3566_v35 = vpop.f32.mrf.mxu0 }
 0x2f1   : > { %3723 = vxpose.xlu0.b32.start [1/16] %v3565_v28, 128  ;;  %v3567_v9 = vadd.f32 %v3566_v35, %v6794_v38 }
 0x2f2   : > { %v3568_v1 = vpop.f32.mrf.mxu0 }
 0x2f3   : > { %v3569_v37 = vadd.f32 %v3568_v1, %v6790_v16  ;;  %3755 = vxpose.xlu1.b32.start [1/16] %v3567_v9, 128 }
 0x2f4   : > { %v3570_v0 = vpop.f32.mrf.mxu0 }
 0x2f5   : > { %v3571_v4 = vadd.f32 %v3570_v0, %v6794_v38  ;;  %3724 = vxpose.xlu0.b32.cont [2/16] %v3569_v37, 128 }
 0x2f6   : > { %v3574_v40 = vpop.f32.mrf.mxu0 }
 0x2f7   : > { %v3575_v52 = vadd.f32 %v3574_v40, %v6790_v16  ;;  %3756 = vxpose.xlu1.b32.cont [2/16] %v3571_v4, 128 }
 0x2f8   : > { %v3576_v43 = vpop.f32.mrf.mxu0 }
 0x2f9   : > { %v3577_v22 = vadd.f32 %v3576_v43, %v6794_v38  ;;  %3725 = vxpose.xlu0.b32.cont [3/16] %v3575_v52, 128 }
 0x2fa   : > { %v3578_v32 = vpop.f32.mrf.mxu0 }
 0x2fb   : > { %v3579_v29 = vadd.f32 %v3578_v32, %v6790_v16  ;;  %3757 = vxpose.xlu1.b32.cont [3/16] %v3577_v22, 128 }
 0x2fc   : > { %v3580_v59 = vpop.f32.mrf.mxu0 }
 0x2fd   : > { %v3581_v19 = vadd.f32 %v3580_v59, %v6794_v38  ;;  %3726 = vxpose.xlu0.b32.cont [4/16] %v3579_v29, 128 }
 0x2fe   : > { %v3584_v60 = vpop.f32.mrf.mxu0 }
 0x2ff   : > { %v3585_v56 = vadd.f32 %v3584_v60, %v6790_v16  ;;  %3758 = vxpose.xlu1.b32.cont [4/16] %v3581_v19, 128 }
 0x300   : > { %v3586_v50 = vpop.f32.mrf.mxu0 }
 0x301   : > { %v3587_v33 = vadd.f32 %v3586_v50, %v6794_v38  ;;  %3727 = vxpose.xlu0.b32.cont [5/16] %v3585_v56, 128 }
 0x302   : > { %v3588_v47 = vpop.f32.mrf.mxu0 }
 0x303   : > { %v3589_v8 = vadd.f32 %v3588_v47, %v6790_v16  ;;  %3759 = vxpose.xlu1.b32.cont [5/16] %v3587_v33, 128 }
 0x304   : > { %v3590_v13 = vpop.f32.mrf.mxu0 }
 0x305   : > { %v3591_v15 = vadd.f32 %v3590_v13, %v6794_v38  ;;  %3728 = vxpose.xlu0.b32.cont [6/16] %v3589_v8, 128 }
 0x306   : > { %v3594_v3 = vpop.f32.mrf.mxu0 }
 0x307   : > { %v3595_v62 = vadd.f32 %v3594_v3, %v6790_v16  ;;  %3760 = vxpose.xlu1.b32.cont [6/16] %v3591_v15, 128 }
 0x308   : > { %v3596_v11 = vpop.f32.mrf.mxu0 }
 0x309   : > { %v3597_v63 = vadd.f32 %v3596_v11, %v6794_v38  ;;  %3729 = vxpose.xlu0.b32.cont [7/16] %v3595_v62, 128 }
 0x30a   : > { %v3598_v23 = vpop.f32.mrf.mxu0 }
 0x30b   : > { %v3599_v46 = vadd.f32 %v3598_v23, %v6790_v16  ;;  %3761 = vxpose.xlu1.b32.cont [7/16] %v3597_v63, 128 }
 0x30c   : > { %v3600_v44 = vpop.f32.mrf.mxu0 }
 0x30d   : > { %v3601_v5 = vadd.f32 %v3600_v44, %v6794_v38  ;;  %3730 = vxpose.xlu0.b32.cont [8/16] %v3599_v46, 128 }
 0x30e   : > { %v3604_v31 = vpop.f32.mrf.mxu0 }
 0x30f   : > { %v3605_v54 = vadd.f32 %v3604_v31, %v6790_v16  ;;  %3762 = vxpose.xlu1.b32.cont [8/16] %v3601_v5, 128 }
 0x310   : > { %v3606_v55 = vpop.f32.mrf.mxu0 }
 0x311   : > { %v3607_v49 = vadd.f32 %v3606_v55, %v6794_v38  ;;  %3731 = vxpose.xlu0.b32.cont [9/16] %v3605_v54, 128 }
 0x312   : > { %v3608_v30 = vpop.f32.mrf.mxu0 }
 0x313   : > { %v3609_v24 = vadd.f32 %v3608_v30, %v6790_v16  ;;  %3763 = vxpose.xlu1.b32.cont [9/16] %v3607_v49, 128 }
 0x314   : > { %v3610_v7 = vpop.f32.mrf.mxu0 }
 0x315   : > { %v3611_v2 = vadd.f32 %v3610_v7, %v6794_v38  ;;  %3732 = vxpose.xlu0.b32.cont [10/16] %v3609_v24, 128 }
 0x316   : > { %v3614_v27 = vpop.f32.mrf.mxu0 }
 0x317   : > { %v3615_v45 = vadd.f32 %v3614_v27, %v6790_v16  ;;  %3764 = vxpose.xlu1.b32.cont [10/16] %v3611_v2, 128 }
 0x318   : > { %v3616_v36 = vpop.f32.mrf.mxu0 }
 0x319   : > { %v3617_v21 = vadd.f32 %v3616_v36, %v6794_v38  ;;  %3733 = vxpose.xlu0.b32.cont [11/16] %v3615_v45, 128 }
 0x31a   : > { %v3618_v10 = vpop.f32.mrf.mxu0 }
 0x31b   : > { %v3619_v17 = vadd.f32 %v3618_v10, %v6790_v16  ;;  %3765 = vxpose.xlu1.b32.cont [11/16] %v3617_v21, 128 }
 0x31c   : > { %v3620_v53 = vpop.f32.mrf.mxu0 }
 0x31d   : > { %v3621_v18 = vadd.f32 %v3620_v53, %v6794_v38  ;;  %3734 = vxpose.xlu0.b32.cont [12/16] %v3619_v17, 128 }
 0x31e   : > { %v3624_v26 = vpop.f32.mrf.mxu0 }
 0x31f   : > { %v3625_v20 = vadd.f32 %v3624_v26, %v6790_v16  ;;  %3766 = vxpose.xlu1.b32.cont [12/16] %v3621_v18, 128 }
 0x320   : > { %v3626_v41 = vpop.f32.mrf.mxu0 }
 0x321   : > { %v3627_v48 = vadd.f32 %v3626_v41, %v6794_v38  ;;  %3735 = vxpose.xlu0.b32.cont [13/16] %v3625_v20, 128 }
 0x322   : > { %v3628_v14 = vpop.f32.mrf.mxu0 }
 0x323   : > { %v3629_v12 = vadd.f32 %v3628_v14, %v6790_v16  ;;  %3767 = vxpose.xlu1.b32.cont [13/16] %v3627_v48, 128 }
 0x324   : > { %v3630_v58 = vpop.f32.mrf.mxu0 }
 0x325   : > { %v3631_v34 = vadd.f32 %v3630_v58, %v6794_v38  ;;  %3736 = vxpose.xlu0.b32.cont [14/16] %v3629_v12, 128 }
 0x326   : > { %v3634_v25 = vpop.f32.mrf.mxu0 }
 0x327   : > { %v3635_v6 = vadd.f32 %v3634_v25, %v6790_v16  ;;  %3768 = vxpose.xlu1.b32.cont [14/16] %v3631_v34, 128 }
 0x328   : > { %v3636_v61 = vpop.f32.mrf.mxu0 }
 0x329   : > { %v3637_v51 = vadd.f32 %v3636_v61, %v6794_v38  ;;  %3737 = vxpose.xlu0.b32.cont [15/16] %v3635_v6, 128 }
 0x32a   : > { %v3638_v57 = vpop.f32.mrf.mxu0 }
 0x32b   : > { %v3639_v39 = vadd.f32 %v3638_v57, %v6790_v16  ;;  %3769 = vxpose.xlu1.b32.cont [15/16] %v3637_v51, 128 }
 0x32c   : > { %v3640_v42 = vpop.f32.mrf.mxu0 }
 0x32d   : > { %v3641_v28 = vadd.f32 %v3640_v42, %v6794_v38  ;;  %3738 = vxpose.xlu0.b32.end [16/16] %v3639_v39, 128 }
 0x32e   : > { %v3644_v35 = vpop.f32.mrf.mxu0 }
 0x32f   : > { %v3645_v9 = vadd.f32 %v3644_v35, %v6790_v16  ;;  %3770 = vxpose.xlu1.b32.end [16/16] %v3641_v28, 128 }
 0x330   : > { %v3646_v1 = vpop.f32.mrf.mxu0 }
 0x331   : > { %v3647_v37 = vadd.f32 %v3646_v1, %v6794_v38  ;;  %3787 = vxpose.xlu0.b32.start [1/16] %v3645_v9, 128 }
 0x332   : > { %v3648_v0 = vpop.f32.mrf.mxu0 }
 0x333   : > { %v3649_v4 = vadd.f32 %v3648_v0, %v6790_v16  ;;  %3819 = vxpose.xlu1.b32.start [1/16] %v3647_v37, 128 }
 0x334   : > { %v3650_v40 = vpop.f32.mrf.mxu0 }
 0x335   : > { %v3651_v52 = vadd.f32 %v3650_v40, %v6794_v38  ;;  %3788 = vxpose.xlu0.b32.cont [2/16] %v3649_v4, 128 }
 0x336   : > { %v3654_v43 = vpop.f32.mrf.mxu0 }
 0x337   : > { %v3655_v22 = vadd.f32 %v3654_v43, %v6790_v16  ;;  %3820 = vxpose.xlu1.b32.cont [2/16] %v3651_v52, 128 }
 0x338   : > { %v3656_v32 = vpop.f32.mrf.mxu0 }
 0x339   : > { %v3657_v29 = vadd.f32 %v3656_v32, %v6794_v38  ;;  %3789 = vxpose.xlu0.b32.cont [3/16] %v3655_v22, 128 }
 0x33a   : > { %v3658_v59 = vpop.f32.mrf.mxu0 }
 0x33b   : > { %v3659_v19 = vadd.f32 %v3658_v59, %v6790_v16  ;;  %3821 = vxpose.xlu1.b32.cont [3/16] %v3657_v29, 128 }
 0x33c   : > { %v3660_v60 = vpop.f32.mrf.mxu0 }
 0x33d   : > { %v3661_v56 = vadd.f32 %v3660_v60, %v6794_v38  ;;  %3790 = vxpose.xlu0.b32.cont [4/16] %v3659_v19, 128 }
 0x33e   : > { %v3664_v50 = vpop.f32.mrf.mxu0 }
 0x33f   : > { %v3665_v33 = vadd.f32 %v3664_v50, %v6790_v16  ;;  %3822 = vxpose.xlu1.b32.cont [4/16] %v3661_v56, 128 }
 0x340   : > { %v3666_v47 = vpop.f32.mrf.mxu0 }
 0x341   : > { %v3667_v8 = vadd.f32 %v3666_v47, %v6794_v38  ;;  %3791 = vxpose.xlu0.b32.cont [5/16] %v3665_v33, 128 }
 0x342   : > { %v3668_v13 = vpop.f32.mrf.mxu0 }
 0x343   : > { %v3669_v15 = vadd.f32 %v3668_v13, %v6790_v16  ;;  %3823 = vxpose.xlu1.b32.cont [5/16] %v3667_v8, 128 }
 0x344   : > { %v3670_v3 = vpop.f32.mrf.mxu0 }
 0x345   : > { %v3671_v62 = vadd.f32 %v3670_v3, %v6794_v38  ;;  %3792 = vxpose.xlu0.b32.cont [6/16] %v3669_v15, 128 }
 0x346   : > { %v3674_v11 = vpop.f32.mrf.mxu0 }
 0x347   : > { %v3675_v63 = vadd.f32 %v3674_v11, %v6790_v16  ;;  %3824 = vxpose.xlu1.b32.cont [6/16] %v3671_v62, 128 }
 0x348   : > { %v3676_v23 = vpop.f32.mrf.mxu0 }
 0x349   : > { %v3677_v46 = vadd.f32 %v3676_v23, %v6794_v38  ;;  %3793 = vxpose.xlu0.b32.cont [7/16] %v3675_v63, 128 }
 0x34a   : > { %v3678_v44 = vpop.f32.mrf.mxu0 }
 0x34b   : > { %v3679_v5 = vadd.f32 %v3678_v44, %v6790_v16  ;;  %3825 = vxpose.xlu1.b32.cont [7/16] %v3677_v46, 128 }
 0x34c   : > { %v3680_v31 = vpop.f32.mrf.mxu0 }
 0x34d   : > { %v3681_v54 = vadd.f32 %v3680_v31, %v6794_v38  ;;  %3794 = vxpose.xlu0.b32.cont [8/16] %v3679_v5, 128 }
 0x34e   : > { %v3684_v55 = vpop.f32.mrf.mxu0 }
 0x34f   : > { %v3685_v49 = vadd.f32 %v3684_v55, %v6790_v16  ;;  %3826 = vxpose.xlu1.b32.cont [8/16] %v3681_v54, 128 }
 0x350   : > { %v3686_v30 = vpop.f32.mrf.mxu0 }
 0x351   : > { %v3687_v24 = vadd.f32 %v3686_v30, %v6794_v38  ;;  %3795 = vxpose.xlu0.b32.cont [9/16] %v3685_v49, 128 }
 0x352   : > { %v3688_v7 = vpop.f32.mrf.mxu0 }
 0x353   : > { %v3689_v2 = vadd.f32 %v3688_v7, %v6790_v16  ;;  %3827 = vxpose.xlu1.b32.cont [9/16] %v3687_v24, 128 }
 0x354   : > { %v3690_v27 = vpop.f32.mrf.mxu0 }
 0x355   : > { %v3691_v45 = vadd.f32 %v3690_v27, %v6794_v38  ;;  %3796 = vxpose.xlu0.b32.cont [10/16] %v3689_v2, 128 }
 0x356   : > { %v3694_v36 = vpop.f32.mrf.mxu0 }
 0x357   : > { %v3695_v21 = vadd.f32 %v3694_v36, %v6790_v16  ;;  %3828 = vxpose.xlu1.b32.cont [10/16] %v3691_v45, 128 }
 0x358   : > { %v3696_v10 = vpop.f32.mrf.mxu0 }
 0x359   : > { %v3697_v17 = vadd.f32 %v3696_v10, %v6794_v38  ;;  %3797 = vxpose.xlu0.b32.cont [11/16] %v3695_v21, 128 }
 0x35a   : > { %v3698_v53 = vpop.f32.mrf.mxu0 }
 0x35b   : > { %v3699_v18 = vadd.f32 %v3698_v53, %v6790_v16  ;;  %3829 = vxpose.xlu1.b32.cont [11/16] %v3697_v17, 128 }
 0x35c   : > { %v3700_v26 = vpop.f32.mrf.mxu0 }
 0x35d   : > { %v3701_v20 = vadd.f32 %v3700_v26, %v6794_v38  ;;  %3798 = vxpose.xlu0.b32.cont [12/16] %v3699_v18, 128 }
 0x35e   : > { %v3704_v41 = vpop.f32.mrf.mxu0 }
 0x35f   : > { %v3705_v48 = vadd.f32 %v3704_v41, %v6790_v16  ;;  %3830 = vxpose.xlu1.b32.cont [12/16] %v3701_v20, 128 }
 0x360   : > { %v3706_v14 = vpop.f32.mrf.mxu0 }
 0x361   : > { %v3707_v12 = vadd.f32 %v3706_v14, %v6794_v38  ;;  %3799 = vxpose.xlu0.b32.cont [13/16] %v3705_v48, 128 }
 0x362   : > { %v3708_v58 = vpop.f32.mrf.mxu0 }
 0x363   : > { %v3709_v34 = vadd.f32 %v3708_v58, %v6790_v16  ;;  %3831 = vxpose.xlu1.b32.cont [13/16] %v3707_v12, 128 }
 0x364   : > { %v3710_v25 = vpop.f32.mrf.mxu0 }
 0x365   : > { %v3711_v6 = vadd.f32 %v3710_v25, %v6794_v38  ;;  %3800 = vxpose.xlu0.b32.cont [14/16] %v3709_v34, 128 }
 0x366   : > { %v3714_v61 = vpop.f32.mrf.mxu0 }
 0x367   : > { %v3715_v51 = vadd.f32 %v3714_v61, %v6790_v16  ;;  %3832 = vxpose.xlu1.b32.cont [14/16] %v3711_v6, 128 }
 0x368   : > { %v3716_v57 = vpop.f32.mrf.mxu0 }
 0x369   : > { %v3717_v39 = vadd.f32 %v3716_v57, %v6794_v38  ;;  %3801 = vxpose.xlu0.b32.cont [15/16] %v3715_v51, 128 }
 0x36a   : > { %v3718_v42 = vpop.f32.mrf.mxu0 }
 0x36b   : > { %v3719_v28 = vadd.f32 %v3718_v42, %v6790_v16  ;;  %3833 = vxpose.xlu1.b32.cont [15/16] %v3717_v39, 128 }
 0x36c   : > { %v3720_v35 = vpop.f32.mrf.mxu0 }
 0x36d   : > { %v3721_v9 = vadd.f32 %v3720_v35, %v6794_v38  ;;  %3802 = vxpose.xlu0.b32.end [16/16] %v3719_v28, 128  ;;  %v3739_v1 = vpop.trf.xlu0 }
 0x36e   : > { %3851 = vst [vmem:[%s6863_s21] sm:$0xff] %v3739_v1 }
 0x36f   : > { %3834 = vxpose.xlu1.b32.end [16/16] %v3721_v9, 128  ;;  %v3771_v16 = vpop.trf.xlu1 }
 0x370   : > { %3883 = vst [vmem:[%s6863_s21 + $0x100] sm:$0xff] %v3771_v16 }
 0x371   : > { %v3740_v37 = vpop.trf.xlu0 }
 0x372   : > { %3853 = vst [vmem:[%s6863_s21 + $0x10] sm:$0xff] %v3740_v37 }
 0x373   : > { %v3772_v0 = vpop.trf.xlu1 }
 0x374   : > { %3885 = vst [vmem:[%s6863_s21 + $0x110] sm:$0xff] %v3772_v0 }
 0x375   : > { %v3741_v4 = vpop.trf.xlu0 }
 0x376   : > { %3855 = vst [vmem:[%s6863_s21 + $0x20] sm:$0xff] %v3741_v4 }
 0x377   : > { %v3773_v38 = vpop.trf.xlu1 }
 0x378   : > { %3887 = vst [vmem:[%s6863_s21 + $0x120] sm:$0xff] %v3773_v38 }
 0x379   : > { %v3742_v40 = vpop.trf.xlu0 }
 0x37a   : > { %3857 = vst [vmem:[%s6863_s21 + $0x30] sm:$0xff] %v3742_v40 }
 0x37b   : > { %v3774_v52 = vpop.trf.xlu1 }
 0x37c   : > { %3889 = vst [vmem:[%s6863_s21 + $0x130] sm:$0xff] %v3774_v52 }
 0x37d   : > { %v3743_v43 = vpop.trf.xlu0 }
 0x37e   : > { %3859 = vst [vmem:[%s6863_s21 + $0x40] sm:$0xff] %v3743_v43 }
 0x37f   : > { %v3775_v22 = vpop.trf.xlu1 }
 0x380   : > { %3891 = vst [vmem:[%s6863_s21 + $0x140] sm:$0xff] %v3775_v22 }
 0x381   : > { %v3744_v32 = vpop.trf.xlu0 }
 0x382   : > { %3861 = vst [vmem:[%s6863_s21 + $0x50] sm:$0xff] %v3744_v32 }
 0x383   : > { %v3776_v29 = vpop.trf.xlu1 }
 0x384   : > { %3893 = vst [vmem:[%s6863_s21 + $0x150] sm:$0xff] %v3776_v29 }
 0x385   : > { %v3745_v59 = vpop.trf.xlu0 }
 0x386   : > { %3863 = vst [vmem:[%s6863_s21 + $0x60] sm:$0xff] %v3745_v59 }
 0x387   : > { %v3777_v19 = vpop.trf.xlu1 }
 0x388   : > { %3895 = vst [vmem:[%s6863_s21 + $0x160] sm:$0xff] %v3777_v19 }
 0x389   : > { %v3746_v60 = vpop.trf.xlu0 }
 0x38a   : > { %3865 = vst [vmem:[%s6863_s21 + $0x70] sm:$0xff] %v3746_v60 }
 0x38b   : > { %v3778_v56 = vpop.trf.xlu1 }
 0x38c   : > { %3897 = vst [vmem:[%s6863_s21 + $0x170] sm:$0xff] %v3778_v56 }
 0x38d   : > { %v3747_v50 = vpop.trf.xlu0 }
 0x38e   : > { %3867 = vst [vmem:[%s6863_s21 + $0x80] sm:$0xff] %v3747_v50 }
 0x38f   : > { %v3779_v33 = vpop.trf.xlu1 }
 0x390   : > { %3899 = vst [vmem:[%s6863_s21 + $0x180] sm:$0xff] %v3779_v33 }
 0x391   : > { %v3748_v47 = vpop.trf.xlu0 }
 0x392   : > { %3869 = vst [vmem:[%s6863_s21 + $0x90] sm:$0xff] %v3748_v47 }
 0x393   : > { %v3780_v8 = vpop.trf.xlu1 }
 0x394   : > { %3901 = vst [vmem:[%s6863_s21 + $0x190] sm:$0xff] %v3780_v8 }
 0x395   : > { %v3749_v13 = vpop.trf.xlu0 }
 0x396   : > { %3871 = vst [vmem:[%s6863_s21 + $0xa0] sm:$0xff] %v3749_v13 }
 0x397   : > { %v3781_v15 = vpop.trf.xlu1 }
 0x398   : > { %3903 = vst [vmem:[%s6863_s21 + $0x1a0] sm:$0xff] %v3781_v15 }
 0x399   : > { %v3750_v3 = vpop.trf.xlu0 }
 0x39a   : > { %3873 = vst [vmem:[%s6863_s21 + $0xb0] sm:$0xff] %v3750_v3 }
 0x39b   : > { %v3782_v62 = vpop.trf.xlu1 }
 0x39c   : > { %3905 = vst [vmem:[%s6863_s21 + $0x1b0] sm:$0xff] %v3782_v62 }
 0x39d   : > { %v3751_v11 = vpop.trf.xlu0 }
 0x39e   : > { %3875 = vst [vmem:[%s6863_s21 + $0xc0] sm:$0xff] %v3751_v11 }
 0x39f   : > { %v3783_v63 = vpop.trf.xlu1 }
 0x3a0   : > { %3907 = vst [vmem:[%s6863_s21 + $0x1c0] sm:$0xff] %v3783_v63 }
 0x3a1   : > { %v3752_v23 = vpop.trf.xlu0 }
 0x3a2   : > { %3877 = vst [vmem:[%s6863_s21 + $0xd0] sm:$0xff] %v3752_v23 }
 0x3a3   : > { %v3784_v46 = vpop.trf.xlu1 }
 0x3a4   : > { %3909 = vst [vmem:[%s6863_s21 + $0x1d0] sm:$0xff] %v3784_v46 }
 0x3a5   : > { %v3753_v44 = vpop.trf.xlu0 }
 0x3a6   : > { %3879 = vst [vmem:[%s6863_s21 + $0xe0] sm:$0xff] %v3753_v44 }
 0x3a7   : > { %v3785_v5 = vpop.trf.xlu1 }
 0x3a8   : > { %3911 = vst [vmem:[%s6863_s21 + $0x1e0] sm:$0xff] %v3785_v5 }
 0x3a9   : > { %v3754_v31 = vpop.trf.xlu0 }
 0x3aa   : > { %3881 = vst [vmem:[%s6863_s21 + $0xf0] sm:$0xff] %v3754_v31 }
 0x3ab   : > { %v3786_v54 = vpop.trf.xlu1 }
 0x3ac   : > { %3913 = vst [vmem:[%s6863_s21 + $0x1f0] sm:$0xff] %v3786_v54 }
 0x3ad   : > { %v3803_v55 = vpop.trf.xlu0 }
 0x3ae   : > { %3852 = vst [vmem:[%s6863_s21 + $0x8] sm:$0xff] %v3803_v55 }
 0x3af   : > { %v3835_v49 = vpop.trf.xlu1 }
 0x3b0   : > { %3884 = vst [vmem:[%s6863_s21 + $0x108] sm:$0xff] %v3835_v49 }
 0x3b1   : > { %v3804_v30 = vpop.trf.xlu0 }
 0x3b2   : > { %3854 = vst [vmem:[%s6863_s21 + $0x18] sm:$0xff] %v3804_v30 }
 0x3b3   : > { %v3836_v24 = vpop.trf.xlu1 }
 0x3b4   : > { %3886 = vst [vmem:[%s6863_s21 + $0x118] sm:$0xff] %v3836_v24 }
 0x3b5   : > { %v3805_v7 = vpop.trf.xlu0 }
 0x3b6   : > { %3856 = vst [vmem:[%s6863_s21 + $0x28] sm:$0xff] %v3805_v7 }
 0x3b7   : > { %v3837_v2 = vpop.trf.xlu1 }
 0x3b8   : > { %3888 = vst [vmem:[%s6863_s21 + $0x128] sm:$0xff] %v3837_v2 }
 0x3b9   : > { %v3806_v27 = vpop.trf.xlu0 }
 0x3ba   : > { %3858 = vst [vmem:[%s6863_s21 + $0x38] sm:$0xff] %v3806_v27 }
 0x3bb   : > { %v3838_v45 = vpop.trf.xlu1 }
 0x3bc   : > { %3890 = vst [vmem:[%s6863_s21 + $0x138] sm:$0xff] %v3838_v45 }
 0x3bd   : > { %v3807_v36 = vpop.trf.xlu0 }
 0x3be   : > { %3860 = vst [vmem:[%s6863_s21 + $0x48] sm:$0xff] %v3807_v36 }
 0x3bf   : > { %v3839_v21 = vpop.trf.xlu1 }
 0x3c0   : > { %3892 = vst [vmem:[%s6863_s21 + $0x148] sm:$0xff] %v3839_v21 }
 0x3c1   : > { %v3808_v10 = vpop.trf.xlu0 }
 0x3c2   : > { %3862 = vst [vmem:[%s6863_s21 + $0x58] sm:$0xff] %v3808_v10 }
 0x3c3   : > { %v3840_v17 = vpop.trf.xlu1 }
 0x3c4   : > { %3894 = vst [vmem:[%s6863_s21 + $0x158] sm:$0xff] %v3840_v17 }
 0x3c5   : > { %v3809_v53 = vpop.trf.xlu0 }
 0x3c6   : > { %3864 = vst [vmem:[%s6863_s21 + $0x68] sm:$0xff] %v3809_v53 }
 0x3c7   : > { %v3841_v18 = vpop.trf.xlu1 }
 0x3c8   : > { %3896 = vst [vmem:[%s6863_s21 + $0x168] sm:$0xff] %v3841_v18 }
 0x3c9   : > { %v3810_v26 = vpop.trf.xlu0 }
 0x3ca   : > { %3866 = vst [vmem:[%s6863_s21 + $0x78] sm:$0xff] %v3810_v26 }
 0x3cb   : > { %v3842_v20 = vpop.trf.xlu1 }
 0x3cc   : > { %3898 = vst [vmem:[%s6863_s21 + $0x178] sm:$0xff] %v3842_v20 }
 0x3cd   : > { %v3811_v41 = vpop.trf.xlu0 }
 0x3ce   : > { %3868 = vst [vmem:[%s6863_s21 + $0x88] sm:$0xff] %v3811_v41 }
 0x3cf   : > { %v3843_v48 = vpop.trf.xlu1 }
 0x3d0   : > { %3900 = vst [vmem:[%s6863_s21 + $0x188] sm:$0xff] %v3843_v48 }
 0x3d1   : > { %v3812_v14 = vpop.trf.xlu0 }
 0x3d2   : > { %3870 = vst [vmem:[%s6863_s21 + $0x98] sm:$0xff] %v3812_v14 }
 0x3d3   : > { %v3844_v12 = vpop.trf.xlu1 }
 0x3d4   : > { %3902 = vst [vmem:[%s6863_s21 + $0x198] sm:$0xff] %v3844_v12 }
 0x3d5   : > { %v3813_v58 = vpop.trf.xlu0 }
 0x3d6   : > { %3872 = vst [vmem:[%s6863_s21 + $0xa8] sm:$0xff] %v3813_v58 }
 0x3d7   : > { %v3845_v34 = vpop.trf.xlu1 }
 0x3d8   : > { %3904 = vst [vmem:[%s6863_s21 + $0x1a8] sm:$0xff] %v3845_v34 }
 0x3d9   : > { %v3814_v25 = vpop.trf.xlu0 }
 0x3da   : > { %3874 = vst [vmem:[%s6863_s21 + $0xb8] sm:$0xff] %v3814_v25 }
 0x3db   : > { %v3846_v6 = vpop.trf.xlu1 }
 0x3dc   : > { %3906 = vst [vmem:[%s6863_s21 + $0x1b8] sm:$0xff] %v3846_v6 }
 0x3dd   : > { %v3815_v61 = vpop.trf.xlu0 }
 0x3de   : > { %3876 = vst [vmem:[%s6863_s21 + $0xc8] sm:$0xff] %v3815_v61 }
 0x3df   : > { %v3847_v51 = vpop.trf.xlu1 }
 0x3e0   : > { %3908 = vst [vmem:[%s6863_s21 + $0x1c8] sm:$0xff] %v3847_v51 }
 0x3e1   : > { %v3816_v57 = vpop.trf.xlu0 }
 0x3e2   : > { %3878 = vst [vmem:[%s6863_s21 + $0xd8] sm:$0xff] %v3816_v57 }
 0x3e3   : > { %v3848_v39 = vpop.trf.xlu1 }
 0x3e4   : > { %3910 = vst [vmem:[%s6863_s21 + $0x1d8] sm:$0xff] %v3848_v39 }
 0x3e5   : > { %v3817_v42 = vpop.trf.xlu0 }
 0x3e6   : > { %3880 = vst [vmem:[%s6863_s21 + $0xe8] sm:$0xff] %v3817_v42 }
 0x3e7   : > { %v3849_v28 = vpop.trf.xlu1 }
 0x3e8   : > { %3912 = vst [vmem:[%s6863_s21 + $0x1e8] sm:$0xff] %v3849_v28 }
 0x3e9   : > { %v3818_v35 = vpop.trf.xlu0 }
 0x3ea   : > { %3882 = vst [vmem:[%s6863_s21 + $0xf8] sm:$0xff] %v3818_v35 }
 0x3eb   : > { %v3850_v9 = vpop.trf.xlu1 }
 0x3ec   : > { %3914 = vst [vmem:[%s6863_s21 + $0x1f8] sm:$0xff] %v3850_v9 }
 0x3ed PF: > { %s18_s28 = sadd.s32 1, %s5128_s28   ;;  %s7146_s24 = smov %s5116_s25 }
 0x3ee   : > { %p15_p10 = scmp.ge.s32.totalorder %s18_s28, 4   ;;  %s7147_s25 = smov %s5209_s10 }
 0x3ef   : > { %s7148_s26 = smov %s5124_s27  ;;  %s7149_s27 = smov %s7151_s29 }
 0x3f0   :  { %17 = sbr.rel (!%p15_p10) target bundleno = 3 (0x3), region = 146 }

</bundles_post_ra>
